<compile_context>
chip_gen: v5e
topology: v5e:2x2
jax: 0.10.0
libtpu: 0.0.40
codegen_flags: <defaults>
</compile_context>

<pallas_src>
import math

import numpy as np
import jax
import jax.numpy as jnp
from jax.experimental import pallas as pl
from jax.experimental.pallas import tpu as pltpu

# -----------------------------------------------------------------------------
# Model hyper-parameters (small, consistent with the module's forward)
# -----------------------------------------------------------------------------
B = 2          # batch
T_SRC = 8      # src sequence length
T_TGT = 8      # tgt sequence length
T_MAX = max(T_SRC, T_TGT)
D_MODEL = 32   # model width
N_HEADS = 4    # attention heads
D_HEAD = D_MODEL // N_HEADS
D_FF = 64      # feed-forward width
N_LAYERS = 2   # encoder / decoder depth
VOCAB = 16     # shared toy vocab size
LN_EPS = 1e-6
NEG_INF = -1e9

# -----------------------------------------------------------------------------
# Packed-buffer layout (row offsets, all multiples of 8 sublanes; shared
# column width = 3*D so every matrix is a prefix column slice at lane 0)
# -----------------------------------------------------------------------------
W_COLS = 3 * D_MODEL                      # 96

# encoder weight rows per layer
EW_QKV = 0                                # (D, 3D)
EW_WO = D_MODEL                           # (D, D)
EW_W1 = 2 * D_MODEL                       # (D, DF)
EW_W2 = 3 * D_MODEL                       # (DF, D)
EW_ROWS = 3 * D_MODEL + D_FF              # 160

# decoder weight rows per layer
DW_QKV_S = 0                              # (D, 3D)  self-attn fused QKV
DW_WO_S = D_MODEL                         # (D, D)
DW_Q_C = 2 * D_MODEL                      # (D, D)   cross-attn Wq (pre-split)
DW_KV_C = 3 * D_MODEL                     # (D, 2D)  cross-attn Wkv (pre-split)
DW_WO_C = 4 * D_MODEL                     # (D, D)
DW_W1 = 5 * D_MODEL                       # (D, DF)
DW_W2 = 6 * D_MODEL                       # (DF, D)
DW_ROWS = 6 * D_MODEL + D_FF              # 256

# vector pack: encoder 8 rows/layer, decoder 16 rows/layer; layer index
# N_LAYERS holds the stack's final LayerNorm (gamma row 0, beta row 1).
EV_ROWS = 8
DV_ROWS = 16

N_EMB_ROWS = 2 * VOCAB + T_MAX            # [src_emb | tgt_emb | pe]


# -----------------------------------------------------------------------------
# In-kernel helpers (operate on jnp values loaded from VMEM refs)
# -----------------------------------------------------------------------------
def _layer_norm(x2, g1, b1):
    """Annotated-Transformer LayerNorm: a*(x-mean)/(std+eps)+b, unbiased std."""
    d = x2.shape[-1]
    mean = jnp.mean(x2, axis=-1, keepdims=True)
    diff = x2 - mean
    var = jnp.sum(diff * diff, axis=-1, keepdims=True) * (1.0 / (d - 1))
    std = jnp.sqrt(var)
    return g1 * diff / (std + LN_EPS) + b1


def _ffn(x2, w1, b1, w2, b2):
    h = jnp.maximum(jnp.dot(x2, w1, preferred_element_type=jnp.float32) + b1, 0.0)
    return jnp.dot(h, w2, preferred_element_type=jnp.float32) + b2


def _attn_core(q2, k2, v2, wo, bo, mask_add, bb, tq, tk):
    """Scores/softmax per head, then ONE fused output projection.

    mask_add is pre-broadcast to (bb, tq, tk) at kernel top (hoisted).
    TODO(synk): heads stay in a small Python loop (4 tiny einsums) because
    Mosaic dot_general supports only one leading batch dim and major-dim
    transposes are not lowerable; the output projection is already fused.
    """
    q3 = q2.reshape(bb, tq, D_MODEL)
    k3 = k2.reshape(bb, tk, D_MODEL)
    v3 = v2.reshape(bb, tk, D_MODEL)
    scale = 1.0 / math.sqrt(D_HEAD)
    heads = []
    for h in range(N_HEADS):
        lo = h * D_HEAD
        s = jnp.einsum("bqd,bkd->bqk",
                       q3[:, :, lo:lo + D_HEAD], k3[:, :, lo:lo + D_HEAD],
                       preferred_element_type=jnp.float32) * scale
        s = s + mask_add
        s = s - jnp.max(s, axis=-1, keepdims=True)
        p = jnp.exp(s)
        p = p / jnp.sum(p, axis=-1, keepdims=True)       # exact normalization
        heads.append(jnp.einsum("bqk,bkd->bqd", p, v3[:, :, lo:lo + D_HEAD],
                                preferred_element_type=jnp.float32))
    o2 = jnp.concatenate(heads, axis=-1).reshape(bb * tq, D_MODEL)
    return jnp.dot(o2, wo, preferred_element_type=jnp.float32) + bo


def _mha_self(x2, wqkv, bqkv, wo, bo, mask_add, bb, t):
    d = D_MODEL
    qkv = jnp.dot(x2, wqkv, preferred_element_type=jnp.float32) + bqkv
    return _attn_core(qkv[:, :d], qkv[:, d:2 * d], qkv[:, 2 * d:],
                      wo, bo, mask_add, bb, t, t)


def _mha_cross(xq2, xkv2, wq, bq, wkv, bkv, wo, bo, mask_add, bb, tq, tk):
    d = D_MODEL
    q2 = jnp.dot(xq2, wq, preferred_element_type=jnp.float32) + bq
    kv = jnp.dot(xkv2, wkv, preferred_element_type=jnp.float32) + bkv
    return _attn_core(q2, kv[:, :d], kv[:, d:], wo, bo, mask_add, bb, tq, tk)


# -----------------------------------------------------------------------------
# The fused encoder-decoder kernel (single pallas_call, everything in VMEM)
# -----------------------------------------------------------------------------
def _encdec_kernel(
    src_ids_ref, tgt_ids_ref,            # SMEM int32 token ids
    src_mask_ref, tgt_mask_ref,          # VMEM int32 masks
    emb_ref,                             # (2V+T, 1, D) packed emb tables + PE
    enc_w_ref, enc_v_ref,                # packed encoder matrices / vectors
    dec_w_ref, dec_v_ref,                # packed decoder matrices / vectors
    o_ref,                               # (B, T_TGT, D) output
    src_x, tgt_x,                        # VMEM scratch activations
):
    D, DF = D_MODEL, D_FF
    emb_scale = math.sqrt(D_MODEL)

    # ---- embeddings * sqrt(D) + positional encoding, fused in-kernel --------
    for i in range(B * T_SRC):
        tok = src_ids_ref[i // T_SRC, i % T_SRC]
        src_x[pl.ds(i, 1), :] = (emb_ref[tok] * emb_scale
                                 + emb_ref[2 * VOCAB + i % T_SRC])
    for i in range(B * T_TGT):
        tok = tgt_ids_ref[i // T_TGT, i % T_TGT] + VOCAB
        tgt_x[pl.ds(i, 1), :] = (emb_ref[tok] * emb_scale
                                 + emb_ref[2 * VOCAB + i % T_TGT])

    # ---- additive masks: built once, pre-broadcast (hoisted) ----------------
    neg = jnp.float32(NEG_INF)
    zero = jnp.float32(0.0)
    src_add = jnp.where(src_mask_ref[...] != 0, zero, neg)          # (B,1,Ts)
    enc_mask = jnp.broadcast_to(src_add, (B, T_SRC, T_SRC))
    crs_mask = (enc_mask if T_TGT == T_SRC
                else jnp.broadcast_to(src_add, (B, T_TGT, T_SRC)))
    slf_mask = jnp.where(tgt_mask_ref[...] != 0, zero, neg)         # (B,Tt,Tt)

    # ----------------------------- encoder -----------------------------------
    x = src_x[...]                                                  # (B*Ts, D)
    for l in range(N_LAYERS):
        wqkv = enc_w_ref[l, EW_QKV:EW_QKV + D, :]
        wo = enc_w_ref[l, EW_WO:EW_WO + D, :D]
        w1 = enc_w_ref[l, EW_W1:EW_W1 + D, :DF]
        w2 = enc_w_ref[l, EW_W2:EW_W2 + DF, :D]
        V = enc_v_ref[l]                                            # (8, 96)
        g0, b0 = V[0:1, :D], V[1:2, :D]
        g1, b1 = V[2:3, :D], V[3:4, :D]
        bqkv, bo = V[4:5, :], V[5:6, :D]
        fb1, fb2 = V[6:7, :DF], V[7:8, :D]

        y = _layer_norm(x, g0, b0)
        x = x + _mha_self(y, wqkv, bqkv, wo, bo, enc_mask, B, T_SRC)
        y = _layer_norm(x, g1, b1)
        x = x + _ffn(y, w1, fb1, w2, fb2)
    memory = _layer_norm(x, enc_v_ref[N_LAYERS, 0:1, :D],
                         enc_v_ref[N_LAYERS, 1:2, :D])              # (B*Ts, D)

    # ----------------------------- decoder -----------------------------------
    x = tgt_x[...]                                                  # (B*Tt, D)
    for l in range(N_LAYERS):
        wqkv_s = dec_w_ref[l, DW_QKV_S:DW_QKV_S + D, :]
        wo_s = dec_w_ref[l, DW_WO_S:DW_WO_S + D, :D]
        wq_c = dec_w_ref[l, DW_Q_C:DW_Q_C + D, :D]
        wkv_c = dec_w_ref[l, DW_KV_C:DW_KV_C + D, :2 * D]
        wo_c = dec_w_ref[l, DW_WO_C:DW_WO_C + D, :D]
        w1 = dec_w_ref[l, DW_W1:DW_W1 + D, :DF]
        w2 = dec_w_ref[l, DW_W2:DW_W2 + DF, :D]
        V = dec_v_ref[l]                                            # (16, 96)
        g0, b0 = V[0:1, :D], V[1:2, :D]
        g1, b1 = V[2:3, :D], V[3:4, :D]
        g2, b2 = V[4:5, :D], V[5:6, :D]
        bqkv_s, bo_s = V[6:7, :], V[7:8, :D]
        bq_c, bkv_c, bo_c = V[8:9, :D], V[9:10, :2 * D], V[10:11, :D]
        fb1, fb2 = V[11:12, :DF], V[12:13, :D]

        # masked self-attention
        y = _layer_norm(x, g0, b0)
        x = x + _mha_self(y, wqkv_s, bqkv_s, wo_s, bo_s, slf_mask, B, T_TGT)
        # cross-attention over encoder memory
        y = _layer_norm(x, g1, b1)
        x = x + _mha_cross(y, memory, wq_c, bq_c, wkv_c, bkv_c, wo_c, bo_c,
                           crs_mask, B, T_TGT, T_SRC)
        # feed-forward
        y = _layer_norm(x, g2, b2)
        x = x + _ffn(y, w1, fb1, w2, fb2)

    out = _layer_norm(x, dec_v_ref[N_LAYERS, 0:1, :D],
                      dec_v_ref[N_LAYERS, 1:2, :D])
    o_ref[...] = out.reshape(B, T_TGT, D_MODEL)


# -----------------------------------------------------------------------------
# Host-side wrapper: ONE pallas_call, 9 operands, no host-side glue ops
# -----------------------------------------------------------------------------
def encoder_decoder_forward(params, src, tgt, src_mask, tgt_mask):
    # Matches EncoderDecoder.forward:
    #   decode(encode(src, src_mask), src_mask, tgt, tgt_mask)
    # (the generator is constructed but NOT applied in forward, per the module)
    smem = pl.BlockSpec(memory_space=pltpu.MemorySpace.SMEM)
    vmem = pl.BlockSpec(memory_space=pltpu.MemorySpace.VMEM)
    return pl.pallas_call(
        _encdec_kernel,
        in_specs=[smem, smem] + [vmem] * 7,
        out_specs=vmem,
        out_shape=jax.ShapeDtypeStruct((B, T_TGT, D_MODEL), jnp.float32),
        scratch_shapes=[pltpu.VMEM((B * T_SRC, D_MODEL), jnp.float32),
                        pltpu.VMEM((B * T_TGT, D_MODEL), jnp.float32)],
    )(src.astype(jnp.int32), tgt.astype(jnp.int32),
      src_mask.astype(jnp.int32), tgt_mask.astype(jnp.int32),
      params["emb"], params["enc_w"], params["enc_v"],
      params["dec_w"], params["dec_v"])


# -----------------------------------------------------------------------------
# Deterministic parameter initialization, pre-packed host-side (numpy)
# -----------------------------------------------------------------------------
def init_packed_params(seed=0):
    rng = np.random.default_rng(seed)
    L, D, DF = N_LAYERS, D_MODEL, D_FF

    def nrm(shape, scale=0.1):
        return (rng.standard_normal(shape) * scale).astype(np.float32)

    enc_w = np.zeros((L, EW_ROWS, W_COLS), np.float32)
    enc_v = np.zeros((L + 1, EV_ROWS, W_COLS), np.float32)
    for l in range(L):
        enc_w[l, EW_QKV:EW_QKV + D, :3 * D] = nrm((D, 3 * D))
        enc_w[l, EW_WO:EW_WO + D, :D] = nrm((D, D))
        enc_w[l, EW_W1:EW_W1 + D, :DF] = nrm((D, DF))
        enc_w[l, EW_W2:EW_W2 + DF, :D] = nrm((DF, D))
        enc_v[l, 0, :D] = 1.0                       # ln gamma (sublayer 0)
        enc_v[l, 2, :D] = 1.0                       # ln gamma (sublayer 1)
        enc_v[l, 4, :3 * D] = nrm((3 * D,), 0.02)   # bqkv
        enc_v[l, 5, :D] = nrm((D,), 0.02)           # bo
        enc_v[l, 6, :DF] = nrm((DF,), 0.02)         # b1
        enc_v[l, 7, :D] = nrm((D,), 0.02)           # b2
    enc_v[L, 0, :D] = 1.0                           # encoder final LN gamma

    dec_w = np.zeros((L, DW_ROWS, W_COLS), np.float32)
    dec_v = np.zeros((L + 1, DV_ROWS, W_COLS), np.float32)
    for l in range(L):
        dec_w[l, DW_QKV_S:DW_QKV_S + D, :3 * D] = nrm((D, 3 * D))
        dec_w[l, DW_WO_S:DW_WO_S + D, :D] = nrm((D, D))
        dec_w[l, DW_Q_C:DW_Q_C + D, :D] = nrm((D, D))
        dec_w[l, DW_KV_C:DW_KV_C + D, :2 * D] = nrm((D, 2 * D))
        dec_w[l, DW_WO_C:DW_WO_C + D, :D] = nrm((D, D))
        dec_w[l, DW_W1:DW_W1 + D, :DF] = nrm((D, DF))
        dec_w[l, DW_W2:DW_W2 + DF, :D] = nrm((DF, D))
        dec_v[l, 0, :D] = 1.0                       # ln gammas (3 sublayers)
        dec_v[l, 2, :D] = 1.0
        dec_v[l, 4, :D] = 1.0
        dec_v[l, 6, :3 * D] = nrm((3 * D,), 0.02)   # bqkv (self)
        dec_v[l, 7, :D] = nrm((D,), 0.02)           # bo (self)
        dec_v[l, 8, :D] = nrm((D,), 0.02)           # bq (cross)
        dec_v[l, 9, :2 * D] = nrm((2 * D,), 0.02)   # bkv (cross)
        dec_v[l, 10, :D] = nrm((D,), 0.02)          # bo (cross)
        dec_v[l, 11, :DF] = nrm((DF,), 0.02)        # b1
        dec_v[l, 12, :D] = nrm((D,), 0.02)          # b2
    dec_v[L, 0, :D] = 1.0                           # decoder final LN gamma

    # packed [src_emb | tgt_emb | sinusoidal PE], leading dim = gather axis
    emb = np.zeros((N_EMB_ROWS, 1, D), np.float32)
    emb[:VOCAB, 0, :] = nrm((VOCAB, D))
    emb[VOCAB:2 * VOCAB, 0, :] = nrm((VOCAB, D))
    pos = np.arange(T_MAX, dtype=np.float32)[:, None]
    div = np.exp(np.arange(0, D, 2, dtype=np.float32) * -(math.log(10000.0) / D))
    pe = np.zeros((T_MAX, D), np.float32)
    pe[:, 0::2] = np.sin(pos * div)
    pe[:, 1::2] = np.cos(pos * div)
    emb[2 * VOCAB:, 0, :] = pe

    gen_w = nrm((D, VOCAB))
    gen_b = np.zeros((VOCAB,), np.float32)

    return dict(
        emb=jnp.asarray(emb),
        enc_w=jnp.asarray(enc_w), enc_v=jnp.asarray(enc_v),
        dec_w=jnp.asarray(dec_w), dec_v=jnp.asarray(dec_v),
        # TODO(synk): generator exists in __init__ but forward() never applies it.
        generator=dict(w=jnp.asarray(gen_w), b=jnp.asarray(gen_b)),
    )


# -----------------------------------------------------------------------------
# Main
# -----------------------------------------------------------------------------
if __name__ == "__main__":
    key = jax.random.PRNGKey(0)
    k_src, k_tgt = jax.random.split(key)

    params = init_packed_params(seed=0)

    src = jax.random.randint(k_src, (B, T_SRC), 0, VOCAB, dtype=jnp.int32)
    tgt = jax.random.randint(k_tgt, (B, T_TGT), 0, VOCAB, dtype=jnp.int32)

    # src_mask: (B, 1, T_src) all valid; tgt_mask: (B, T_tgt, T_tgt) causal.
    src_mask = jnp.ones((B, 1, T_SRC), jnp.int32)
    tgt_mask = jnp.broadcast_to(
        jnp.tril(jnp.ones((T_TGT, T_TGT), jnp.int32))[None, :, :],
        (B, T_TGT, T_TGT))

    fwd = jax.jit(encoder_decoder_forward)
    out = jax.block_until_ready(fwd(params, src, tgt, src_mask, tgt_mask))

    assert out.shape == (B, T_TGT, D_MODEL), out.shape
    assert bool(jnp.all(jnp.isfinite(out)))
    print("KERNEL_OK")
</pallas_src>

<mosaic_0001>
module attributes {stable_mosaic.version = 11 : i64} {
  func.func @_encdec_kernel(%arg0: memref<2x8xi32, #tpu.memory_space<smem>>, %arg1: memref<2x8xi32, #tpu.memory_space<smem>>, %arg2: memref<2x1x8xi32, #tpu.memory_space<vmem>>, %arg3: memref<2x8x8xi32, #tpu.memory_space<vmem>>, %arg4: memref<40x1x32xf32, #tpu.memory_space<vmem>>, %arg5: memref<2x160x96xf32, #tpu.memory_space<vmem>>, %arg6: memref<3x8x96xf32, #tpu.memory_space<vmem>>, %arg7: memref<2x256x96xf32, #tpu.memory_space<vmem>>, %arg8: memref<3x16x96xf32, #tpu.memory_space<vmem>>, %arg9: memref<2x8x32xf32, #tpu.memory_space<vmem>>, %arg10: memref<16x32xf32, #tpu.memory_space<vmem>>, %arg11: memref<16x32xf32, #tpu.memory_space<vmem>>) attributes {dimension_semantics = [], scalar_prefetch = 0 : i64, scratch_operands = 2 : i64, tpu.core_type = #tpu.core_type<tc>} {
    %c0 = arith.constant 0 : index
    %c0_0 = arith.constant 0 : index
    %0 = memref.load %arg0[%c0, %c0_0] : memref<2x8xi32, #tpu.memory_space<smem>>
    %1 = arith.index_cast %0 : i32 to index
    %c0_1 = arith.constant 0 : index
    %c0_2 = arith.constant 0 : index
    %2 = vector.load %arg4[%1, %c0_1, %c0_2] : memref<40x1x32xf32, #tpu.memory_space<vmem>>, vector<1x1x32xf32>
    %3 = vector.shape_cast %2 : vector<1x1x32xf32> to vector<1x32xf32>
    %cst = arith.constant 5.65685415 : f32
    %4 = vector.broadcast %cst : f32 to vector<1x32xf32>
    %5 = arith.mulf %3, %4 : vector<1x32xf32>
    %c32 = arith.constant 32 : index
    %c0_3 = arith.constant 0 : index
    %c0_4 = arith.constant 0 : index
    %6 = vector.load %arg4[%c32, %c0_3, %c0_4] : memref<40x1x32xf32, #tpu.memory_space<vmem>>, vector<1x1x32xf32>
    %7 = vector.shape_cast %6 : vector<1x1x32xf32> to vector<1x32xf32>
    %8 = arith.addf %5, %7 : vector<1x32xf32>
    %c0_5 = arith.constant 0 : index
    %c0_6 = arith.constant 0 : index
    %9 = vector.load %arg10[%c0_5, %c0_6] : memref<16x32xf32, #tpu.memory_space<vmem>>, vector<1x32xf32>
    tpu.vector_store %arg10[%c0_5, %c0_6], %8 {strides = array<i32>} : memref<16x32xf32, #tpu.memory_space<vmem>>, vector<1x32xf32>,
    %c0_7 = arith.constant 0 : index
    %c1 = arith.constant 1 : index
    %10 = memref.load %arg0[%c0_7, %c1] : memref<2x8xi32, #tpu.memory_space<smem>>
    %11 = arith.index_cast %10 : i32 to index
    %c0_8 = arith.constant 0 : index
    %c0_9 = arith.constant 0 : index
    %12 = vector.load %arg4[%11, %c0_8, %c0_9] : memref<40x1x32xf32, #tpu.memory_space<vmem>>, vector<1x1x32xf32>
    %13 = vector.shape_cast %12 : vector<1x1x32xf32> to vector<1x32xf32>
    %cst_10 = arith.constant 5.65685415 : f32
    %14 = vector.broadcast %cst_10 : f32 to vector<1x32xf32>
    %15 = arith.mulf %13, %14 : vector<1x32xf32>
    %c33 = arith.constant 33 : index
    %c0_11 = arith.constant 0 : index
    %c0_12 = arith.constant 0 : index
    %16 = vector.load %arg4[%c33, %c0_11, %c0_12] : memref<40x1x32xf32, #tpu.memory_space<vmem>>, vector<1x1x32xf32>
    %17 = vector.shape_cast %16 : vector<1x1x32xf32> to vector<1x32xf32>
    %18 = arith.addf %15, %17 : vector<1x32xf32>
    %c1_13 = arith.constant 1 : index
    %c0_14 = arith.constant 0 : index
    %19 = vector.load %arg10[%c1_13, %c0_14] : memref<16x32xf32, #tpu.memory_space<vmem>>, vector<1x32xf32>
    tpu.vector_store %arg10[%c1_13, %c0_14], %18 {strides = array<i32>} : memref<16x32xf32, #tpu.memory_space<vmem>>, vector<1x32xf32>,
    %c0_15 = arith.constant 0 : index
    %c2 = arith.constant 2 : index
    %20 = memref.load %arg0[%c0_15, %c2] : memref<2x8xi32, #tpu.memory_space<smem>>
    %21 = arith.index_cast %20 : i32 to index
    %c0_16 = arith.constant 0 : index
    %c0_17 = arith.constant 0 : index
    %22 = vector.load %arg4[%21, %c0_16, %c0_17] : memref<40x1x32xf32, #tpu.memory_space<vmem>>, vector<1x1x32xf32>
    %23 = vector.shape_cast %22 : vector<1x1x32xf32> to vector<1x32xf32>
    %cst_18 = arith.constant 5.65685415 : f32
    %24 = vector.broadcast %cst_18 : f32 to vector<1x32xf32>
    %25 = arith.mulf %23, %24 : vector<1x32xf32>
    %c34 = arith.constant 34 : index
    %c0_19 = arith.constant 0 : index
    %c0_20 = arith.constant 0 : index
    %26 = vector.load %arg4[%c34, %c0_19, %c0_20] : memref<40x1x32xf32, #tpu.memory_space<vmem>>, vector<1x1x32xf32>
    %27 = vector.shape_cast %26 : vector<1x1x32xf32> to vector<1x32xf32>
    %28 = arith.addf %25, %27 : vector<1x32xf32>
    %c2_21 = arith.constant 2 : index
    %c0_22 = arith.constant 0 : index
    %29 = vector.load %arg10[%c2_21, %c0_22] : memref<16x32xf32, #tpu.memory_space<vmem>>, vector<1x32xf32>
    tpu.vector_store %arg10[%c2_21, %c0_22], %28 {strides = array<i32>} : memref<16x32xf32, #tpu.memory_space<vmem>>, vector<1x32xf32>,
    %c0_23 = arith.constant 0 : index
    %c3 = arith.constant 3 : index
    %30 = memref.load %arg0[%c0_23, %c3] : memref<2x8xi32, #tpu.memory_space<smem>>
    %31 = arith.index_cast %30 : i32 to index
    %c0_24 = arith.constant 0 : index
    %c0_25 = arith.constant 0 : index
    %32 = vector.load %arg4[%31, %c0_24, %c0_25] : memref<40x1x32xf32, #tpu.memory_space<vmem>>, vector<1x1x32xf32>
    %33 = vector.shape_cast %32 : vector<1x1x32xf32> to vector<1x32xf32>
    %cst_26 = arith.constant 5.65685415 : f32
    %34 = vector.broadcast %cst_26 : f32 to vector<1x32xf32>
    %35 = arith.mulf %33, %34 : vector<1x32xf32>
    %c35 = arith.constant 35 : index
    %c0_27 = arith.constant 0 : index
    %c0_28 = arith.constant 0 : index
    %36 = vector.load %arg4[%c35, %c0_27, %c0_28] : memref<40x1x32xf32, #tpu.memory_space<vmem>>, vector<1x1x32xf32>
    %37 = vector.shape_cast %36 : vector<1x1x32xf32> to vector<1x32xf32>
    %38 = arith.addf %35, %37 : vector<1x32xf32>
    %c3_29 = arith.constant 3 : index
    %c0_30 = arith.constant 0 : index
    %39 = vector.load %arg10[%c3_29, %c0_30] : memref<16x32xf32, #tpu.memory_space<vmem>>, vector<1x32xf32>
    tpu.vector_store %arg10[%c3_29, %c0_30], %38 {strides = array<i32>} : memref<16x32xf32, #tpu.memory_space<vmem>>, vector<1x32xf32>,
    %c0_31 = arith.constant 0 : index
    %c4 = arith.constant 4 : index
    %40 = memref.load %arg0[%c0_31, %c4] : memref<2x8xi32, #tpu.memory_space<smem>>
    %41 = arith.index_cast %40 : i32 to index
    %c0_32 = arith.constant 0 : index
    %c0_33 = arith.constant 0 : index
    %42 = vector.load %arg4[%41, %c0_32, %c0_33] : memref<40x1x32xf32, #tpu.memory_space<vmem>>, vector<1x1x32xf32>
    %43 = vector.shape_cast %42 : vector<1x1x32xf32> to vector<1x32xf32>
    %cst_34 = arith.constant 5.65685415 : f32
    %44 = vector.broadcast %cst_34 : f32 to vector<1x32xf32>
    %45 = arith.mulf %43, %44 : vector<1x32xf32>
    %c36 = arith.constant 36 : index
    %c0_35 = arith.constant 0 : index
    %c0_36 = arith.constant 0 : index
    %46 = vector.load %arg4[%c36, %c0_35, %c0_36] : memref<40x1x32xf32, #tpu.memory_space<vmem>>, vector<1x1x32xf32>
    %47 = vector.shape_cast %46 : vector<1x1x32xf32> to vector<1x32xf32>
    %48 = arith.addf %45, %47 : vector<1x32xf32>
    %c4_37 = arith.constant 4 : index
    %c0_38 = arith.constant 0 : index
    %49 = vector.load %arg10[%c4_37, %c0_38] : memref<16x32xf32, #tpu.memory_space<vmem>>, vector<1x32xf32>
    tpu.vector_store %arg10[%c4_37, %c0_38], %48 {strides = array<i32>} : memref<16x32xf32, #tpu.memory_space<vmem>>, vector<1x32xf32>,
    %c0_39 = arith.constant 0 : index
    %c5 = arith.constant 5 : index
    %50 = memref.load %arg0[%c0_39, %c5] : memref<2x8xi32, #tpu.memory_space<smem>>
    %51 = arith.index_cast %50 : i32 to index
    %c0_40 = arith.constant 0 : index
    %c0_41 = arith.constant 0 : index
    %52 = vector.load %arg4[%51, %c0_40, %c0_41] : memref<40x1x32xf32, #tpu.memory_space<vmem>>, vector<1x1x32xf32>
    %53 = vector.shape_cast %52 : vector<1x1x32xf32> to vector<1x32xf32>
    %cst_42 = arith.constant 5.65685415 : f32
    %54 = vector.broadcast %cst_42 : f32 to vector<1x32xf32>
    %55 = arith.mulf %53, %54 : vector<1x32xf32>
    %c37 = arith.constant 37 : index
    %c0_43 = arith.constant 0 : index
    %c0_44 = arith.constant 0 : index
    %56 = vector.load %arg4[%c37, %c0_43, %c0_44] : memref<40x1x32xf32, #tpu.memory_space<vmem>>, vector<1x1x32xf32>
    %57 = vector.shape_cast %56 : vector<1x1x32xf32> to vector<1x32xf32>
    %58 = arith.addf %55, %57 : vector<1x32xf32>
    %c5_45 = arith.constant 5 : index
    %c0_46 = arith.constant 0 : index
    %59 = vector.load %arg10[%c5_45, %c0_46] : memref<16x32xf32, #tpu.memory_space<vmem>>, vector<1x32xf32>
    tpu.vector_store %arg10[%c5_45, %c0_46], %58 {strides = array<i32>} : memref<16x32xf32, #tpu.memory_space<vmem>>, vector<1x32xf32>,
    %c0_47 = arith.constant 0 : index
    %c6 = arith.constant 6 : index
    %60 = memref.load %arg0[%c0_47, %c6] : memref<2x8xi32, #tpu.memory_space<smem>>
    %61 = arith.index_cast %60 : i32 to index
    %c0_48 = arith.constant 0 : index
    %c0_49 = arith.constant 0 : index
    %62 = vector.load %arg4[%61, %c0_48, %c0_49] : memref<40x1x32xf32, #tpu.memory_space<vmem>>, vector<1x1x32xf32>
    %63 = vector.shape_cast %62 : vector<1x1x32xf32> to vector<1x32xf32>
    %cst_50 = arith.constant 5.65685415 : f32
    %64 = vector.broadcast %cst_50 : f32 to vector<1x32xf32>
    %65 = arith.mulf %63, %64 : vector<1x32xf32>
    %c38 = arith.constant 38 : index
    %c0_51 = arith.constant 0 : index
    %c0_52 = arith.constant 0 : index
    %66 = vector.load %arg4[%c38, %c0_51, %c0_52] : memref<40x1x32xf32, #tpu.memory_space<vmem>>, vector<1x1x32xf32>
    %67 = vector.shape_cast %66 : vector<1x1x32xf32> to vector<1x32xf32>
    %68 = arith.addf %65, %67 : vector<1x32xf32>
    %c6_53 = arith.constant 6 : index
    %c0_54 = arith.constant 0 : index
    %69 = vector.load %arg10[%c6_53, %c0_54] : memref<16x32xf32, #tpu.memory_space<vmem>>, vector<1x32xf32>
    tpu.vector_store %arg10[%c6_53, %c0_54], %68 {strides = array<i32>} : memref<16x32xf32, #tpu.memory_space<vmem>>, vector<1x32xf32>,
    %c0_55 = arith.constant 0 : index
    %c7 = arith.constant 7 : index
    %70 = memref.load %arg0[%c0_55, %c7] : memref<2x8xi32, #tpu.memory_space<smem>>
    %71 = arith.index_cast %70 : i32 to index
    %c0_56 = arith.constant 0 : index
    %c0_57 = arith.constant 0 : index
    %72 = vector.load %arg4[%71, %c0_56, %c0_57] : memref<40x1x32xf32, #tpu.memory_space<vmem>>, vector<1x1x32xf32>
    %73 = vector.shape_cast %72 : vector<1x1x32xf32> to vector<1x32xf32>
    %cst_58 = arith.constant 5.65685415 : f32
    %74 = vector.broadcast %cst_58 : f32 to vector<1x32xf32>
    %75 = arith.mulf %73, %74 : vector<1x32xf32>
    %c39 = arith.constant 39 : index
    %c0_59 = arith.constant 0 : index
    %c0_60 = arith.constant 0 : index
    %76 = vector.load %arg4[%c39, %c0_59, %c0_60] : memref<40x1x32xf32, #tpu.memory_space<vmem>>, vector<1x1x32xf32>
    %77 = vector.shape_cast %76 : vector<1x1x32xf32> to vector<1x32xf32>
    %78 = arith.addf %75, %77 : vector<1x32xf32>
    %c7_61 = arith.constant 7 : index
    %c0_62 = arith.constant 0 : index
    %79 = vector.load %arg10[%c7_61, %c0_62] : memref<16x32xf32, #tpu.memory_space<vmem>>, vector<1x32xf32>
    tpu.vector_store %arg10[%c7_61, %c0_62], %78 {strides = array<i32>} : memref<16x32xf32, #tpu.memory_space<vmem>>, vector<1x32xf32>,
    %c1_63 = arith.constant 1 : index
    %c0_64 = arith.constant 0 : index
    %80 = memref.load %arg0[%c1_63, %c0_64] : memref<2x8xi32, #tpu.memory_space<smem>>
    %81 = arith.index_cast %80 : i32 to index
    %c0_65 = arith.constant 0 : index
    %c0_66 = arith.constant 0 : index
    %82 = vector.load %arg4[%81, %c0_65, %c0_66] : memref<40x1x32xf32, #tpu.memory_space<vmem>>, vector<1x1x32xf32>
    %83 = vector.shape_cast %82 : vector<1x1x32xf32> to vector<1x32xf32>
    %cst_67 = arith.constant 5.65685415 : f32
    %84 = vector.broadcast %cst_67 : f32 to vector<1x32xf32>
    %85 = arith.mulf %83, %84 : vector<1x32xf32>
    %c32_68 = arith.constant 32 : index
    %c0_69 = arith.constant 0 : index
    %c0_70 = arith.constant 0 : index
    %86 = vector.load %arg4[%c32_68, %c0_69, %c0_70] : memref<40x1x32xf32, #tpu.memory_space<vmem>>, vector<1x1x32xf32>
    %87 = vector.shape_cast %86 : vector<1x1x32xf32> to vector<1x32xf32>
    %88 = arith.addf %85, %87 : vector<1x32xf32>
    %c8 = arith.constant 8 : index
    %c0_71 = arith.constant 0 : index
    %89 = vector.load %arg10[%c8, %c0_71] : memref<16x32xf32, #tpu.memory_space<vmem>>, vector<1x32xf32>
    tpu.vector_store %arg10[%c8, %c0_71], %88 {strides = array<i32>} : memref<16x32xf32, #tpu.memory_space<vmem>>, vector<1x32xf32>,
    %c1_72 = arith.constant 1 : index
    %c1_73 = arith.constant 1 : index
    %90 = memref.load %arg0[%c1_72, %c1_73] : memref<2x8xi32, #tpu.memory_space<smem>>
    %91 = arith.index_cast %90 : i32 to index
    %c0_74 = arith.constant 0 : index
    %c0_75 = arith.constant 0 : index
    %92 = vector.load %arg4[%91, %c0_74, %c0_75] : memref<40x1x32xf32, #tpu.memory_space<vmem>>, vector<1x1x32xf32>
    %93 = vector.shape_cast %92 : vector<1x1x32xf32> to vector<1x32xf32>
    %cst_76 = arith.constant 5.65685415 : f32
    %94 = vector.broadcast %cst_76 : f32 to vector<1x32xf32>
    %95 = arith.mulf %93, %94 : vector<1x32xf32>
    %c33_77 = arith.constant 33 : index
    %c0_78 = arith.constant 0 : index
    %c0_79 = arith.constant 0 : index
    %96 = vector.load %arg4[%c33_77, %c0_78, %c0_79] : memref<40x1x32xf32, #tpu.memory_space<vmem>>, vector<1x1x32xf32>
    %97 = vector.shape_cast %96 : vector<1x1x32xf32> to vector<1x32xf32>
    %98 = arith.addf %95, %97 : vector<1x32xf32>
    %c9 = arith.constant 9 : index
    %c0_80 = arith.constant 0 : index
    %99 = vector.load %arg10[%c9, %c0_80] : memref<16x32xf32, #tpu.memory_space<vmem>>, vector<1x32xf32>
    tpu.vector_store %arg10[%c9, %c0_80], %98 {strides = array<i32>} : memref<16x32xf32, #tpu.memory_space<vmem>>, vector<1x32xf32>,
    %c1_81 = arith.constant 1 : index
    %c2_82 = arith.constant 2 : index
    %100 = memref.load %arg0[%c1_81, %c2_82] : memref<2x8xi32, #tpu.memory_space<smem>>
    %101 = arith.index_cast %100 : i32 to index
    %c0_83 = arith.constant 0 : index
    %c0_84 = arith.constant 0 : index
    %102 = vector.load %arg4[%101, %c0_83, %c0_84] : memref<40x1x32xf32, #tpu.memory_space<vmem>>, vector<1x1x32xf32>
    %103 = vector.shape_cast %102 : vector<1x1x32xf32> to vector<1x32xf32>
    %cst_85 = arith.constant 5.65685415 : f32
    %104 = vector.broadcast %cst_85 : f32 to vector<1x32xf32>
    %105 = arith.mulf %103, %104 : vector<1x32xf32>
    %c34_86 = arith.constant 34 : index
    %c0_87 = arith.constant 0 : index
    %c0_88 = arith.constant 0 : index
    %106 = vector.load %arg4[%c34_86, %c0_87, %c0_88] : memref<40x1x32xf32, #tpu.memory_space<vmem>>, vector<1x1x32xf32>
    %107 = vector.shape_cast %106 : vector<1x1x32xf32> to vector<1x32xf32>
    %108 = arith.addf %105, %107 : vector<1x32xf32>
    %c10 = arith.constant 10 : index
    %c0_89 = arith.constant 0 : index
    %109 = vector.load %arg10[%c10, %c0_89] : memref<16x32xf32, #tpu.memory_space<vmem>>, vector<1x32xf32>
    tpu.vector_store %arg10[%c10, %c0_89], %108 {strides = array<i32>} : memref<16x32xf32, #tpu.memory_space<vmem>>, vector<1x32xf32>,
    %c1_90 = arith.constant 1 : index
    %c3_91 = arith.constant 3 : index
    %110 = memref.load %arg0[%c1_90, %c3_91] : memref<2x8xi32, #tpu.memory_space<smem>>
    %111 = arith.index_cast %110 : i32 to index
    %c0_92 = arith.constant 0 : index
    %c0_93 = arith.constant 0 : index
    %112 = vector.load %arg4[%111, %c0_92, %c0_93] : memref<40x1x32xf32, #tpu.memory_space<vmem>>, vector<1x1x32xf32>
    %113 = vector.shape_cast %112 : vector<1x1x32xf32> to vector<1x32xf32>
    %cst_94 = arith.constant 5.65685415 : f32
    %114 = vector.broadcast %cst_94 : f32 to vector<1x32xf32>
    %115 = arith.mulf %113, %114 : vector<1x32xf32>
    %c35_95 = arith.constant 35 : index
    %c0_96 = arith.constant 0 : index
    %c0_97 = arith.constant 0 : index
    %116 = vector.load %arg4[%c35_95, %c0_96, %c0_97] : memref<40x1x32xf32, #tpu.memory_space<vmem>>, vector<1x1x32xf32>
    %117 = vector.shape_cast %116 : vector<1x1x32xf32> to vector<1x32xf32>
    %118 = arith.addf %115, %117 : vector<1x32xf32>
    %c11 = arith.constant 11 : index
    %c0_98 = arith.constant 0 : index
    %119 = vector.load %arg10[%c11, %c0_98] : memref<16x32xf32, #tpu.memory_space<vmem>>, vector<1x32xf32>
    tpu.vector_store %arg10[%c11, %c0_98], %118 {strides = array<i32>} : memref<16x32xf32, #tpu.memory_space<vmem>>, vector<1x32xf32>,
    %c1_99 = arith.constant 1 : index
    %c4_100 = arith.constant 4 : index
    %120 = memref.load %arg0[%c1_99, %c4_100] : memref<2x8xi32, #tpu.memory_space<smem>>
    %121 = arith.index_cast %120 : i32 to index
    %c0_101 = arith.constant 0 : index
    %c0_102 = arith.constant 0 : index
    %122 = vector.load %arg4[%121, %c0_101, %c0_102] : memref<40x1x32xf32, #tpu.memory_space<vmem>>, vector<1x1x32xf32>
    %123 = vector.shape_cast %122 : vector<1x1x32xf32> to vector<1x32xf32>
    %cst_103 = arith.constant 5.65685415 : f32
    %124 = vector.broadcast %cst_103 : f32 to vector<1x32xf32>
    %125 = arith.mulf %123, %124 : vector<1x32xf32>
    %c36_104 = arith.constant 36 : index
    %c0_105 = arith.constant 0 : index
    %c0_106 = arith.constant 0 : index
    %126 = vector.load %arg4[%c36_104, %c0_105, %c0_106] : memref<40x1x32xf32, #tpu.memory_space<vmem>>, vector<1x1x32xf32>
    %127 = vector.shape_cast %126 : vector<1x1x32xf32> to vector<1x32xf32>
    %128 = arith.addf %125, %127 : vector<1x32xf32>
    %c12 = arith.constant 12 : index
    %c0_107 = arith.constant 0 : index
    %129 = vector.load %arg10[%c12, %c0_107] : memref<16x32xf32, #tpu.memory_space<vmem>>, vector<1x32xf32>
    tpu.vector_store %arg10[%c12, %c0_107], %128 {strides = array<i32>} : memref<16x32xf32, #tpu.memory_space<vmem>>, vector<1x32xf32>,
    %c1_108 = arith.constant 1 : index
    %c5_109 = arith.constant 5 : index
    %130 = memref.load %arg0[%c1_108, %c5_109] : memref<2x8xi32, #tpu.memory_space<smem>>
    %131 = arith.index_cast %130 : i32 to index
    %c0_110 = arith.constant 0 : index
    %c0_111 = arith.constant 0 : index
    %132 = vector.load %arg4[%131, %c0_110, %c0_111] : memref<40x1x32xf32, #tpu.memory_space<vmem>>, vector<1x1x32xf32>
    %133 = vector.shape_cast %132 : vector<1x1x32xf32> to vector<1x32xf32>
    %cst_112 = arith.constant 5.65685415 : f32
    %134 = vector.broadcast %cst_112 : f32 to vector<1x32xf32>
    %135 = arith.mulf %133, %134 : vector<1x32xf32>
    %c37_113 = arith.constant 37 : index
    %c0_114 = arith.constant 0 : index
    %c0_115 = arith.constant 0 : index
    %136 = vector.load %arg4[%c37_113, %c0_114, %c0_115] : memref<40x1x32xf32, #tpu.memory_space<vmem>>, vector<1x1x32xf32>
    %137 = vector.shape_cast %136 : vector<1x1x32xf32> to vector<1x32xf32>
    %138 = arith.addf %135, %137 : vector<1x32xf32>
    %c13 = arith.constant 13 : index
    %c0_116 = arith.constant 0 : index
    %139 = vector.load %arg10[%c13, %c0_116] : memref<16x32xf32, #tpu.memory_space<vmem>>, vector<1x32xf32>
    tpu.vector_store %arg10[%c13, %c0_116], %138 {strides = array<i32>} : memref<16x32xf32, #tpu.memory_space<vmem>>, vector<1x32xf32>,
    %c1_117 = arith.constant 1 : index
    %c6_118 = arith.constant 6 : index
    %140 = memref.load %arg0[%c1_117, %c6_118] : memref<2x8xi32, #tpu.memory_space<smem>>
    %141 = arith.index_cast %140 : i32 to index
    %c0_119 = arith.constant 0 : index
    %c0_120 = arith.constant 0 : index
    %142 = vector.load %arg4[%141, %c0_119, %c0_120] : memref<40x1x32xf32, #tpu.memory_space<vmem>>, vector<1x1x32xf32>
    %143 = vector.shape_cast %142 : vector<1x1x32xf32> to vector<1x32xf32>
    %cst_121 = arith.constant 5.65685415 : f32
    %144 = vector.broadcast %cst_121 : f32 to vector<1x32xf32>
    %145 = arith.mulf %143, %144 : vector<1x32xf32>
    %c38_122 = arith.constant 38 : index
    %c0_123 = arith.constant 0 : index
    %c0_124 = arith.constant 0 : index
    %146 = vector.load %arg4[%c38_122, %c0_123, %c0_124] : memref<40x1x32xf32, #tpu.memory_space<vmem>>, vector<1x1x32xf32>
    %147 = vector.shape_cast %146 : vector<1x1x32xf32> to vector<1x32xf32>
    %148 = arith.addf %145, %147 : vector<1x32xf32>
    %c14 = arith.constant 14 : index
    %c0_125 = arith.constant 0 : index
    %149 = vector.load %arg10[%c14, %c0_125] : memref<16x32xf32, #tpu.memory_space<vmem>>, vector<1x32xf32>
    tpu.vector_store %arg10[%c14, %c0_125], %148 {strides = array<i32>} : memref<16x32xf32, #tpu.memory_space<vmem>>, vector<1x32xf32>,
    %c1_126 = arith.constant 1 : index
    %c7_127 = arith.constant 7 : index
    %150 = memref.load %arg0[%c1_126, %c7_127] : memref<2x8xi32, #tpu.memory_space<smem>>
    %151 = arith.index_cast %150 : i32 to index
    %c0_128 = arith.constant 0 : index
    %c0_129 = arith.constant 0 : index
    %152 = vector.load %arg4[%151, %c0_128, %c0_129] : memref<40x1x32xf32, #tpu.memory_space<vmem>>, vector<1x1x32xf32>
    %153 = vector.shape_cast %152 : vector<1x1x32xf32> to vector<1x32xf32>
    %cst_130 = arith.constant 5.65685415 : f32
    %154 = vector.broadcast %cst_130 : f32 to vector<1x32xf32>
    %155 = arith.mulf %153, %154 : vector<1x32xf32>
    %c39_131 = arith.constant 39 : index
    %c0_132 = arith.constant 0 : index
    %c0_133 = arith.constant 0 : index
    %156 = vector.load %arg4[%c39_131, %c0_132, %c0_133] : memref<40x1x32xf32, #tpu.memory_space<vmem>>, vector<1x1x32xf32>
    %157 = vector.shape_cast %156 : vector<1x1x32xf32> to vector<1x32xf32>
    %158 = arith.addf %155, %157 : vector<1x32xf32>
    %c15 = arith.constant 15 : index
    %c0_134 = arith.constant 0 : index
    %159 = vector.load %arg10[%c15, %c0_134] : memref<16x32xf32, #tpu.memory_space<vmem>>, vector<1x32xf32>
    tpu.vector_store %arg10[%c15, %c0_134], %158 {strides = array<i32>} : memref<16x32xf32, #tpu.memory_space<vmem>>, vector<1x32xf32>,
    %c0_135 = arith.constant 0 : index
    %c0_136 = arith.constant 0 : index
    %160 = memref.load %arg1[%c0_135, %c0_136] : memref<2x8xi32, #tpu.memory_space<smem>>
    %c16_i32 = arith.constant 16 : i32
    %161 = arith.addi %160, %c16_i32 : i32
    %162 = arith.index_cast %161 : i32 to index
    %c0_137 = arith.constant 0 : index
    %c0_138 = arith.constant 0 : index
    %163 = vector.load %arg4[%162, %c0_137, %c0_138] : memref<40x1x32xf32, #tpu.memory_space<vmem>>, vector<1x1x32xf32>
    %164 = vector.shape_cast %163 : vector<1x1x32xf32> to vector<1x32xf32>
    %cst_139 = arith.constant 5.65685415 : f32
    %165 = vector.broadcast %cst_139 : f32 to vector<1x32xf32>
    %166 = arith.mulf %164, %165 : vector<1x32xf32>
    %c32_140 = arith.constant 32 : index
    %c0_141 = arith.constant 0 : index
    %c0_142 = arith.constant 0 : index
    %167 = vector.load %arg4[%c32_140, %c0_141, %c0_142] : memref<40x1x32xf32, #tpu.memory_space<vmem>>, vector<1x1x32xf32>
    %168 = vector.shape_cast %167 : vector<1x1x32xf32> to vector<1x32xf32>
    %169 = arith.addf %166, %168 : vector<1x32xf32>
    %c0_143 = arith.constant 0 : index
    %c0_144 = arith.constant 0 : index
    %170 = vector.load %arg11[%c0_143, %c0_144] : memref<16x32xf32, #tpu.memory_space<vmem>>, vector<1x32xf32>
    tpu.vector_store %arg11[%c0_143, %c0_144], %169 {strides = array<i32>} : memref<16x32xf32, #tpu.memory_space<vmem>>, vector<1x32xf32>,
    %c0_145 = arith.constant 0 : index
    %c1_146 = arith.constant 1 : index
    %171 = memref.load %arg1[%c0_145, %c1_146] : memref<2x8xi32, #tpu.memory_space<smem>>
    %c16_i32_147 = arith.constant 16 : i32
    %172 = arith.addi %171, %c16_i32_147 : i32
    %173 = arith.index_cast %172 : i32 to index
    %c0_148 = arith.constant 0 : index
    %c0_149 = arith.constant 0 : index
    %174 = vector.load %arg4[%173, %c0_148, %c0_149] : memref<40x1x32xf32, #tpu.memory_space<vmem>>, vector<1x1x32xf32>
    %175 = vector.shape_cast %174 : vector<1x1x32xf32> to vector<1x32xf32>
    %cst_150 = arith.constant 5.65685415 : f32
    %176 = vector.broadcast %cst_150 : f32 to vector<1x32xf32>
    %177 = arith.mulf %175, %176 : vector<1x32xf32>
    %c33_151 = arith.constant 33 : index
    %c0_152 = arith.constant 0 : index
    %c0_153 = arith.constant 0 : index
    %178 = vector.load %arg4[%c33_151, %c0_152, %c0_153] : memref<40x1x32xf32, #tpu.memory_space<vmem>>, vector<1x1x32xf32>
    %179 = vector.shape_cast %178 : vector<1x1x32xf32> to vector<1x32xf32>
    %180 = arith.addf %177, %179 : vector<1x32xf32>
    %c1_154 = arith.constant 1 : index
    %c0_155 = arith.constant 0 : index
    %181 = vector.load %arg11[%c1_154, %c0_155] : memref<16x32xf32, #tpu.memory_space<vmem>>, vector<1x32xf32>
    tpu.vector_store %arg11[%c1_154, %c0_155], %180 {strides = array<i32>} : memref<16x32xf32, #tpu.memory_space<vmem>>, vector<1x32xf32>,
    %c0_156 = arith.constant 0 : index
    %c2_157 = arith.constant 2 : index
    %182 = memref.load %arg1[%c0_156, %c2_157] : memref<2x8xi32, #tpu.memory_space<smem>>
    %c16_i32_158 = arith.constant 16 : i32
    %183 = arith.addi %182, %c16_i32_158 : i32
    %184 = arith.index_cast %183 : i32 to index
    %c0_159 = arith.constant 0 : index
    %c0_160 = arith.constant 0 : index
    %185 = vector.load %arg4[%184, %c0_159, %c0_160] : memref<40x1x32xf32, #tpu.memory_space<vmem>>, vector<1x1x32xf32>
    %186 = vector.shape_cast %185 : vector<1x1x32xf32> to vector<1x32xf32>
    %cst_161 = arith.constant 5.65685415 : f32
    %187 = vector.broadcast %cst_161 : f32 to vector<1x32xf32>
    %188 = arith.mulf %186, %187 : vector<1x32xf32>
    %c34_162 = arith.constant 34 : index
    %c0_163 = arith.constant 0 : index
    %c0_164 = arith.constant 0 : index
    %189 = vector.load %arg4[%c34_162, %c0_163, %c0_164] : memref<40x1x32xf32, #tpu.memory_space<vmem>>, vector<1x1x32xf32>
    %190 = vector.shape_cast %189 : vector<1x1x32xf32> to vector<1x32xf32>
    %191 = arith.addf %188, %190 : vector<1x32xf32>
    %c2_165 = arith.constant 2 : index
    %c0_166 = arith.constant 0 : index
    %192 = vector.load %arg11[%c2_165, %c0_166] : memref<16x32xf32, #tpu.memory_space<vmem>>, vector<1x32xf32>
    tpu.vector_store %arg11[%c2_165, %c0_166], %191 {strides = array<i32>} : memref<16x32xf32, #tpu.memory_space<vmem>>, vector<1x32xf32>,
    %c0_167 = arith.constant 0 : index
    %c3_168 = arith.constant 3 : index
    %193 = memref.load %arg1[%c0_167, %c3_168] : memref<2x8xi32, #tpu.memory_space<smem>>
    %c16_i32_169 = arith.constant 16 : i32
    %194 = arith.addi %193, %c16_i32_169 : i32
    %195 = arith.index_cast %194 : i32 to index
    %c0_170 = arith.constant 0 : index
    %c0_171 = arith.constant 0 : index
    %196 = vector.load %arg4[%195, %c0_170, %c0_171] : memref<40x1x32xf32, #tpu.memory_space<vmem>>, vector<1x1x32xf32>
    %197 = vector.shape_cast %196 : vector<1x1x32xf32> to vector<1x32xf32>
    %cst_172 = arith.constant 5.65685415 : f32
    %198 = vector.broadcast %cst_172 : f32 to vector<1x32xf32>
    %199 = arith.mulf %197, %198 : vector<1x32xf32>
    %c35_173 = arith.constant 35 : index
    %c0_174 = arith.constant 0 : index
    %c0_175 = arith.constant 0 : index
    %200 = vector.load %arg4[%c35_173, %c0_174, %c0_175] : memref<40x1x32xf32, #tpu.memory_space<vmem>>, vector<1x1x32xf32>
    %201 = vector.shape_cast %200 : vector<1x1x32xf32> to vector<1x32xf32>
    %202 = arith.addf %199, %201 : vector<1x32xf32>
    %c3_176 = arith.constant 3 : index
    %c0_177 = arith.constant 0 : index
    %203 = vector.load %arg11[%c3_176, %c0_177] : memref<16x32xf32, #tpu.memory_space<vmem>>, vector<1x32xf32>
    tpu.vector_store %arg11[%c3_176, %c0_177], %202 {strides = array<i32>} : memref<16x32xf32, #tpu.memory_space<vmem>>, vector<1x32xf32>,
    %c0_178 = arith.constant 0 : index
    %c4_179 = arith.constant 4 : index
    %204 = memref.load %arg1[%c0_178, %c4_179] : memref<2x8xi32, #tpu.memory_space<smem>>
    %c16_i32_180 = arith.constant 16 : i32
    %205 = arith.addi %204, %c16_i32_180 : i32
    %206 = arith.index_cast %205 : i32 to index
    %c0_181 = arith.constant 0 : index
    %c0_182 = arith.constant 0 : index
    %207 = vector.load %arg4[%206, %c0_181, %c0_182] : memref<40x1x32xf32, #tpu.memory_space<vmem>>, vector<1x1x32xf32>
    %208 = vector.shape_cast %207 : vector<1x1x32xf32> to vector<1x32xf32>
    %cst_183 = arith.constant 5.65685415 : f32
    %209 = vector.broadcast %cst_183 : f32 to vector<1x32xf32>
    %210 = arith.mulf %208, %209 : vector<1x32xf32>
    %c36_184 = arith.constant 36 : index
    %c0_185 = arith.constant 0 : index
    %c0_186 = arith.constant 0 : index
    %211 = vector.load %arg4[%c36_184, %c0_185, %c0_186] : memref<40x1x32xf32, #tpu.memory_space<vmem>>, vector<1x1x32xf32>
    %212 = vector.shape_cast %211 : vector<1x1x32xf32> to vector<1x32xf32>
    %213 = arith.addf %210, %212 : vector<1x32xf32>
    %c4_187 = arith.constant 4 : index
    %c0_188 = arith.constant 0 : index
    %214 = vector.load %arg11[%c4_187, %c0_188] : memref<16x32xf32, #tpu.memory_space<vmem>>, vector<1x32xf32>
    tpu.vector_store %arg11[%c4_187, %c0_188], %213 {strides = array<i32>} : memref<16x32xf32, #tpu.memory_space<vmem>>, vector<1x32xf32>,
    %c0_189 = arith.constant 0 : index
    %c5_190 = arith.constant 5 : index
    %215 = memref.load %arg1[%c0_189, %c5_190] : memref<2x8xi32, #tpu.memory_space<smem>>
    %c16_i32_191 = arith.constant 16 : i32
    %216 = arith.addi %215, %c16_i32_191 : i32
    %217 = arith.index_cast %216 : i32 to index
    %c0_192 = arith.constant 0 : index
    %c0_193 = arith.constant 0 : index
    %218 = vector.load %arg4[%217, %c0_192, %c0_193] : memref<40x1x32xf32, #tpu.memory_space<vmem>>, vector<1x1x32xf32>
    %219 = vector.shape_cast %218 : vector<1x1x32xf32> to vector<1x32xf32>
    %cst_194 = arith.constant 5.65685415 : f32
    %220 = vector.broadcast %cst_194 : f32 to vector<1x32xf32>
    %221 = arith.mulf %219, %220 : vector<1x32xf32>
    %c37_195 = arith.constant 37 : index
    %c0_196 = arith.constant 0 : index
    %c0_197 = arith.constant 0 : index
    %222 = vector.load %arg4[%c37_195, %c0_196, %c0_197] : memref<40x1x32xf32, #tpu.memory_space<vmem>>, vector<1x1x32xf32>
    %223 = vector.shape_cast %222 : vector<1x1x32xf32> to vector<1x32xf32>
    %224 = arith.addf %221, %223 : vector<1x32xf32>
    %c5_198 = arith.constant 5 : index
    %c0_199 = arith.constant 0 : index
    %225 = vector.load %arg11[%c5_198, %c0_199] : memref<16x32xf32, #tpu.memory_space<vmem>>, vector<1x32xf32>
    tpu.vector_store %arg11[%c5_198, %c0_199], %224 {strides = array<i32>} : memref<16x32xf32, #tpu.memory_space<vmem>>, vector<1x32xf32>,
    %c0_200 = arith.constant 0 : index
    %c6_201 = arith.constant 6 : index
    %226 = memref.load %arg1[%c0_200, %c6_201] : memref<2x8xi32, #tpu.memory_space<smem>>
    %c16_i32_202 = arith.constant 16 : i32
    %227 = arith.addi %226, %c16_i32_202 : i32
    %228 = arith.index_cast %227 : i32 to index
    %c0_203 = arith.constant 0 : index
    %c0_204 = arith.constant 0 : index
    %229 = vector.load %arg4[%228, %c0_203, %c0_204] : memref<40x1x32xf32, #tpu.memory_space<vmem>>, vector<1x1x32xf32>
    %230 = vector.shape_cast %229 : vector<1x1x32xf32> to vector<1x32xf32>
    %cst_205 = arith.constant 5.65685415 : f32
    %231 = vector.broadcast %cst_205 : f32 to vector<1x32xf32>
    %232 = arith.mulf %230, %231 : vector<1x32xf32>
    %c38_206 = arith.constant 38 : index
    %c0_207 = arith.constant 0 : index
    %c0_208 = arith.constant 0 : index
    %233 = vector.load %arg4[%c38_206, %c0_207, %c0_208] : memref<40x1x32xf32, #tpu.memory_space<vmem>>, vector<1x1x32xf32>
    %234 = vector.shape_cast %233 : vector<1x1x32xf32> to vector<1x32xf32>
    %235 = arith.addf %232, %234 : vector<1x32xf32>
    %c6_209 = arith.constant 6 : index
    %c0_210 = arith.constant 0 : index
    %236 = vector.load %arg11[%c6_209, %c0_210] : memref<16x32xf32, #tpu.memory_space<vmem>>, vector<1x32xf32>
    tpu.vector_store %arg11[%c6_209, %c0_210], %235 {strides = array<i32>} : memref<16x32xf32, #tpu.memory_space<vmem>>, vector<1x32xf32>,
    %c0_211 = arith.constant 0 : index
    %c7_212 = arith.constant 7 : index
    %237 = memref.load %arg1[%c0_211, %c7_212] : memref<2x8xi32, #tpu.memory_space<smem>>
    %c16_i32_213 = arith.constant 16 : i32
    %238 = arith.addi %237, %c16_i32_213 : i32
    %239 = arith.index_cast %238 : i32 to index
    %c0_214 = arith.constant 0 : index
    %c0_215 = arith.constant 0 : index
    %240 = vector.load %arg4[%239, %c0_214, %c0_215] : memref<40x1x32xf32, #tpu.memory_space<vmem>>, vector<1x1x32xf32>
    %241 = vector.shape_cast %240 : vector<1x1x32xf32> to vector<1x32xf32>
    %cst_216 = arith.constant 5.65685415 : f32
    %242 = vector.broadcast %cst_216 : f32 to vector<1x32xf32>
    %243 = arith.mulf %241, %242 : vector<1x32xf32>
    %c39_217 = arith.constant 39 : index
    %c0_218 = arith.constant 0 : index
    %c0_219 = arith.constant 0 : index
    %244 = vector.load %arg4[%c39_217, %c0_218, %c0_219] : memref<40x1x32xf32, #tpu.memory_space<vmem>>, vector<1x1x32xf32>
    %245 = vector.shape_cast %244 : vector<1x1x32xf32> to vector<1x32xf32>
    %246 = arith.addf %243, %245 : vector<1x32xf32>
    %c7_220 = arith.constant 7 : index
    %c0_221 = arith.constant 0 : index
    %247 = vector.load %arg11[%c7_220, %c0_221] : memref<16x32xf32, #tpu.memory_space<vmem>>, vector<1x32xf32>
    tpu.vector_store %arg11[%c7_220, %c0_221], %246 {strides = array<i32>} : memref<16x32xf32, #tpu.memory_space<vmem>>, vector<1x32xf32>,
    %c1_222 = arith.constant 1 : index
    %c0_223 = arith.constant 0 : index
    %248 = memref.load %arg1[%c1_222, %c0_223] : memref<2x8xi32, #tpu.memory_space<smem>>
    %c16_i32_224 = arith.constant 16 : i32
    %249 = arith.addi %248, %c16_i32_224 : i32
    %250 = arith.index_cast %249 : i32 to index
    %c0_225 = arith.constant 0 : index
    %c0_226 = arith.constant 0 : index
    %251 = vector.load %arg4[%250, %c0_225, %c0_226] : memref<40x1x32xf32, #tpu.memory_space<vmem>>, vector<1x1x32xf32>
    %252 = vector.shape_cast %251 : vector<1x1x32xf32> to vector<1x32xf32>
    %cst_227 = arith.constant 5.65685415 : f32
    %253 = vector.broadcast %cst_227 : f32 to vector<1x32xf32>
    %254 = arith.mulf %252, %253 : vector<1x32xf32>
    %c32_228 = arith.constant 32 : index
    %c0_229 = arith.constant 0 : index
    %c0_230 = arith.constant 0 : index
    %255 = vector.load %arg4[%c32_228, %c0_229, %c0_230] : memref<40x1x32xf32, #tpu.memory_space<vmem>>, vector<1x1x32xf32>
    %256 = vector.shape_cast %255 : vector<1x1x32xf32> to vector<1x32xf32>
    %257 = arith.addf %254, %256 : vector<1x32xf32>
    %c8_231 = arith.constant 8 : index
    %c0_232 = arith.constant 0 : index
    %258 = vector.load %arg11[%c8_231, %c0_232] : memref<16x32xf32, #tpu.memory_space<vmem>>, vector<1x32xf32>
    tpu.vector_store %arg11[%c8_231, %c0_232], %257 {strides = array<i32>} : memref<16x32xf32, #tpu.memory_space<vmem>>, vector<1x32xf32>,
    %c1_233 = arith.constant 1 : index
    %c1_234 = arith.constant 1 : index
    %259 = memref.load %arg1[%c1_233, %c1_234] : memref<2x8xi32, #tpu.memory_space<smem>>
    %c16_i32_235 = arith.constant 16 : i32
    %260 = arith.addi %259, %c16_i32_235 : i32
    %261 = arith.index_cast %260 : i32 to index
    %c0_236 = arith.constant 0 : index
    %c0_237 = arith.constant 0 : index
    %262 = vector.load %arg4[%261, %c0_236, %c0_237] : memref<40x1x32xf32, #tpu.memory_space<vmem>>, vector<1x1x32xf32>
    %263 = vector.shape_cast %262 : vector<1x1x32xf32> to vector<1x32xf32>
    %cst_238 = arith.constant 5.65685415 : f32
    %264 = vector.broadcast %cst_238 : f32 to vector<1x32xf32>
    %265 = arith.mulf %263, %264 : vector<1x32xf32>
    %c33_239 = arith.constant 33 : index
    %c0_240 = arith.constant 0 : index
    %c0_241 = arith.constant 0 : index
    %266 = vector.load %arg4[%c33_239, %c0_240, %c0_241] : memref<40x1x32xf32, #tpu.memory_space<vmem>>, vector<1x1x32xf32>
    %267 = vector.shape_cast %266 : vector<1x1x32xf32> to vector<1x32xf32>
    %268 = arith.addf %265, %267 : vector<1x32xf32>
    %c9_242 = arith.constant 9 : index
    %c0_243 = arith.constant 0 : index
    %269 = vector.load %arg11[%c9_242, %c0_243] : memref<16x32xf32, #tpu.memory_space<vmem>>, vector<1x32xf32>
    tpu.vector_store %arg11[%c9_242, %c0_243], %268 {strides = array<i32>} : memref<16x32xf32, #tpu.memory_space<vmem>>, vector<1x32xf32>,
    %c1_244 = arith.constant 1 : index
    %c2_245 = arith.constant 2 : index
    %270 = memref.load %arg1[%c1_244, %c2_245] : memref<2x8xi32, #tpu.memory_space<smem>>
    %c16_i32_246 = arith.constant 16 : i32
    %271 = arith.addi %270, %c16_i32_246 : i32
    %272 = arith.index_cast %271 : i32 to index
    %c0_247 = arith.constant 0 : index
    %c0_248 = arith.constant 0 : index
    %273 = vector.load %arg4[%272, %c0_247, %c0_248] : memref<40x1x32xf32, #tpu.memory_space<vmem>>, vector<1x1x32xf32>
    %274 = vector.shape_cast %273 : vector<1x1x32xf32> to vector<1x32xf32>
    %cst_249 = arith.constant 5.65685415 : f32
    %275 = vector.broadcast %cst_249 : f32 to vector<1x32xf32>
    %276 = arith.mulf %274, %275 : vector<1x32xf32>
    %c34_250 = arith.constant 34 : index
    %c0_251 = arith.constant 0 : index
    %c0_252 = arith.constant 0 : index
    %277 = vector.load %arg4[%c34_250, %c0_251, %c0_252] : memref<40x1x32xf32, #tpu.memory_space<vmem>>, vector<1x1x32xf32>
    %278 = vector.shape_cast %277 : vector<1x1x32xf32> to vector<1x32xf32>
    %279 = arith.addf %276, %278 : vector<1x32xf32>
    %c10_253 = arith.constant 10 : index
    %c0_254 = arith.constant 0 : index
    %280 = vector.load %arg11[%c10_253, %c0_254] : memref<16x32xf32, #tpu.memory_space<vmem>>, vector<1x32xf32>
    tpu.vector_store %arg11[%c10_253, %c0_254], %279 {strides = array<i32>} : memref<16x32xf32, #tpu.memory_space<vmem>>, vector<1x32xf32>,
    %c1_255 = arith.constant 1 : index
    %c3_256 = arith.constant 3 : index
    %281 = memref.load %arg1[%c1_255, %c3_256] : memref<2x8xi32, #tpu.memory_space<smem>>
    %c16_i32_257 = arith.constant 16 : i32
    %282 = arith.addi %281, %c16_i32_257 : i32
    %283 = arith.index_cast %282 : i32 to index
    %c0_258 = arith.constant 0 : index
    %c0_259 = arith.constant 0 : index
    %284 = vector.load %arg4[%283, %c0_258, %c0_259] : memref<40x1x32xf32, #tpu.memory_space<vmem>>, vector<1x1x32xf32>
    %285 = vector.shape_cast %284 : vector<1x1x32xf32> to vector<1x32xf32>
    %cst_260 = arith.constant 5.65685415 : f32
    %286 = vector.broadcast %cst_260 : f32 to vector<1x32xf32>
    %287 = arith.mulf %285, %286 : vector<1x32xf32>
    %c35_261 = arith.constant 35 : index
    %c0_262 = arith.constant 0 : index
    %c0_263 = arith.constant 0 : index
    %288 = vector.load %arg4[%c35_261, %c0_262, %c0_263] : memref<40x1x32xf32, #tpu.memory_space<vmem>>, vector<1x1x32xf32>
    %289 = vector.shape_cast %288 : vector<1x1x32xf32> to vector<1x32xf32>
    %290 = arith.addf %287, %289 : vector<1x32xf32>
    %c11_264 = arith.constant 11 : index
    %c0_265 = arith.constant 0 : index
    %291 = vector.load %arg11[%c11_264, %c0_265] : memref<16x32xf32, #tpu.memory_space<vmem>>, vector<1x32xf32>
    tpu.vector_store %arg11[%c11_264, %c0_265], %290 {strides = array<i32>} : memref<16x32xf32, #tpu.memory_space<vmem>>, vector<1x32xf32>,
    %c1_266 = arith.constant 1 : index
    %c4_267 = arith.constant 4 : index
    %292 = memref.load %arg1[%c1_266, %c4_267] : memref<2x8xi32, #tpu.memory_space<smem>>
    %c16_i32_268 = arith.constant 16 : i32
    %293 = arith.addi %292, %c16_i32_268 : i32
    %294 = arith.index_cast %293 : i32 to index
    %c0_269 = arith.constant 0 : index
    %c0_270 = arith.constant 0 : index
    %295 = vector.load %arg4[%294, %c0_269, %c0_270] : memref<40x1x32xf32, #tpu.memory_space<vmem>>, vector<1x1x32xf32>
    %296 = vector.shape_cast %295 : vector<1x1x32xf32> to vector<1x32xf32>
    %cst_271 = arith.constant 5.65685415 : f32
    %297 = vector.broadcast %cst_271 : f32 to vector<1x32xf32>
    %298 = arith.mulf %296, %297 : vector<1x32xf32>
    %c36_272 = arith.constant 36 : index
    %c0_273 = arith.constant 0 : index
    %c0_274 = arith.constant 0 : index
    %299 = vector.load %arg4[%c36_272, %c0_273, %c0_274] : memref<40x1x32xf32, #tpu.memory_space<vmem>>, vector<1x1x32xf32>
    %300 = vector.shape_cast %299 : vector<1x1x32xf32> to vector<1x32xf32>
    %301 = arith.addf %298, %300 : vector<1x32xf32>
    %c12_275 = arith.constant 12 : index
    %c0_276 = arith.constant 0 : index
    %302 = vector.load %arg11[%c12_275, %c0_276] : memref<16x32xf32, #tpu.memory_space<vmem>>, vector<1x32xf32>
    tpu.vector_store %arg11[%c12_275, %c0_276], %301 {strides = array<i32>} : memref<16x32xf32, #tpu.memory_space<vmem>>, vector<1x32xf32>,
    %c1_277 = arith.constant 1 : index
    %c5_278 = arith.constant 5 : index
    %303 = memref.load %arg1[%c1_277, %c5_278] : memref<2x8xi32, #tpu.memory_space<smem>>
    %c16_i32_279 = arith.constant 16 : i32
    %304 = arith.addi %303, %c16_i32_279 : i32
    %305 = arith.index_cast %304 : i32 to index
    %c0_280 = arith.constant 0 : index
    %c0_281 = arith.constant 0 : index
    %306 = vector.load %arg4[%305, %c0_280, %c0_281] : memref<40x1x32xf32, #tpu.memory_space<vmem>>, vector<1x1x32xf32>
    %307 = vector.shape_cast %306 : vector<1x1x32xf32> to vector<1x32xf32>
    %cst_282 = arith.constant 5.65685415 : f32
    %308 = vector.broadcast %cst_282 : f32 to vector<1x32xf32>
    %309 = arith.mulf %307, %308 : vector<1x32xf32>
    %c37_283 = arith.constant 37 : index
    %c0_284 = arith.constant 0 : index
    %c0_285 = arith.constant 0 : index
    %310 = vector.load %arg4[%c37_283, %c0_284, %c0_285] : memref<40x1x32xf32, #tpu.memory_space<vmem>>, vector<1x1x32xf32>
    %311 = vector.shape_cast %310 : vector<1x1x32xf32> to vector<1x32xf32>
    %312 = arith.addf %309, %311 : vector<1x32xf32>
    %c13_286 = arith.constant 13 : index
    %c0_287 = arith.constant 0 : index
    %313 = vector.load %arg11[%c13_286, %c0_287] : memref<16x32xf32, #tpu.memory_space<vmem>>, vector<1x32xf32>
    tpu.vector_store %arg11[%c13_286, %c0_287], %312 {strides = array<i32>} : memref<16x32xf32, #tpu.memory_space<vmem>>, vector<1x32xf32>,
    %c1_288 = arith.constant 1 : index
    %c6_289 = arith.constant 6 : index
    %314 = memref.load %arg1[%c1_288, %c6_289] : memref<2x8xi32, #tpu.memory_space<smem>>
    %c16_i32_290 = arith.constant 16 : i32
    %315 = arith.addi %314, %c16_i32_290 : i32
    %316 = arith.index_cast %315 : i32 to index
    %c0_291 = arith.constant 0 : index
    %c0_292 = arith.constant 0 : index
    %317 = vector.load %arg4[%316, %c0_291, %c0_292] : memref<40x1x32xf32, #tpu.memory_space<vmem>>, vector<1x1x32xf32>
    %318 = vector.shape_cast %317 : vector<1x1x32xf32> to vector<1x32xf32>
    %cst_293 = arith.constant 5.65685415 : f32
    %319 = vector.broadcast %cst_293 : f32 to vector<1x32xf32>
    %320 = arith.mulf %318, %319 : vector<1x32xf32>
    %c38_294 = arith.constant 38 : index
    %c0_295 = arith.constant 0 : index
    %c0_296 = arith.constant 0 : index
    %321 = vector.load %arg4[%c38_294, %c0_295, %c0_296] : memref<40x1x32xf32, #tpu.memory_space<vmem>>, vector<1x1x32xf32>
    %322 = vector.shape_cast %321 : vector<1x1x32xf32> to vector<1x32xf32>
    %323 = arith.addf %320, %322 : vector<1x32xf32>
    %c14_297 = arith.constant 14 : index
    %c0_298 = arith.constant 0 : index
    %324 = vector.load %arg11[%c14_297, %c0_298] : memref<16x32xf32, #tpu.memory_space<vmem>>, vector<1x32xf32>
    tpu.vector_store %arg11[%c14_297, %c0_298], %323 {strides = array<i32>} : memref<16x32xf32, #tpu.memory_space<vmem>>, vector<1x32xf32>,
    %c1_299 = arith.constant 1 : index
    %c7_300 = arith.constant 7 : index
    %325 = memref.load %arg1[%c1_299, %c7_300] : memref<2x8xi32, #tpu.memory_space<smem>>
    %c16_i32_301 = arith.constant 16 : i32
    %326 = arith.addi %325, %c16_i32_301 : i32
    %327 = arith.index_cast %326 : i32 to index
    %c0_302 = arith.constant 0 : index
    %c0_303 = arith.constant 0 : index
    %328 = vector.load %arg4[%327, %c0_302, %c0_303] : memref<40x1x32xf32, #tpu.memory_space<vmem>>, vector<1x1x32xf32>
    %329 = vector.shape_cast %328 : vector<1x1x32xf32> to vector<1x32xf32>
    %cst_304 = arith.constant 5.65685415 : f32
    %330 = vector.broadcast %cst_304 : f32 to vector<1x32xf32>
    %331 = arith.mulf %329, %330 : vector<1x32xf32>
    %c39_305 = arith.constant 39 : index
    %c0_306 = arith.constant 0 : index
    %c0_307 = arith.constant 0 : index
    %332 = vector.load %arg4[%c39_305, %c0_306, %c0_307] : memref<40x1x32xf32, #tpu.memory_space<vmem>>, vector<1x1x32xf32>
    %333 = vector.shape_cast %332 : vector<1x1x32xf32> to vector<1x32xf32>
    %334 = arith.addf %331, %333 : vector<1x32xf32>
    %c15_308 = arith.constant 15 : index
    %c0_309 = arith.constant 0 : index
    %335 = vector.load %arg11[%c15_308, %c0_309] : memref<16x32xf32, #tpu.memory_space<vmem>>, vector<1x32xf32>
    tpu.vector_store %arg11[%c15_308, %c0_309], %334 {strides = array<i32>} : memref<16x32xf32, #tpu.memory_space<vmem>>, vector<1x32xf32>,
    %c0_310 = arith.constant 0 : index
    %c0_311 = arith.constant 0 : index
    %c0_312 = arith.constant 0 : index
    %336 = vector.load %arg2[%c0_310, %c0_311, %c0_312] : memref<2x1x8xi32, #tpu.memory_space<vmem>>, vector<2x1x8xi32>
    %c0_i32 = arith.constant 0 : i32
    %337 = vector.broadcast %c0_i32 : i32 to vector<2x1x8xi32>
    %338 = arith.cmpi ne, %336, %337 : vector<2x1x8xi32>
    %cst_313 = arith.constant 0.000000e+00 : f32
    %cst_314 = arith.constant -1.000000e+09 : f32
    %339 = vector.broadcast %cst_313 : f32 to vector<2x1x8xf32>
    %340 = vector.broadcast %cst_314 : f32 to vector<2x1x8xf32>
    %341 = arith.select %338, %339, %340 : vector<2x1x8xi1>, vector<2x1x8xf32>
    %342 = vector.shape_cast %341 : vector<2x1x8xf32> to vector<2x1x8xf32>
    %343 = vector.broadcast %342 : vector<2x1x8xf32> to vector<2x8x8xf32>
    %c0_315 = arith.constant 0 : index
    %c0_316 = arith.constant 0 : index
    %c0_317 = arith.constant 0 : index
    %344 = vector.load %arg3[%c0_315, %c0_316, %c0_317] : memref<2x8x8xi32, #tpu.memory_space<vmem>>, vector<2x8x8xi32>
    %c0_i32_318 = arith.constant 0 : i32
    %345 = vector.broadcast %c0_i32_318 : i32 to vector<2x8x8xi32>
    %346 = arith.cmpi ne, %344, %345 : vector<2x8x8xi32>
    %cst_319 = arith.constant 0.000000e+00 : f32
    %cst_320 = arith.constant -1.000000e+09 : f32
    %347 = vector.broadcast %cst_319 : f32 to vector<2x8x8xf32>
    %348 = vector.broadcast %cst_320 : f32 to vector<2x8x8xf32>
    %349 = arith.select %346, %347, %348 : vector<2x8x8xi1>, vector<2x8x8xf32>
    %c0_321 = arith.constant 0 : index
    %c0_322 = arith.constant 0 : index
    %350 = vector.load %arg10[%c0_321, %c0_322] : memref<16x32xf32, #tpu.memory_space<vmem>>, vector<16x32xf32>
    %c0_323 = arith.constant 0 : index
    %c0_324 = arith.constant 0 : index
    %c0_325 = arith.constant 0 : index
    %351 = vector.load %arg5[%c0_323, %c0_324, %c0_325] : memref<2x160x96xf32, #tpu.memory_space<vmem>>, vector<1x32x96xf32>
    %352 = vector.shape_cast %351 : vector<1x32x96xf32> to vector<32x96xf32>
    %c0_326 = arith.constant 0 : index
    %c32_327 = arith.constant 32 : index
    %c0_328 = arith.constant 0 : index
    %353 = vector.load %arg5[%c0_326, %c32_327, %c0_328] : memref<2x160x96xf32, #tpu.memory_space<vmem>>, vector<1x32x32xf32>
    %354 = vector.shape_cast %353 : vector<1x32x32xf32> to vector<32x32xf32>
    %c0_329 = arith.constant 0 : index
    %c64 = arith.constant 64 : index
    %c0_330 = arith.constant 0 : index
    %355 = vector.load %arg5[%c0_329, %c64, %c0_330] : memref<2x160x96xf32, #tpu.memory_space<vmem>>, vector<1x32x64xf32>
    %356 = vector.shape_cast %355 : vector<1x32x64xf32> to vector<32x64xf32>
    %c0_331 = arith.constant 0 : index
    %c96 = arith.constant 96 : index
    %c0_332 = arith.constant 0 : index
    %357 = vector.load %arg5[%c0_331, %c96, %c0_332] : memref<2x160x96xf32, #tpu.memory_space<vmem>>, vector<1x64x32xf32>
    %358 = vector.shape_cast %357 : vector<1x64x32xf32> to vector<64x32xf32>
    %c0_333 = arith.constant 0 : index
    %c0_334 = arith.constant 0 : index
    %c0_335 = arith.constant 0 : index
    %359 = vector.load %arg6[%c0_333, %c0_334, %c0_335] : memref<3x8x96xf32, #tpu.memory_space<vmem>>, vector<1x8x96xf32>
    %360 = vector.shape_cast %359 : vector<1x8x96xf32> to vector<8x96xf32>
    %361 = vector.extract_strided_slice %360 {offsets = [0, 0], sizes = [1, 32], strides = [1, 1]} : vector<8x96xf32> to vector<1x32xf32>
    %362 = vector.extract_strided_slice %360 {offsets = [1, 0], sizes = [1, 32], strides = [1, 1]} : vector<8x96xf32> to vector<1x32xf32>
    %363 = vector.extract_strided_slice %360 {offsets = [2, 0], sizes = [1, 32], strides = [1, 1]} : vector<8x96xf32> to vector<1x32xf32>
    %364 = vector.extract_strided_slice %360 {offsets = [3, 0], sizes = [1, 32], strides = [1, 1]} : vector<8x96xf32> to vector<1x32xf32>
    %365 = vector.extract_strided_slice %360 {offsets = [4, 0], sizes = [1, 96], strides = [1, 1]} : vector<8x96xf32> to vector<1x96xf32>
    %366 = vector.extract_strided_slice %360 {offsets = [5, 0], sizes = [1, 32], strides = [1, 1]} : vector<8x96xf32> to vector<1x32xf32>
    %367 = vector.extract_strided_slice %360 {offsets = [6, 0], sizes = [1, 64], strides = [1, 1]} : vector<8x96xf32> to vector<1x64xf32>
    %368 = vector.extract_strided_slice %360 {offsets = [7, 0], sizes = [1, 32], strides = [1, 1]} : vector<8x96xf32> to vector<1x32xf32>
    %cst_336 = arith.constant dense<0.000000e+00> : vector<16xf32>
    %369 = vector.multi_reduction <add>, %350, %cst_336 [1] : vector<16x32xf32> to vector<16xf32>
    %370 = vector.shape_cast %369 : vector<16xf32> to vector<16x1xf32>
    %cst_337 = arith.constant 3.200000e+01 : f32
    %371 = vector.broadcast %cst_337 : f32 to vector<16x1xf32>
    %372 = arith.divf %370, %371 : vector<16x1xf32>
    %373 = vector.broadcast %372 : vector<16x1xf32> to vector<16x32xf32>
    %374 = arith.subf %350, %373 : vector<16x32xf32>
    %375 = arith.mulf %374, %374 : vector<16x32xf32>
    %cst_338 = arith.constant dense<0.000000e+00> : vector<16xf32>
    %376 = vector.multi_reduction <add>, %375, %cst_338 [1] : vector<16x32xf32> to vector<16xf32>
    %377 = vector.shape_cast %376 : vector<16xf32> to vector<16x1xf32>
    %cst_339 = arith.constant 0.0322580636 : f32
    %378 = vector.broadcast %cst_339 : f32 to vector<16x1xf32>
    %379 = arith.mulf %377, %378 : vector<16x1xf32>
    %380 = math.sqrt %379 : vector<16x1xf32>
    %381 = vector.broadcast %361 : vector<1x32xf32> to vector<16x32xf32>
    %382 = arith.mulf %381, %374 : vector<16x32xf32>
    %cst_340 = arith.constant 9.99999997E-7 : f32
    %383 = vector.broadcast %cst_340 : f32 to vector<16x1xf32>
    %384 = arith.addf %380, %383 : vector<16x1xf32>
    %385 = vector.broadcast %384 : vector<16x1xf32> to vector<16x32xf32>
    %386 = arith.divf %382, %385 : vector<16x32xf32>
    %387 = vector.broadcast %362 : vector<1x32xf32> to vector<16x32xf32>
    %388 = arith.addf %386, %387 : vector<16x32xf32>
    %cst_341 = arith.constant dense<0.000000e+00> : vector<16x96xf32>
    %389 = tpu.matmul %388, %352, %cst_341 {dimension_numbers = #tpu.dot_dimension_numbers<[1], [0], [0], [1], [0, 0, 1, 1], [], []>} : vector<16x32xf32>, vector<32x96xf32>, vector<16x96xf32> -> vector<16x96xf32>
    %390 = vector.broadcast %365 : vector<1x96xf32> to vector<16x96xf32>
    %391 = arith.addf %389, %390 : vector<16x96xf32>
    %392 = vector.extract_strided_slice %391 {offsets = [0, 0], sizes = [16, 32], strides = [1, 1]} : vector<16x96xf32> to vector<16x32xf32>
    %393 = vector.extract_strided_slice %391 {offsets = [0, 32], sizes = [16, 32], strides = [1, 1]} : vector<16x96xf32> to vector<16x32xf32>
    %394 = vector.extract_strided_slice %391 {offsets = [0, 64], sizes = [16, 32], strides = [1, 1]} : vector<16x96xf32> to vector<16x32xf32>
    %395 = vector.shape_cast %392 : vector<16x32xf32> to vector<2x8x32xf32>
    %396 = vector.shape_cast %393 : vector<16x32xf32> to vector<2x8x32xf32>
    %397 = vector.shape_cast %394 : vector<16x32xf32> to vector<2x8x32xf32>
    %398 = vector.extract_strided_slice %395 {offsets = [0, 0, 0], sizes = [2, 8, 8], strides = [1, 1, 1]} : vector<2x8x32xf32> to vector<2x8x8xf32>
    %399 = vector.extract_strided_slice %396 {offsets = [0, 0, 0], sizes = [2, 8, 8], strides = [1, 1, 1]} : vector<2x8x32xf32> to vector<2x8x8xf32>
    "tpu.trace_start"() <{level = 10 : i32, message = "bqd,bkd->bqk"}> : () -> ()
    %cst_342 = arith.constant dense<0.000000e+00> : vector<2x8x8xf32>
    %400 = tpu.matmul %398, %399, %cst_342 {dimension_numbers = #tpu.dot_dimension_numbers<[2], [2], [1], [1], [0, 0, 0, 1, 1, 1], [0], [0]>} : vector<2x8x8xf32>, vector<2x8x8xf32>, vector<2x8x8xf32> -> vector<2x8x8xf32>
    "tpu.trace_stop"() : () -> ()
    %cst_343 = arith.constant 0.353553385 : f32
    %401 = vector.broadcast %cst_343 : f32 to vector<2x8x8xf32>
    %402 = arith.mulf %400, %401 : vector<2x8x8xf32>
    %403 = arith.addf %402, %343 : vector<2x8x8xf32>
    %cst_344 = arith.constant dense<0xFF800000> : vector<2x8xf32>
    %404 = vector.multi_reduction <maximumf>, %403, %cst_344 [2] : vector<2x8x8xf32> to vector<2x8xf32>
    %405 = vector.shape_cast %404 : vector<2x8xf32> to vector<2x8x1xf32>
    %406 = vector.broadcast %405 : vector<2x8x1xf32> to vector<2x8x8xf32>
    %407 = arith.subf %403, %406 : vector<2x8x8xf32>
    %408 = math.exp %407 : vector<2x8x8xf32>
    %cst_345 = arith.constant dense<0.000000e+00> : vector<2x8xf32>
    %409 = vector.multi_reduction <add>, %408, %cst_345 [2] : vector<2x8x8xf32> to vector<2x8xf32>
    %410 = vector.shape_cast %409 : vector<2x8xf32> to vector<2x8x1xf32>
    %411 = vector.broadcast %410 : vector<2x8x1xf32> to vector<2x8x8xf32>
    %412 = arith.divf %408, %411 : vector<2x8x8xf32>
    %413 = vector.extract_strided_slice %397 {offsets = [0, 0, 0], sizes = [2, 8, 8], strides = [1, 1, 1]} : vector<2x8x32xf32> to vector<2x8x8xf32>
    "tpu.trace_start"() <{level = 10 : i32, message = "bqk,bkd->bqd"}> : () -> ()
    %cst_346 = arith.constant dense<0.000000e+00> : vector<2x8x8xf32>
    %414 = tpu.matmul %412, %413, %cst_346 {dimension_numbers = #tpu.dot_dimension_numbers<[2], [1], [1], [2], [0, 0, 0, 1, 1, 2], [0], [0]>} : vector<2x8x8xf32>, vector<2x8x8xf32>, vector<2x8x8xf32> -> vector<2x8x8xf32>
    "tpu.trace_stop"() : () -> ()
    %415 = vector.extract_strided_slice %395 {offsets = [0, 0, 8], sizes = [2, 8, 8], strides = [1, 1, 1]} : vector<2x8x32xf32> to vector<2x8x8xf32>
    %416 = vector.extract_strided_slice %396 {offsets = [0, 0, 8], sizes = [2, 8, 8], strides = [1, 1, 1]} : vector<2x8x32xf32> to vector<2x8x8xf32>
    "tpu.trace_start"() <{level = 10 : i32, message = "bqd,bkd->bqk"}> : () -> ()
    %cst_347 = arith.constant dense<0.000000e+00> : vector<2x8x8xf32>
    %417 = tpu.matmul %415, %416, %cst_347 {dimension_numbers = #tpu.dot_dimension_numbers<[2], [2], [1], [1], [0, 0, 0, 1, 1, 1], [0], [0]>} : vector<2x8x8xf32>, vector<2x8x8xf32>, vector<2x8x8xf32> -> vector<2x8x8xf32>
    "tpu.trace_stop"() : () -> ()
    %cst_348 = arith.constant 0.353553385 : f32
    %418 = vector.broadcast %cst_348 : f32 to vector<2x8x8xf32>
    %419 = arith.mulf %417, %418 : vector<2x8x8xf32>
    %420 = arith.addf %419, %343 : vector<2x8x8xf32>
    %cst_349 = arith.constant dense<0xFF800000> : vector<2x8xf32>
    %421 = vector.multi_reduction <maximumf>, %420, %cst_349 [2] : vector<2x8x8xf32> to vector<2x8xf32>
    %422 = vector.shape_cast %421 : vector<2x8xf32> to vector<2x8x1xf32>
    %423 = vector.broadcast %422 : vector<2x8x1xf32> to vector<2x8x8xf32>
    %424 = arith.subf %420, %423 : vector<2x8x8xf32>
    %425 = math.exp %424 : vector<2x8x8xf32>
    %cst_350 = arith.constant dense<0.000000e+00> : vector<2x8xf32>
    %426 = vector.multi_reduction <add>, %425, %cst_350 [2] : vector<2x8x8xf32> to vector<2x8xf32>
    %427 = vector.shape_cast %426 : vector<2x8xf32> to vector<2x8x1xf32>
    %428 = vector.broadcast %427 : vector<2x8x1xf32> to vector<2x8x8xf32>
    %429 = arith.divf %425, %428 : vector<2x8x8xf32>
    %430 = vector.extract_strided_slice %397 {offsets = [0, 0, 8], sizes = [2, 8, 8], strides = [1, 1, 1]} : vector<2x8x32xf32> to vector<2x8x8xf32>
    "tpu.trace_start"() <{level = 10 : i32, message = "bqk,bkd->bqd"}> : () -> ()
    %cst_351 = arith.constant dense<0.000000e+00> : vector<2x8x8xf32>
    %431 = tpu.matmul %429, %430, %cst_351 {dimension_numbers = #tpu.dot_dimension_numbers<[2], [1], [1], [2], [0, 0, 0, 1, 1, 2], [0], [0]>} : vector<2x8x8xf32>, vector<2x8x8xf32>, vector<2x8x8xf32> -> vector<2x8x8xf32>
    "tpu.trace_stop"() : () -> ()
    %432 = vector.extract_strided_slice %395 {offsets = [0, 0, 16], sizes = [2, 8, 8], strides = [1, 1, 1]} : vector<2x8x32xf32> to vector<2x8x8xf32>
    %433 = vector.extract_strided_slice %396 {offsets = [0, 0, 16], sizes = [2, 8, 8], strides = [1, 1, 1]} : vector<2x8x32xf32> to vector<2x8x8xf32>
    "tpu.trace_start"() <{level = 10 : i32, message = "bqd,bkd->bqk"}> : () -> ()
    %cst_352 = arith.constant dense<0.000000e+00> : vector<2x8x8xf32>
    %434 = tpu.matmul %432, %433, %cst_352 {dimension_numbers = #tpu.dot_dimension_numbers<[2], [2], [1], [1], [0, 0, 0, 1, 1, 1], [0], [0]>} : vector<2x8x8xf32>, vector<2x8x8xf32>, vector<2x8x8xf32> -> vector<2x8x8xf32>
    "tpu.trace_stop"() : () -> ()
    %cst_353 = arith.constant 0.353553385 : f32
    %435 = vector.broadcast %cst_353 : f32 to vector<2x8x8xf32>
    %436 = arith.mulf %434, %435 : vector<2x8x8xf32>
    %437 = arith.addf %436, %343 : vector<2x8x8xf32>
    %cst_354 = arith.constant dense<0xFF800000> : vector<2x8xf32>
    %438 = vector.multi_reduction <maximumf>, %437, %cst_354 [2] : vector<2x8x8xf32> to vector<2x8xf32>
    %439 = vector.shape_cast %438 : vector<2x8xf32> to vector<2x8x1xf32>
    %440 = vector.broadcast %439 : vector<2x8x1xf32> to vector<2x8x8xf32>
    %441 = arith.subf %437, %440 : vector<2x8x8xf32>
    %442 = math.exp %441 : vector<2x8x8xf32>
    %cst_355 = arith.constant dense<0.000000e+00> : vector<2x8xf32>
    %443 = vector.multi_reduction <add>, %442, %cst_355 [2] : vector<2x8x8xf32> to vector<2x8xf32>
    %444 = vector.shape_cast %443 : vector<2x8xf32> to vector<2x8x1xf32>
    %445 = vector.broadcast %444 : vector<2x8x1xf32> to vector<2x8x8xf32>
    %446 = arith.divf %442, %445 : vector<2x8x8xf32>
    %447 = vector.extract_strided_slice %397 {offsets = [0, 0, 16], sizes = [2, 8, 8], strides = [1, 1, 1]} : vector<2x8x32xf32> to vector<2x8x8xf32>
    "tpu.trace_start"() <{level = 10 : i32, message = "bqk,bkd->bqd"}> : () -> ()
    %cst_356 = arith.constant dense<0.000000e+00> : vector<2x8x8xf32>
    %448 = tpu.matmul %446, %447, %cst_356 {dimension_numbers = #tpu.dot_dimension_numbers<[2], [1], [1], [2], [0, 0, 0, 1, 1, 2], [0], [0]>} : vector<2x8x8xf32>, vector<2x8x8xf32>, vector<2x8x8xf32> -> vector<2x8x8xf32>
    "tpu.trace_stop"() : () -> ()
    %449 = vector.extract_strided_slice %395 {offsets = [0, 0, 24], sizes = [2, 8, 8], strides = [1, 1, 1]} : vector<2x8x32xf32> to vector<2x8x8xf32>
    %450 = vector.extract_strided_slice %396 {offsets = [0, 0, 24], sizes = [2, 8, 8], strides = [1, 1, 1]} : vector<2x8x32xf32> to vector<2x8x8xf32>
    "tpu.trace_start"() <{level = 10 : i32, message = "bqd,bkd->bqk"}> : () -> ()
    %cst_357 = arith.constant dense<0.000000e+00> : vector<2x8x8xf32>
    %451 = tpu.matmul %449, %450, %cst_357 {dimension_numbers = #tpu.dot_dimension_numbers<[2], [2], [1], [1], [0, 0, 0, 1, 1, 1], [0], [0]>} : vector<2x8x8xf32>, vector<2x8x8xf32>, vector<2x8x8xf32> -> vector<2x8x8xf32>
    "tpu.trace_stop"() : () -> ()
    %cst_358 = arith.constant 0.353553385 : f32
    %452 = vector.broadcast %cst_358 : f32 to vector<2x8x8xf32>
    %453 = arith.mulf %451, %452 : vector<2x8x8xf32>
    %454 = arith.addf %453, %343 : vector<2x8x8xf32>
    %cst_359 = arith.constant dense<0xFF800000> : vector<2x8xf32>
    %455 = vector.multi_reduction <maximumf>, %454, %cst_359 [2] : vector<2x8x8xf32> to vector<2x8xf32>
    %456 = vector.shape_cast %455 : vector<2x8xf32> to vector<2x8x1xf32>
    %457 = vector.broadcast %456 : vector<2x8x1xf32> to vector<2x8x8xf32>
    %458 = arith.subf %454, %457 : vector<2x8x8xf32>
    %459 = math.exp %458 : vector<2x8x8xf32>
    %cst_360 = arith.constant dense<0.000000e+00> : vector<2x8xf32>
    %460 = vector.multi_reduction <add>, %459, %cst_360 [2] : vector<2x8x8xf32> to vector<2x8xf32>
    %461 = vector.shape_cast %460 : vector<2x8xf32> to vector<2x8x1xf32>
    %462 = vector.broadcast %461 : vector<2x8x1xf32> to vector<2x8x8xf32>
    %463 = arith.divf %459, %462 : vector<2x8x8xf32>
    %464 = vector.extract_strided_slice %397 {offsets = [0, 0, 24], sizes = [2, 8, 8], strides = [1, 1, 1]} : vector<2x8x32xf32> to vector<2x8x8xf32>
    "tpu.trace_start"() <{level = 10 : i32, message = "bqk,bkd->bqd"}> : () -> ()
    %cst_361 = arith.constant dense<0.000000e+00> : vector<2x8x8xf32>
    %465 = tpu.matmul %463, %464, %cst_361 {dimension_numbers = #tpu.dot_dimension_numbers<[2], [1], [1], [2], [0, 0, 0, 1, 1, 2], [0], [0]>} : vector<2x8x8xf32>, vector<2x8x8xf32>, vector<2x8x8xf32> -> vector<2x8x8xf32>
    "tpu.trace_stop"() : () -> ()
    %466 = tpu.concatenate %414, %431, %448, %465 in 2 : vector<2x8x8xf32>, vector<2x8x8xf32>, vector<2x8x8xf32>, vector<2x8x8xf32> -> vector<2x8x32xf32>
    %467 = vector.shape_cast %466 : vector<2x8x32xf32> to vector<16x32xf32>
    %cst_362 = arith.constant dense<0.000000e+00> : vector<16x32xf32>
    %468 = tpu.matmul %467, %354, %cst_362 {dimension_numbers = #tpu.dot_dimension_numbers<[1], [0], [0], [1], [0, 0, 1, 1], [], []>} : vector<16x32xf32>, vector<32x32xf32>, vector<16x32xf32> -> vector<16x32xf32>
    %469 = vector.broadcast %366 : vector<1x32xf32> to vector<16x32xf32>
    %470 = arith.addf %468, %469 : vector<16x32xf32>
    %471 = arith.addf %350, %470 : vector<16x32xf32>
    %cst_363 = arith.constant dense<0.000000e+00> : vector<16xf32>
    %472 = vector.multi_reduction <add>, %471, %cst_363 [1] : vector<16x32xf32> to vector<16xf32>
    %473 = vector.shape_cast %472 : vector<16xf32> to vector<16x1xf32>
    %cst_364 = arith.constant 3.200000e+01 : f32
    %474 = vector.broadcast %cst_364 : f32 to vector<16x1xf32>
    %475 = arith.divf %473, %474 : vector<16x1xf32>
    %476 = vector.broadcast %475 : vector<16x1xf32> to vector<16x32xf32>
    %477 = arith.subf %471, %476 : vector<16x32xf32>
    %478 = arith.mulf %477, %477 : vector<16x32xf32>
    %cst_365 = arith.constant dense<0.000000e+00> : vector<16xf32>
    %479 = vector.multi_reduction <add>, %478, %cst_365 [1] : vector<16x32xf32> to vector<16xf32>
    %480 = vector.shape_cast %479 : vector<16xf32> to vector<16x1xf32>
    %cst_366 = arith.constant 0.0322580636 : f32
    %481 = vector.broadcast %cst_366 : f32 to vector<16x1xf32>
    %482 = arith.mulf %480, %481 : vector<16x1xf32>
    %483 = math.sqrt %482 : vector<16x1xf32>
    %484 = vector.broadcast %363 : vector<1x32xf32> to vector<16x32xf32>
    %485 = arith.mulf %484, %477 : vector<16x32xf32>
    %cst_367 = arith.constant 9.99999997E-7 : f32
    %486 = vector.broadcast %cst_367 : f32 to vector<16x1xf32>
    %487 = arith.addf %483, %486 : vector<16x1xf32>
    %488 = vector.broadcast %487 : vector<16x1xf32> to vector<16x32xf32>
    %489 = arith.divf %485, %488 : vector<16x32xf32>
    %490 = vector.broadcast %364 : vector<1x32xf32> to vector<16x32xf32>
    %491 = arith.addf %489, %490 : vector<16x32xf32>
    %cst_368 = arith.constant dense<0.000000e+00> : vector<16x64xf32>
    %492 = tpu.matmul %491, %356, %cst_368 {dimension_numbers = #tpu.dot_dimension_numbers<[1], [0], [0], [1], [0, 0, 1, 1], [], []>} : vector<16x32xf32>, vector<32x64xf32>, vector<16x64xf32> -> vector<16x64xf32>
    %493 = vector.broadcast %367 : vector<1x64xf32> to vector<16x64xf32>
    %494 = arith.addf %492, %493 : vector<16x64xf32>
    %cst_369 = arith.constant 0.000000e+00 : f32
    %495 = vector.broadcast %cst_369 : f32 to vector<16x64xf32>
    %496 = arith.maximumf %494, %495 : vector<16x64xf32>
    %cst_370 = arith.constant dense<0.000000e+00> : vector<16x32xf32>
    %497 = tpu.matmul %496, %358, %cst_370 {dimension_numbers = #tpu.dot_dimension_numbers<[1], [0], [0], [1], [0, 0, 1, 1], [], []>} : vector<16x64xf32>, vector<64x32xf32>, vector<16x32xf32> -> vector<16x32xf32>
    %498 = vector.broadcast %368 : vector<1x32xf32> to vector<16x32xf32>
    %499 = arith.addf %497, %498 : vector<16x32xf32>
    %500 = arith.addf %471, %499 : vector<16x32xf32>
    %c1_371 = arith.constant 1 : index
    %c0_372 = arith.constant 0 : index
    %c0_373 = arith.constant 0 : index
    %501 = vector.load %arg5[%c1_371, %c0_372, %c0_373] : memref<2x160x96xf32, #tpu.memory_space<vmem>>, vector<1x32x96xf32>
    %502 = vector.shape_cast %501 : vector<1x32x96xf32> to vector<32x96xf32>
    %c1_374 = arith.constant 1 : index
    %c32_375 = arith.constant 32 : index
    %c0_376 = arith.constant 0 : index
    %503 = vector.load %arg5[%c1_374, %c32_375, %c0_376] : memref<2x160x96xf32, #tpu.memory_space<vmem>>, vector<1x32x32xf32>
    %504 = vector.shape_cast %503 : vector<1x32x32xf32> to vector<32x32xf32>
    %c1_377 = arith.constant 1 : index
    %c64_378 = arith.constant 64 : index
    %c0_379 = arith.constant 0 : index
    %505 = vector.load %arg5[%c1_377, %c64_378, %c0_379] : memref<2x160x96xf32, #tpu.memory_space<vmem>>, vector<1x32x64xf32>
    %506 = vector.shape_cast %505 : vector<1x32x64xf32> to vector<32x64xf32>
    %c1_380 = arith.constant 1 : index
    %c96_381 = arith.constant 96 : index
    %c0_382 = arith.constant 0 : index
    %507 = vector.load %arg5[%c1_380, %c96_381, %c0_382] : memref<2x160x96xf32, #tpu.memory_space<vmem>>, vector<1x64x32xf32>
    %508 = vector.shape_cast %507 : vector<1x64x32xf32> to vector<64x32xf32>
    %c1_383 = arith.constant 1 : index
    %c0_384 = arith.constant 0 : index
    %c0_385 = arith.constant 0 : index
    %509 = vector.load %arg6[%c1_383, %c0_384, %c0_385] : memref<3x8x96xf32, #tpu.memory_space<vmem>>, vector<1x8x96xf32>
    %510 = vector.shape_cast %509 : vector<1x8x96xf32> to vector<8x96xf32>
    %511 = vector.extract_strided_slice %510 {offsets = [0, 0], sizes = [1, 32], strides = [1, 1]} : vector<8x96xf32> to vector<1x32xf32>
    %512 = vector.extract_strided_slice %510 {offsets = [1, 0], sizes = [1, 32], strides = [1, 1]} : vector<8x96xf32> to vector<1x32xf32>
    %513 = vector.extract_strided_slice %510 {offsets = [2, 0], sizes = [1, 32], strides = [1, 1]} : vector<8x96xf32> to vector<1x32xf32>
    %514 = vector.extract_strided_slice %510 {offsets = [3, 0], sizes = [1, 32], strides = [1, 1]} : vector<8x96xf32> to vector<1x32xf32>
    %515 = vector.extract_strided_slice %510 {offsets = [4, 0], sizes = [1, 96], strides = [1, 1]} : vector<8x96xf32> to vector<1x96xf32>
    %516 = vector.extract_strided_slice %510 {offsets = [5, 0], sizes = [1, 32], strides = [1, 1]} : vector<8x96xf32> to vector<1x32xf32>
    %517 = vector.extract_strided_slice %510 {offsets = [6, 0], sizes = [1, 64], strides = [1, 1]} : vector<8x96xf32> to vector<1x64xf32>
    %518 = vector.extract_strided_slice %510 {offsets = [7, 0], sizes = [1, 32], strides = [1, 1]} : vector<8x96xf32> to vector<1x32xf32>
    %cst_386 = arith.constant dense<0.000000e+00> : vector<16xf32>
    %519 = vector.multi_reduction <add>, %500, %cst_386 [1] : vector<16x32xf32> to vector<16xf32>
    %520 = vector.shape_cast %519 : vector<16xf32> to vector<16x1xf32>
    %cst_387 = arith.constant 3.200000e+01 : f32
    %521 = vector.broadcast %cst_387 : f32 to vector<16x1xf32>
    %522 = arith.divf %520, %521 : vector<16x1xf32>
    %523 = vector.broadcast %522 : vector<16x1xf32> to vector<16x32xf32>
    %524 = arith.subf %500, %523 : vector<16x32xf32>
    %525 = arith.mulf %524, %524 : vector<16x32xf32>
    %cst_388 = arith.constant dense<0.000000e+00> : vector<16xf32>
    %526 = vector.multi_reduction <add>, %525, %cst_388 [1] : vector<16x32xf32> to vector<16xf32>
    %527 = vector.shape_cast %526 : vector<16xf32> to vector<16x1xf32>
    %cst_389 = arith.constant 0.0322580636 : f32
    %528 = vector.broadcast %cst_389 : f32 to vector<16x1xf32>
    %529 = arith.mulf %527, %528 : vector<16x1xf32>
    %530 = math.sqrt %529 : vector<16x1xf32>
    %531 = vector.broadcast %511 : vector<1x32xf32> to vector<16x32xf32>
    %532 = arith.mulf %531, %524 : vector<16x32xf32>
    %cst_390 = arith.constant 9.99999997E-7 : f32
    %533 = vector.broadcast %cst_390 : f32 to vector<16x1xf32>
    %534 = arith.addf %530, %533 : vector<16x1xf32>
    %535 = vector.broadcast %534 : vector<16x1xf32> to vector<16x32xf32>
    %536 = arith.divf %532, %535 : vector<16x32xf32>
    %537 = vector.broadcast %512 : vector<1x32xf32> to vector<16x32xf32>
    %538 = arith.addf %536, %537 : vector<16x32xf32>
    %cst_391 = arith.constant dense<0.000000e+00> : vector<16x96xf32>
    %539 = tpu.matmul %538, %502, %cst_391 {dimension_numbers = #tpu.dot_dimension_numbers<[1], [0], [0], [1], [0, 0, 1, 1], [], []>} : vector<16x32xf32>, vector<32x96xf32>, vector<16x96xf32> -> vector<16x96xf32>
    %540 = vector.broadcast %515 : vector<1x96xf32> to vector<16x96xf32>
    %541 = arith.addf %539, %540 : vector<16x96xf32>
    %542 = vector.extract_strided_slice %541 {offsets = [0, 0], sizes = [16, 32], strides = [1, 1]} : vector<16x96xf32> to vector<16x32xf32>
    %543 = vector.extract_strided_slice %541 {offsets = [0, 32], sizes = [16, 32], strides = [1, 1]} : vector<16x96xf32> to vector<16x32xf32>
    %544 = vector.extract_strided_slice %541 {offsets = [0, 64], sizes = [16, 32], strides = [1, 1]} : vector<16x96xf32> to vector<16x32xf32>
    %545 = vector.shape_cast %542 : vector<16x32xf32> to vector<2x8x32xf32>
    %546 = vector.shape_cast %543 : vector<16x32xf32> to vector<2x8x32xf32>
    %547 = vector.shape_cast %544 : vector<16x32xf32> to vector<2x8x32xf32>
    %548 = vector.extract_strided_slice %545 {offsets = [0, 0, 0], sizes = [2, 8, 8], strides = [1, 1, 1]} : vector<2x8x32xf32> to vector<2x8x8xf32>
    %549 = vector.extract_strided_slice %546 {offsets = [0, 0, 0], sizes = [2, 8, 8], strides = [1, 1, 1]} : vector<2x8x32xf32> to vector<2x8x8xf32>
    "tpu.trace_start"() <{level = 10 : i32, message = "bqd,bkd->bqk"}> : () -> ()
    %cst_392 = arith.constant dense<0.000000e+00> : vector<2x8x8xf32>
    %550 = tpu.matmul %548, %549, %cst_392 {dimension_numbers = #tpu.dot_dimension_numbers<[2], [2], [1], [1], [0, 0, 0, 1, 1, 1], [0], [0]>} : vector<2x8x8xf32>, vector<2x8x8xf32>, vector<2x8x8xf32> -> vector<2x8x8xf32>
    "tpu.trace_stop"() : () -> ()
    %cst_393 = arith.constant 0.353553385 : f32
    %551 = vector.broadcast %cst_393 : f32 to vector<2x8x8xf32>
    %552 = arith.mulf %550, %551 : vector<2x8x8xf32>
    %553 = arith.addf %552, %343 : vector<2x8x8xf32>
    %cst_394 = arith.constant dense<0xFF800000> : vector<2x8xf32>
    %554 = vector.multi_reduction <maximumf>, %553, %cst_394 [2] : vector<2x8x8xf32> to vector<2x8xf32>
    %555 = vector.shape_cast %554 : vector<2x8xf32> to vector<2x8x1xf32>
    %556 = vector.broadcast %555 : vector<2x8x1xf32> to vector<2x8x8xf32>
    %557 = arith.subf %553, %556 : vector<2x8x8xf32>
    %558 = math.exp %557 : vector<2x8x8xf32>
    %cst_395 = arith.constant dense<0.000000e+00> : vector<2x8xf32>
    %559 = vector.multi_reduction <add>, %558, %cst_395 [2] : vector<2x8x8xf32> to vector<2x8xf32>
    %560 = vector.shape_cast %559 : vector<2x8xf32> to vector<2x8x1xf32>
    %561 = vector.broadcast %560 : vector<2x8x1xf32> to vector<2x8x8xf32>
    %562 = arith.divf %558, %561 : vector<2x8x8xf32>
    %563 = vector.extract_strided_slice %547 {offsets = [0, 0, 0], sizes = [2, 8, 8], strides = [1, 1, 1]} : vector<2x8x32xf32> to vector<2x8x8xf32>
    "tpu.trace_start"() <{level = 10 : i32, message = "bqk,bkd->bqd"}> : () -> ()
    %cst_396 = arith.constant dense<0.000000e+00> : vector<2x8x8xf32>
    %564 = tpu.matmul %562, %563, %cst_396 {dimension_numbers = #tpu.dot_dimension_numbers<[2], [1], [1], [2], [0, 0, 0, 1, 1, 2], [0], [0]>} : vector<2x8x8xf32>, vector<2x8x8xf32>, vector<2x8x8xf32> -> vector<2x8x8xf32>
    "tpu.trace_stop"() : () -> ()
    %565 = vector.extract_strided_slice %545 {offsets = [0, 0, 8], sizes = [2, 8, 8], strides = [1, 1, 1]} : vector<2x8x32xf32> to vector<2x8x8xf32>
    %566 = vector.extract_strided_slice %546 {offsets = [0, 0, 8], sizes = [2, 8, 8], strides = [1, 1, 1]} : vector<2x8x32xf32> to vector<2x8x8xf32>
    "tpu.trace_start"() <{level = 10 : i32, message = "bqd,bkd->bqk"}> : () -> ()
    %cst_397 = arith.constant dense<0.000000e+00> : vector<2x8x8xf32>
    %567 = tpu.matmul %565, %566, %cst_397 {dimension_numbers = #tpu.dot_dimension_numbers<[2], [2], [1], [1], [0, 0, 0, 1, 1, 1], [0], [0]>} : vector<2x8x8xf32>, vector<2x8x8xf32>, vector<2x8x8xf32> -> vector<2x8x8xf32>
    "tpu.trace_stop"() : () -> ()
    %cst_398 = arith.constant 0.353553385 : f32
    %568 = vector.broadcast %cst_398 : f32 to vector<2x8x8xf32>
    %569 = arith.mulf %567, %568 : vector<2x8x8xf32>
    %570 = arith.addf %569, %343 : vector<2x8x8xf32>
    %cst_399 = arith.constant dense<0xFF800000> : vector<2x8xf32>
    %571 = vector.multi_reduction <maximumf>, %570, %cst_399 [2] : vector<2x8x8xf32> to vector<2x8xf32>
    %572 = vector.shape_cast %571 : vector<2x8xf32> to vector<2x8x1xf32>
    %573 = vector.broadcast %572 : vector<2x8x1xf32> to vector<2x8x8xf32>
    %574 = arith.subf %570, %573 : vector<2x8x8xf32>
    %575 = math.exp %574 : vector<2x8x8xf32>
    %cst_400 = arith.constant dense<0.000000e+00> : vector<2x8xf32>
    %576 = vector.multi_reduction <add>, %575, %cst_400 [2] : vector<2x8x8xf32> to vector<2x8xf32>
    %577 = vector.shape_cast %576 : vector<2x8xf32> to vector<2x8x1xf32>
    %578 = vector.broadcast %577 : vector<2x8x1xf32> to vector<2x8x8xf32>
    %579 = arith.divf %575, %578 : vector<2x8x8xf32>
    %580 = vector.extract_strided_slice %547 {offsets = [0, 0, 8], sizes = [2, 8, 8], strides = [1, 1, 1]} : vector<2x8x32xf32> to vector<2x8x8xf32>
    "tpu.trace_start"() <{level = 10 : i32, message = "bqk,bkd->bqd"}> : () -> ()
    %cst_401 = arith.constant dense<0.000000e+00> : vector<2x8x8xf32>
    %581 = tpu.matmul %579, %580, %cst_401 {dimension_numbers = #tpu.dot_dimension_numbers<[2], [1], [1], [2], [0, 0, 0, 1, 1, 2], [0], [0]>} : vector<2x8x8xf32>, vector<2x8x8xf32>, vector<2x8x8xf32> -> vector<2x8x8xf32>
    "tpu.trace_stop"() : () -> ()
    %582 = vector.extract_strided_slice %545 {offsets = [0, 0, 16], sizes = [2, 8, 8], strides = [1, 1, 1]} : vector<2x8x32xf32> to vector<2x8x8xf32>
    %583 = vector.extract_strided_slice %546 {offsets = [0, 0, 16], sizes = [2, 8, 8], strides = [1, 1, 1]} : vector<2x8x32xf32> to vector<2x8x8xf32>
    "tpu.trace_start"() <{level = 10 : i32, message = "bqd,bkd->bqk"}> : () -> ()
    %cst_402 = arith.constant dense<0.000000e+00> : vector<2x8x8xf32>
    %584 = tpu.matmul %582, %583, %cst_402 {dimension_numbers = #tpu.dot_dimension_numbers<[2], [2], [1], [1], [0, 0, 0, 1, 1, 1], [0], [0]>} : vector<2x8x8xf32>, vector<2x8x8xf32>, vector<2x8x8xf32> -> vector<2x8x8xf32>
    "tpu.trace_stop"() : () -> ()
    %cst_403 = arith.constant 0.353553385 : f32
    %585 = vector.broadcast %cst_403 : f32 to vector<2x8x8xf32>
    %586 = arith.mulf %584, %585 : vector<2x8x8xf32>
    %587 = arith.addf %586, %343 : vector<2x8x8xf32>
    %cst_404 = arith.constant dense<0xFF800000> : vector<2x8xf32>
    %588 = vector.multi_reduction <maximumf>, %587, %cst_404 [2] : vector<2x8x8xf32> to vector<2x8xf32>
    %589 = vector.shape_cast %588 : vector<2x8xf32> to vector<2x8x1xf32>
    %590 = vector.broadcast %589 : vector<2x8x1xf32> to vector<2x8x8xf32>
    %591 = arith.subf %587, %590 : vector<2x8x8xf32>
    %592 = math.exp %591 : vector<2x8x8xf32>
    %cst_405 = arith.constant dense<0.000000e+00> : vector<2x8xf32>
    %593 = vector.multi_reduction <add>, %592, %cst_405 [2] : vector<2x8x8xf32> to vector<2x8xf32>
    %594 = vector.shape_cast %593 : vector<2x8xf32> to vector<2x8x1xf32>
    %595 = vector.broadcast %594 : vector<2x8x1xf32> to vector<2x8x8xf32>
    %596 = arith.divf %592, %595 : vector<2x8x8xf32>
    %597 = vector.extract_strided_slice %547 {offsets = [0, 0, 16], sizes = [2, 8, 8], strides = [1, 1, 1]} : vector<2x8x32xf32> to vector<2x8x8xf32>
    "tpu.trace_start"() <{level = 10 : i32, message = "bqk,bkd->bqd"}> : () -> ()
    %cst_406 = arith.constant dense<0.000000e+00> : vector<2x8x8xf32>
    %598 = tpu.matmul %596, %597, %cst_406 {dimension_numbers = #tpu.dot_dimension_numbers<[2], [1], [1], [2], [0, 0, 0, 1, 1, 2], [0], [0]>} : vector<2x8x8xf32>, vector<2x8x8xf32>, vector<2x8x8xf32> -> vector<2x8x8xf32>
    "tpu.trace_stop"() : () -> ()
    %599 = vector.extract_strided_slice %545 {offsets = [0, 0, 24], sizes = [2, 8, 8], strides = [1, 1, 1]} : vector<2x8x32xf32> to vector<2x8x8xf32>
    %600 = vector.extract_strided_slice %546 {offsets = [0, 0, 24], sizes = [2, 8, 8], strides = [1, 1, 1]} : vector<2x8x32xf32> to vector<2x8x8xf32>
    "tpu.trace_start"() <{level = 10 : i32, message = "bqd,bkd->bqk"}> : () -> ()
    %cst_407 = arith.constant dense<0.000000e+00> : vector<2x8x8xf32>
    %601 = tpu.matmul %599, %600, %cst_407 {dimension_numbers = #tpu.dot_dimension_numbers<[2], [2], [1], [1], [0, 0, 0, 1, 1, 1], [0], [0]>} : vector<2x8x8xf32>, vector<2x8x8xf32>, vector<2x8x8xf32> -> vector<2x8x8xf32>
    "tpu.trace_stop"() : () -> ()
    %cst_408 = arith.constant 0.353553385 : f32
    %602 = vector.broadcast %cst_408 : f32 to vector<2x8x8xf32>
    %603 = arith.mulf %601, %602 : vector<2x8x8xf32>
    %604 = arith.addf %603, %343 : vector<2x8x8xf32>
    %cst_409 = arith.constant dense<0xFF800000> : vector<2x8xf32>
    %605 = vector.multi_reduction <maximumf>, %604, %cst_409 [2] : vector<2x8x8xf32> to vector<2x8xf32>
    %606 = vector.shape_cast %605 : vector<2x8xf32> to vector<2x8x1xf32>
    %607 = vector.broadcast %606 : vector<2x8x1xf32> to vector<2x8x8xf32>
    %608 = arith.subf %604, %607 : vector<2x8x8xf32>
    %609 = math.exp %608 : vector<2x8x8xf32>
    %cst_410 = arith.constant dense<0.000000e+00> : vector<2x8xf32>
    %610 = vector.multi_reduction <add>, %609, %cst_410 [2] : vector<2x8x8xf32> to vector<2x8xf32>
    %611 = vector.shape_cast %610 : vector<2x8xf32> to vector<2x8x1xf32>
    %612 = vector.broadcast %611 : vector<2x8x1xf32> to vector<2x8x8xf32>
    %613 = arith.divf %609, %612 : vector<2x8x8xf32>
    %614 = vector.extract_strided_slice %547 {offsets = [0, 0, 24], sizes = [2, 8, 8], strides = [1, 1, 1]} : vector<2x8x32xf32> to vector<2x8x8xf32>
    "tpu.trace_start"() <{level = 10 : i32, message = "bqk,bkd->bqd"}> : () -> ()
    %cst_411 = arith.constant dense<0.000000e+00> : vector<2x8x8xf32>
    %615 = tpu.matmul %613, %614, %cst_411 {dimension_numbers = #tpu.dot_dimension_numbers<[2], [1], [1], [2], [0, 0, 0, 1, 1, 2], [0], [0]>} : vector<2x8x8xf32>, vector<2x8x8xf32>, vector<2x8x8xf32> -> vector<2x8x8xf32>
    "tpu.trace_stop"() : () -> ()
    %616 = tpu.concatenate %564, %581, %598, %615 in 2 : vector<2x8x8xf32>, vector<2x8x8xf32>, vector<2x8x8xf32>, vector<2x8x8xf32> -> vector<2x8x32xf32>
    %617 = vector.shape_cast %616 : vector<2x8x32xf32> to vector<16x32xf32>
    %cst_412 = arith.constant dense<0.000000e+00> : vector<16x32xf32>
    %618 = tpu.matmul %617, %504, %cst_412 {dimension_numbers = #tpu.dot_dimension_numbers<[1], [0], [0], [1], [0, 0, 1, 1], [], []>} : vector<16x32xf32>, vector<32x32xf32>, vector<16x32xf32> -> vector<16x32xf32>
    %619 = vector.broadcast %516 : vector<1x32xf32> to vector<16x32xf32>
    %620 = arith.addf %618, %619 : vector<16x32xf32>
    %621 = arith.addf %500, %620 : vector<16x32xf32>
    %cst_413 = arith.constant dense<0.000000e+00> : vector<16xf32>
    %622 = vector.multi_reduction <add>, %621, %cst_413 [1] : vector<16x32xf32> to vector<16xf32>
    %623 = vector.shape_cast %622 : vector<16xf32> to vector<16x1xf32>
    %cst_414 = arith.constant 3.200000e+01 : f32
    %624 = vector.broadcast %cst_414 : f32 to vector<16x1xf32>
    %625 = arith.divf %623, %624 : vector<16x1xf32>
    %626 = vector.broadcast %625 : vector<16x1xf32> to vector<16x32xf32>
    %627 = arith.subf %621, %626 : vector<16x32xf32>
    %628 = arith.mulf %627, %627 : vector<16x32xf32>
    %cst_415 = arith.constant dense<0.000000e+00> : vector<16xf32>
    %629 = vector.multi_reduction <add>, %628, %cst_415 [1] : vector<16x32xf32> to vector<16xf32>
    %630 = vector.shape_cast %629 : vector<16xf32> to vector<16x1xf32>
    %cst_416 = arith.constant 0.0322580636 : f32
    %631 = vector.broadcast %cst_416 : f32 to vector<16x1xf32>
    %632 = arith.mulf %630, %631 : vector<16x1xf32>
    %633 = math.sqrt %632 : vector<16x1xf32>
    %634 = vector.broadcast %513 : vector<1x32xf32> to vector<16x32xf32>
    %635 = arith.mulf %634, %627 : vector<16x32xf32>
    %cst_417 = arith.constant 9.99999997E-7 : f32
    %636 = vector.broadcast %cst_417 : f32 to vector<16x1xf32>
    %637 = arith.addf %633, %636 : vector<16x1xf32>
    %638 = vector.broadcast %637 : vector<16x1xf32> to vector<16x32xf32>
    %639 = arith.divf %635, %638 : vector<16x32xf32>
    %640 = vector.broadcast %514 : vector<1x32xf32> to vector<16x32xf32>
    %641 = arith.addf %639, %640 : vector<16x32xf32>
    %cst_418 = arith.constant dense<0.000000e+00> : vector<16x64xf32>
    %642 = tpu.matmul %641, %506, %cst_418 {dimension_numbers = #tpu.dot_dimension_numbers<[1], [0], [0], [1], [0, 0, 1, 1], [], []>} : vector<16x32xf32>, vector<32x64xf32>, vector<16x64xf32> -> vector<16x64xf32>
    %643 = vector.broadcast %517 : vector<1x64xf32> to vector<16x64xf32>
    %644 = arith.addf %642, %643 : vector<16x64xf32>
    %cst_419 = arith.constant 0.000000e+00 : f32
    %645 = vector.broadcast %cst_419 : f32 to vector<16x64xf32>
    %646 = arith.maximumf %644, %645 : vector<16x64xf32>
    %cst_420 = arith.constant dense<0.000000e+00> : vector<16x32xf32>
    %647 = tpu.matmul %646, %508, %cst_420 {dimension_numbers = #tpu.dot_dimension_numbers<[1], [0], [0], [1], [0, 0, 1, 1], [], []>} : vector<16x64xf32>, vector<64x32xf32>, vector<16x32xf32> -> vector<16x32xf32>
    %648 = vector.broadcast %518 : vector<1x32xf32> to vector<16x32xf32>
    %649 = arith.addf %647, %648 : vector<16x32xf32>
    %650 = arith.addf %621, %649 : vector<16x32xf32>
    %c2_421 = arith.constant 2 : index
    %c0_422 = arith.constant 0 : index
    %c0_423 = arith.constant 0 : index
    %651 = vector.load %arg6[%c2_421, %c0_422, %c0_423] : memref<3x8x96xf32, #tpu.memory_space<vmem>>, vector<1x1x32xf32>
    %652 = vector.shape_cast %651 : vector<1x1x32xf32> to vector<1x32xf32>
    %c2_424 = arith.constant 2 : index
    %c1_425 = arith.constant 1 : index
    %c0_426 = arith.constant 0 : index
    %653 = vector.load %arg6[%c2_424, %c1_425, %c0_426] : memref<3x8x96xf32, #tpu.memory_space<vmem>>, vector<1x1x32xf32>
    %654 = vector.shape_cast %653 : vector<1x1x32xf32> to vector<1x32xf32>
    %cst_427 = arith.constant dense<0.000000e+00> : vector<16xf32>
    %655 = vector.multi_reduction <add>, %650, %cst_427 [1] : vector<16x32xf32> to vector<16xf32>
    %656 = vector.shape_cast %655 : vector<16xf32> to vector<16x1xf32>
    %cst_428 = arith.constant 3.200000e+01 : f32
    %657 = vector.broadcast %cst_428 : f32 to vector<16x1xf32>
    %658 = arith.divf %656, %657 : vector<16x1xf32>
    %659 = vector.broadcast %658 : vector<16x1xf32> to vector<16x32xf32>
    %660 = arith.subf %650, %659 : vector<16x32xf32>
    %661 = arith.mulf %660, %660 : vector<16x32xf32>
    %cst_429 = arith.constant dense<0.000000e+00> : vector<16xf32>
    %662 = vector.multi_reduction <add>, %661, %cst_429 [1] : vector<16x32xf32> to vector<16xf32>
    %663 = vector.shape_cast %662 : vector<16xf32> to vector<16x1xf32>
    %cst_430 = arith.constant 0.0322580636 : f32
    %664 = vector.broadcast %cst_430 : f32 to vector<16x1xf32>
    %665 = arith.mulf %663, %664 : vector<16x1xf32>
    %666 = math.sqrt %665 : vector<16x1xf32>
    %667 = vector.broadcast %652 : vector<1x32xf32> to vector<16x32xf32>
    %668 = arith.mulf %667, %660 : vector<16x32xf32>
    %cst_431 = arith.constant 9.99999997E-7 : f32
    %669 = vector.broadcast %cst_431 : f32 to vector<16x1xf32>
    %670 = arith.addf %666, %669 : vector<16x1xf32>
    %671 = vector.broadcast %670 : vector<16x1xf32> to vector<16x32xf32>
    %672 = arith.divf %668, %671 : vector<16x32xf32>
    %673 = vector.broadcast %654 : vector<1x32xf32> to vector<16x32xf32>
    %674 = arith.addf %672, %673 : vector<16x32xf32>
    %c0_432 = arith.constant 0 : index
    %c0_433 = arith.constant 0 : index
    %675 = vector.load %arg11[%c0_432, %c0_433] : memref<16x32xf32, #tpu.memory_space<vmem>>, vector<16x32xf32>
    %c0_434 = arith.constant 0 : index
    %c0_435 = arith.constant 0 : index
    %c0_436 = arith.constant 0 : index
    %676 = vector.load %arg7[%c0_434, %c0_435, %c0_436] : memref<2x256x96xf32, #tpu.memory_space<vmem>>, vector<1x32x96xf32>
    %677 = vector.shape_cast %676 : vector<1x32x96xf32> to vector<32x96xf32>
    %c0_437 = arith.constant 0 : index
    %c32_438 = arith.constant 32 : index
    %c0_439 = arith.constant 0 : index
    %678 = vector.load %arg7[%c0_437, %c32_438, %c0_439] : memref<2x256x96xf32, #tpu.memory_space<vmem>>, vector<1x32x32xf32>
    %679 = vector.shape_cast %678 : vector<1x32x32xf32> to vector<32x32xf32>
    %c0_440 = arith.constant 0 : index
    %c64_441 = arith.constant 64 : index
    %c0_442 = arith.constant 0 : index
    %680 = vector.load %arg7[%c0_440, %c64_441, %c0_442] : memref<2x256x96xf32, #tpu.memory_space<vmem>>, vector<1x32x32xf32>
    %681 = vector.shape_cast %680 : vector<1x32x32xf32> to vector<32x32xf32>
    %c0_443 = arith.constant 0 : index
    %c96_444 = arith.constant 96 : index
    %c0_445 = arith.constant 0 : index
    %682 = vector.load %arg7[%c0_443, %c96_444, %c0_445] : memref<2x256x96xf32, #tpu.memory_space<vmem>>, vector<1x32x64xf32>
    %683 = vector.shape_cast %682 : vector<1x32x64xf32> to vector<32x64xf32>
    %c0_446 = arith.constant 0 : index
    %c128 = arith.constant 128 : index
    %c0_447 = arith.constant 0 : index
    %684 = vector.load %arg7[%c0_446, %c128, %c0_447] : memref<2x256x96xf32, #tpu.memory_space<vmem>>, vector<1x32x32xf32>
    %685 = vector.shape_cast %684 : vector<1x32x32xf32> to vector<32x32xf32>
    %c0_448 = arith.constant 0 : index
    %c160 = arith.constant 160 : index
    %c0_449 = arith.constant 0 : index
    %686 = vector.load %arg7[%c0_448, %c160, %c0_449] : memref<2x256x96xf32, #tpu.memory_space<vmem>>, vector<1x32x64xf32>
    %687 = vector.shape_cast %686 : vector<1x32x64xf32> to vector<32x64xf32>
    %c0_450 = arith.constant 0 : index
    %c192 = arith.constant 192 : index
    %c0_451 = arith.constant 0 : index
    %688 = vector.load %arg7[%c0_450, %c192, %c0_451] : memref<2x256x96xf32, #tpu.memory_space<vmem>>, vector<1x64x32xf32>
    %689 = vector.shape_cast %688 : vector<1x64x32xf32> to vector<64x32xf32>
    %c0_452 = arith.constant 0 : index
    %c0_453 = arith.constant 0 : index
    %c0_454 = arith.constant 0 : index
    %690 = vector.load %arg8[%c0_452, %c0_453, %c0_454] : memref<3x16x96xf32, #tpu.memory_space<vmem>>, vector<1x16x96xf32>
    %691 = vector.shape_cast %690 : vector<1x16x96xf32> to vector<16x96xf32>
    %692 = vector.extract_strided_slice %691 {offsets = [0, 0], sizes = [1, 32], strides = [1, 1]} : vector<16x96xf32> to vector<1x32xf32>
    %693 = vector.extract_strided_slice %691 {offsets = [1, 0], sizes = [1, 32], strides = [1, 1]} : vector<16x96xf32> to vector<1x32xf32>
    %694 = vector.extract_strided_slice %691 {offsets = [2, 0], sizes = [1, 32], strides = [1, 1]} : vector<16x96xf32> to vector<1x32xf32>
    %695 = vector.extract_strided_slice %691 {offsets = [3, 0], sizes = [1, 32], strides = [1, 1]} : vector<16x96xf32> to vector<1x32xf32>
    %696 = vector.extract_strided_slice %691 {offsets = [4, 0], sizes = [1, 32], strides = [1, 1]} : vector<16x96xf32> to vector<1x32xf32>
    %697 = vector.extract_strided_slice %691 {offsets = [5, 0], sizes = [1, 32], strides = [1, 1]} : vector<16x96xf32> to vector<1x32xf32>
    %698 = vector.extract_strided_slice %691 {offsets = [6, 0], sizes = [1, 96], strides = [1, 1]} : vector<16x96xf32> to vector<1x96xf32>
    %699 = vector.extract_strided_slice %691 {offsets = [7, 0], sizes = [1, 32], strides = [1, 1]} : vector<16x96xf32> to vector<1x32xf32>
    %700 = vector.extract_strided_slice %691 {offsets = [8, 0], sizes = [1, 32], strides = [1, 1]} : vector<16x96xf32> to vector<1x32xf32>
    %701 = vector.extract_strided_slice %691 {offsets = [9, 0], sizes = [1, 64], strides = [1, 1]} : vector<16x96xf32> to vector<1x64xf32>
    %702 = vector.extract_strided_slice %691 {offsets = [10, 0], sizes = [1, 32], strides = [1, 1]} : vector<16x96xf32> to vector<1x32xf32>
    %703 = vector.extract_strided_slice %691 {offsets = [11, 0], sizes = [1, 64], strides = [1, 1]} : vector<16x96xf32> to vector<1x64xf32>
    %704 = vector.extract_strided_slice %691 {offsets = [12, 0], sizes = [1, 32], strides = [1, 1]} : vector<16x96xf32> to vector<1x32xf32>
    %cst_455 = arith.constant dense<0.000000e+00> : vector<16xf32>
    %705 = vector.multi_reduction <add>, %675, %cst_455 [1] : vector<16x32xf32> to vector<16xf32>
    %706 = vector.shape_cast %705 : vector<16xf32> to vector<16x1xf32>
    %cst_456 = arith.constant 3.200000e+01 : f32
    %707 = vector.broadcast %cst_456 : f32 to vector<16x1xf32>
    %708 = arith.divf %706, %707 : vector<16x1xf32>
    %709 = vector.broadcast %708 : vector<16x1xf32> to vector<16x32xf32>
    %710 = arith.subf %675, %709 : vector<16x32xf32>
    %711 = arith.mulf %710, %710 : vector<16x32xf32>
    %cst_457 = arith.constant dense<0.000000e+00> : vector<16xf32>
    %712 = vector.multi_reduction <add>, %711, %cst_457 [1] : vector<16x32xf32> to vector<16xf32>
    %713 = vector.shape_cast %712 : vector<16xf32> to vector<16x1xf32>
    %cst_458 = arith.constant 0.0322580636 : f32
    %714 = vector.broadcast %cst_458 : f32 to vector<16x1xf32>
    %715 = arith.mulf %713, %714 : vector<16x1xf32>
    %716 = math.sqrt %715 : vector<16x1xf32>
    %717 = vector.broadcast %692 : vector<1x32xf32> to vector<16x32xf32>
    %718 = arith.mulf %717, %710 : vector<16x32xf32>
    %cst_459 = arith.constant 9.99999997E-7 : f32
    %719 = vector.broadcast %cst_459 : f32 to vector<16x1xf32>
    %720 = arith.addf %716, %719 : vector<16x1xf32>
    %721 = vector.broadcast %720 : vector<16x1xf32> to vector<16x32xf32>
    %722 = arith.divf %718, %721 : vector<16x32xf32>
    %723 = vector.broadcast %693 : vector<1x32xf32> to vector<16x32xf32>
    %724 = arith.addf %722, %723 : vector<16x32xf32>
    %cst_460 = arith.constant dense<0.000000e+00> : vector<16x96xf32>
    %725 = tpu.matmul %724, %677, %cst_460 {dimension_numbers = #tpu.dot_dimension_numbers<[1], [0], [0], [1], [0, 0, 1, 1], [], []>} : vector<16x32xf32>, vector<32x96xf32>, vector<16x96xf32> -> vector<16x96xf32>
    %726 = vector.broadcast %698 : vector<1x96xf32> to vector<16x96xf32>
    %727 = arith.addf %725, %726 : vector<16x96xf32>
    %728 = vector.extract_strided_slice %727 {offsets = [0, 0], sizes = [16, 32], strides = [1, 1]} : vector<16x96xf32> to vector<16x32xf32>
    %729 = vector.extract_strided_slice %727 {offsets = [0, 32], sizes = [16, 32], strides = [1, 1]} : vector<16x96xf32> to vector<16x32xf32>
    %730 = vector.extract_strided_slice %727 {offsets = [0, 64], sizes = [16, 32], strides = [1, 1]} : vector<16x96xf32> to vector<16x32xf32>
    %731 = vector.shape_cast %728 : vector<16x32xf32> to vector<2x8x32xf32>
    %732 = vector.shape_cast %729 : vector<16x32xf32> to vector<2x8x32xf32>
    %733 = vector.shape_cast %730 : vector<16x32xf32> to vector<2x8x32xf32>
    %734 = vector.extract_strided_slice %731 {offsets = [0, 0, 0], sizes = [2, 8, 8], strides = [1, 1, 1]} : vector<2x8x32xf32> to vector<2x8x8xf32>
    %735 = vector.extract_strided_slice %732 {offsets = [0, 0, 0], sizes = [2, 8, 8], strides = [1, 1, 1]} : vector<2x8x32xf32> to vector<2x8x8xf32>
    "tpu.trace_start"() <{level = 10 : i32, message = "bqd,bkd->bqk"}> : () -> ()
    %cst_461 = arith.constant dense<0.000000e+00> : vector<2x8x8xf32>
    %736 = tpu.matmul %734, %735, %cst_461 {dimension_numbers = #tpu.dot_dimension_numbers<[2], [2], [1], [1], [0, 0, 0, 1, 1, 1], [0], [0]>} : vector<2x8x8xf32>, vector<2x8x8xf32>, vector<2x8x8xf32> -> vector<2x8x8xf32>
    "tpu.trace_stop"() : () -> ()
    %cst_462 = arith.constant 0.353553385 : f32
    %737 = vector.broadcast %cst_462 : f32 to vector<2x8x8xf32>
    %738 = arith.mulf %736, %737 : vector<2x8x8xf32>
    %739 = arith.addf %738, %349 : vector<2x8x8xf32>
    %cst_463 = arith.constant dense<0xFF800000> : vector<2x8xf32>
    %740 = vector.multi_reduction <maximumf>, %739, %cst_463 [2] : vector<2x8x8xf32> to vector<2x8xf32>
    %741 = vector.shape_cast %740 : vector<2x8xf32> to vector<2x8x1xf32>
    %742 = vector.broadcast %741 : vector<2x8x1xf32> to vector<2x8x8xf32>
    %743 = arith.subf %739, %742 : vector<2x8x8xf32>
    %744 = math.exp %743 : vector<2x8x8xf32>
    %cst_464 = arith.constant dense<0.000000e+00> : vector<2x8xf32>
    %745 = vector.multi_reduction <add>, %744, %cst_464 [2] : vector<2x8x8xf32> to vector<2x8xf32>
    %746 = vector.shape_cast %745 : vector<2x8xf32> to vector<2x8x1xf32>
    %747 = vector.broadcast %746 : vector<2x8x1xf32> to vector<2x8x8xf32>
    %748 = arith.divf %744, %747 : vector<2x8x8xf32>
    %749 = vector.extract_strided_slice %733 {offsets = [0, 0, 0], sizes = [2, 8, 8], strides = [1, 1, 1]} : vector<2x8x32xf32> to vector<2x8x8xf32>
    "tpu.trace_start"() <{level = 10 : i32, message = "bqk,bkd->bqd"}> : () -> ()
    %cst_465 = arith.constant dense<0.000000e+00> : vector<2x8x8xf32>
    %750 = tpu.matmul %748, %749, %cst_465 {dimension_numbers = #tpu.dot_dimension_numbers<[2], [1], [1], [2], [0, 0, 0, 1, 1, 2], [0], [0]>} : vector<2x8x8xf32>, vector<2x8x8xf32>, vector<2x8x8xf32> -> vector<2x8x8xf32>
    "tpu.trace_stop"() : () -> ()
    %751 = vector.extract_strided_slice %731 {offsets = [0, 0, 8], sizes = [2, 8, 8], strides = [1, 1, 1]} : vector<2x8x32xf32> to vector<2x8x8xf32>
    %752 = vector.extract_strided_slice %732 {offsets = [0, 0, 8], sizes = [2, 8, 8], strides = [1, 1, 1]} : vector<2x8x32xf32> to vector<2x8x8xf32>
    "tpu.trace_start"() <{level = 10 : i32, message = "bqd,bkd->bqk"}> : () -> ()
    %cst_466 = arith.constant dense<0.000000e+00> : vector<2x8x8xf32>
    %753 = tpu.matmul %751, %752, %cst_466 {dimension_numbers = #tpu.dot_dimension_numbers<[2], [2], [1], [1], [0, 0, 0, 1, 1, 1], [0], [0]>} : vector<2x8x8xf32>, vector<2x8x8xf32>, vector<2x8x8xf32> -> vector<2x8x8xf32>
    "tpu.trace_stop"() : () -> ()
    %cst_467 = arith.constant 0.353553385 : f32
    %754 = vector.broadcast %cst_467 : f32 to vector<2x8x8xf32>
    %755 = arith.mulf %753, %754 : vector<2x8x8xf32>
    %756 = arith.addf %755, %349 : vector<2x8x8xf32>
    %cst_468 = arith.constant dense<0xFF800000> : vector<2x8xf32>
    %757 = vector.multi_reduction <maximumf>, %756, %cst_468 [2] : vector<2x8x8xf32> to vector<2x8xf32>
    %758 = vector.shape_cast %757 : vector<2x8xf32> to vector<2x8x1xf32>
    %759 = vector.broadcast %758 : vector<2x8x1xf32> to vector<2x8x8xf32>
    %760 = arith.subf %756, %759 : vector<2x8x8xf32>
    %761 = math.exp %760 : vector<2x8x8xf32>
    %cst_469 = arith.constant dense<0.000000e+00> : vector<2x8xf32>
    %762 = vector.multi_reduction <add>, %761, %cst_469 [2] : vector<2x8x8xf32> to vector<2x8xf32>
    %763 = vector.shape_cast %762 : vector<2x8xf32> to vector<2x8x1xf32>
    %764 = vector.broadcast %763 : vector<2x8x1xf32> to vector<2x8x8xf32>
    %765 = arith.divf %761, %764 : vector<2x8x8xf32>
    %766 = vector.extract_strided_slice %733 {offsets = [0, 0, 8], sizes = [2, 8, 8], strides = [1, 1, 1]} : vector<2x8x32xf32> to vector<2x8x8xf32>
    "tpu.trace_start"() <{level = 10 : i32, message = "bqk,bkd->bqd"}> : () -> ()
    %cst_470 = arith.constant dense<0.000000e+00> : vector<2x8x8xf32>
    %767 = tpu.matmul %765, %766, %cst_470 {dimension_numbers = #tpu.dot_dimension_numbers<[2], [1], [1], [2], [0, 0, 0, 1, 1, 2], [0], [0]>} : vector<2x8x8xf32>, vector<2x8x8xf32>, vector<2x8x8xf32> -> vector<2x8x8xf32>
    "tpu.trace_stop"() : () -> ()
    %768 = vector.extract_strided_slice %731 {offsets = [0, 0, 16], sizes = [2, 8, 8], strides = [1, 1, 1]} : vector<2x8x32xf32> to vector<2x8x8xf32>
    %769 = vector.extract_strided_slice %732 {offsets = [0, 0, 16], sizes = [2, 8, 8], strides = [1, 1, 1]} : vector<2x8x32xf32> to vector<2x8x8xf32>
    "tpu.trace_start"() <{level = 10 : i32, message = "bqd,bkd->bqk"}> : () -> ()
    %cst_471 = arith.constant dense<0.000000e+00> : vector<2x8x8xf32>
    %770 = tpu.matmul %768, %769, %cst_471 {dimension_numbers = #tpu.dot_dimension_numbers<[2], [2], [1], [1], [0, 0, 0, 1, 1, 1], [0], [0]>} : vector<2x8x8xf32>, vector<2x8x8xf32>, vector<2x8x8xf32> -> vector<2x8x8xf32>
    "tpu.trace_stop"() : () -> ()
    %cst_472 = arith.constant 0.353553385 : f32
    %771 = vector.broadcast %cst_472 : f32 to vector<2x8x8xf32>
    %772 = arith.mulf %770, %771 : vector<2x8x8xf32>
    %773 = arith.addf %772, %349 : vector<2x8x8xf32>
    %cst_473 = arith.constant dense<0xFF800000> : vector<2x8xf32>
    %774 = vector.multi_reduction <maximumf>, %773, %cst_473 [2] : vector<2x8x8xf32> to vector<2x8xf32>
    %775 = vector.shape_cast %774 : vector<2x8xf32> to vector<2x8x1xf32>
    %776 = vector.broadcast %775 : vector<2x8x1xf32> to vector<2x8x8xf32>
    %777 = arith.subf %773, %776 : vector<2x8x8xf32>
    %778 = math.exp %777 : vector<2x8x8xf32>
    %cst_474 = arith.constant dense<0.000000e+00> : vector<2x8xf32>
    %779 = vector.multi_reduction <add>, %778, %cst_474 [2] : vector<2x8x8xf32> to vector<2x8xf32>
    %780 = vector.shape_cast %779 : vector<2x8xf32> to vector<2x8x1xf32>
    %781 = vector.broadcast %780 : vector<2x8x1xf32> to vector<2x8x8xf32>
    %782 = arith.divf %778, %781 : vector<2x8x8xf32>
    %783 = vector.extract_strided_slice %733 {offsets = [0, 0, 16], sizes = [2, 8, 8], strides = [1, 1, 1]} : vector<2x8x32xf32> to vector<2x8x8xf32>
    "tpu.trace_start"() <{level = 10 : i32, message = "bqk,bkd->bqd"}> : () -> ()
    %cst_475 = arith.constant dense<0.000000e+00> : vector<2x8x8xf32>
    %784 = tpu.matmul %782, %783, %cst_475 {dimension_numbers = #tpu.dot_dimension_numbers<[2], [1], [1], [2], [0, 0, 0, 1, 1, 2], [0], [0]>} : vector<2x8x8xf32>, vector<2x8x8xf32>, vector<2x8x8xf32> -> vector<2x8x8xf32>
    "tpu.trace_stop"() : () -> ()
    %785 = vector.extract_strided_slice %731 {offsets = [0, 0, 24], sizes = [2, 8, 8], strides = [1, 1, 1]} : vector<2x8x32xf32> to vector<2x8x8xf32>
    %786 = vector.extract_strided_slice %732 {offsets = [0, 0, 24], sizes = [2, 8, 8], strides = [1, 1, 1]} : vector<2x8x32xf32> to vector<2x8x8xf32>
    "tpu.trace_start"() <{level = 10 : i32, message = "bqd,bkd->bqk"}> : () -> ()
    %cst_476 = arith.constant dense<0.000000e+00> : vector<2x8x8xf32>
    %787 = tpu.matmul %785, %786, %cst_476 {dimension_numbers = #tpu.dot_dimension_numbers<[2], [2], [1], [1], [0, 0, 0, 1, 1, 1], [0], [0]>} : vector<2x8x8xf32>, vector<2x8x8xf32>, vector<2x8x8xf32> -> vector<2x8x8xf32>
    "tpu.trace_stop"() : () -> ()
    %cst_477 = arith.constant 0.353553385 : f32
    %788 = vector.broadcast %cst_477 : f32 to vector<2x8x8xf32>
    %789 = arith.mulf %787, %788 : vector<2x8x8xf32>
    %790 = arith.addf %789, %349 : vector<2x8x8xf32>
    %cst_478 = arith.constant dense<0xFF800000> : vector<2x8xf32>
    %791 = vector.multi_reduction <maximumf>, %790, %cst_478 [2] : vector<2x8x8xf32> to vector<2x8xf32>
    %792 = vector.shape_cast %791 : vector<2x8xf32> to vector<2x8x1xf32>
    %793 = vector.broadcast %792 : vector<2x8x1xf32> to vector<2x8x8xf32>
    %794 = arith.subf %790, %793 : vector<2x8x8xf32>
    %795 = math.exp %794 : vector<2x8x8xf32>
    %cst_479 = arith.constant dense<0.000000e+00> : vector<2x8xf32>
    %796 = vector.multi_reduction <add>, %795, %cst_479 [2] : vector<2x8x8xf32> to vector<2x8xf32>
    %797 = vector.shape_cast %796 : vector<2x8xf32> to vector<2x8x1xf32>
    %798 = vector.broadcast %797 : vector<2x8x1xf32> to vector<2x8x8xf32>
    %799 = arith.divf %795, %798 : vector<2x8x8xf32>
    %800 = vector.extract_strided_slice %733 {offsets = [0, 0, 24], sizes = [2, 8, 8], strides = [1, 1, 1]} : vector<2x8x32xf32> to vector<2x8x8xf32>
    "tpu.trace_start"() <{level = 10 : i32, message = "bqk,bkd->bqd"}> : () -> ()
    %cst_480 = arith.constant dense<0.000000e+00> : vector<2x8x8xf32>
    %801 = tpu.matmul %799, %800, %cst_480 {dimension_numbers = #tpu.dot_dimension_numbers<[2], [1], [1], [2], [0, 0, 0, 1, 1, 2], [0], [0]>} : vector<2x8x8xf32>, vector<2x8x8xf32>, vector<2x8x8xf32> -> vector<2x8x8xf32>
    "tpu.trace_stop"() : () -> ()
    %802 = tpu.concatenate %750, %767, %784, %801 in 2 : vector<2x8x8xf32>, vector<2x8x8xf32>, vector<2x8x8xf32>, vector<2x8x8xf32> -> vector<2x8x32xf32>
    %803 = vector.shape_cast %802 : vector<2x8x32xf32> to vector<16x32xf32>
    %cst_481 = arith.constant dense<0.000000e+00> : vector<16x32xf32>
    %804 = tpu.matmul %803, %679, %cst_481 {dimension_numbers = #tpu.dot_dimension_numbers<[1], [0], [0], [1], [0, 0, 1, 1], [], []>} : vector<16x32xf32>, vector<32x32xf32>, vector<16x32xf32> -> vector<16x32xf32>
    %805 = vector.broadcast %699 : vector<1x32xf32> to vector<16x32xf32>
    %806 = arith.addf %804, %805 : vector<16x32xf32>
    %807 = arith.addf %675, %806 : vector<16x32xf32>
    %cst_482 = arith.constant dense<0.000000e+00> : vector<16xf32>
    %808 = vector.multi_reduction <add>, %807, %cst_482 [1] : vector<16x32xf32> to vector<16xf32>
    %809 = vector.shape_cast %808 : vector<16xf32> to vector<16x1xf32>
    %cst_483 = arith.constant 3.200000e+01 : f32
    %810 = vector.broadcast %cst_483 : f32 to vector<16x1xf32>
    %811 = arith.divf %809, %810 : vector<16x1xf32>
    %812 = vector.broadcast %811 : vector<16x1xf32> to vector<16x32xf32>
    %813 = arith.subf %807, %812 : vector<16x32xf32>
    %814 = arith.mulf %813, %813 : vector<16x32xf32>
    %cst_484 = arith.constant dense<0.000000e+00> : vector<16xf32>
    %815 = vector.multi_reduction <add>, %814, %cst_484 [1] : vector<16x32xf32> to vector<16xf32>
    %816 = vector.shape_cast %815 : vector<16xf32> to vector<16x1xf32>
    %cst_485 = arith.constant 0.0322580636 : f32
    %817 = vector.broadcast %cst_485 : f32 to vector<16x1xf32>
    %818 = arith.mulf %816, %817 : vector<16x1xf32>
    %819 = math.sqrt %818 : vector<16x1xf32>
    %820 = vector.broadcast %694 : vector<1x32xf32> to vector<16x32xf32>
    %821 = arith.mulf %820, %813 : vector<16x32xf32>
    %cst_486 = arith.constant 9.99999997E-7 : f32
    %822 = vector.broadcast %cst_486 : f32 to vector<16x1xf32>
    %823 = arith.addf %819, %822 : vector<16x1xf32>
    %824 = vector.broadcast %823 : vector<16x1xf32> to vector<16x32xf32>
    %825 = arith.divf %821, %824 : vector<16x32xf32>
    %826 = vector.broadcast %695 : vector<1x32xf32> to vector<16x32xf32>
    %827 = arith.addf %825, %826 : vector<16x32xf32>
    %cst_487 = arith.constant dense<0.000000e+00> : vector<16x32xf32>
    %828 = tpu.matmul %827, %681, %cst_487 {dimension_numbers = #tpu.dot_dimension_numbers<[1], [0], [0], [1], [0, 0, 1, 1], [], []>} : vector<16x32xf32>, vector<32x32xf32>, vector<16x32xf32> -> vector<16x32xf32>
    %829 = vector.broadcast %700 : vector<1x32xf32> to vector<16x32xf32>
    %830 = arith.addf %828, %829 : vector<16x32xf32>
    %cst_488 = arith.constant dense<0.000000e+00> : vector<16x64xf32>
    %831 = tpu.matmul %674, %683, %cst_488 {dimension_numbers = #tpu.dot_dimension_numbers<[1], [0], [0], [1], [0, 0, 1, 1], [], []>} : vector<16x32xf32>, vector<32x64xf32>, vector<16x64xf32> -> vector<16x64xf32>
    %832 = vector.broadcast %701 : vector<1x64xf32> to vector<16x64xf32>
    %833 = arith.addf %831, %832 : vector<16x64xf32>
    %834 = vector.extract_strided_slice %833 {offsets = [0, 0], sizes = [16, 32], strides = [1, 1]} : vector<16x64xf32> to vector<16x32xf32>
    %835 = vector.extract_strided_slice %833 {offsets = [0, 32], sizes = [16, 32], strides = [1, 1]} : vector<16x64xf32> to vector<16x32xf32>
    %836 = vector.shape_cast %830 : vector<16x32xf32> to vector<2x8x32xf32>
    %837 = vector.shape_cast %834 : vector<16x32xf32> to vector<2x8x32xf32>
    %838 = vector.shape_cast %835 : vector<16x32xf32> to vector<2x8x32xf32>
    %839 = vector.extract_strided_slice %836 {offsets = [0, 0, 0], sizes = [2, 8, 8], strides = [1, 1, 1]} : vector<2x8x32xf32> to vector<2x8x8xf32>
    %840 = vector.extract_strided_slice %837 {offsets = [0, 0, 0], sizes = [2, 8, 8], strides = [1, 1, 1]} : vector<2x8x32xf32> to vector<2x8x8xf32>
    "tpu.trace_start"() <{level = 10 : i32, message = "bqd,bkd->bqk"}> : () -> ()
    %cst_489 = arith.constant dense<0.000000e+00> : vector<2x8x8xf32>
    %841 = tpu.matmul %839, %840, %cst_489 {dimension_numbers = #tpu.dot_dimension_numbers<[2], [2], [1], [1], [0, 0, 0, 1, 1, 1], [0], [0]>} : vector<2x8x8xf32>, vector<2x8x8xf32>, vector<2x8x8xf32> -> vector<2x8x8xf32>
    "tpu.trace_stop"() : () -> ()
    %cst_490 = arith.constant 0.353553385 : f32
    %842 = vector.broadcast %cst_490 : f32 to vector<2x8x8xf32>
    %843 = arith.mulf %841, %842 : vector<2x8x8xf32>
    %844 = arith.addf %843, %343 : vector<2x8x8xf32>
    %cst_491 = arith.constant dense<0xFF800000> : vector<2x8xf32>
    %845 = vector.multi_reduction <maximumf>, %844, %cst_491 [2] : vector<2x8x8xf32> to vector<2x8xf32>
    %846 = vector.shape_cast %845 : vector<2x8xf32> to vector<2x8x1xf32>
    %847 = vector.broadcast %846 : vector<2x8x1xf32> to vector<2x8x8xf32>
    %848 = arith.subf %844, %847 : vector<2x8x8xf32>
    %849 = math.exp %848 : vector<2x8x8xf32>
    %cst_492 = arith.constant dense<0.000000e+00> : vector<2x8xf32>
    %850 = vector.multi_reduction <add>, %849, %cst_492 [2] : vector<2x8x8xf32> to vector<2x8xf32>
    %851 = vector.shape_cast %850 : vector<2x8xf32> to vector<2x8x1xf32>
    %852 = vector.broadcast %851 : vector<2x8x1xf32> to vector<2x8x8xf32>
    %853 = arith.divf %849, %852 : vector<2x8x8xf32>
    %854 = vector.extract_strided_slice %838 {offsets = [0, 0, 0], sizes = [2, 8, 8], strides = [1, 1, 1]} : vector<2x8x32xf32> to vector<2x8x8xf32>
    "tpu.trace_start"() <{level = 10 : i32, message = "bqk,bkd->bqd"}> : () -> ()
    %cst_493 = arith.constant dense<0.000000e+00> : vector<2x8x8xf32>
    %855 = tpu.matmul %853, %854, %cst_493 {dimension_numbers = #tpu.dot_dimension_numbers<[2], [1], [1], [2], [0, 0, 0, 1, 1, 2], [0], [0]>} : vector<2x8x8xf32>, vector<2x8x8xf32>, vector<2x8x8xf32> -> vector<2x8x8xf32>
    "tpu.trace_stop"() : () -> ()
    %856 = vector.extract_strided_slice %836 {offsets = [0, 0, 8], sizes = [2, 8, 8], strides = [1, 1, 1]} : vector<2x8x32xf32> to vector<2x8x8xf32>
    %857 = vector.extract_strided_slice %837 {offsets = [0, 0, 8], sizes = [2, 8, 8], strides = [1, 1, 1]} : vector<2x8x32xf32> to vector<2x8x8xf32>
    "tpu.trace_start"() <{level = 10 : i32, message = "bqd,bkd->bqk"}> : () -> ()
    %cst_494 = arith.constant dense<0.000000e+00> : vector<2x8x8xf32>
    %858 = tpu.matmul %856, %857, %cst_494 {dimension_numbers = #tpu.dot_dimension_numbers<[2], [2], [1], [1], [0, 0, 0, 1, 1, 1], [0], [0]>} : vector<2x8x8xf32>, vector<2x8x8xf32>, vector<2x8x8xf32> -> vector<2x8x8xf32>
    "tpu.trace_stop"() : () -> ()
    %cst_495 = arith.constant 0.353553385 : f32
    %859 = vector.broadcast %cst_495 : f32 to vector<2x8x8xf32>
    %860 = arith.mulf %858, %859 : vector<2x8x8xf32>
    %861 = arith.addf %860, %343 : vector<2x8x8xf32>
    %cst_496 = arith.constant dense<0xFF800000> : vector<2x8xf32>
    %862 = vector.multi_reduction <maximumf>, %861, %cst_496 [2] : vector<2x8x8xf32> to vector<2x8xf32>
    %863 = vector.shape_cast %862 : vector<2x8xf32> to vector<2x8x1xf32>
    %864 = vector.broadcast %863 : vector<2x8x1xf32> to vector<2x8x8xf32>
    %865 = arith.subf %861, %864 : vector<2x8x8xf32>
    %866 = math.exp %865 : vector<2x8x8xf32>
    %cst_497 = arith.constant dense<0.000000e+00> : vector<2x8xf32>
    %867 = vector.multi_reduction <add>, %866, %cst_497 [2] : vector<2x8x8xf32> to vector<2x8xf32>
    %868 = vector.shape_cast %867 : vector<2x8xf32> to vector<2x8x1xf32>
    %869 = vector.broadcast %868 : vector<2x8x1xf32> to vector<2x8x8xf32>
    %870 = arith.divf %866, %869 : vector<2x8x8xf32>
    %871 = vector.extract_strided_slice %838 {offsets = [0, 0, 8], sizes = [2, 8, 8], strides = [1, 1, 1]} : vector<2x8x32xf32> to vector<2x8x8xf32>
    "tpu.trace_start"() <{level = 10 : i32, message = "bqk,bkd->bqd"}> : () -> ()
    %cst_498 = arith.constant dense<0.000000e+00> : vector<2x8x8xf32>
    %872 = tpu.matmul %870, %871, %cst_498 {dimension_numbers = #tpu.dot_dimension_numbers<[2], [1], [1], [2], [0, 0, 0, 1, 1, 2], [0], [0]>} : vector<2x8x8xf32>, vector<2x8x8xf32>, vector<2x8x8xf32> -> vector<2x8x8xf32>
    "tpu.trace_stop"() : () -> ()
    %873 = vector.extract_strided_slice %836 {offsets = [0, 0, 16], sizes = [2, 8, 8], strides = [1, 1, 1]} : vector<2x8x32xf32> to vector<2x8x8xf32>
    %874 = vector.extract_strided_slice %837 {offsets = [0, 0, 16], sizes = [2, 8, 8], strides = [1, 1, 1]} : vector<2x8x32xf32> to vector<2x8x8xf32>
    "tpu.trace_start"() <{level = 10 : i32, message = "bqd,bkd->bqk"}> : () -> ()
    %cst_499 = arith.constant dense<0.000000e+00> : vector<2x8x8xf32>
    %875 = tpu.matmul %873, %874, %cst_499 {dimension_numbers = #tpu.dot_dimension_numbers<[2], [2], [1], [1], [0, 0, 0, 1, 1, 1], [0], [0]>} : vector<2x8x8xf32>, vector<2x8x8xf32>, vector<2x8x8xf32> -> vector<2x8x8xf32>
    "tpu.trace_stop"() : () -> ()
    %cst_500 = arith.constant 0.353553385 : f32
    %876 = vector.broadcast %cst_500 : f32 to vector<2x8x8xf32>
    %877 = arith.mulf %875, %876 : vector<2x8x8xf32>
    %878 = arith.addf %877, %343 : vector<2x8x8xf32>
    %cst_501 = arith.constant dense<0xFF800000> : vector<2x8xf32>
    %879 = vector.multi_reduction <maximumf>, %878, %cst_501 [2] : vector<2x8x8xf32> to vector<2x8xf32>
    %880 = vector.shape_cast %879 : vector<2x8xf32> to vector<2x8x1xf32>
    %881 = vector.broadcast %880 : vector<2x8x1xf32> to vector<2x8x8xf32>
    %882 = arith.subf %878, %881 : vector<2x8x8xf32>
    %883 = math.exp %882 : vector<2x8x8xf32>
    %cst_502 = arith.constant dense<0.000000e+00> : vector<2x8xf32>
    %884 = vector.multi_reduction <add>, %883, %cst_502 [2] : vector<2x8x8xf32> to vector<2x8xf32>
    %885 = vector.shape_cast %884 : vector<2x8xf32> to vector<2x8x1xf32>
    %886 = vector.broadcast %885 : vector<2x8x1xf32> to vector<2x8x8xf32>
    %887 = arith.divf %883, %886 : vector<2x8x8xf32>
    %888 = vector.extract_strided_slice %838 {offsets = [0, 0, 16], sizes = [2, 8, 8], strides = [1, 1, 1]} : vector<2x8x32xf32> to vector<2x8x8xf32>
    "tpu.trace_start"() <{level = 10 : i32, message = "bqk,bkd->bqd"}> : () -> ()
    %cst_503 = arith.constant dense<0.000000e+00> : vector<2x8x8xf32>
    %889 = tpu.matmul %887, %888, %cst_503 {dimension_numbers = #tpu.dot_dimension_numbers<[2], [1], [1], [2], [0, 0, 0, 1, 1, 2], [0], [0]>} : vector<2x8x8xf32>, vector<2x8x8xf32>, vector<2x8x8xf32> -> vector<2x8x8xf32>
    "tpu.trace_stop"() : () -> ()
    %890 = vector.extract_strided_slice %836 {offsets = [0, 0, 24], sizes = [2, 8, 8], strides = [1, 1, 1]} : vector<2x8x32xf32> to vector<2x8x8xf32>
    %891 = vector.extract_strided_slice %837 {offsets = [0, 0, 24], sizes = [2, 8, 8], strides = [1, 1, 1]} : vector<2x8x32xf32> to vector<2x8x8xf32>
    "tpu.trace_start"() <{level = 10 : i32, message = "bqd,bkd->bqk"}> : () -> ()
    %cst_504 = arith.constant dense<0.000000e+00> : vector<2x8x8xf32>
    %892 = tpu.matmul %890, %891, %cst_504 {dimension_numbers = #tpu.dot_dimension_numbers<[2], [2], [1], [1], [0, 0, 0, 1, 1, 1], [0], [0]>} : vector<2x8x8xf32>, vector<2x8x8xf32>, vector<2x8x8xf32> -> vector<2x8x8xf32>
    "tpu.trace_stop"() : () -> ()
    %cst_505 = arith.constant 0.353553385 : f32
    %893 = vector.broadcast %cst_505 : f32 to vector<2x8x8xf32>
    %894 = arith.mulf %892, %893 : vector<2x8x8xf32>
    %895 = arith.addf %894, %343 : vector<2x8x8xf32>
    %cst_506 = arith.constant dense<0xFF800000> : vector<2x8xf32>
    %896 = vector.multi_reduction <maximumf>, %895, %cst_506 [2] : vector<2x8x8xf32> to vector<2x8xf32>
    %897 = vector.shape_cast %896 : vector<2x8xf32> to vector<2x8x1xf32>
    %898 = vector.broadcast %897 : vector<2x8x1xf32> to vector<2x8x8xf32>
    %899 = arith.subf %895, %898 : vector<2x8x8xf32>
    %900 = math.exp %899 : vector<2x8x8xf32>
    %cst_507 = arith.constant dense<0.000000e+00> : vector<2x8xf32>
    %901 = vector.multi_reduction <add>, %900, %cst_507 [2] : vector<2x8x8xf32> to vector<2x8xf32>
    %902 = vector.shape_cast %901 : vector<2x8xf32> to vector<2x8x1xf32>
    %903 = vector.broadcast %902 : vector<2x8x1xf32> to vector<2x8x8xf32>
    %904 = arith.divf %900, %903 : vector<2x8x8xf32>
    %905 = vector.extract_strided_slice %838 {offsets = [0, 0, 24], sizes = [2, 8, 8], strides = [1, 1, 1]} : vector<2x8x32xf32> to vector<2x8x8xf32>
    "tpu.trace_start"() <{level = 10 : i32, message = "bqk,bkd->bqd"}> : () -> ()
    %cst_508 = arith.constant dense<0.000000e+00> : vector<2x8x8xf32>
    %906 = tpu.matmul %904, %905, %cst_508 {dimension_numbers = #tpu.dot_dimension_numbers<[2], [1], [1], [2], [0, 0, 0, 1, 1, 2], [0], [0]>} : vector<2x8x8xf32>, vector<2x8x8xf32>, vector<2x8x8xf32> -> vector<2x8x8xf32>
    "tpu.trace_stop"() : () -> ()
    %907 = tpu.concatenate %855, %872, %889, %906 in 2 : vector<2x8x8xf32>, vector<2x8x8xf32>, vector<2x8x8xf32>, vector<2x8x8xf32> -> vector<2x8x32xf32>
    %908 = vector.shape_cast %907 : vector<2x8x32xf32> to vector<16x32xf32>
    %cst_509 = arith.constant dense<0.000000e+00> : vector<16x32xf32>
    %909 = tpu.matmul %908, %685, %cst_509 {dimension_numbers = #tpu.dot_dimension_numbers<[1], [0], [0], [1], [0, 0, 1, 1], [], []>} : vector<16x32xf32>, vector<32x32xf32>, vector<16x32xf32> -> vector<16x32xf32>
    %910 = vector.broadcast %702 : vector<1x32xf32> to vector<16x32xf32>
    %911 = arith.addf %909, %910 : vector<16x32xf32>
    %912 = arith.addf %807, %911 : vector<16x32xf32>
    %cst_510 = arith.constant dense<0.000000e+00> : vector<16xf32>
    %913 = vector.multi_reduction <add>, %912, %cst_510 [1] : vector<16x32xf32> to vector<16xf32>
    %914 = vector.shape_cast %913 : vector<16xf32> to vector<16x1xf32>
    %cst_511 = arith.constant 3.200000e+01 : f32
    %915 = vector.broadcast %cst_511 : f32 to vector<16x1xf32>
    %916 = arith.divf %914, %915 : vector<16x1xf32>
    %917 = vector.broadcast %916 : vector<16x1xf32> to vector<16x32xf32>
    %918 = arith.subf %912, %917 : vector<16x32xf32>
    %919 = arith.mulf %918, %918 : vector<16x32xf32>
    %cst_512 = arith.constant dense<0.000000e+00> : vector<16xf32>
    %920 = vector.multi_reduction <add>, %919, %cst_512 [1] : vector<16x32xf32> to vector<16xf32>
    %921 = vector.shape_cast %920 : vector<16xf32> to vector<16x1xf32>
    %cst_513 = arith.constant 0.0322580636 : f32
    %922 = vector.broadcast %cst_513 : f32 to vector<16x1xf32>
    %923 = arith.mulf %921, %922 : vector<16x1xf32>
    %924 = math.sqrt %923 : vector<16x1xf32>
    %925 = vector.broadcast %696 : vector<1x32xf32> to vector<16x32xf32>
    %926 = arith.mulf %925, %918 : vector<16x32xf32>
    %cst_514 = arith.constant 9.99999997E-7 : f32
    %927 = vector.broadcast %cst_514 : f32 to vector<16x1xf32>
    %928 = arith.addf %924, %927 : vector<16x1xf32>
    %929 = vector.broadcast %928 : vector<16x1xf32> to vector<16x32xf32>
    %930 = arith.divf %926, %929 : vector<16x32xf32>
    %931 = vector.broadcast %697 : vector<1x32xf32> to vector<16x32xf32>
    %932 = arith.addf %930, %931 : vector<16x32xf32>
    %cst_515 = arith.constant dense<0.000000e+00> : vector<16x64xf32>
    %933 = tpu.matmul %932, %687, %cst_515 {dimension_numbers = #tpu.dot_dimension_numbers<[1], [0], [0], [1], [0, 0, 1, 1], [], []>} : vector<16x32xf32>, vector<32x64xf32>, vector<16x64xf32> -> vector<16x64xf32>
    %934 = vector.broadcast %703 : vector<1x64xf32> to vector<16x64xf32>
    %935 = arith.addf %933, %934 : vector<16x64xf32>
    %cst_516 = arith.constant 0.000000e+00 : f32
    %936 = vector.broadcast %cst_516 : f32 to vector<16x64xf32>
    %937 = arith.maximumf %935, %936 : vector<16x64xf32>
    %cst_517 = arith.constant dense<0.000000e+00> : vector<16x32xf32>
    %938 = tpu.matmul %937, %689, %cst_517 {dimension_numbers = #tpu.dot_dimension_numbers<[1], [0], [0], [1], [0, 0, 1, 1], [], []>} : vector<16x64xf32>, vector<64x32xf32>, vector<16x32xf32> -> vector<16x32xf32>
    %939 = vector.broadcast %704 : vector<1x32xf32> to vector<16x32xf32>
    %940 = arith.addf %938, %939 : vector<16x32xf32>
    %941 = arith.addf %912, %940 : vector<16x32xf32>
    %c1_518 = arith.constant 1 : index
    %c0_519 = arith.constant 0 : index
    %c0_520 = arith.constant 0 : index
    %942 = vector.load %arg7[%c1_518, %c0_519, %c0_520] : memref<2x256x96xf32, #tpu.memory_space<vmem>>, vector<1x32x96xf32>
    %943 = vector.shape_cast %942 : vector<1x32x96xf32> to vector<32x96xf32>
    %c1_521 = arith.constant 1 : index
    %c32_522 = arith.constant 32 : index
    %c0_523 = arith.constant 0 : index
    %944 = vector.load %arg7[%c1_521, %c32_522, %c0_523] : memref<2x256x96xf32, #tpu.memory_space<vmem>>, vector<1x32x32xf32>
    %945 = vector.shape_cast %944 : vector<1x32x32xf32> to vector<32x32xf32>
    %c1_524 = arith.constant 1 : index
    %c64_525 = arith.constant 64 : index
    %c0_526 = arith.constant 0 : index
    %946 = vector.load %arg7[%c1_524, %c64_525, %c0_526] : memref<2x256x96xf32, #tpu.memory_space<vmem>>, vector<1x32x32xf32>
    %947 = vector.shape_cast %946 : vector<1x32x32xf32> to vector<32x32xf32>
    %c1_527 = arith.constant 1 : index
    %c96_528 = arith.constant 96 : index
    %c0_529 = arith.constant 0 : index
    %948 = vector.load %arg7[%c1_527, %c96_528, %c0_529] : memref<2x256x96xf32, #tpu.memory_space<vmem>>, vector<1x32x64xf32>
    %949 = vector.shape_cast %948 : vector<1x32x64xf32> to vector<32x64xf32>
    %c1_530 = arith.constant 1 : index
    %c128_531 = arith.constant 128 : index
    %c0_532 = arith.constant 0 : index
    %950 = vector.load %arg7[%c1_530, %c128_531, %c0_532] : memref<2x256x96xf32, #tpu.memory_space<vmem>>, vector<1x32x32xf32>
    %951 = vector.shape_cast %950 : vector<1x32x32xf32> to vector<32x32xf32>
    %c1_533 = arith.constant 1 : index
    %c160_534 = arith.constant 160 : index
    %c0_535 = arith.constant 0 : index
    %952 = vector.load %arg7[%c1_533, %c160_534, %c0_535] : memref<2x256x96xf32, #tpu.memory_space<vmem>>, vector<1x32x64xf32>
    %953 = vector.shape_cast %952 : vector<1x32x64xf32> to vector<32x64xf32>
    %c1_536 = arith.constant 1 : index
    %c192_537 = arith.constant 192 : index
    %c0_538 = arith.constant 0 : index
    %954 = vector.load %arg7[%c1_536, %c192_537, %c0_538] : memref<2x256x96xf32, #tpu.memory_space<vmem>>, vector<1x64x32xf32>
    %955 = vector.shape_cast %954 : vector<1x64x32xf32> to vector<64x32xf32>
    %c1_539 = arith.constant 1 : index
    %c0_540 = arith.constant 0 : index
    %c0_541 = arith.constant 0 : index
    %956 = vector.load %arg8[%c1_539, %c0_540, %c0_541] : memref<3x16x96xf32, #tpu.memory_space<vmem>>, vector<1x16x96xf32>
    %957 = vector.shape_cast %956 : vector<1x16x96xf32> to vector<16x96xf32>
    %958 = vector.extract_strided_slice %957 {offsets = [0, 0], sizes = [1, 32], strides = [1, 1]} : vector<16x96xf32> to vector<1x32xf32>
    %959 = vector.extract_strided_slice %957 {offsets = [1, 0], sizes = [1, 32], strides = [1, 1]} : vector<16x96xf32> to vector<1x32xf32>
    %960 = vector.extract_strided_slice %957 {offsets = [2, 0], sizes = [1, 32], strides = [1, 1]} : vector<16x96xf32> to vector<1x32xf32>
    %961 = vector.extract_strided_slice %957 {offsets = [3, 0], sizes = [1, 32], strides = [1, 1]} : vector<16x96xf32> to vector<1x32xf32>
    %962 = vector.extract_strided_slice %957 {offsets = [4, 0], sizes = [1, 32], strides = [1, 1]} : vector<16x96xf32> to vector<1x32xf32>
    %963 = vector.extract_strided_slice %957 {offsets = [5, 0], sizes = [1, 32], strides = [1, 1]} : vector<16x96xf32> to vector<1x32xf32>
    %964 = vector.extract_strided_slice %957 {offsets = [6, 0], sizes = [1, 96], strides = [1, 1]} : vector<16x96xf32> to vector<1x96xf32>
    %965 = vector.extract_strided_slice %957 {offsets = [7, 0], sizes = [1, 32], strides = [1, 1]} : vector<16x96xf32> to vector<1x32xf32>
    %966 = vector.extract_strided_slice %957 {offsets = [8, 0], sizes = [1, 32], strides = [1, 1]} : vector<16x96xf32> to vector<1x32xf32>
    %967 = vector.extract_strided_slice %957 {offsets = [9, 0], sizes = [1, 64], strides = [1, 1]} : vector<16x96xf32> to vector<1x64xf32>
    %968 = vector.extract_strided_slice %957 {offsets = [10, 0], sizes = [1, 32], strides = [1, 1]} : vector<16x96xf32> to vector<1x32xf32>
    %969 = vector.extract_strided_slice %957 {offsets = [11, 0], sizes = [1, 64], strides = [1, 1]} : vector<16x96xf32> to vector<1x64xf32>
    %970 = vector.extract_strided_slice %957 {offsets = [12, 0], sizes = [1, 32], strides = [1, 1]} : vector<16x96xf32> to vector<1x32xf32>
    %cst_542 = arith.constant dense<0.000000e+00> : vector<16xf32>
    %971 = vector.multi_reduction <add>, %941, %cst_542 [1] : vector<16x32xf32> to vector<16xf32>
    %972 = vector.shape_cast %971 : vector<16xf32> to vector<16x1xf32>
    %cst_543 = arith.constant 3.200000e+01 : f32
    %973 = vector.broadcast %cst_543 : f32 to vector<16x1xf32>
    %974 = arith.divf %972, %973 : vector<16x1xf32>
    %975 = vector.broadcast %974 : vector<16x1xf32> to vector<16x32xf32>
    %976 = arith.subf %941, %975 : vector<16x32xf32>
    %977 = arith.mulf %976, %976 : vector<16x32xf32>
    %cst_544 = arith.constant dense<0.000000e+00> : vector<16xf32>
    %978 = vector.multi_reduction <add>, %977, %cst_544 [1] : vector<16x32xf32> to vector<16xf32>
    %979 = vector.shape_cast %978 : vector<16xf32> to vector<16x1xf32>
    %cst_545 = arith.constant 0.0322580636 : f32
    %980 = vector.broadcast %cst_545 : f32 to vector<16x1xf32>
    %981 = arith.mulf %979, %980 : vector<16x1xf32>
    %982 = math.sqrt %981 : vector<16x1xf32>
    %983 = vector.broadcast %958 : vector<1x32xf32> to vector<16x32xf32>
    %984 = arith.mulf %983, %976 : vector<16x32xf32>
    %cst_546 = arith.constant 9.99999997E-7 : f32
    %985 = vector.broadcast %cst_546 : f32 to vector<16x1xf32>
    %986 = arith.addf %982, %985 : vector<16x1xf32>
    %987 = vector.broadcast %986 : vector<16x1xf32> to vector<16x32xf32>
    %988 = arith.divf %984, %987 : vector<16x32xf32>
    %989 = vector.broadcast %959 : vector<1x32xf32> to vector<16x32xf32>
    %990 = arith.addf %988, %989 : vector<16x32xf32>
    %cst_547 = arith.constant dense<0.000000e+00> : vector<16x96xf32>
    %991 = tpu.matmul %990, %943, %cst_547 {dimension_numbers = #tpu.dot_dimension_numbers<[1], [0], [0], [1], [0, 0, 1, 1], [], []>} : vector<16x32xf32>, vector<32x96xf32>, vector<16x96xf32> -> vector<16x96xf32>
    %992 = vector.broadcast %964 : vector<1x96xf32> to vector<16x96xf32>
    %993 = arith.addf %991, %992 : vector<16x96xf32>
    %994 = vector.extract_strided_slice %993 {offsets = [0, 0], sizes = [16, 32], strides = [1, 1]} : vector<16x96xf32> to vector<16x32xf32>
    %995 = vector.extract_strided_slice %993 {offsets = [0, 32], sizes = [16, 32], strides = [1, 1]} : vector<16x96xf32> to vector<16x32xf32>
    %996 = vector.extract_strided_slice %993 {offsets = [0, 64], sizes = [16, 32], strides = [1, 1]} : vector<16x96xf32> to vector<16x32xf32>
    %997 = vector.shape_cast %994 : vector<16x32xf32> to vector<2x8x32xf32>
    %998 = vector.shape_cast %995 : vector<16x32xf32> to vector<2x8x32xf32>
    %999 = vector.shape_cast %996 : vector<16x32xf32> to vector<2x8x32xf32>
    %1000 = vector.extract_strided_slice %997 {offsets = [0, 0, 0], sizes = [2, 8, 8], strides = [1, 1, 1]} : vector<2x8x32xf32> to vector<2x8x8xf32>
    %1001 = vector.extract_strided_slice %998 {offsets = [0, 0, 0], sizes = [2, 8, 8], strides = [1, 1, 1]} : vector<2x8x32xf32> to vector<2x8x8xf32>
    "tpu.trace_start"() <{level = 10 : i32, message = "bqd,bkd->bqk"}> : () -> ()
    %cst_548 = arith.constant dense<0.000000e+00> : vector<2x8x8xf32>
    %1002 = tpu.matmul %1000, %1001, %cst_548 {dimension_numbers = #tpu.dot_dimension_numbers<[2], [2], [1], [1], [0, 0, 0, 1, 1, 1], [0], [0]>} : vector<2x8x8xf32>, vector<2x8x8xf32>, vector<2x8x8xf32> -> vector<2x8x8xf32>
    "tpu.trace_stop"() : () -> ()
    %cst_549 = arith.constant 0.353553385 : f32
    %1003 = vector.broadcast %cst_549 : f32 to vector<2x8x8xf32>
    %1004 = arith.mulf %1002, %1003 : vector<2x8x8xf32>
    %1005 = arith.addf %1004, %349 : vector<2x8x8xf32>
    %cst_550 = arith.constant dense<0xFF800000> : vector<2x8xf32>
    %1006 = vector.multi_reduction <maximumf>, %1005, %cst_550 [2] : vector<2x8x8xf32> to vector<2x8xf32>
    %1007 = vector.shape_cast %1006 : vector<2x8xf32> to vector<2x8x1xf32>
    %1008 = vector.broadcast %1007 : vector<2x8x1xf32> to vector<2x8x8xf32>
    %1009 = arith.subf %1005, %1008 : vector<2x8x8xf32>
    %1010 = math.exp %1009 : vector<2x8x8xf32>
    %cst_551 = arith.constant dense<0.000000e+00> : vector<2x8xf32>
    %1011 = vector.multi_reduction <add>, %1010, %cst_551 [2] : vector<2x8x8xf32> to vector<2x8xf32>
    %1012 = vector.shape_cast %1011 : vector<2x8xf32> to vector<2x8x1xf32>
    %1013 = vector.broadcast %1012 : vector<2x8x1xf32> to vector<2x8x8xf32>
    %1014 = arith.divf %1010, %1013 : vector<2x8x8xf32>
    %1015 = vector.extract_strided_slice %999 {offsets = [0, 0, 0], sizes = [2, 8, 8], strides = [1, 1, 1]} : vector<2x8x32xf32> to vector<2x8x8xf32>
    "tpu.trace_start"() <{level = 10 : i32, message = "bqk,bkd->bqd"}> : () -> ()
    %cst_552 = arith.constant dense<0.000000e+00> : vector<2x8x8xf32>
    %1016 = tpu.matmul %1014, %1015, %cst_552 {dimension_numbers = #tpu.dot_dimension_numbers<[2], [1], [1], [2], [0, 0, 0, 1, 1, 2], [0], [0]>} : vector<2x8x8xf32>, vector<2x8x8xf32>, vector<2x8x8xf32> -> vector<2x8x8xf32>
    "tpu.trace_stop"() : () -> ()
    %1017 = vector.extract_strided_slice %997 {offsets = [0, 0, 8], sizes = [2, 8, 8], strides = [1, 1, 1]} : vector<2x8x32xf32> to vector<2x8x8xf32>
    %1018 = vector.extract_strided_slice %998 {offsets = [0, 0, 8], sizes = [2, 8, 8], strides = [1, 1, 1]} : vector<2x8x32xf32> to vector<2x8x8xf32>
    "tpu.trace_start"() <{level = 10 : i32, message = "bqd,bkd->bqk"}> : () -> ()
    %cst_553 = arith.constant dense<0.000000e+00> : vector<2x8x8xf32>
    %1019 = tpu.matmul %1017, %1018, %cst_553 {dimension_numbers = #tpu.dot_dimension_numbers<[2], [2], [1], [1], [0, 0, 0, 1, 1, 1], [0], [0]>} : vector<2x8x8xf32>, vector<2x8x8xf32>, vector<2x8x8xf32> -> vector<2x8x8xf32>
    "tpu.trace_stop"() : () -> ()
    %cst_554 = arith.constant 0.353553385 : f32
    %1020 = vector.broadcast %cst_554 : f32 to vector<2x8x8xf32>
    %1021 = arith.mulf %1019, %1020 : vector<2x8x8xf32>
    %1022 = arith.addf %1021, %349 : vector<2x8x8xf32>
    %cst_555 = arith.constant dense<0xFF800000> : vector<2x8xf32>
    %1023 = vector.multi_reduction <maximumf>, %1022, %cst_555 [2] : vector<2x8x8xf32> to vector<2x8xf32>
    %1024 = vector.shape_cast %1023 : vector<2x8xf32> to vector<2x8x1xf32>
    %1025 = vector.broadcast %1024 : vector<2x8x1xf32> to vector<2x8x8xf32>
    %1026 = arith.subf %1022, %1025 : vector<2x8x8xf32>
    %1027 = math.exp %1026 : vector<2x8x8xf32>
    %cst_556 = arith.constant dense<0.000000e+00> : vector<2x8xf32>
    %1028 = vector.multi_reduction <add>, %1027, %cst_556 [2] : vector<2x8x8xf32> to vector<2x8xf32>
    %1029 = vector.shape_cast %1028 : vector<2x8xf32> to vector<2x8x1xf32>
    %1030 = vector.broadcast %1029 : vector<2x8x1xf32> to vector<2x8x8xf32>
    %1031 = arith.divf %1027, %1030 : vector<2x8x8xf32>
    %1032 = vector.extract_strided_slice %999 {offsets = [0, 0, 8], sizes = [2, 8, 8], strides = [1, 1, 1]} : vector<2x8x32xf32> to vector<2x8x8xf32>
    "tpu.trace_start"() <{level = 10 : i32, message = "bqk,bkd->bqd"}> : () -> ()
    %cst_557 = arith.constant dense<0.000000e+00> : vector<2x8x8xf32>
    %1033 = tpu.matmul %1031, %1032, %cst_557 {dimension_numbers = #tpu.dot_dimension_numbers<[2], [1], [1], [2], [0, 0, 0, 1, 1, 2], [0], [0]>} : vector<2x8x8xf32>, vector<2x8x8xf32>, vector<2x8x8xf32> -> vector<2x8x8xf32>
    "tpu.trace_stop"() : () -> ()
    %1034 = vector.extract_strided_slice %997 {offsets = [0, 0, 16], sizes = [2, 8, 8], strides = [1, 1, 1]} : vector<2x8x32xf32> to vector<2x8x8xf32>
    %1035 = vector.extract_strided_slice %998 {offsets = [0, 0, 16], sizes = [2, 8, 8], strides = [1, 1, 1]} : vector<2x8x32xf32> to vector<2x8x8xf32>
    "tpu.trace_start"() <{level = 10 : i32, message = "bqd,bkd->bqk"}> : () -> ()
    %cst_558 = arith.constant dense<0.000000e+00> : vector<2x8x8xf32>
    %1036 = tpu.matmul %1034, %1035, %cst_558 {dimension_numbers = #tpu.dot_dimension_numbers<[2], [2], [1], [1], [0, 0, 0, 1, 1, 1], [0], [0]>} : vector<2x8x8xf32>, vector<2x8x8xf32>, vector<2x8x8xf32> -> vector<2x8x8xf32>
    "tpu.trace_stop"() : () -> ()
    %cst_559 = arith.constant 0.353553385 : f32
    %1037 = vector.broadcast %cst_559 : f32 to vector<2x8x8xf32>
    %1038 = arith.mulf %1036, %1037 : vector<2x8x8xf32>
    %1039 = arith.addf %1038, %349 : vector<2x8x8xf32>
    %cst_560 = arith.constant dense<0xFF800000> : vector<2x8xf32>
    %1040 = vector.multi_reduction <maximumf>, %1039, %cst_560 [2] : vector<2x8x8xf32> to vector<2x8xf32>
    %1041 = vector.shape_cast %1040 : vector<2x8xf32> to vector<2x8x1xf32>
    %1042 = vector.broadcast %1041 : vector<2x8x1xf32> to vector<2x8x8xf32>
    %1043 = arith.subf %1039, %1042 : vector<2x8x8xf32>
    %1044 = math.exp %1043 : vector<2x8x8xf32>
    %cst_561 = arith.constant dense<0.000000e+00> : vector<2x8xf32>
    %1045 = vector.multi_reduction <add>, %1044, %cst_561 [2] : vector<2x8x8xf32> to vector<2x8xf32>
    %1046 = vector.shape_cast %1045 : vector<2x8xf32> to vector<2x8x1xf32>
    %1047 = vector.broadcast %1046 : vector<2x8x1xf32> to vector<2x8x8xf32>
    %1048 = arith.divf %1044, %1047 : vector<2x8x8xf32>
    %1049 = vector.extract_strided_slice %999 {offsets = [0, 0, 16], sizes = [2, 8, 8], strides = [1, 1, 1]} : vector<2x8x32xf32> to vector<2x8x8xf32>
    "tpu.trace_start"() <{level = 10 : i32, message = "bqk,bkd->bqd"}> : () -> ()
    %cst_562 = arith.constant dense<0.000000e+00> : vector<2x8x8xf32>
    %1050 = tpu.matmul %1048, %1049, %cst_562 {dimension_numbers = #tpu.dot_dimension_numbers<[2], [1], [1], [2], [0, 0, 0, 1, 1, 2], [0], [0]>} : vector<2x8x8xf32>, vector<2x8x8xf32>, vector<2x8x8xf32> -> vector<2x8x8xf32>
    "tpu.trace_stop"() : () -> ()
    %1051 = vector.extract_strided_slice %997 {offsets = [0, 0, 24], sizes = [2, 8, 8], strides = [1, 1, 1]} : vector<2x8x32xf32> to vector<2x8x8xf32>
    %1052 = vector.extract_strided_slice %998 {offsets = [0, 0, 24], sizes = [2, 8, 8], strides = [1, 1, 1]} : vector<2x8x32xf32> to vector<2x8x8xf32>
    "tpu.trace_start"() <{level = 10 : i32, message = "bqd,bkd->bqk"}> : () -> ()
    %cst_563 = arith.constant dense<0.000000e+00> : vector<2x8x8xf32>
    %1053 = tpu.matmul %1051, %1052, %cst_563 {dimension_numbers = #tpu.dot_dimension_numbers<[2], [2], [1], [1], [0, 0, 0, 1, 1, 1], [0], [0]>} : vector<2x8x8xf32>, vector<2x8x8xf32>, vector<2x8x8xf32> -> vector<2x8x8xf32>
    "tpu.trace_stop"() : () -> ()
    %cst_564 = arith.constant 0.353553385 : f32
    %1054 = vector.broadcast %cst_564 : f32 to vector<2x8x8xf32>
    %1055 = arith.mulf %1053, %1054 : vector<2x8x8xf32>
    %1056 = arith.addf %1055, %349 : vector<2x8x8xf32>
    %cst_565 = arith.constant dense<0xFF800000> : vector<2x8xf32>
    %1057 = vector.multi_reduction <maximumf>, %1056, %cst_565 [2] : vector<2x8x8xf32> to vector<2x8xf32>
    %1058 = vector.shape_cast %1057 : vector<2x8xf32> to vector<2x8x1xf32>
    %1059 = vector.broadcast %1058 : vector<2x8x1xf32> to vector<2x8x8xf32>
    %1060 = arith.subf %1056, %1059 : vector<2x8x8xf32>
    %1061 = math.exp %1060 : vector<2x8x8xf32>
    %cst_566 = arith.constant dense<0.000000e+00> : vector<2x8xf32>
    %1062 = vector.multi_reduction <add>, %1061, %cst_566 [2] : vector<2x8x8xf32> to vector<2x8xf32>
    %1063 = vector.shape_cast %1062 : vector<2x8xf32> to vector<2x8x1xf32>
    %1064 = vector.broadcast %1063 : vector<2x8x1xf32> to vector<2x8x8xf32>
    %1065 = arith.divf %1061, %1064 : vector<2x8x8xf32>
    %1066 = vector.extract_strided_slice %999 {offsets = [0, 0, 24], sizes = [2, 8, 8], strides = [1, 1, 1]} : vector<2x8x32xf32> to vector<2x8x8xf32>
    "tpu.trace_start"() <{level = 10 : i32, message = "bqk,bkd->bqd"}> : () -> ()
    %cst_567 = arith.constant dense<0.000000e+00> : vector<2x8x8xf32>
    %1067 = tpu.matmul %1065, %1066, %cst_567 {dimension_numbers = #tpu.dot_dimension_numbers<[2], [1], [1], [2], [0, 0, 0, 1, 1, 2], [0], [0]>} : vector<2x8x8xf32>, vector<2x8x8xf32>, vector<2x8x8xf32> -> vector<2x8x8xf32>
    "tpu.trace_stop"() : () -> ()
    %1068 = tpu.concatenate %1016, %1033, %1050, %1067 in 2 : vector<2x8x8xf32>, vector<2x8x8xf32>, vector<2x8x8xf32>, vector<2x8x8xf32> -> vector<2x8x32xf32>
    %1069 = vector.shape_cast %1068 : vector<2x8x32xf32> to vector<16x32xf32>
    %cst_568 = arith.constant dense<0.000000e+00> : vector<16x32xf32>
    %1070 = tpu.matmul %1069, %945, %cst_568 {dimension_numbers = #tpu.dot_dimension_numbers<[1], [0], [0], [1], [0, 0, 1, 1], [], []>} : vector<16x32xf32>, vector<32x32xf32>, vector<16x32xf32> -> vector<16x32xf32>
    %1071 = vector.broadcast %965 : vector<1x32xf32> to vector<16x32xf32>
    %1072 = arith.addf %1070, %1071 : vector<16x32xf32>
    %1073 = arith.addf %941, %1072 : vector<16x32xf32>
    %cst_569 = arith.constant dense<0.000000e+00> : vector<16xf32>
    %1074 = vector.multi_reduction <add>, %1073, %cst_569 [1] : vector<16x32xf32> to vector<16xf32>
    %1075 = vector.shape_cast %1074 : vector<16xf32> to vector<16x1xf32>
    %cst_570 = arith.constant 3.200000e+01 : f32
    %1076 = vector.broadcast %cst_570 : f32 to vector<16x1xf32>
    %1077 = arith.divf %1075, %1076 : vector<16x1xf32>
    %1078 = vector.broadcast %1077 : vector<16x1xf32> to vector<16x32xf32>
    %1079 = arith.subf %1073, %1078 : vector<16x32xf32>
    %1080 = arith.mulf %1079, %1079 : vector<16x32xf32>
    %cst_571 = arith.constant dense<0.000000e+00> : vector<16xf32>
    %1081 = vector.multi_reduction <add>, %1080, %cst_571 [1] : vector<16x32xf32> to vector<16xf32>
    %1082 = vector.shape_cast %1081 : vector<16xf32> to vector<16x1xf32>
    %cst_572 = arith.constant 0.0322580636 : f32
    %1083 = vector.broadcast %cst_572 : f32 to vector<16x1xf32>
    %1084 = arith.mulf %1082, %1083 : vector<16x1xf32>
    %1085 = math.sqrt %1084 : vector<16x1xf32>
    %1086 = vector.broadcast %960 : vector<1x32xf32> to vector<16x32xf32>
    %1087 = arith.mulf %1086, %1079 : vector<16x32xf32>
    %cst_573 = arith.constant 9.99999997E-7 : f32
    %1088 = vector.broadcast %cst_573 : f32 to vector<16x1xf32>
    %1089 = arith.addf %1085, %1088 : vector<16x1xf32>
    %1090 = vector.broadcast %1089 : vector<16x1xf32> to vector<16x32xf32>
    %1091 = arith.divf %1087, %1090 : vector<16x32xf32>
    %1092 = vector.broadcast %961 : vector<1x32xf32> to vector<16x32xf32>
    %1093 = arith.addf %1091, %1092 : vector<16x32xf32>
    %cst_574 = arith.constant dense<0.000000e+00> : vector<16x32xf32>
    %1094 = tpu.matmul %1093, %947, %cst_574 {dimension_numbers = #tpu.dot_dimension_numbers<[1], [0], [0], [1], [0, 0, 1, 1], [], []>} : vector<16x32xf32>, vector<32x32xf32>, vector<16x32xf32> -> vector<16x32xf32>
    %1095 = vector.broadcast %966 : vector<1x32xf32> to vector<16x32xf32>
    %1096 = arith.addf %1094, %1095 : vector<16x32xf32>
    %cst_575 = arith.constant dense<0.000000e+00> : vector<16x64xf32>
    %1097 = tpu.matmul %674, %949, %cst_575 {dimension_numbers = #tpu.dot_dimension_numbers<[1], [0], [0], [1], [0, 0, 1, 1], [], []>} : vector<16x32xf32>, vector<32x64xf32>, vector<16x64xf32> -> vector<16x64xf32>
    %1098 = vector.broadcast %967 : vector<1x64xf32> to vector<16x64xf32>
    %1099 = arith.addf %1097, %1098 : vector<16x64xf32>
    %1100 = vector.extract_strided_slice %1099 {offsets = [0, 0], sizes = [16, 32], strides = [1, 1]} : vector<16x64xf32> to vector<16x32xf32>
    %1101 = vector.extract_strided_slice %1099 {offsets = [0, 32], sizes = [16, 32], strides = [1, 1]} : vector<16x64xf32> to vector<16x32xf32>
    %1102 = vector.shape_cast %1096 : vector<16x32xf32> to vector<2x8x32xf32>
    %1103 = vector.shape_cast %1100 : vector<16x32xf32> to vector<2x8x32xf32>
    %1104 = vector.shape_cast %1101 : vector<16x32xf32> to vector<2x8x32xf32>
    %1105 = vector.extract_strided_slice %1102 {offsets = [0, 0, 0], sizes = [2, 8, 8], strides = [1, 1, 1]} : vector<2x8x32xf32> to vector<2x8x8xf32>
    %1106 = vector.extract_strided_slice %1103 {offsets = [0, 0, 0], sizes = [2, 8, 8], strides = [1, 1, 1]} : vector<2x8x32xf32> to vector<2x8x8xf32>
    "tpu.trace_start"() <{level = 10 : i32, message = "bqd,bkd->bqk"}> : () -> ()
    %cst_576 = arith.constant dense<0.000000e+00> : vector<2x8x8xf32>
    %1107 = tpu.matmul %1105, %1106, %cst_576 {dimension_numbers = #tpu.dot_dimension_numbers<[2], [2], [1], [1], [0, 0, 0, 1, 1, 1], [0], [0]>} : vector<2x8x8xf32>, vector<2x8x8xf32>, vector<2x8x8xf32> -> vector<2x8x8xf32>
    "tpu.trace_stop"() : () -> ()
    %cst_577 = arith.constant 0.353553385 : f32
    %1108 = vector.broadcast %cst_577 : f32 to vector<2x8x8xf32>
    %1109 = arith.mulf %1107, %1108 : vector<2x8x8xf32>
    %1110 = arith.addf %1109, %343 : vector<2x8x8xf32>
    %cst_578 = arith.constant dense<0xFF800000> : vector<2x8xf32>
    %1111 = vector.multi_reduction <maximumf>, %1110, %cst_578 [2] : vector<2x8x8xf32> to vector<2x8xf32>
    %1112 = vector.shape_cast %1111 : vector<2x8xf32> to vector<2x8x1xf32>
    %1113 = vector.broadcast %1112 : vector<2x8x1xf32> to vector<2x8x8xf32>
    %1114 = arith.subf %1110, %1113 : vector<2x8x8xf32>
    %1115 = math.exp %1114 : vector<2x8x8xf32>
    %cst_579 = arith.constant dense<0.000000e+00> : vector<2x8xf32>
    %1116 = vector.multi_reduction <add>, %1115, %cst_579 [2] : vector<2x8x8xf32> to vector<2x8xf32>
    %1117 = vector.shape_cast %1116 : vector<2x8xf32> to vector<2x8x1xf32>
    %1118 = vector.broadcast %1117 : vector<2x8x1xf32> to vector<2x8x8xf32>
    %1119 = arith.divf %1115, %1118 : vector<2x8x8xf32>
    %1120 = vector.extract_strided_slice %1104 {offsets = [0, 0, 0], sizes = [2, 8, 8], strides = [1, 1, 1]} : vector<2x8x32xf32> to vector<2x8x8xf32>
    "tpu.trace_start"() <{level = 10 : i32, message = "bqk,bkd->bqd"}> : () -> ()
    %cst_580 = arith.constant dense<0.000000e+00> : vector<2x8x8xf32>
    %1121 = tpu.matmul %1119, %1120, %cst_580 {dimension_numbers = #tpu.dot_dimension_numbers<[2], [1], [1], [2], [0, 0, 0, 1, 1, 2], [0], [0]>} : vector<2x8x8xf32>, vector<2x8x8xf32>, vector<2x8x8xf32> -> vector<2x8x8xf32>
    "tpu.trace_stop"() : () -> ()
    %1122 = vector.extract_strided_slice %1102 {offsets = [0, 0, 8], sizes = [2, 8, 8], strides = [1, 1, 1]} : vector<2x8x32xf32> to vector<2x8x8xf32>
    %1123 = vector.extract_strided_slice %1103 {offsets = [0, 0, 8], sizes = [2, 8, 8], strides = [1, 1, 1]} : vector<2x8x32xf32> to vector<2x8x8xf32>
    "tpu.trace_start"() <{level = 10 : i32, message = "bqd,bkd->bqk"}> : () -> ()
    %cst_581 = arith.constant dense<0.000000e+00> : vector<2x8x8xf32>
    %1124 = tpu.matmul %1122, %1123, %cst_581 {dimension_numbers = #tpu.dot_dimension_numbers<[2], [2], [1], [1], [0, 0, 0, 1, 1, 1], [0], [0]>} : vector<2x8x8xf32>, vector<2x8x8xf32>, vector<2x8x8xf32> -> vector<2x8x8xf32>
    "tpu.trace_stop"() : () -> ()
    %cst_582 = arith.constant 0.353553385 : f32
    %1125 = vector.broadcast %cst_582 : f32 to vector<2x8x8xf32>
    %1126 = arith.mulf %1124, %1125 : vector<2x8x8xf32>
    %1127 = arith.addf %1126, %343 : vector<2x8x8xf32>
    %cst_583 = arith.constant dense<0xFF800000> : vector<2x8xf32>
    %1128 = vector.multi_reduction <maximumf>, %1127, %cst_583 [2] : vector<2x8x8xf32> to vector<2x8xf32>
    %1129 = vector.shape_cast %1128 : vector<2x8xf32> to vector<2x8x1xf32>
    %1130 = vector.broadcast %1129 : vector<2x8x1xf32> to vector<2x8x8xf32>
    %1131 = arith.subf %1127, %1130 : vector<2x8x8xf32>
    %1132 = math.exp %1131 : vector<2x8x8xf32>
    %cst_584 = arith.constant dense<0.000000e+00> : vector<2x8xf32>
    %1133 = vector.multi_reduction <add>, %1132, %cst_584 [2] : vector<2x8x8xf32> to vector<2x8xf32>
    %1134 = vector.shape_cast %1133 : vector<2x8xf32> to vector<2x8x1xf32>
    %1135 = vector.broadcast %1134 : vector<2x8x1xf32> to vector<2x8x8xf32>
    %1136 = arith.divf %1132, %1135 : vector<2x8x8xf32>
    %1137 = vector.extract_strided_slice %1104 {offsets = [0, 0, 8], sizes = [2, 8, 8], strides = [1, 1, 1]} : vector<2x8x32xf32> to vector<2x8x8xf32>
    "tpu.trace_start"() <{level = 10 : i32, message = "bqk,bkd->bqd"}> : () -> ()
    %cst_585 = arith.constant dense<0.000000e+00> : vector<2x8x8xf32>
    %1138 = tpu.matmul %1136, %1137, %cst_585 {dimension_numbers = #tpu.dot_dimension_numbers<[2], [1], [1], [2], [0, 0, 0, 1, 1, 2], [0], [0]>} : vector<2x8x8xf32>, vector<2x8x8xf32>, vector<2x8x8xf32> -> vector<2x8x8xf32>
    "tpu.trace_stop"() : () -> ()
    %1139 = vector.extract_strided_slice %1102 {offsets = [0, 0, 16], sizes = [2, 8, 8], strides = [1, 1, 1]} : vector<2x8x32xf32> to vector<2x8x8xf32>
    %1140 = vector.extract_strided_slice %1103 {offsets = [0, 0, 16], sizes = [2, 8, 8], strides = [1, 1, 1]} : vector<2x8x32xf32> to vector<2x8x8xf32>
    "tpu.trace_start"() <{level = 10 : i32, message = "bqd,bkd->bqk"}> : () -> ()
    %cst_586 = arith.constant dense<0.000000e+00> : vector<2x8x8xf32>
    %1141 = tpu.matmul %1139, %1140, %cst_586 {dimension_numbers = #tpu.dot_dimension_numbers<[2], [2], [1], [1], [0, 0, 0, 1, 1, 1], [0], [0]>} : vector<2x8x8xf32>, vector<2x8x8xf32>, vector<2x8x8xf32> -> vector<2x8x8xf32>
    "tpu.trace_stop"() : () -> ()
    %cst_587 = arith.constant 0.353553385 : f32
    %1142 = vector.broadcast %cst_587 : f32 to vector<2x8x8xf32>
    %1143 = arith.mulf %1141, %1142 : vector<2x8x8xf32>
    %1144 = arith.addf %1143, %343 : vector<2x8x8xf32>
    %cst_588 = arith.constant dense<0xFF800000> : vector<2x8xf32>
    %1145 = vector.multi_reduction <maximumf>, %1144, %cst_588 [2] : vector<2x8x8xf32> to vector<2x8xf32>
    %1146 = vector.shape_cast %1145 : vector<2x8xf32> to vector<2x8x1xf32>
    %1147 = vector.broadcast %1146 : vector<2x8x1xf32> to vector<2x8x8xf32>
    %1148 = arith.subf %1144, %1147 : vector<2x8x8xf32>
    %1149 = math.exp %1148 : vector<2x8x8xf32>
    %cst_589 = arith.constant dense<0.000000e+00> : vector<2x8xf32>
    %1150 = vector.multi_reduction <add>, %1149, %cst_589 [2] : vector<2x8x8xf32> to vector<2x8xf32>
    %1151 = vector.shape_cast %1150 : vector<2x8xf32> to vector<2x8x1xf32>
    %1152 = vector.broadcast %1151 : vector<2x8x1xf32> to vector<2x8x8xf32>
    %1153 = arith.divf %1149, %1152 : vector<2x8x8xf32>
    %1154 = vector.extract_strided_slice %1104 {offsets = [0, 0, 16], sizes = [2, 8, 8], strides = [1, 1, 1]} : vector<2x8x32xf32> to vector<2x8x8xf32>
    "tpu.trace_start"() <{level = 10 : i32, message = "bqk,bkd->bqd"}> : () -> ()
    %cst_590 = arith.constant dense<0.000000e+00> : vector<2x8x8xf32>
    %1155 = tpu.matmul %1153, %1154, %cst_590 {dimension_numbers = #tpu.dot_dimension_numbers<[2], [1], [1], [2], [0, 0, 0, 1, 1, 2], [0], [0]>} : vector<2x8x8xf32>, vector<2x8x8xf32>, vector<2x8x8xf32> -> vector<2x8x8xf32>
    "tpu.trace_stop"() : () -> ()
    %1156 = vector.extract_strided_slice %1102 {offsets = [0, 0, 24], sizes = [2, 8, 8], strides = [1, 1, 1]} : vector<2x8x32xf32> to vector<2x8x8xf32>
    %1157 = vector.extract_strided_slice %1103 {offsets = [0, 0, 24], sizes = [2, 8, 8], strides = [1, 1, 1]} : vector<2x8x32xf32> to vector<2x8x8xf32>
    "tpu.trace_start"() <{level = 10 : i32, message = "bqd,bkd->bqk"}> : () -> ()
    %cst_591 = arith.constant dense<0.000000e+00> : vector<2x8x8xf32>
    %1158 = tpu.matmul %1156, %1157, %cst_591 {dimension_numbers = #tpu.dot_dimension_numbers<[2], [2], [1], [1], [0, 0, 0, 1, 1, 1], [0], [0]>} : vector<2x8x8xf32>, vector<2x8x8xf32>, vector<2x8x8xf32> -> vector<2x8x8xf32>
    "tpu.trace_stop"() : () -> ()
    %cst_592 = arith.constant 0.353553385 : f32
    %1159 = vector.broadcast %cst_592 : f32 to vector<2x8x8xf32>
    %1160 = arith.mulf %1158, %1159 : vector<2x8x8xf32>
    %1161 = arith.addf %1160, %343 : vector<2x8x8xf32>
    %cst_593 = arith.constant dense<0xFF800000> : vector<2x8xf32>
    %1162 = vector.multi_reduction <maximumf>, %1161, %cst_593 [2] : vector<2x8x8xf32> to vector<2x8xf32>
    %1163 = vector.shape_cast %1162 : vector<2x8xf32> to vector<2x8x1xf32>
    %1164 = vector.broadcast %1163 : vector<2x8x1xf32> to vector<2x8x8xf32>
    %1165 = arith.subf %1161, %1164 : vector<2x8x8xf32>
    %1166 = math.exp %1165 : vector<2x8x8xf32>
    %cst_594 = arith.constant dense<0.000000e+00> : vector<2x8xf32>
    %1167 = vector.multi_reduction <add>, %1166, %cst_594 [2] : vector<2x8x8xf32> to vector<2x8xf32>
    %1168 = vector.shape_cast %1167 : vector<2x8xf32> to vector<2x8x1xf32>
    %1169 = vector.broadcast %1168 : vector<2x8x1xf32> to vector<2x8x8xf32>
    %1170 = arith.divf %1166, %1169 : vector<2x8x8xf32>
    %1171 = vector.extract_strided_slice %1104 {offsets = [0, 0, 24], sizes = [2, 8, 8], strides = [1, 1, 1]} : vector<2x8x32xf32> to vector<2x8x8xf32>
    "tpu.trace_start"() <{level = 10 : i32, message = "bqk,bkd->bqd"}> : () -> ()
    %cst_595 = arith.constant dense<0.000000e+00> : vector<2x8x8xf32>
    %1172 = tpu.matmul %1170, %1171, %cst_595 {dimension_numbers = #tpu.dot_dimension_numbers<[2], [1], [1], [2], [0, 0, 0, 1, 1, 2], [0], [0]>} : vector<2x8x8xf32>, vector<2x8x8xf32>, vector<2x8x8xf32> -> vector<2x8x8xf32>
    "tpu.trace_stop"() : () -> ()
    %1173 = tpu.concatenate %1121, %1138, %1155, %1172 in 2 : vector<2x8x8xf32>, vector<2x8x8xf32>, vector<2x8x8xf32>, vector<2x8x8xf32> -> vector<2x8x32xf32>
    %1174 = vector.shape_cast %1173 : vector<2x8x32xf32> to vector<16x32xf32>
    %cst_596 = arith.constant dense<0.000000e+00> : vector<16x32xf32>
    %1175 = tpu.matmul %1174, %951, %cst_596 {dimension_numbers = #tpu.dot_dimension_numbers<[1], [0], [0], [1], [0, 0, 1, 1], [], []>} : vector<16x32xf32>, vector<32x32xf32>, vector<16x32xf32> -> vector<16x32xf32>
    %1176 = vector.broadcast %968 : vector<1x32xf32> to vector<16x32xf32>
    %1177 = arith.addf %1175, %1176 : vector<16x32xf32>
    %1178 = arith.addf %1073, %1177 : vector<16x32xf32>
    %cst_597 = arith.constant dense<0.000000e+00> : vector<16xf32>
    %1179 = vector.multi_reduction <add>, %1178, %cst_597 [1] : vector<16x32xf32> to vector<16xf32>
    %1180 = vector.shape_cast %1179 : vector<16xf32> to vector<16x1xf32>
    %cst_598 = arith.constant 3.200000e+01 : f32
    %1181 = vector.broadcast %cst_598 : f32 to vector<16x1xf32>
    %1182 = arith.divf %1180, %1181 : vector<16x1xf32>
    %1183 = vector.broadcast %1182 : vector<16x1xf32> to vector<16x32xf32>
    %1184 = arith.subf %1178, %1183 : vector<16x32xf32>
    %1185 = arith.mulf %1184, %1184 : vector<16x32xf32>
    %cst_599 = arith.constant dense<0.000000e+00> : vector<16xf32>
    %1186 = vector.multi_reduction <add>, %1185, %cst_599 [1] : vector<16x32xf32> to vector<16xf32>
    %1187 = vector.shape_cast %1186 : vector<16xf32> to vector<16x1xf32>
    %cst_600 = arith.constant 0.0322580636 : f32
    %1188 = vector.broadcast %cst_600 : f32 to vector<16x1xf32>
    %1189 = arith.mulf %1187, %1188 : vector<16x1xf32>
    %1190 = math.sqrt %1189 : vector<16x1xf32>
    %1191 = vector.broadcast %962 : vector<1x32xf32> to vector<16x32xf32>
    %1192 = arith.mulf %1191, %1184 : vector<16x32xf32>
    %cst_601 = arith.constant 9.99999997E-7 : f32
    %1193 = vector.broadcast %cst_601 : f32 to vector<16x1xf32>
    %1194 = arith.addf %1190, %1193 : vector<16x1xf32>
    %1195 = vector.broadcast %1194 : vector<16x1xf32> to vector<16x32xf32>
    %1196 = arith.divf %1192, %1195 : vector<16x32xf32>
    %1197 = vector.broadcast %963 : vector<1x32xf32> to vector<16x32xf32>
    %1198 = arith.addf %1196, %1197 : vector<16x32xf32>
    %cst_602 = arith.constant dense<0.000000e+00> : vector<16x64xf32>
    %1199 = tpu.matmul %1198, %953, %cst_602 {dimension_numbers = #tpu.dot_dimension_numbers<[1], [0], [0], [1], [0, 0, 1, 1], [], []>} : vector<16x32xf32>, vector<32x64xf32>, vector<16x64xf32> -> vector<16x64xf32>
    %1200 = vector.broadcast %969 : vector<1x64xf32> to vector<16x64xf32>
    %1201 = arith.addf %1199, %1200 : vector<16x64xf32>
    %cst_603 = arith.constant 0.000000e+00 : f32
    %1202 = vector.broadcast %cst_603 : f32 to vector<16x64xf32>
    %1203 = arith.maximumf %1201, %1202 : vector<16x64xf32>
    %cst_604 = arith.constant dense<0.000000e+00> : vector<16x32xf32>
    %1204 = tpu.matmul %1203, %955, %cst_604 {dimension_numbers = #tpu.dot_dimension_numbers<[1], [0], [0], [1], [0, 0, 1, 1], [], []>} : vector<16x64xf32>, vector<64x32xf32>, vector<16x32xf32> -> vector<16x32xf32>
    %1205 = vector.broadcast %970 : vector<1x32xf32> to vector<16x32xf32>
    %1206 = arith.addf %1204, %1205 : vector<16x32xf32>
    %1207 = arith.addf %1178, %1206 : vector<16x32xf32>
    %c2_605 = arith.constant 2 : index
    %c0_606 = arith.constant 0 : index
    %c0_607 = arith.constant 0 : index
    %1208 = vector.load %arg8[%c2_605, %c0_606, %c0_607] : memref<3x16x96xf32, #tpu.memory_space<vmem>>, vector<1x1x32xf32>
    %1209 = vector.shape_cast %1208 : vector<1x1x32xf32> to vector<1x32xf32>
    %c2_608 = arith.constant 2 : index
    %c1_609 = arith.constant 1 : index
    %c0_610 = arith.constant 0 : index
    %1210 = vector.load %arg8[%c2_608, %c1_609, %c0_610] : memref<3x16x96xf32, #tpu.memory_space<vmem>>, vector<1x1x32xf32>
    %1211 = vector.shape_cast %1210 : vector<1x1x32xf32> to vector<1x32xf32>
    %cst_611 = arith.constant dense<0.000000e+00> : vector<16xf32>
    %1212 = vector.multi_reduction <add>, %1207, %cst_611 [1] : vector<16x32xf32> to vector<16xf32>
    %1213 = vector.shape_cast %1212 : vector<16xf32> to vector<16x1xf32>
    %cst_612 = arith.constant 3.200000e+01 : f32
    %1214 = vector.broadcast %cst_612 : f32 to vector<16x1xf32>
    %1215 = arith.divf %1213, %1214 : vector<16x1xf32>
    %1216 = vector.broadcast %1215 : vector<16x1xf32> to vector<16x32xf32>
    %1217 = arith.subf %1207, %1216 : vector<16x32xf32>
    %1218 = arith.mulf %1217, %1217 : vector<16x32xf32>
    %cst_613 = arith.constant dense<0.000000e+00> : vector<16xf32>
    %1219 = vector.multi_reduction <add>, %1218, %cst_613 [1] : vector<16x32xf32> to vector<16xf32>
    %1220 = vector.shape_cast %1219 : vector<16xf32> to vector<16x1xf32>
    %cst_614 = arith.constant 0.0322580636 : f32
    %1221 = vector.broadcast %cst_614 : f32 to vector<16x1xf32>
    %1222 = arith.mulf %1220, %1221 : vector<16x1xf32>
    %1223 = math.sqrt %1222 : vector<16x1xf32>
    %1224 = vector.broadcast %1209 : vector<1x32xf32> to vector<16x32xf32>
    %1225 = arith.mulf %1224, %1217 : vector<16x32xf32>
    %cst_615 = arith.constant 9.99999997E-7 : f32
    %1226 = vector.broadcast %cst_615 : f32 to vector<16x1xf32>
    %1227 = arith.addf %1223, %1226 : vector<16x1xf32>
    %1228 = vector.broadcast %1227 : vector<16x1xf32> to vector<16x32xf32>
    %1229 = arith.divf %1225, %1228 : vector<16x32xf32>
    %1230 = vector.broadcast %1211 : vector<1x32xf32> to vector<16x32xf32>
    %1231 = arith.addf %1229, %1230 : vector<16x32xf32>
    %1232 = vector.shape_cast %1231 : vector<16x32xf32> to vector<2x8x32xf32>
    %c0_616 = arith.constant 0 : index
    %c0_617 = arith.constant 0 : index
    %c0_618 = arith.constant 0 : index
    %1233 = vector.load %arg9[%c0_616, %c0_617, %c0_618] : memref<2x8x32xf32, #tpu.memory_space<vmem>>, vector<2x8x32xf32>
    tpu.vector_store %arg9[%c0_616, %c0_617, %c0_618], %1232 {strides = array<i32>} : memref<2x8x32xf32, #tpu.memory_space<vmem>>, vector<2x8x32xf32>,
    return
  }
}

</mosaic_0001>

<bundles_post_ra>
// kernel: encoder_decoder_forward.1
= control target key start
LH: loop header
LB: loop body
LE: loop exit
PB: predicated region body
PF: predicated region fallthrough
CT: control target
= control target key end

     0   :  { %14 = vsyncpa [#allocation6], 0  ;;  %s9202_s0 = inlined_call_operand.vmem [shape: s32[2,8], index: 0, kind: input, shape index: {}]   ;;  %s9203_s1 = inlined_call_operand.vmem [shape: s32[2,8], index: 1, kind: input, shape index: {}]   ;;  %s9204_s2 = inlined_call_operand.vmem [shape: s32[2,1,8], index: 2, kind: input, shape index: {}]   ;;  %s9205_s3 = inlined_call_operand.vmem [shape: s32[2,8,8], index: 3, kind: input, shape index: {}]   ;;  %s9206_s4 = inlined_call_operand.vmem [shape: f32[40,1,32], index: 4, kind: input, shape index: {}]   ;;  %s9207_s5 = inlined_call_operand.vmem [shape: f32[2,160,96], index: 5, kind: input, shape index: {}]   ;;  %s9208_s6 = inlined_call_operand.vmem [shape: f32[3,8,96], index: 6, kind: input, shape index: {}]   ;;  %s9209_s7 = inlined_call_operand.vmem [shape: f32[2,256,96], index: 7, kind: input, shape index: {}]   ;;  %s9210_s8 = inlined_call_operand.vmem [shape: f32[3,16,96], index: 8, kind: input, shape index: {}]   ;;  %s9211_s9 = inlined_call_operand.hbm [shape: f32[2,8,32], index: 9, kind: output, shape index: {}]  }
   0x1   :  { %15 = vsyncpa [#allocation8], 0 }
   0x2   :  { %16 = vsyncpa [#allocation5], 0  ;;  %s22_s11 = sshll.u32 %s9202_s0, 4  ;;  %s31_s14 = sshll.u32 %s9203_s1, 4  ;;  %s23_s11 = int_to_ptr.vmem [resolvable:$true] %s22_s11  ;;  %s32_s14 = int_to_ptr.vmem [resolvable:$true] %s31_s14 }
   0x3   :  { %s6974_s15 = smov [#allocation4]   ;;  %s6975_s16 = smov [#allocation7]  }
   0x4   :  { %25 = dma.vmem_to_smem %s23_s11, 32, %s6974_s15, [#allocation6]  }
   0x5   :  { %34 = dma.vmem_to_smem %s32_s14, 32, %s6975_s16, [#allocation8]  }
   0x6   :  { %6968 = dma.done.wait [#allocation6], 32  }
   0x7   :  { %6969 = vsyncadd [#allocation6], 4294967264 }
   0x8   :  { %6970 = dma.done.wait [#allocation8], 32  }
   0x9   :  { %6971 = vsyncadd [#allocation8], 4294967264 }
   0xa   :  { %57 = sfence }
   0xb   :  { %s58_s17 = sld [smem:[#allocation4]]  ;;  %v6201_v0 = vld [vmem:[%s9206_s4 + $0x20] sm:$0x1]  ;;  %vm65_vm0 = vcmask 253952   ;;  %v6203_v1 = vld [vmem:[%s9206_s4 + $0x21] sm:$0x1] }
   0xc   :  { %s6202_s18 = sld [smem:[#allocation4 + $0x1]]  ;;  %v6205_v3 = vld [vmem:[%s9206_s4 + $0x22] sm:$0x1]  ;;  %v6207_v6 = vld [vmem:[%s9206_s4 + $0x23] sm:$0x1]  ;;  %vm348_vm1 = vcmask 261120  }
   0xd   :  { %s6204_s19 = sld [smem:[#allocation4 + $0x2]]  ;;  %v6209_v9 = vld [vmem:[%s9206_s4 + $0x24] sm:$0x1]  ;;  %v6211_v13 = vld [vmem:[%s9206_s4 + $0x25] sm:$0x1]  ;;  %vm471_vm15 = vcmask 64512  }
   0xe   :  { %s6206_s20 = sld [smem:[#allocation4 + $0x3]]  ;;  %v6213_v17 = vld [vmem:[%s9206_s4 + $0x26] sm:$0x1]  ;;  %v6215_v21 = vld [vmem:[%s9206_s4 + $0x27] sm:$0x1] }
   0xf   :  { %s7050_s0 = sld [smem:[#allocation4 + $0x4]]  ;;  %v6217_v25 = vld [vmem:[%s9206_s4 + $0x20] sm:$0x1]  ;;  %v6219_v29 = vld [vmem:[%s9206_s4 + $0x21] sm:$0x1] }
  0x10   :  { %s7055_s1 = sld [smem:[#allocation4 + $0x5]]  ;;  %v6221_v33 = vld [vmem:[%s9206_s4 + $0x22] sm:$0x1]  ;;  %v6223_v37 = vld [vmem:[%s9206_s4 + $0x23] sm:$0x1] }
  0x11   :  { %s59_s25 = scalar_lea.vmem %s9206_s4, %s58_s17  ;;  %s7063_s28 = sld [smem:[#allocation4 + $0x6]]  ;;  %v6225_v48 = vld [vmem:[%s9206_s4 + $0x24] sm:$0x1]  ;;  %v6227_v51 = vld [vmem:[%s9206_s4 + $0x25] sm:$0x1] }
  0x12   :  { %v60_v2 = vld [vmem:[%s59_s25] sm:$0x1]  ;;  %s68_s10 = scalar_lea.vmem %s9206_s4, %s6202_s18  ;;  %s7071_s13 = sld [smem:[#allocation4 + $0x7]]  ;;  %v6229_v57 = vld [vmem:[%s9206_s4 + $0x26] sm:$0x1] }
  0x13   :  { %v61_v4 = vmul.f32 5.656854, %v60_v2  ;;  %v69_v5 = vld [vmem:[%s68_s10] sm:$0x1]  ;;  %s76_s16 = scalar_lea.vmem %s9206_s4, %s6204_s19  ;;  %s7079_s22 = sld [smem:[#allocation4 + $0x80]] }
  0x14   :  { %v70_v7 = vmul.f32 5.656854, %v69_v5  ;;  %v77_v8 = vld [vmem:[%s76_s16] sm:$0x1]  ;;  %s84_s24 = scalar_lea.vmem %s9206_s4, %s6206_s20  ;;  %s7087_s27 = sld [smem:[#allocation4 + $0x81]] }
  0x15   :  { %v64_v10 = vadd.f32 %v6201_v0, %v61_v4  ;;  %v78_v11 = vmul.f32 5.656854, %v77_v8  ;;  %v85_v12 = vld [vmem:[%s84_s24] sm:$0x1]  ;;  %s92_s30 = scalar_lea.vmem %s9206_s4, %s7050_s0  ;;  %s7096_s12 = sld [smem:[#allocation4 + $0x82]]  ;;  %v6976_v4 = vmov 32.0  }
  0x16   :  { %v73_v14 = vadd.f32 %v6203_v1, %v70_v7  ;;  %v86_v15 = vmul.f32 5.656854, %v85_v12  ;;  %v93_v16 = vld [vmem:[%s92_s30] sm:$0x1]  ;;  %s100_s15 = scalar_lea.vmem %s9206_s4, %s7055_s1  ;;  %s7105_s21 = sld [smem:[#allocation4 + $0x83]]  ;;  %6620 = vrcp.f32 %v6976_v4 }
  0x17   :  { %66 = vst.msk [vmem:[#allocation2] sm:$0x1] %vm65_vm0, %v64_v10  ;;  %v81_v18 = vadd.f32 %v6205_v3, %v78_v11  ;;  %v94_v19 = vmul.f32 5.656854, %v93_v16  ;;  %v101_v20 = vld [vmem:[%s100_s15] sm:$0x1]  ;;  %s108_s23 = scalar_lea.vmem %s9206_s4, %s7063_s28 }
  0x18   :  { %74 = vst.msk [vmem:[#allocation2 + $0x1] sm:$0x1] %vm65_vm0, %v73_v14  ;;  %v89_v22 = vadd.f32 %v6207_v6, %v86_v15  ;;  %v102_v23 = vmul.f32 5.656854, %v101_v20  ;;  %v109_v24 = vld [vmem:[%s108_s23] sm:$0x1]  ;;  %s116_s19 = scalar_lea.vmem %s9206_s4, %s7071_s13 }
  0x19   :  { %82 = vst.msk [vmem:[#allocation2 + $0x2] sm:$0x1] %vm65_vm0, %v81_v18  ;;  %v97_v26 = vadd.f32 %v6209_v9, %v94_v19  ;;  %v110_v27 = vmul.f32 5.656854, %v109_v24  ;;  %v117_v28 = vld [vmem:[%s116_s19] sm:$0x1]  ;;  %s124_s11 = scalar_lea.vmem %s9206_s4, %s7079_s22 }
  0x1a   :  { %90 = vst.msk [vmem:[#allocation2 + $0x3] sm:$0x1] %vm65_vm0, %v89_v22  ;;  %v105_v30 = vadd.f32 %v6211_v13, %v102_v23  ;;  %v118_v31 = vmul.f32 5.656854, %v117_v28  ;;  %v125_v32 = vld [vmem:[%s124_s11] sm:$0x1]  ;;  %s131_s16 = scalar_lea.vmem %s9206_s4, %s7087_s27 }
  0x1b   :  { %98 = vst.msk [vmem:[#allocation2 + $0x4] sm:$0x1] %vm65_vm0, %v97_v26  ;;  %v113_v34 = vadd.f32 %v6213_v17, %v110_v27  ;;  %v126_v35 = vmul.f32 5.656854, %v125_v32  ;;  %v132_v36 = vld [vmem:[%s131_s16] sm:$0x1]  ;;  %s138_s23 = scalar_lea.vmem %s9206_s4, %s7096_s12 }
  0x1c   :  { %106 = vst.msk [vmem:[#allocation2 + $0x5] sm:$0x1] %vm65_vm0, %v105_v30  ;;  %v121_v38 = vadd.f32 %v6215_v21, %v118_v31  ;;  %v133_v39 = vmul.f32 5.656854, %v132_v36  ;;  %v139_v40 = vld [vmem:[%s138_s23] sm:$0x1]  ;;  %s145_s26 = scalar_lea.vmem %s9206_s4, %s7105_s21  ;;  %v6621_v5 = vpop.eup %6620 }
  0x1d   :  { %114 = vst.msk [vmem:[#allocation2 + $0x6] sm:$0x1] %vm65_vm0, %v113_v34  ;;  %v128_v41 = vadd.f32 %v6217_v25, %v126_v35  ;;  %v140_v42 = vmul.f32 5.656854, %v139_v40  ;;  %v146_v43 = vld [vmem:[%s145_s26] sm:$0x1]  ;;  %vm360_vm2 = vweird.f32 %v6621_v5 }
  0x1e   :  { %122 = vst.msk [vmem:[#allocation2 + $0x7] sm:$0x1] %vm65_vm0, %v121_v38  ;;  %v135_v44 = vadd.f32 %v6219_v29, %v133_v39  ;;  %v147_v45 = vmul.f32 5.656854, %v146_v43  ;;  %s6224_s12 = sld [smem:[#allocation4 + $0x84]]  ;;  %v356_v6 = vmul.f32 32.0, %v6621_v5 }
  0x1f   :  { %129 = vst.msk [vmem:[#allocation2 + $0x8] sm:$0x1] %vm65_vm0, %v128_v41  ;;  %v142_v46 = vadd.f32 %v6221_v33, %v140_v42  ;;  %s6226_s19 = sld [smem:[#allocation4 + $0x85]]  ;;  %v6231_v61 = vld [vmem:[%s9206_s4 + $0x27] sm:$0x1]  ;;  %v330_v23 = vld [vmem:[%s9207_s5 + $0x18] sm:$0xff] }
  0x20   :  { %136 = vst.msk [vmem:[#allocation2 + $0x9] sm:$0x1] %vm65_vm0, %v135_v44  ;;  %v149_v47 = vadd.f32 %v6223_v37, %v147_v45  ;;  %s6228_s29 = sld [smem:[#allocation4 + $0x86]]  ;;  %v357_v7 = vsub.f32 1.0, %v356_v6  ;;  %v329_v24 = vld [vmem:[%s9207_s5 + $0x10] sm:$0xff]  ;;  %457 = vmatpush.msra.mxu0 %v330_v23  ;;  %v328_v25 = vld [vmem:[%s9207_s5 + $0x8] sm:$0xff] }
  0x21   :  { %143 = vst.msk [vmem:[#allocation2 + $0xa] sm:$0x1] %vm65_vm0, %v142_v46  ;;  %s6230_s21 = sld [smem:[#allocation4 + $0x87]]  ;;  %v327_v26 = vld [vmem:[%s9207_s5] sm:$0xff]  ;;  %s9228_s16 = smov 120  }
  0x22   :  { %150 = vst.msk [vmem:[#allocation2 + $0xb] sm:$0x1] %vm65_vm0, %v149_v47  ;;  %v358_v8 = vmul.f32 %v6621_v5, %v357_v7  ;;  %458 = vmatpush.msra.mxu0 %v329_v24  ;;  %v7221_v46 = vld [vmem:[%s9208_s6] sm:$0xff]  ;;  %s9230_s17 = smov 88   ;;  %s9226_s0 = smov 104  }
  0x23   :  { %s9222_s22 = smov 112   ;;  %s9224_s23 = smov 80  }
  0x24   :  { %s152_s10 = scalar_lea.vmem %s9206_s4, %s6224_s12  ;;  %v359_v9 = vadd.f32 %v6621_v5, %v358_v8  ;;  %459 = vmatpush.msra.mxu0 %v328_v25  ;;  %s9218_s26 = smov 56  }
  0x25   :  { %v7164_v49 = vld [vmem:[#allocation2] sm:$0xff]  ;;  %s159_s15 = scalar_lea.vmem %s9206_s4, %s6226_s19  ;;  %s9216_s12 = smov 48  }
  0x26   :  { %v153_v50 = vld [vmem:[%s152_s10] sm:$0x1]  ;;  %v349_v52 = vsel %vm348_vm1, %v7164_v49, 0.0  ;;  %s166_s18 = scalar_lea.vmem %s9206_s4, %s6228_s29  ;;  %v7194_v10 = vsel %vm360_vm2, %v6621_v5, %v359_v9  ;;  %460 = vmatpush.msra.mxu0 %v327_v26  ;;  %s9212_s19 = smov 40  }
  0x27   :  { %v154_v53 = vmul.f32 5.656854, %v153_v50  ;;  %v160_v54 = vld [vmem:[%s159_s15] sm:$0x1]  ;;  %350 = vadd.xlane.f32.xlu0 %v349_v52  ;;  %s173_s1 = scalar_lea.vmem %s9206_s4, %s6230_s21  ;;  %v400_v50 = vperm.slane %v7221_v46, 0  ;;  %s9232_s15 = smov 96  }
  0x28   :  { %v161_v55 = vmul.f32 5.656854, %v160_v54  ;;  %v167_v56 = vld [vmem:[%s166_s18] sm:$0x1]  ;;  %s9220_s18 = smov 72   ;;  %s6989_s29 = smov 8  }
  0x29   :  { %v156_v58 = vadd.f32 %v6225_v48, %v154_v53  ;;  %v168_v59 = vmul.f32 5.656854, %v167_v56  ;;  %v174_v60 = vld [vmem:[%s173_s1] sm:$0x1]  ;;  %s6990_s21 = smov 16   ;;  %s6991_s30 = smov 24  }
  0x2a   :  { %v163_v62 = vadd.f32 %v6227_v51, %v161_v55  ;;  %v175_v63 = vmul.f32 5.656854, %v174_v60  ;;  %s179_s14 = sld [smem:[#allocation7]]  ;;  %s9256_s11 = smov 40  }
  0x2b   :  { %157 = vst.msk [vmem:[#allocation2 + $0xc] sm:$0x1] %vm65_vm0, %v156_v58  ;;  %v170_v0 = vadd.f32 %v6229_v57, %v168_v59  ;;  %s6234_s13 = sld [smem:[#allocation7 + $0x1]] }
  0x2c   :  { %164 = vst.msk [vmem:[#allocation2 + $0xd] sm:$0x1] %vm65_vm0, %v163_v62  ;;  %v177_v1 = vadd.f32 %v6231_v61, %v175_v63  ;;  %s6237_s24 = sld [smem:[#allocation7 + $0x2]] }
  0x2d   :  { %171 = vst.msk [vmem:[#allocation2 + $0xe] sm:$0x1] %vm65_vm0, %v170_v0  ;;  %v435_v0 = vperm.slane %v7221_v46, 1  ;;  %s6240_s25 = sld [smem:[#allocation7 + $0x3]] }
  0x2e   :  { %178 = vst.msk [vmem:[#allocation2 + $0xf] sm:$0x1] %vm65_vm0, %v177_v1  ;;  %s6243_s27 = sld [smem:[#allocation7 + $0x4]] }
  0x2f   :  { %s6246_s1 = sld [smem:[#allocation7 + $0x5]] }
  0x30   :  { %s7767_s28 = sld [smem:[#allocation7 + $0x6]]  ;;  %s6169_s20 = scalar_lea.vmem %s9206_s4, %s179_s14 }
  0x35   :  { %v7190_v2 = vld [vmem:[#allocation2 + $0x8] sm:$0xff] }
  0x36   :  { %v352_v3 = vsel %vm348_vm1, %v7190_v2, 0.0 }
  0x37   :  { %353 = vadd.xlane.f32.xlu0 %v352_v3 }
  0x9a   :  { %v351_v11 = vpop.xlane.xlu0 %350 }
  0x9b   :  { %v362_v12 = vmul.f32 %v7194_v10, %v351_v11 }
  0x9d   :  { %v364_v13 = vsub.f32 %v7164_v49, %v362_v12 }
  0x9f   :  { %v366_v14 = vmul.f32 %v364_v13, %v364_v13  ;;  %v401_v61 = vmul.f32 %v400_v50, %v364_v13 }
  0xa1   :  { %v368_v15 = vsel %vm348_vm1, %v366_v14, 0.0 }
  0xa2   :  { %369 = vadd.xlane.f32.xlu1 %v368_v15 }
  0xaa   :  { %v354_v16 = vpop.xlane.xlu0 %353 }
  0xab   :  { %v363_v17 = vmul.f32 %v7194_v10, %v354_v16 }
  0xad   :  { %v7201_v18 = vsub.f32 %v7190_v2, %v363_v17 }
  0xaf   :  { %v367_v19 = vmul.f32 %v7201_v18, %v7201_v18  ;;  %v402_v14 = vmul.f32 %v400_v50, %v7201_v18 }
  0xb1   :  { %v371_v20 = vsel %vm348_vm1, %v367_v19, 0.0 }
  0xb2   :  { %372 = vadd.xlane.f32.xlu1 %v371_v20  ;;  %v438_v20 = vperm.slane %v7221_v46, 4 }
 0x115   :  { %v370_v21 = vpop.xlane.xlu1 %369 }
 0x116   :  { %v374_v22 = vmul.f32 0.032258064, %v370_v21 }
 0x118   :  { %6622 = vrsqrt.f32 %v374_v22  ;;  %vm383_vm3 = vcmp.eq.f32.partialorder %v374_v22, inf  ;;  %v386_v36 = vand.u32 2147483648, %v374_v22  ;;  %vm385_vm4 = vcmp.eq.f32.partialorder %v374_v22, 0.0 }
 0x11e   :  { %v6623_v27 = vpop.eup %6622 }
 0x11f   :  { %v377_v28 = vmul.f32 %v6623_v27, %v374_v22 }
 0x121   :  { %v378_v29 = vmul.f32 %v6623_v27, %v377_v28 }
 0x123   :  { %v379_v30 = vmul.f32 0.5, %v378_v29 }
 0x125   :  { %v373_v31 = vpop.xlane.xlu1 %372  ;;  %v380_v32 = vsub.f32 1.5, %v379_v30 }
 0x126   :  { %v375_v33 = vmul.f32 0.032258064, %v373_v31 }
 0x127   :  { %v381_v34 = vmul.f32 %v6623_v27, %v380_v32 }
 0x128   :  { %6624 = vrsqrt.f32 %v375_v33  ;;  %vm395_vm5 = vcmp.eq.f32.partialorder %v375_v33, inf  ;;  %v398_v53 = vand.u32 2147483648, %v375_v33  ;;  %vm397_vm6 = vcmp.eq.f32.partialorder %v375_v33, 0.0 }
 0x129   :  { %v382_v35 = vmul.f32 %v381_v34, %v374_v22 }
 0x12b   :  { %v384_v37 = vsel %vm383_vm3, %v374_v22, %v382_v35 }
 0x12c   :  { %v387_v38 = vsel %vm385_vm4, %v386_v36, %v384_v37 }
 0x12d   :  { %v403_v40 = vadd.f32 1e-06, %v387_v38  ;;  %v307_v38 = vld [vmem:[%s9204_s2] sm:$0x1] }
 0x12e   :  { %v6625_v39 = vpop.eup %6624  ;;  %vm309_vm2 = vcmp.ne.s32.totalorder %v307_v38, 0 }
 0x12f   :  { %v389_v41 = vmul.f32 %v6625_v39, %v375_v33  ;;  %6626 = vrcp.f32 %v403_v40  ;;  %v416_v54 = vand.u32 2147483648, %v403_v40  ;;  %v414_v56 = vand.u32 2147483647, %v403_v40 }
 0x130   :  { %vm410_vm8 = vweird.f32 %v403_v40 }
 0x131   :  { %v390_v42 = vmul.f32 %v6625_v39, %v389_v41  ;;  %v417_v62 = vor.u32 1.1754944e-38, %v416_v54  ;;  %vm415_vm10 = vcmp.eq.f32.partialorder %v414_v56, 8.507059e+37 }
 0x133   :  { %v391_v43 = vmul.f32 0.5, %v390_v42 }
 0x135   :  { %v392_v44 = vsub.f32 1.5, %v391_v43  ;;  %v6627_v45 = vpop.eup %6626 }
 0x136   :  { %v406_v48 = vmul.f32 %v6627_v45, %v403_v40  ;;  %vm411_vm7 = vweird.f32 %v6627_v45 }
 0x137   :  { %v393_v47 = vmul.f32 %v6625_v39, %v392_v44  ;;  %vm412_vm9 = vmor %vm410_vm8, %vm411_vm7  ;;  %v6984_v39 = vmov -1e+09  }
 0x138   :  { %v407_v52 = vsub.f32 1.0, %v406_v48  ;;  %v311_v40 = vsel %vm309_vm2, 0.0, %v6984_v39 }
 0x139   :  { %v394_v51 = vmul.f32 %v393_v47, %v375_v33  ;;  %v7283_v41 = vperm.slane %v311_v40, 0  ;;  %v308_v47 = vld [vmem:[%s9204_s2 + $0x1] sm:$0x1]  ;;  %s9214_s2 = smov 64  }
 0x13a   :  { %v408_v55 = vmul.f32 %v6627_v45, %v407_v52  ;;  %vm310_vm3 = vcmp.ne.s32.totalorder %v308_v47, 0 }
 0x13b   :  { %v396_v57 = vsel %vm395_vm5, %v375_v33, %v394_v51  ;;  %v312_v48 = vsel %vm310_vm3, 0.0, %v6984_v39 }
 0x13c   :  { %v399_v58 = vsel %vm397_vm6, %v398_v53, %v396_v57  ;;  %v409_v59 = vadd.f32 %v6627_v45, %v408_v55  ;;  %v7291_v50 = vperm.slane %v312_v48, 0 }
 0x13d   :  { %v404_v60 = vadd.f32 1e-06, %v399_v58 }
 0x13e   :  { %v413_v63 = vsel %vm412_vm9, %v6627_v45, %v409_v59 }
 0x13f   :  { %6628 = vrcp.f32 %v404_v60  ;;  %v418_v1 = vsel %vm415_vm10, %v417_v62, %v413_v63  ;;  %v431_v8 = vand.u32 2147483648, %v404_v60  ;;  %v429_v11 = vand.u32 2147483647, %v404_v60 }
 0x140   :  { %v419_v3 = vmul.f32 %v418_v1, %v401_v61  ;;  %vm425_vm12 = vweird.f32 %v404_v60 }
 0x141   :  { %v432_v13 = vor.u32 1.1754944e-38, %v431_v8  ;;  %vm430_vm14 = vcmp.eq.f32.partialorder %v429_v11, 8.507059e+37 }
 0x142   :  { %v436_v4 = vadd.f32 %v435_v0, %v419_v3 }
 0x144   :  { %6279 = vmatmul.msk.f32.vlgmr.msra.gmra.mxu0 %vm348_vm1, %v436_v4 }
 0x145   :  { %v6629_v5 = vpop.eup %6628 }
 0x146   :  { %v421_v6 = vmul.f32 %v6629_v5, %v404_v60  ;;  %vm426_vm11 = vweird.f32 %v6629_v5 }
 0x147   :  { %vm427_vm13 = vmor %vm425_vm12, %vm426_vm11 }
 0x148   :  { %v422_v7 = vsub.f32 1.0, %v421_v6 }
 0x14a   :  { %v423_v9 = vmul.f32 %v6629_v5, %v422_v7 }
 0x14c   :  { %v424_v12 = vadd.f32 %v6629_v5, %v423_v9 }
 0x14e   :  { %v428_v15 = vsel %vm427_vm13, %v6629_v5, %v424_v12 }
 0x14f   :  { %v433_v16 = vsel %vm430_vm14, %v432_v13, %v428_v15 }
 0x150   :  { %v434_v17 = vmul.f32 %v433_v16, %v402_v14 }
 0x152   :  { %v437_v19 = vadd.f32 %v435_v0, %v434_v17 }
 0x154   :  { %6280 = vmatmul.msk.f32.gmra.mxu0 %vm348_vm1, %v437_v19 }
 0x1c1   :  { %v462_v21 = vpop.f32.mrf.mxu0 }
 0x1c2   :  { %v7229_v22 = vadd.f32 %v462_v21, %v438_v20 }
 0x1c4   :  { %469 = vrot.lane.b32.xlu2 %v7229_v22, %s9232_s15 }
 0x1d1   :  { %v465_v23 = vpop.f32.mrf.mxu0 }
 0x1d2   :  { %v7233_v24 = vadd.f32 %v465_v23, %v438_v20 }
 0x1d4   :  { %655 = vrot.lane.b32.xlu1 %v7233_v24, %s9228_s16  ;;  %657 = vrot.lane.b32.xlu0 %v7233_v24, %s9230_s17  ;;  %v6546_v17 = vpack.i.bf16 %v7233_v24, %v7229_v22 }
 0x1d5   :  { %497 = vrot.lane.b32.xlu2 %v7233_v24, %s9232_s15 }
 0x1dc   :  { %947 = vrot.lane.b32.xlu1 %v7229_v22, %s9226_s0  ;;  %787 = vrot.lane.b32.xlu0 %v7229_v22, %s9222_s22 }
 0x1dd   :  { %629 = vrot.lane.b32.xlu2 %v7229_v22, %s9230_s17 }
 0x1e4   :  { %977 = vrot.lane.b32.xlu1 %v7233_v24, %s9220_s18  ;;  %817 = vrot.lane.b32.xlu0 %v7233_v24, %s9224_s23 }
 0x1e5   :  { %789 = vrot.lane.b32.xlu2 %v7229_v22, %s9224_s23 }
 0x1ec   :  { %975 = vrot.lane.b32.xlu0 %v7233_v24, %s9226_s0 }
 0x1ed   :  { %627 = vrot.lane.b32.xlu2 %v7229_v22, %s9228_s16 }
 0x1f5   :  { %949 = vrot.lane.b32.xlu2 %v7229_v22, %s9220_s18 }
 0x1fd   :  { %815 = vrot.lane.b32.xlu2 %v7233_v24, %s9222_s22 }
 0x21e   :  { %v470_v18 = vpop.permute.xlu2 %469 }
 0x21f   :  { %6281 = vmatpush.xpose.msk.msra.mxu1 %vm471_vm15, %v470_v18 }
 0x222   :  { %6282 = vmatmul.msk.f32.vlgmr.msra.gmra.mxu1 %vm471_vm15, %v7229_v22 }
 0x22f   :  { %v498_v25 = vpop.permute.xlu2 %497 }
 0x230   :  { %6283 = vmatpush.xpose.msk.msra.mxu2 %vm471_vm15, %v498_v25 }
 0x233   :  { %6284 = vmatmul.msk.f32.vlgmr.msra.gmra.mxu2 %vm471_vm15, %v7233_v24 }
 0x237   :  { %v630_v26 = vpop.permute.xlu2 %629 }
 0x238   :  { %6287 = vmatpush.xpose.msk.msrb.mxu1 %vm471_vm15, %v630_v26 }
 0x23f   :  { %v790_v27 = vpop.permute.xlu2 %789 }
 0x246   :  { %v656_v28 = vpop.permute.xlu1 %655  ;;  %v658_v29 = vpop.permute.xlu0 %657 }
 0x247   :  { %v628_v30 = vpop.permute.xlu2 %627  ;;  %6289 = vmatpush.xpose.msk.msrb.mxu2 %vm471_vm15, %v658_v29 }
 0x248   :  { %6288 = vmatmul.msk.f32.vlgmr.msrb.gmra.mxu1 %vm471_vm15, %v628_v30 }
 0x24a   :  { %6290 = vmatmul.msk.f32.vlgmr.msrb.gmra.mxu2 %vm471_vm15, %v656_v28 }
 0x24b   :  { %6293 = vmatpush.xpose.msk.msra.mxu2 %vm471_vm15, %v790_v27 }
 0x24e   :  { %v948_v31 = vpop.permute.xlu1 %947  ;;  %v788_v32 = vpop.permute.xlu0 %787 }
 0x24f   :  { %v950_v33 = vpop.permute.xlu2 %949 }
 0x250   :  { %6299 = vmatpush.xpose.msk.msrb.mxu2 %vm471_vm15, %v950_v33 }
 0x252   :  { %6294 = vmatmul.msk.f32.vlgmr.msra.gmra.mxu2 %vm471_vm15, %v788_v32 }
 0x256   :  { %v978_v34 = vpop.permute.xlu1 %977  ;;  %v818_v35 = vpop.permute.xlu0 %817 }
 0x257   :  { %6295 = vmatpush.xpose.msk.msrb.mxu0 %vm471_vm15, %v818_v35  ;;  %v816_v36 = vpop.permute.xlu2 %815 }
 0x25a   :  { %6296 = vmatmul.msk.f32.vlgmr.msrb.gmra.mxu0 %vm471_vm15, %v816_v36  ;;  %6300 = vmatmul.msk.f32.vlgmr.msrb.gmra.mxu2 %vm471_vm15, %v948_v31 }
 0x25b   :  { %6301 = vmatpush.xpose.msk.msra.mxu0 %vm471_vm15, %v978_v34 }
 0x25e   :  { %v976_v37 = vpop.permute.xlu0 %975 }
 0x262   :  { %6302 = vmatmul.msk.f32.vlgmr.msra.gmra.mxu0 %vm471_vm15, %v976_v37 }
 0x29f   :  { %v493_v42 = vpop.f32.mrf.mxu1 }
 0x2a0   :  { %v523_v43 = vmul.f32 0.35355338, %v493_v42 }
 0x2a2   :  { %v525_v44 = vadd.f32 %v523_v43, %v7283_v41 }
 0x2a4   :  { %v527_v45 = vsel %vm471_vm15, %v525_v44, -inf }
 0x2a5   :  { %528 = vmax.xlane.f32.xlu2 %v527_v45 }
 0x2b6   :  { %v520_v51 = vpop.f32.mrf.mxu2 }
 0x2b7   :  { %v524_v52 = vmul.f32 0.35355338, %v520_v51 }
 0x2b9   :  { %v526_v53 = vadd.f32 %v524_v52, %v7291_v50 }
 0x2bb   :  { %v530_v54 = vsel %vm471_vm15, %v526_v53, -inf }
 0x2bc   :  { %531 = vmax.xlane.f32.xlu1 %v530_v54 }
 0x2c5   :  { %v652_v55 = vpop.f32.mrf.mxu1 }
 0x2c6   :  { %v683_v56 = vmul.f32 0.35355338, %v652_v55 }
 0x2c8   :  { %v685_v57 = vadd.f32 %v683_v56, %v7283_v41 }
 0x2ca   :  { %v687_v58 = vsel %vm471_vm15, %v685_v57, -inf }
 0x2cb   :  { %688 = vmax.xlane.f32.xlu0 %v687_v58 }
 0x2cd   :  { %v680_v59 = vpop.f32.mrf.mxu2 }
 0x2ce   :  { %v684_v12 = vmul.f32 0.35355338, %v680_v59 }
 0x2d0   :  { %v686_v15 = vadd.f32 %v684_v12, %v7291_v50 }
 0x2d2   :  { %v690_v16 = vsel %vm471_vm15, %v686_v15, -inf }
 0x2d5   :  { %v812_v60 = vpop.f32.mrf.mxu2 }
 0x2d6   :  { %v843_v0 = vmul.f32 0.35355338, %v812_v60 }
 0x2d7   :  { %v840_v61 = vpop.f32.mrf.mxu0 }
 0x2d8   :  { %v844_v62 = vmul.f32 0.35355338, %v840_v61  ;;  %v845_v8 = vadd.f32 %v843_v0, %v7283_v41 }
 0x2da   :  { %v846_v63 = vadd.f32 %v844_v62, %v7291_v50  ;;  %v847_v14 = vsel %vm471_vm15, %v845_v8, -inf }
 0x2dc   :  { %v850_v1 = vsel %vm471_vm15, %v846_v63, -inf }
 0x2dd   :  { %v972_v3 = vpop.f32.mrf.mxu2  ;;  %851 = vmax.xlane.f32.xlu2 %v850_v1 }
 0x2de   :  { %v1003_v4 = vmul.f32 0.35355338, %v972_v3 }
 0x2df   :  { %v1000_v5 = vpop.f32.mrf.mxu0 }
 0x2e0   :  { %v1004_v6 = vmul.f32 0.35355338, %v1000_v5  ;;  %v7300_v7 = vadd.f32 %v1003_v4, %v7283_v41 }
 0x2e2   :  { %v1007_v9 = vsel %vm471_vm15, %v7300_v7, -inf  ;;  %v1006_v11 = vadd.f32 %v1004_v6, %v7291_v50 }
 0x2e3   :  { %1008 = vmax.xlane.f32.xlu0 %v1007_v9 }
 0x2e4   :  { %v1010_v13 = vsel %vm471_vm15, %v1006_v11, -inf }
 0x2e5   :  { %1011 = vmax.xlane.f32.xlu1 %v1010_v13  ;;  %848 = vmax.xlane.f32.xlu2 %v847_v14 }
 0x2ed   :  { %691 = vmax.xlane.f32.xlu1 %v690_v16 }
 0x2f7   :  { %6547 = vrot.lane.b32.xlu0 %v6546_v17, %s9214_s2 }
 0x306   :  { %735 = vrot.lane.b32.xlu1 %v7229_v22, %s9218_s26 }
 0x318   :  { %v529_v19 = vpop.xlane.xlu2 %528 }
 0x319   :  { %v533_v20 = vsub.f32 %v525_v44, %v529_v19 }
 0x31b   :  { %v535_v21 = vmul.f32 1.442695, %v533_v20 }
 0x31d   :  { %6630 = vpow2.f32 %v535_v21 }
 0x323   :  { %v7315_v23 = vpop.eup %6630 }
 0x324   :  { %v539_v18 = vsel %vm471_vm15, %v7315_v23, 0.0 }
 0x325   :  { %540 = vadd.xlane.f32.xlu0 %v539_v18 }
 0x32f   :  { %v532_v30 = vpop.xlane.xlu1 %531 }
 0x330   :  { %v534_v33 = vsub.f32 %v526_v53, %v532_v30 }
 0x332   :  { %v537_v35 = vmul.f32 1.442695, %v534_v33 }
 0x339   :  { %895 = vrot.lane.b32.xlu0 %v7229_v22, %s9216_s12 }
 0x33e   :  { %v689_v25 = vpop.xlane.xlu0 %688 }
 0x33f   :  { %v693_v26 = vsub.f32 %v685_v57, %v689_v25 }
 0x341   :  { %v695_v27 = vmul.f32 1.442695, %v693_v26  ;;  %761 = vrot.lane.b32.xlu0 %v7233_v24, %s9218_s26 }
 0x343   :  { %6632 = vpow2.f32 %v695_v27 }
 0x349   :  { %v7323_v28 = vpop.eup %6632  ;;  %921 = vrot.lane.b32.xlu0 %v7233_v24, %s9216_s12 }
 0x34a   :  { %v699_v29 = vsel %vm471_vm15, %v7323_v28, 0.0 }
 0x34b   :  { %700 = vadd.xlane.f32.xlu1 %v699_v29 }
 0x350   :  { %v852_v31 = vpop.xlane.xlu2 %851 }
 0x351   :  { %v854_v32 = vsub.f32 %v846_v63, %v852_v31 }
 0x353   :  { %v857_v34 = vmul.f32 1.442695, %v854_v32 }
 0x355   :  { %6634 = vpow2.f32 %v857_v34 }
 0x356   :  { %6636 = vpow2.f32 %v537_v35  ;;  %v1009_v45 = vpop.xlane.xlu0 %1008 }
 0x357   :  { %v1013_v60 = vsub.f32 %v7300_v7, %v1009_v45 }
 0x358   :  { %v1012_v36 = vpop.xlane.xlu1 %1011  ;;  %v849_v47 = vpop.xlane.xlu2 %848 }
 0x359   :  { %v1014_v38 = vsub.f32 %v1006_v11, %v1012_v36  ;;  %v853_v52 = vsub.f32 %v845_v8, %v849_v47  ;;  %v1015_v63 = vmul.f32 1.442695, %v1013_v60 }
 0x35b   :  { %v7329_v37 = vpop.eup %6634  ;;  %v1017_v42 = vmul.f32 1.442695, %v1014_v38  ;;  %v855_v54 = vmul.f32 1.442695, %v853_v52 }
 0x35c   :  { %v862_v40 = vsel %vm471_vm15, %v7329_v37, 0.0  ;;  %v7333_v44 = vpop.eup %6636 }
 0x35d   :  { %863 = vadd.xlane.f32.xlu2 %v862_v40  ;;  %6638 = vpow2.f32 %v1017_v42  ;;  %v542_v53 = vsel %vm471_vm15, %v7333_v44, 0.0 }
 0x360   :  { %v692_v43 = vpop.xlane.xlu1 %691 }
 0x361   :  { %v694_v48 = vsub.f32 %v686_v15, %v692_v43 }
 0x363   :  { %v697_v51 = vmul.f32 1.442695, %v694_v48  ;;  %v7337_v56 = vpop.eup %6638 }
 0x364   :  { %v1022_v62 = vsel %vm471_vm15, %v7337_v56, 0.0 }
 0x365   :  { %6640 = vpow2.f32 %v697_v51  ;;  %543 = vadd.xlane.f32.xlu2 %v542_v53 }
 0x366   :  { %6642 = vpow2.f32 %v855_v54 }
 0x367   :  { %6644 = vpow2.f32 %v1015_v63 }
 0x369   :  { %v6548_v55 = vpop.permute.xlu0 %6547 }
 0x36a   :  { %v6549_v57 = vunpack.i.l.bf16 %v6548_v55  ;;  %v6550_v58 = vunpack.i.h.bf16 %v6548_v55 }
 0x36b   :  { %v7339_v59 = vpop.eup %6640 }
 0x36c   :  { %596 = vmatpush.msra.mxu3 %v6549_v57  ;;  %v702_v61 = vsel %vm471_vm15, %v7339_v59, 0.0  ;;  %v7346_v0 = vpop.eup %6642 }
 0x36d   :  { %703 = vadd.xlane.f32.xlu1 %v702_v61  ;;  %1023 = vadd.xlane.f32.xlu2 %v1022_v62  ;;  %v859_v1 = vsel %vm471_vm15, %v7346_v0, 0.0  ;;  %v7350_v3 = vpop.eup %6644 }
 0x36e   :  { %622 = vmatpush.msrb.mxu3 %v6550_v58  ;;  %v1019_v4 = vsel %vm471_vm15, %v7350_v3, 0.0 }
 0x375   :  { %860 = vadd.xlane.f32.xlu2 %v859_v1 }
 0x37d   :  { %1020 = vadd.xlane.f32.xlu2 %v1019_v4 }
 0x386   :  { %1081 = vrot.lane.b32.xlu1 %v7233_v24, %s9212_s19 }
 0x395   :  { %1055 = vrot.lane.b32.xlu2 %v7229_v22, %s9212_s19  ;;  %v736_v22 = vpop.permute.xlu1 %735 }
 0x398   :  { %v541_v5 = vpop.xlane.xlu0 %540 }
 0x399   :  { %6646 = vrcp.f32 %v541_v5  ;;  %v556_v9 = vand.u32 2147483648, %v541_v5  ;;  %v554_v12 = vand.u32 2147483647, %v541_v5  ;;  %vm550_vm5 = vweird.f32 %v541_v5 }
 0x39b   :  { %v557_v14 = vor.u32 1.1754944e-38, %v556_v9  ;;  %vm555_vm7 = vcmp.eq.f32.partialorder %v554_v12, 8.507059e+37 }
 0x39f   :  { %v6647_v6 = vpop.eup %6646 }
 0x3a0   :  { %v546_v7 = vmul.f32 %v6647_v6, %v541_v5  ;;  %vm551_vm4 = vweird.f32 %v6647_v6 }
 0x3a1   :  { %vm552_vm6 = vmor %vm550_vm5, %vm551_vm4 }
 0x3a2   :  { %v547_v8 = vsub.f32 1.0, %v546_v7 }
 0x3a4   :  { %v548_v11 = vmul.f32 %v6647_v6, %v547_v8 }
 0x3a6   :  { %v549_v13 = vadd.f32 %v6647_v6, %v548_v11 }
 0x3a8   :  { %v553_v15 = vsel %vm552_vm6, %v6647_v6, %v549_v13 }
 0x3a9   :  { %v558_v16 = vsel %vm555_vm7, %v557_v14, %v553_v15 }
 0x3aa   :  { %v559_v24 = vmul.f32 %v7315_v23, %v558_v16 }
 0x3ab   :  { %v7359_v17 = vpop.permute.xlu0 %895 }
 0x3ac   :  { %6285 = vmatmul.msk.f32.vlgmr.msra.gmra.mxu3 %vm471_vm15, %v559_v24 }
 0x3ad   :  { %756 = vmatpush.msra.mxu3 %v736_v22 }
 0x3b3   :  { %v762_v19 = vpop.permute.xlu0 %761 }
 0x3b4   :  { %782 = vmatpush.msra.mxu1 %v762_v19 }
 0x3bb   :  { %v922_v20 = vpop.permute.xlu0 %921 }
 0x3bc   :  { %942 = vmatpush.msrb.mxu1 %v922_v20 }
 0x3be   :  { %v701_v21 = vpop.xlane.xlu1 %700 }
 0x3bf   :  { %6648 = vrcp.f32 %v701_v21  ;;  %vm710_vm13 = vweird.f32 %v701_v21  ;;  %v716_v54 = vand.u32 2147483648, %v701_v21  ;;  %v714_v61 = vand.u32 2147483647, %v701_v21 }
 0x3c1   :  { %v717_v8 = vor.u32 1.1754944e-38, %v716_v54  ;;  %vm715_vm3 = vcmp.eq.f32.partialorder %v714_v61, 8.507059e+37 }
 0x3c5   :  { %v6649_v25 = vpop.eup %6648 }
 0x3c6   :  { %v706_v23 = vmul.f32 %v6649_v25, %v701_v21  ;;  %vm711_vm10 = vweird.f32 %v6649_v25 }
 0x3c7   :  { %vm7374_vm14 = vmor %vm710_vm13, %vm711_vm10 }
 0x3c8   :  { %v707_v29 = vsub.f32 1.0, %v706_v23 }
 0x3ca   :  { %v708_v35 = vmul.f32 %v6649_v25, %v707_v29 }
 0x3cc   :  { %v709_v47 = vadd.f32 %v6649_v25, %v708_v35 }
 0x3ce   :  { %v713_v63 = vsel %vm7374_vm14, %v6649_v25, %v709_v47 }
 0x3cf   :  { %v718_v13 = vsel %vm715_vm3, %v717_v8, %v713_v63 }
 0x3d0   :  { %v7362_v18 = vpop.xlane.xlu2 %863 }
 0x3d1   :  { %v891_v20 = vand.u32 2147483648, %v7362_v18  ;;  %v889_v21 = vand.u32 2147483647, %v7362_v18 }
 0x3d8   :  { %v544_v26 = vpop.xlane.xlu2 %543 }
 0x3d9   :  { %6650 = vrcp.f32 %v544_v26  ;;  %v571_v38 = vand.u32 2147483648, %v544_v26  ;;  %v569_v42 = vand.u32 2147483647, %v544_v26  ;;  %vm565_vm9 = vweird.f32 %v544_v26 }
 0x3da   :  { %6652 = vrcp.f32 %v7362_v18 }
 0x3db   :  { %v572_v48 = vor.u32 1.1754944e-38, %v571_v38  ;;  %vm570_vm12 = vcmp.eq.f32.partialorder %v569_v42, 8.507059e+37 }
 0x3df   :  { %v6651_v27 = vpop.eup %6650 }
 0x3e0   :  { %v7365_v30 = vpop.eup %6652  ;;  %v561_v31 = vmul.f32 %v6651_v27, %v544_v26  ;;  %v704_v32 = vpop.xlane.xlu1 %703  ;;  %vm566_vm8 = vweird.f32 %v6651_v27  ;;  %v719_v26 = vmul.f32 %v7323_v28, %v718_v13  ;;  %v332_v13 = vld [vmem:[%s9207_s5 + $0x28] sm:$0xff] }
 0x3e1   :  { %6654 = vrcp.f32 %v704_v32  ;;  %v7367_v33 = vpop.xlane.xlu2 %1023  ;;  %v881_v36 = vmul.f32 %v7365_v30, %v7362_v18  ;;  %vm567_vm11 = vmor %vm565_vm9, %vm566_vm8  ;;  %v731_v1 = vand.u32 2147483648, %v704_v32  ;;  %v729_v7 = vand.u32 2147483647, %v704_v32 }
 0x3e2   :  { %v562_v34 = vsub.f32 1.0, %v561_v31  ;;  %6656 = vrcp.f32 %v7367_v33  ;;  %vm725_vm4 = vweird.f32 %v704_v32  ;;  %vm886_vm6 = vweird.f32 %v7365_v30 }
 0x3e3   :  { %v882_v51 = vsub.f32 1.0, %v881_v36  ;;  %v732_v12 = vor.u32 1.1754944e-38, %v731_v1  ;;  %vm730_vm7 = vcmp.eq.f32.partialorder %v729_v7, 8.507059e+37  ;;  %vm885_vm8 = vweird.f32 %v7362_v18 }
 0x3e4   :  { %v563_v40 = vmul.f32 %v6651_v27, %v562_v34  ;;  %vm7390_vm9 = vmor %vm885_vm8, %vm886_vm6  ;;  %v892_v18 = vor.u32 1.1754944e-38, %v891_v20  ;;  %vm1045_vm3 = vweird.f32 %v7367_v33 }
 0x3e5   :  { %v883_v5 = vmul.f32 %v7365_v30, %v882_v51 }
 0x3e6   :  { %v564_v43 = vadd.f32 %v6651_v27, %v563_v40 }
 0x3e7   :  { %v6655_v45 = vpop.eup %6654  ;;  %v884_v14 = vadd.f32 %v7365_v30, %v883_v5 }
 0x3e8   :  { %v721_v52 = vmul.f32 %v6655_v45, %v704_v32  ;;  %v568_v53 = vsel %vm567_vm11, %v6651_v27, %v564_v43  ;;  %v7372_v58 = vpop.eup %6656  ;;  %vm726_vm2 = vweird.f32 %v6655_v45  ;;  %vm890_vm11 = vcmp.eq.f32.partialorder %v889_v21, 8.507059e+37 }
 0x3e9   :  { %v861_v55 = vpop.xlane.xlu2 %860  ;;  %v573_v57 = vsel %vm570_vm12, %v572_v48, %v568_v53  ;;  %v1041_v9 = vmul.f32 %v7372_v58, %v7367_v33  ;;  %vm727_vm5 = vmor %vm725_vm4, %vm726_vm2  ;;  %v888_v27 = vsel %vm7390_vm9, %v7365_v30, %v884_v14  ;;  %vm1046_vm13 = vweird.f32 %v7372_v58 }
 0x3ea   :  { %v722_v62 = vsub.f32 1.0, %v721_v52  ;;  %6658 = vrcp.f32 %v861_v55  ;;  %v574_v4 = vmul.f32 %v7333_v44, %v573_v57  ;;  %v876_v29 = vand.u32 2147483648, %v861_v55  ;;  %vm1047_vm4 = vmor %vm1045_vm3, %vm1046_vm13 }
 0x3eb   :  { %v1042_v16 = vsub.f32 1.0, %v1041_v9  ;;  %v874_v34 = vand.u32 2147483647, %v861_v55  ;;  %vm870_vm12 = vweird.f32 %v861_v55  ;;  %v893_v36 = vsel %vm890_vm11, %v892_v18, %v888_v27 }
 0x3ec   :  { %v723_v6 = vmul.f32 %v6655_v45, %v722_v62  ;;  %6286 = vmatmul.msk.f32.vlgmr.msrb.gmra.mxu3 %vm471_vm15, %v574_v4  ;;  %v1049_v48 = vand.u32 2147483647, %v7367_v33  ;;  %v894_v53 = vmul.f32 %v7329_v37, %v893_v36  ;;  %vm1136_vm11 = vcmask 195584  }
 0x3ed   :  { %916 = vmatpush.msrb.mxu3 %v7359_v17  ;;  %v1043_v31 = vmul.f32 %v7372_v58, %v1042_v16  ;;  %vm875_vm2 = vcmp.eq.f32.partialorder %v874_v34, 8.507059e+37  ;;  %v1139_v27 = vperm.slane %v7221_v46, 5 }
 0x3ee   :  { %v724_v11 = vadd.f32 %v6655_v45, %v723_v6  ;;  %vm1050_vm6 = vcmp.eq.f32.partialorder %v1049_v48, 8.507059e+37  ;;  %v338_v48 = vld [vmem:[%s9207_s5 + $0x58] sm:$0xff] }
 0x3ef   :  { %v1044_v38 = vadd.f32 %v7372_v58, %v1043_v31 }
 0x3f0   :  { %v6659_v44 = vpop.eup %6658  ;;  %v728_v15 = vsel %vm727_vm5, %v6655_v45, %v724_v11  ;;  %v1051_v45 = vand.u32 2147483648, %v7367_v33  ;;  %v334_v11 = vld [vmem:[%s9207_s5 + $0x38] sm:$0xff] }
 0x3f1   :  { %v866_v24 = vmul.f32 %v6659_v44, %v861_v55  ;;  %v1021_v22 = vpop.xlane.xlu2 %1020  ;;  %v733_v19 = vsel %vm730_vm7, %v732_v12, %v728_v15  ;;  %vm871_vm10 = vweird.f32 %v6659_v44  ;;  %v1048_v55 = vsel %vm1047_vm4, %v7372_v58, %v1044_v38  ;;  %v333_v12 = vld [vmem:[%s9207_s5 + $0x30] sm:$0xff]  ;;  %1158 = vmatpush.msra.mxu2 %v334_v11 }
 0x3f2   :  { %6660 = vrcp.f32 %v1021_v22  ;;  %v734_v23 = vmul.f32 %v7339_v59, %v733_v19  ;;  %vm872_vm14 = vmor %vm870_vm12, %vm871_vm10  ;;  %v877_v59 = vor.u32 1.1754944e-38, %v876_v29  ;;  %v1036_v54 = vand.u32 2147483648, %v1021_v22 }
 0x3f3   :  { %v867_v25 = vsub.f32 1.0, %v866_v24  ;;  %v1034_v60 = vand.u32 2147483647, %v1021_v22  ;;  %v1052_v61 = vor.u32 1.1754944e-38, %v1051_v45  ;;  %vm1030_vm7 = vweird.f32 %v1021_v22  ;;  %1159 = vmatpush.msra.mxu2 %v333_v12 }
 0x3f4   :  { %6291 = vmatmul.msk.f32.vlgmr.msra.gmra.mxu3 %vm471_vm15, %v719_v26  ;;  %6292 = vmatmul.msk.f32.vlgmr.msra.gmra.mxu1 %vm471_vm15, %v734_v23  ;;  %vm1133_vm10 = vcmask 130048  }
 0x3f5   :  { %v868_v32 = vmul.f32 %v6659_v44, %v867_v25  ;;  %v1053_v37 = vsel %vm1050_vm6, %v1052_v61, %v1048_v55  ;;  %vm1035_vm9 = vcmp.eq.f32.partialorder %v1034_v60, 8.507059e+37  ;;  %1160 = vmatpush.msra.mxu2 %v332_v13  ;;  %v344_v13 = vld [vmem:[%s9207_s5 + $0x88] sm:$0xff] }
 0x3f6   :  { %v1054_v58 = vmul.f32 %v7337_v56, %v1053_v37 }
 0x3f7   :  { %v869_v35 = vadd.f32 %v6659_v44, %v868_v32 }
 0x3f8   :  { %v6661_v28 = vpop.eup %6660  ;;  %v1082_v30 = vpop.permute.xlu1 %1081 }
 0x3f9   :  { %v873_v40 = vsel %vm872_vm14, %v6659_v44, %v869_v35  ;;  %v1026_v42 = vmul.f32 %v6661_v28, %v1021_v22  ;;  %v1056_v43 = vpop.permute.xlu2 %1055  ;;  %1102 = vmatpush.msra.mxu1 %v1082_v30  ;;  %vm1031_vm5 = vweird.f32 %v6661_v28  ;;  %v331_v44 = vld [vmem:[%s9207_s5 + $0x20] sm:$0xff] }
 0x3fa   :  { %1076 = vmatpush.msra.mxu3 %v1056_v43  ;;  %v878_v47 = vsel %vm875_vm2, %v877_v59, %v873_v40  ;;  %vm1032_vm8 = vmor %vm1030_vm7, %vm1031_vm5  ;;  %1161 = vmatpush.msra.mxu2 %v331_v44 }
 0x3fb   :  { %v1027_v51 = vsub.f32 1.0, %v1026_v42  ;;  %v879_v52 = vmul.f32 %v7346_v0, %v878_v47  ;;  %v1037_v0 = vor.u32 1.1754944e-38, %v1036_v54  ;;  %v335_v54 = vld [vmem:[%s9207_s5 + $0x40] sm:$0xff] }
 0x3fc   :  { %6298 = vmatmul.msk.f32.vlgmr.msrb.gmra.mxu1 %vm471_vm15, %v894_v53 }
 0x3fd   :  { %v1028_v57 = vmul.f32 %v6661_v28, %v1027_v51  ;;  %6297 = vmatmul.msk.f32.vlgmr.msrb.gmra.mxu3 %vm471_vm15, %v879_v52  ;;  %v337_v51 = vld [vmem:[%s9207_s5 + $0x50] sm:$0xff]  ;;  %v336_v52 = vld [vmem:[%s9207_s5 + $0x48] sm:$0xff] }
 0x3fe   :  { %1272 = vmatpush.msrb.mxu3 %v338_v48 }
 0x3ff   :  { %v1029_v33 = vadd.f32 %v6661_v28, %v1028_v57 }
 0x400   :  { %1273 = vmatpush.msrb.mxu3 %v337_v51 }
 0x401   :  { %v1033_v62 = vsel %vm1032_vm8, %v6661_v28, %v1029_v33 }
 0x402   :  { %v1038_v63 = vsel %vm1035_vm9, %v1037_v0, %v1033_v62  ;;  %1274 = vmatpush.msrb.mxu3 %v336_v52 }
 0x403   :  { %v1039_v1 = vmul.f32 %v7350_v3, %v1038_v63 }
 0x404   :  { %6304 = vmatmul.msk.f32.vlgmr.msra.gmra.mxu1 %vm471_vm15, %v1054_v58  ;;  %1275 = vmatpush.msrb.mxu3 %v335_v54 }
 0x405   :  { %6303 = vmatmul.msk.f32.vlgmr.msra.gmra.mxu3 %vm471_vm15, %v1039_v1 }
 0x42f   :  { %v598_v4 = vpop.f32.mrf.mxu3 }
 0x46f   :  { %v624_v5 = vpop.f32.mrf.mxu3 }
 0x471   :  { %v784_v6 = vpop.f32.mrf.mxu1 }
 0x477   :  { %v758_v7 = vpop.f32.mrf.mxu3 }
 0x478   :  { %1109 = vrot.lane.b32.xlu0 %v758_v7, %s6989_s29 }
 0x479   :  { %v944_v8 = vpop.f32.mrf.mxu1 }
 0x47a   :  { %1119 = vrot.lane.b32.xlu2 %v944_v8, %s6990_s21 }
 0x480   :  { %v918_v9 = vpop.f32.mrf.mxu3 }
 0x481   :  { %1117 = vrot.lane.b32.xlu1 %v918_v9, %s6990_s21  ;;  %v1104_v56 = vpop.f32.mrf.mxu1 }
 0x488   :  { %v1078_v3 = vpop.f32.mrf.mxu3 }
 0x489   :  { %1111 = vrot.lane.b32.xlu1 %v784_v6, %s6989_s29  ;;  %1125 = vrot.lane.b32.xlu0 %v1078_v3, %s6991_s30  ;;  %v346_v3 = vld [vmem:[%s9207_s5 + $0x98] sm:$0xff] }
 0x48a   :  { %1301 = vmatpush.msra.mxu3 %v346_v3 }
 0x491   :  { %1127 = vrot.lane.b32.xlu0 %v1104_v56, %s6991_s30  ;;  %v345_v56 = vld [vmem:[%s9207_s5 + $0x90] sm:$0xff] }
 0x492   :  { %1302 = vmatpush.msra.mxu3 %v345_v56 }
 0x494   :  { %1303 = vmatpush.msra.mxu3 %v344_v13 }
 0x4d4   :  { %v1120_v21 = vpop.permute.xlu2 %1119 }
 0x4ea   :  { %v1110_v14 = vpop.permute.xlu0 %1109 }
 0x4eb   :  { %v1131_v16 = vsel %vm471_vm15, %v598_v4, %v1110_v14  ;;  %v343_v14 = vld [vmem:[%s9207_s5 + $0x80] sm:$0xff] }
 0x4ec   :  { %1304 = vmatpush.msra.mxu3 %v343_v14 }
 0x4f3   :  { %v1118_v15 = vpop.permute.xlu1 %1117 }
 0x4f4   :  { %v1134_v24 = vsel %vm1133_vm10, %v1131_v16, %v1118_v15 }
 0x4fb   :  { %v1126_v22 = vpop.permute.xlu0 %1125  ;;  %v1112_v20 = vpop.permute.xlu1 %1111 }
 0x4fc   :  { %v1137_v19 = vsel %vm1136_vm11, %v1134_v24, %v1126_v22  ;;  %v1132_v17 = vsel %vm471_vm15, %v624_v5, %v1112_v20  ;;  %v342_v24 = vld [vmem:[%s9207_s5 + $0x78] sm:$0xff] }
 0x4fd   :  { %6305 = vmatmul.msk.f32.vlgmr.msra.gmra.mxu2 %vm348_vm1, %v1137_v19  ;;  %v1135_v26 = vsel %vm1133_vm10, %v1132_v17, %v1120_v21  ;;  %1305 = vmatpush.msra.mxu3 %v342_v24 }
 0x503   :  { %v1128_v25 = vpop.permute.xlu0 %1127 }
 0x504   :  { %v1138_v23 = vsel %vm1136_vm11, %v1135_v26, %v1128_v25  ;;  %v1215_v26 = vperm.slane %v7221_v46, 2 }
 0x505   :  { %6306 = vmatmul.msk.f32.gmra.mxu2 %vm348_vm1, %v1138_v23 }
 0x580   :  { %v1163_v29 = vpop.f32.mrf.mxu2 }
 0x581   :  { %v1164_v31 = vadd.f32 %v1163_v29, %v1139_v27 }
 0x583   :  { %v7447_v32 = vadd.f32 %v1164_v31, %v7164_v49 }
 0x585   :  { %v1171_v34 = vsel %vm348_vm1, %v7447_v32, 0.0 }
 0x586   :  { %1172 = vadd.xlane.f32.xlu1 %v1171_v34 }
 0x588   :  { %v1166_v18 = vpop.f32.mrf.mxu2 }
 0x589   :  { %v1167_v35 = vadd.f32 %v1166_v18, %v1139_v27 }
 0x58b   :  { %v7452_v28 = vadd.f32 %v1167_v35, %v7190_v2 }
 0x58d   :  { %v1174_v59 = vsel %vm348_vm1, %v7452_v28, 0.0 }
 0x58e   :  { %1175 = vadd.xlane.f32.xlu2 %v1174_v59 }
 0x5f9   :  { %v1173_v30 = vpop.xlane.xlu1 %1172 }
 0x5fa   :  { %v1177_v36 = vmul.f32 %v1173_v30, %v7194_v10  ;;  %v6910_v30 = vld [vmem:[%s9208_s6] sm:$0xff] }
 0x5fc   :  { %v7458_v38 = vsub.f32 %v7447_v32, %v1177_v36  ;;  %v1250_v36 = vperm.slane %v6910_v30, 3 }
 0x5fe   :  { %v1181_v49 = vmul.f32 %v7458_v38, %v7458_v38  ;;  %v1216_v18 = vmul.f32 %v1215_v26, %v7458_v38 }
 0x600   :  { %v1183_v40 = vsel %vm348_vm1, %v1181_v49, 0.0 }
 0x601   :  { %1184 = vadd.xlane.f32.xlu0 %v1183_v40  ;;  %v1176_v42 = vpop.xlane.xlu2 %1175 }
 0x602   :  { %v1178_v2 = vmul.f32 %v1176_v42, %v7194_v10 }
 0x604   :  { %v7465_v43 = vsub.f32 %v7452_v28, %v1178_v2 }
 0x606   :  { %v1182_v45 = vmul.f32 %v7465_v43, %v7465_v43  ;;  %v1217_v52 = vmul.f32 %v1215_v26, %v7465_v43  ;;  %v339_v43 = vld [vmem:[%s9207_s5 + $0x60] sm:$0xff] }
 0x608   :  { %v1186_v47 = vsel %vm348_vm1, %v1182_v45, 0.0 }
 0x609   :  { %1187 = vadd.xlane.f32.xlu1 %v1186_v47 }
 0x674   :  { %v1185_v53 = vpop.xlane.xlu0 %1184 }
 0x675   :  { %v1189_v55 = vmul.f32 0.032258064, %v1185_v53 }
 0x677   :  { %6662 = vrsqrt.f32 %v1189_v55  ;;  %vm1198_vm12 = vcmp.eq.f32.partialorder %v1189_v55, inf  ;;  %v1201_v6 = vand.u32 2147483648, %v1189_v55  ;;  %vm1200_vm13 = vcmp.eq.f32.partialorder %v1189_v55, 0.0 }
 0x67c   :  { %v1188_v57 = vpop.xlane.xlu1 %1187 }
 0x67d   :  { %v6663_v60 = vpop.eup %6662  ;;  %v1190_v61 = vmul.f32 0.032258064, %v1188_v57 }
 0x67e   :  { %v1192_v33 = vmul.f32 %v6663_v60, %v1189_v55 }
 0x67f   :  { %6664 = vrsqrt.f32 %v1190_v61  ;;  %vm1210_vm14 = vcmp.eq.f32.partialorder %v1190_v61, inf  ;;  %v1213_v16 = vand.u32 2147483648, %v1190_v61  ;;  %vm1212_vm2 = vcmp.eq.f32.partialorder %v1190_v61, 0.0 }
 0x680   :  { %v1193_v0 = vmul.f32 %v6663_v60, %v1192_v33  ;;  %v1253_v33 = vperm.slane %v6910_v30, 6 }
 0x682   :  { %v1194_v37 = vmul.f32 0.5, %v1193_v0 }
 0x684   :  { %v1195_v62 = vsub.f32 1.5, %v1194_v37 }
 0x685   :  { %v6665_v63 = vpop.eup %6664 }
 0x686   :  { %v1196_v1 = vmul.f32 %v6663_v60, %v1195_v62  ;;  %v1204_v58 = vmul.f32 %v6665_v63, %v1190_v61  ;;  %v341_v60 = vld [vmem:[%s9207_s5 + $0x70] sm:$0xff] }
 0x687   :  { %1306 = vmatpush.msra.mxu3 %v341_v60  ;;  %v6331_v60 = vld [vmem:[%s9208_s6 + $0x8] sm:$0xff] }
 0x688   :  { %v1197_v4 = vmul.f32 %v1196_v1, %v1189_v55  ;;  %v1205_v5 = vmul.f32 %v6665_v63, %v1204_v58 }
 0x68a   :  { %v1199_v7 = vsel %vm1198_vm12, %v1189_v55, %v1197_v4  ;;  %v1206_v8 = vmul.f32 0.5, %v1205_v5  ;;  %v1285_v4 = vperm.slane %v6910_v30, 7 }
 0x68b   :  { %v1202_v9 = vsel %vm1200_vm13, %v1201_v6, %v1199_v7  ;;  %vm1286_vm13 = vcmask 523264  }
 0x68c   :  { %v1218_v11 = vadd.f32 1e-06, %v1202_v9  ;;  %v1207_v12 = vsub.f32 1.5, %v1206_v8 }
 0x68e   :  { %6666 = vrcp.f32 %v1218_v11  ;;  %v1208_v44 = vmul.f32 %v6665_v63, %v1207_v12  ;;  %v1231_v23 = vand.u32 2147483648, %v1218_v11  ;;  %v1229_v29 = vand.u32 2147483647, %v1218_v11 }
 0x68f   :  { %vm1225_vm4 = vweird.f32 %v1218_v11 }
 0x690   :  { %v1209_v15 = vmul.f32 %v1208_v44, %v1190_v61  ;;  %v1232_v35 = vor.u32 1.1754944e-38, %v1231_v23  ;;  %vm1230_vm6 = vcmp.eq.f32.partialorder %v1229_v29, 8.507059e+37 }
 0x692   :  { %v1211_v22 = vsel %vm1210_vm14, %v1190_v61, %v1209_v15  ;;  %v340_v61 = vld [vmem:[%s9207_s5 + $0x68] sm:$0xff] }
 0x693   :  { %v1214_v19 = vsel %vm1212_vm2, %v1213_v16, %v1211_v22  ;;  %1307 = vmatpush.msra.mxu3 %v340_v61 }
 0x694   :  { %v6667_v20 = vpop.eup %6666  ;;  %v1219_v17 = vadd.f32 1e-06, %v1214_v19  ;;  %v6314_v19 = vld [vmem:[%s9207_s5 + $0xb8] sm:$0xff] }
 0x695   :  { %v1221_v21 = vmul.f32 %v6667_v20, %v1218_v11  ;;  %vm1226_vm3 = vweird.f32 %v6667_v20  ;;  %1308 = vmatpush.msra.mxu3 %v339_v43  ;;  %1442 = vmatpush.msrb.mxu1 %v6314_v19 }
 0x696   :  { %6668 = vrcp.f32 %v1219_v17  ;;  %vm1227_vm5 = vmor %vm1225_vm4, %vm1226_vm3  ;;  %v1246_v2 = vand.u32 2147483648, %v1219_v17  ;;  %v1244_v48 = vand.u32 2147483647, %v1219_v17  ;;  %vm1240_vm8 = vweird.f32 %v1219_v17 }
 0x697   :  { %v1222_v25 = vsub.f32 1.0, %v1221_v21 }
 0x698   :  { %v1247_v51 = vor.u32 1.1754944e-38, %v1246_v2  ;;  %vm1245_vm12 = vcmp.eq.f32.partialorder %v1244_v48, 8.507059e+37 }
 0x699   :  { %v1223_v27 = vmul.f32 %v6667_v20, %v1222_v25  ;;  %v6311_v25 = vld [vmem:[%s9207_s5 + $0xa0] sm:$0xff] }
 0x69b   :  { %v1224_v31 = vadd.f32 %v6667_v20, %v1223_v27 }
 0x69c   :  { %v6669_v34 = vpop.eup %6668 }
 0x69d   :  { %v1228_v59 = vsel %vm1227_vm5, %v6667_v20, %v1224_v31  ;;  %v1236_v49 = vmul.f32 %v6669_v34, %v1219_v17  ;;  %vm1241_vm7 = vweird.f32 %v6669_v34  ;;  %v6313_v20 = vld [vmem:[%s9207_s5 + $0xb0] sm:$0xff]  ;;  %v6312_v17 = vld [vmem:[%s9207_s5 + $0xa8] sm:$0xff] }
 0x69e   :  { %v1233_v46 = vsel %vm1230_vm6, %v1232_v35, %v1228_v59  ;;  %vm1242_vm9 = vmor %vm1240_vm8, %vm1241_vm7  ;;  %1443 = vmatpush.msrb.mxu1 %v6313_v20 }
 0x69f   :  { %v1234_v40 = vmul.f32 %v1233_v46, %v1216_v18  ;;  %v1237_v42 = vsub.f32 1.0, %v1236_v49 }
 0x6a0   :  { %1444 = vmatpush.msrb.mxu1 %v6312_v17  ;;  %v1423_v17 = vperm.slane %v6331_v60, 4 }
 0x6a1   :  { %v1251_v45 = vadd.f32 %v1250_v36, %v1234_v40  ;;  %v1238_v47 = vmul.f32 %v6669_v34, %v1237_v42 }
 0x6a2   :  { %1445 = vmatpush.msrb.mxu1 %v6311_v25 }
 0x6a3   :  { %6307 = vmatmul.msk.f32.vlgmr.msrb.gmra.mxu3 %vm348_vm1, %v1251_v45  ;;  %v1239_v38 = vadd.f32 %v6669_v34, %v1238_v47 }
 0x6a5   :  { %v1243_v53 = vsel %vm1242_vm9, %v6669_v34, %v1239_v38 }
 0x6a6   :  { %v1248_v54 = vsel %vm1245_vm12, %v1247_v51, %v1243_v53 }
 0x6a7   :  { %v1249_v55 = vmul.f32 %v1248_v54, %v1217_v52 }
 0x6a9   :  { %v1252_v57 = vadd.f32 %v1250_v36, %v1249_v55 }
 0x6ab   :  { %6308 = vmatmul.msk.f32.gmra.mxu3 %vm348_vm1, %v1252_v57 }
 0x726   :  { %v1277_v0 = vpop.f32.mrf.mxu3 }
 0x727   :  { %v1278_v37 = vadd.f32 %v1277_v0, %v1253_v33 }
 0x729   :  { %v1283_v62 = vmax.f32 %v1278_v37, 0.0 }
 0x72b   :  { %6309 = vmatmul.msk.f32.vlgmr.msra.gmra.mxu3 %vm1286_vm13, %v1283_v62 }
 0x72e   :  { %v1280_v63 = vpop.f32.mrf.mxu3 }
 0x72f   :  { %v1281_v1 = vadd.f32 %v1280_v63, %v1253_v33  ;;  %v1385_v33 = vperm.slane %v6331_v60, 0 }
 0x731   :  { %v1284_v58 = vmax.f32 %v1281_v1, 0.0 }
 0x733   :  { %6310 = vmatmul.msk.f32.gmra.mxu3 %vm1286_vm13, %v1284_v58 }
 0x7ae   :  { %v1310_v5 = vpop.f32.mrf.mxu3 }
 0x7af   :  { %v1311_v6 = vadd.f32 %v1310_v5, %v1285_v4 }
 0x7b1   :  { %v7517_v7 = vadd.f32 %v1311_v6, %v7447_v32  ;;  %v1420_v6 = vperm.slane %v6331_v60, 1 }
 0x7b3   :  { %v1341_v8 = vsel %vm348_vm1, %v7517_v7, 0.0 }
 0x7b4   :  { %1342 = vadd.xlane.f32.xlu2 %v1341_v8 }
 0x7b6   :  { %v1313_v9 = vpop.f32.mrf.mxu3 }
 0x7b7   :  { %v1314_v3 = vadd.f32 %v1313_v9, %v1285_v4 }
 0x7b9   :  { %v7522_v56 = vadd.f32 %v1314_v3, %v7452_v28 }
 0x7bb   :  { %v1344_v11 = vsel %vm348_vm1, %v7522_v56, 0.0 }
 0x7bc   :  { %1345 = vadd.xlane.f32.xlu0 %v1344_v11 }
 0x827   :  { %v1343_v12 = vpop.xlane.xlu2 %1342 }
 0x828   :  { %v1347_v13 = vmul.f32 %v1343_v12, %v7194_v10 }
 0x82a   :  { %v7528_v44 = vsub.f32 %v7517_v7, %v1347_v13 }
 0x82c   :  { %v1351_v32 = vmul.f32 %v7528_v44, %v7528_v44  ;;  %v1386_v58 = vmul.f32 %v1385_v33, %v7528_v44 }
 0x82e   :  { %v1353_v14 = vsel %vm348_vm1, %v1351_v32, 0.0 }
 0x82f   :  { %1354 = vadd.xlane.f32.xlu1 %v1353_v14  ;;  %v1346_v15 = vpop.xlane.xlu0 %1345 }
 0x830   :  { %v1348_v28 = vmul.f32 %v1346_v15, %v7194_v10 }
 0x832   :  { %v7535_v16 = vsub.f32 %v7522_v56, %v1348_v28 }
 0x834   :  { %v1352_v24 = vmul.f32 %v7535_v16, %v7535_v16  ;;  %v1387_v28 = vmul.f32 %v1385_v33, %v7535_v16 }
 0x836   :  { %v1356_v22 = vsel %vm348_vm1, %v1352_v24, 0.0 }
 0x837   :  { %1357 = vadd.xlane.f32.xlu2 %v1356_v22 }
 0x8a2   :  { %v1355_v21 = vpop.xlane.xlu1 %1354 }
 0x8a3   :  { %v1359_v26 = vmul.f32 0.032258064, %v1355_v21 }
 0x8a5   :  { %6670 = vrsqrt.f32 %v1359_v26  ;;  %vm1368_vm14 = vcmp.eq.f32.partialorder %v1359_v26, inf  ;;  %v1371_v40 = vand.u32 2147483648, %v1359_v26  ;;  %vm1370_vm2 = vcmp.eq.f32.partialorder %v1359_v26, 0.0 }
 0x8aa   :  { %v1358_v23 = vpop.xlane.xlu2 %1357 }
 0x8ab   :  { %v6671_v27 = vpop.eup %6670  ;;  %v1360_v29 = vmul.f32 0.032258064, %v1358_v23 }
 0x8ac   :  { %v1362_v31 = vmul.f32 %v6671_v27, %v1359_v26 }
 0x8ad   :  { %6672 = vrsqrt.f32 %v1360_v29  ;;  %vm1380_vm3 = vcmp.eq.f32.partialorder %v1360_v29, inf  ;;  %v1383_v52 = vand.u32 2147483648, %v1360_v29  ;;  %vm1382_vm4 = vcmp.eq.f32.partialorder %v1360_v29, 0.0 }
 0x8ae   :  { %v1363_v34 = vmul.f32 %v6671_v27, %v1362_v31 }
 0x8b0   :  { %v1364_v18 = vmul.f32 0.5, %v1363_v34 }
 0x8b2   :  { %v1365_v35 = vsub.f32 1.5, %v1364_v18 }
 0x8b3   :  { %v6673_v59 = vpop.eup %6672 }
 0x8b4   :  { %v1366_v30 = vmul.f32 %v6671_v27, %v1365_v35  ;;  %v1374_v36 = vmul.f32 %v6673_v59, %v1360_v29 }
 0x8b6   :  { %v1367_v49 = vmul.f32 %v1366_v30, %v1359_v26  ;;  %v1375_v46 = vmul.f32 %v6673_v59, %v1374_v36 }
 0x8b8   :  { %v1369_v42 = vsel %vm1368_vm14, %v1359_v26, %v1367_v49  ;;  %v1376_v2 = vmul.f32 0.5, %v1375_v46 }
 0x8b9   :  { %v1372_v45 = vsel %vm1370_vm2, %v1371_v40, %v1369_v42 }
 0x8ba   :  { %v1388_v47 = vadd.f32 1e-06, %v1372_v45  ;;  %v1377_v48 = vsub.f32 1.5, %v1376_v2 }
 0x8bc   :  { %6674 = vrcp.f32 %v1388_v47  ;;  %v1378_v38 = vmul.f32 %v6673_v59, %v1377_v48  ;;  %v1401_v0 = vand.u32 2147483648, %v1388_v47  ;;  %v1399_v62 = vand.u32 2147483647, %v1388_v47 }
 0x8bd   :  { %vm1395_vm6 = vweird.f32 %v1388_v47 }
 0x8be   :  { %v1379_v51 = vmul.f32 %v1378_v38, %v1360_v29  ;;  %v1402_v4 = vor.u32 1.1754944e-38, %v1401_v0  ;;  %vm1400_vm8 = vcmp.eq.f32.partialorder %v1399_v62, 8.507059e+37 }
 0x8c0   :  { %v1381_v53 = vsel %vm1380_vm3, %v1360_v29, %v1379_v51 }
 0x8c1   :  { %v1384_v54 = vsel %vm1382_vm4, %v1383_v52, %v1381_v53 }
 0x8c2   :  { %v6675_v55 = vpop.eup %6674  ;;  %v1389_v57 = vadd.f32 1e-06, %v1384_v54 }
 0x8c3   :  { %v1391_v61 = vmul.f32 %v6675_v55, %v1388_v47  ;;  %vm1396_vm5 = vweird.f32 %v6675_v55 }
 0x8c4   :  { %6676 = vrcp.f32 %v1389_v57  ;;  %vm1397_vm7 = vmor %vm1395_vm6, %vm1396_vm5  ;;  %v1416_v12 = vand.u32 2147483648, %v1389_v57  ;;  %v1414_v14 = vand.u32 2147483647, %v1389_v57  ;;  %vm1410_vm12 = vweird.f32 %v1389_v57 }
 0x8c5   :  { %v1392_v43 = vsub.f32 1.0, %v1391_v61 }
 0x8c6   :  { %v1417_v44 = vor.u32 1.1754944e-38, %v1416_v12  ;;  %vm1415_vm2 = vcmp.eq.f32.partialorder %v1414_v14, 8.507059e+37 }
 0x8c7   :  { %v1393_v37 = vmul.f32 %v6675_v55, %v1392_v43 }
 0x8c9   :  { %v1394_v63 = vadd.f32 %v6675_v55, %v1393_v37 }
 0x8ca   :  { %v6677_v1 = vpop.eup %6676 }
 0x8cb   :  { %v1398_v5 = vsel %vm1397_vm7, %v6675_v55, %v1394_v63  ;;  %v1406_v8 = vmul.f32 %v6677_v1, %v1389_v57  ;;  %vm1411_vm9 = vweird.f32 %v6677_v1 }
 0x8cc   :  { %v1403_v9 = vsel %vm1400_vm8, %v1402_v4, %v1398_v5  ;;  %vm1412_vm14 = vmor %vm1410_vm12, %vm1411_vm9 }
 0x8cd   :  { %v1404_v3 = vmul.f32 %v1403_v9, %v1386_v58  ;;  %v1407_v11 = vsub.f32 1.0, %v1406_v8 }
 0x8cf   :  { %v1421_v13 = vadd.f32 %v1420_v6, %v1404_v3  ;;  %v1408_v32 = vmul.f32 %v6677_v1, %v1407_v11 }
 0x8d1   :  { %6332 = vmatmul.msk.f32.vlgmr.msrb.gmra.mxu1 %vm348_vm1, %v1421_v13  ;;  %v1409_v15 = vadd.f32 %v6677_v1, %v1408_v32 }
 0x8d3   :  { %v1413_v24 = vsel %vm1412_vm14, %v6677_v1, %v1409_v15 }
 0x8d4   :  { %v1418_v22 = vsel %vm1415_vm2, %v1417_v44, %v1413_v24 }
 0x8d5   :  { %v1419_v19 = vmul.f32 %v1418_v22, %v1387_v28 }
 0x8d7   :  { %v1422_v20 = vadd.f32 %v1420_v6, %v1419_v19 }
 0x8d9   :  { %6333 = vmatmul.msk.f32.gmra.mxu1 %vm348_vm1, %v1422_v20 }
 0x94e   :  { %v1447_v21 = vpop.f32.mrf.mxu1 }
 0x94f   :  { %v7559_v25 = vadd.f32 %v1447_v21, %v1423_v17 }
 0x951   :  { %1454 = vrot.lane.b32.xlu0 %v7559_v25, %s9232_s15 }
 0x956   :  { %v1450_v26 = vpop.f32.mrf.mxu1 }
 0x957   :  { %v7563_v23 = vadd.f32 %v1450_v26, %v1423_v17 }
 0x959   :  { %1611 = vrot.lane.b32.xlu0 %v7559_v25, %s9228_s16  ;;  %1641 = vrot.lane.b32.xlu2 %v7563_v23, %s9230_s17  ;;  %v7627_v15 = vpack.i.bf16 %v7563_v23, %v7559_v25 }
 0x95a   :  { %1481 = vrot.lane.b32.xlu1 %v7563_v23, %s9232_s15  ;;  %s7834_s15 = sld [smem:[#allocation7 + $0x84]] }
 0x961   :  { %1639 = vrot.lane.b32.xlu0 %v7563_v23, %s9228_s16  ;;  %1801 = vrot.lane.b32.xlu2 %v7563_v23, %s9224_s23  ;;  %s6258_s16 = sld [smem:[#allocation7 + $0x81]] }
 0x962   :  { %1613 = vrot.lane.b32.xlu1 %v7559_v25, %s9230_s17  ;;  %s6175_s17 = scalar_lea.vmem %s9206_s4, %s6240_s25  ;;  %s7840_s25 = sld [smem:[#allocation7 + $0x86]] }
 0x969   :  { %1773 = vrot.lane.b32.xlu0 %v7559_v25, %s9224_s23  ;;  %1771 = vrot.lane.b32.xlu2 %v7559_v25, %s9222_s22  ;;  %s6173_s23 = scalar_lea.vmem %s9206_s4, %s6237_s24  ;;  %s6264_s24 = sld [smem:[#allocation7 + $0x83]] }
 0x96a   :  { %1799 = vrot.lane.b32.xlu1 %v7563_v23, %s9222_s22  ;;  %s6197_s22 = scalar_lea.vmem %s9206_s4, %s7840_s25  ;;  %s9255_s25 = smov 64  }
 0x971   :  { %1959 = vrot.lane.b32.xlu0 %v7563_v23, %s9226_s0  ;;  %1933 = vrot.lane.b32.xlu2 %v7559_v25, %s9220_s18 }
 0x972   :  { %1961 = vrot.lane.b32.xlu1 %v7563_v23, %s9220_s18  ;;  %s6177_s18 = scalar_lea.vmem %s9206_s4, %s6243_s27 }
 0x97a   :  { %1931 = vrot.lane.b32.xlu1 %v7559_v25, %s9226_s0  ;;  %s6179_s0 = scalar_lea.vmem %s9206_s4, %s6246_s1 }
 0x9b3   :  { %v1642_v16 = vpop.permute.xlu2 %1641 }
 0x9b4   :  { %6342 = vmatpush.xpose.msk.msrb.mxu3 %vm471_vm15, %v1642_v16 }
 0x9bb   :  { %v1802_v27 = vpop.permute.xlu2 %1801 }
 0x9bc   :  { %6348 = vmatpush.xpose.msk.msra.mxu3 %vm471_vm15, %v1802_v27 }
 0x9c3   :  { %v1455_v29 = vpop.permute.xlu0 %1454  ;;  %v1772_v18 = vpop.permute.xlu2 %1771 }
 0x9c4   :  { %6334 = vmatpush.xpose.msk.msrb.mxu2 %vm471_vm15, %v1455_v29 }
 0x9c7   :  { %6335 = vmatmul.msk.f32.vlgmr.msrb.gmra.mxu2 %vm471_vm15, %v7559_v25 }
 0x9cb   :  { %v1612_v31 = vpop.permute.xlu0 %1611  ;;  %v1934_v36 = vpop.permute.xlu2 %1933 }
 0x9cc   :  { %v1482_v34 = vpop.permute.xlu1 %1481 }
 0x9cd   :  { %6336 = vmatpush.xpose.msk.msrb.mxu0 %vm471_vm15, %v1482_v34 }
 0x9d0   :  { %6337 = vmatmul.msk.f32.vlgmr.msrb.gmra.mxu0 %vm471_vm15, %v7563_v23 }
 0x9d3   :  { %v1640_v35 = vpop.permute.xlu0 %1639 }
 0x9d4   :  { %v1614_v59 = vpop.permute.xlu1 %1613  ;;  %6343 = vmatmul.msk.f32.vlgmr.msrb.gmra.mxu3 %vm471_vm15, %v1640_v35 }
 0x9d5   :  { %6340 = vmatpush.xpose.msk.msra.mxu0 %vm471_vm15, %v1614_v59 }
 0x9d8   :  { %6341 = vmatmul.msk.f32.vlgmr.msra.gmra.mxu0 %vm471_vm15, %v1612_v31 }
 0x9db   :  { %v1774_v30 = vpop.permute.xlu0 %1773 }
 0x9dc   :  { %v1800_v49 = vpop.permute.xlu1 %1799  ;;  %6346 = vmatpush.xpose.msk.msrb.mxu0 %vm471_vm15, %v1774_v30 }
 0x9dd   :  { %6349 = vmatmul.msk.f32.vlgmr.msra.gmra.mxu3 %vm471_vm15, %v1800_v49 }
 0x9e0   :  { %6352 = vmatpush.xpose.msk.msra.mxu0 %vm471_vm15, %v1934_v36 }
 0x9e1   :  { %6347 = vmatmul.msk.f32.vlgmr.msrb.gmra.mxu0 %vm471_vm15, %v1772_v18 }
 0x9e3   :  { %v1960_v40 = vpop.permute.xlu0 %1959 }
 0x9e4   :  { %v1962_v46 = vpop.permute.xlu1 %1961 }
 0x9e5   :  { %6354 = vmatpush.xpose.msk.msrb.mxu3 %vm471_vm15, %v1962_v46 }
 0x9e8   :  { %6355 = vmatmul.msk.f32.vlgmr.msrb.gmra.mxu3 %vm471_vm15, %v1960_v40 }
 0x9ec   :  { %v1932_v42 = vpop.permute.xlu1 %1931 }
 0x9ed   :  { %6353 = vmatmul.msk.f32.vlgmr.msra.gmra.mxu0 %vm471_vm15, %v1932_v42 }
 0xa4a   :  { %v1477_v2 = vpop.f32.mrf.mxu2 }
 0xa4b   :  { %v1507_v45 = vmul.f32 0.35355338, %v1477_v2 }
 0xa4d   :  { %v1504_v47 = vpop.f32.mrf.mxu0  ;;  %v1509_v48 = vadd.f32 %v1507_v45, %v7283_v41 }
 0xa4e   :  { %v1508_v38 = vmul.f32 0.35355338, %v1504_v47 }
 0xa4f   :  { %v1511_v51 = vsel %vm471_vm15, %v1509_v48, -inf }
 0xa50   :  { %1512 = vmax.xlane.f32.xlu0 %v1511_v51  ;;  %v1510_v52 = vadd.f32 %v1508_v38, %v7291_v50 }
 0xa52   :  { %v1514_v53 = vsel %vm471_vm15, %v1510_v52, -inf }
 0xa53   :  { %1515 = vmax.xlane.f32.xlu2 %v1514_v53 }
 0xa55   :  { %v1636_v54 = vpop.f32.mrf.mxu0 }
 0xa56   :  { %v1667_v55 = vmul.f32 0.35355338, %v1636_v54 }
 0xa57   :  { %v1664_v57 = vpop.f32.mrf.mxu3 }
 0xa58   :  { %v1668_v60 = vmul.f32 0.35355338, %v1664_v57  ;;  %v1669_v61 = vadd.f32 %v1667_v55, %v7283_v41 }
 0xa5a   :  { %v1671_v43 = vsel %vm471_vm15, %v1669_v61, -inf  ;;  %v1670_v33 = vadd.f32 %v1668_v60, %v7291_v50 }
 0xa5b   :  { %1672 = vmax.xlane.f32.xlu1 %v1671_v43 }
 0xa5c   :  { %v1674_v0 = vsel %vm471_vm15, %v1670_v33, -inf }
 0xa5d   :  { %1675 = vmax.xlane.f32.xlu0 %v1674_v0 }
 0xa5e   :  { %v1796_v37 = vpop.f32.mrf.mxu0 }
 0xa5f   :  { %v1827_v62 = vmul.f32 0.35355338, %v1796_v37 }
 0xa60   :  { %v1824_v63 = vpop.f32.mrf.mxu3 }
 0xa61   :  { %v1829_v1 = vadd.f32 %v1827_v62, %v7283_v41  ;;  %v1828_v58 = vmul.f32 0.35355338, %v1824_v63 }
 0xa63   :  { %v1831_v4 = vsel %vm471_vm15, %v1829_v1, -inf  ;;  %v1830_v5 = vadd.f32 %v1828_v58, %v7291_v50 }
 0xa64   :  { %1832 = vmax.xlane.f32.xlu2 %v1831_v4 }
 0xa65   :  { %v1834_v6 = vsel %vm471_vm15, %v1830_v5, -inf }
 0xa66   :  { %1835 = vmax.xlane.f32.xlu1 %v1834_v6 }
 0xa6a   :  { %v1956_v8 = vpop.f32.mrf.mxu0 }
 0xa6b   :  { %v1987_v9 = vmul.f32 0.35355338, %v1956_v8  ;;  %v1984_v3 = vpop.f32.mrf.mxu3 }
 0xa6c   :  { %v1988_v11 = vmul.f32 0.35355338, %v1984_v3 }
 0xa6d   :  { %v1989_v12 = vadd.f32 %v1987_v9, %v7283_v41 }
 0xa6e   :  { %v1990_v13 = vadd.f32 %v1988_v11, %v7291_v50 }
 0xa6f   :  { %v1991_v32 = vsel %vm471_vm15, %v1989_v12, -inf }
 0xa70   :  { %1992 = vmax.xlane.f32.xlu0 %v1991_v32  ;;  %v1994_v14 = vsel %vm471_vm15, %v1990_v13, -inf }
 0xa71   :  { %1995 = vmax.xlane.f32.xlu2 %v1994_v14 }
 0xa7f   :  { %6552 = vrot.lane.b32.xlu1 %v7627_v15, %s9214_s2 }
 0xac3   :  { %v1513_v44 = vpop.xlane.xlu0 %1512 }
 0xac4   :  { %v1517_v28 = vsub.f32 %v1509_v48, %v1513_v44 }
 0xac6   :  { %v1519_v24 = vmul.f32 1.442695, %v1517_v28  ;;  %v1516_v22 = vpop.xlane.xlu2 %1515 }
 0xac7   :  { %v1518_v19 = vsub.f32 %v1510_v52, %v1516_v22 }
 0xac8   :  { %6678 = vpow2.f32 %v1519_v24 }
 0xac9   :  { %v1521_v20 = vmul.f32 1.442695, %v1518_v19 }
 0xacb   :  { %6680 = vpow2.f32 %v1521_v20 }
 0xace   :  { %v7631_v17 = vpop.eup %6678  ;;  %v1673_v21 = vpop.xlane.xlu1 %1672 }
 0xacf   :  { %v1677_v26 = vsub.f32 %v1669_v61, %v1673_v21  ;;  %v1523_v16 = vsel %vm471_vm15, %v7631_v17, 0.0 }
 0xad0   :  { %1524 = vadd.xlane.f32.xlu1 %v1523_v16  ;;  %v1676_v25 = vpop.xlane.xlu0 %1675 }
 0xad1   :  { %v7635_v23 = vpop.eup %6680  ;;  %v1679_v27 = vmul.f32 1.442695, %v1677_v26  ;;  %v1678_v29 = vsub.f32 %v1670_v33, %v1676_v25 }
 0xad2   :  { %v1526_v31 = vsel %vm471_vm15, %v7635_v23, 0.0 }
 0xad3   :  { %6682 = vpow2.f32 %v1679_v27  ;;  %v1681_v34 = vmul.f32 1.442695, %v1678_v29  ;;  %1527 = vadd.xlane.f32.xlu0 %v1526_v31 }
 0xad5   :  { %6684 = vpow2.f32 %v1681_v34 }
 0xad7   :  { %v1833_v18 = vpop.xlane.xlu2 %1832 }
 0xad8   :  { %v1837_v35 = vsub.f32 %v1829_v1, %v1833_v18 }
 0xad9   :  { %v7639_v59 = vpop.eup %6682  ;;  %v1836_v36 = vpop.xlane.xlu1 %1835 }
 0xada   :  { %v1839_v30 = vmul.f32 1.442695, %v1837_v35  ;;  %v1838_v49 = vsub.f32 %v1830_v5, %v1836_v36  ;;  %v1683_v46 = vsel %vm471_vm15, %v7639_v59, 0.0 }
 0xadb   :  { %v7643_v40 = vpop.eup %6684  ;;  %1684 = vadd.xlane.f32.xlu2 %v1683_v46 }
 0xadc   :  { %6686 = vpow2.f32 %v1839_v30  ;;  %v1841_v42 = vmul.f32 1.442695, %v1838_v49  ;;  %v1686_v2 = vsel %vm471_vm15, %v7643_v40, 0.0 }
 0xadd   :  { %1687 = vadd.xlane.f32.xlu1 %v1686_v2 }
 0xade   :  { %6688 = vpow2.f32 %v1841_v42 }
 0xae2   :  { %v7647_v45 = vpop.eup %6686 }
 0xae3   :  { %v1843_v47 = vsel %vm471_vm15, %v7647_v45, 0.0  ;;  %v1993_v48 = vpop.xlane.xlu0 %1992 }
 0xae4   :  { %1844 = vadd.xlane.f32.xlu0 %v1843_v47  ;;  %v7651_v38 = vpop.eup %6688  ;;  %v1997_v51 = vsub.f32 %v1989_v12, %v1993_v48  ;;  %v1996_v52 = vpop.xlane.xlu2 %1995 }
 0xae5   :  { %v1998_v53 = vsub.f32 %v1990_v13, %v1996_v52  ;;  %v1846_v54 = vsel %vm471_vm15, %v7651_v38, 0.0 }
 0xae6   :  { %v1999_v55 = vmul.f32 1.442695, %v1997_v51  ;;  %1847 = vadd.xlane.f32.xlu2 %v1846_v54 }
 0xae7   :  { %v2001_v57 = vmul.f32 1.442695, %v1998_v53 }
 0xae8   :  { %6690 = vpow2.f32 %v1999_v55 }
 0xae9   :  { %6692 = vpow2.f32 %v2001_v57 }
 0xaee   :  { %v7655_v60 = vpop.eup %6690 }
 0xaef   :  { %v7657_v61 = vpop.eup %6692  ;;  %v2003_v43 = vsel %vm471_vm15, %v7655_v60, 0.0 }
 0xaf0   :  { %2004 = vadd.xlane.f32.xlu0 %v2003_v43  ;;  %v2006_v33 = vsel %vm471_vm15, %v7657_v61, 0.0 }
 0xaf1   :  { %v6553_v0 = vpop.permute.xlu1 %6552  ;;  %2007 = vadd.xlane.f32.xlu2 %v2006_v33 }
 0xaf2   :  { %v6555_v37 = vunpack.i.h.bf16 %v6553_v0  ;;  %v6554_v62 = vunpack.i.l.bf16 %v6553_v0 }
 0xaf4   :  { %1580 = vmatpush.msra.mxu1 %v6554_v62  ;;  %1606 = vmatpush.msra.mxu2 %v6555_v37 }
 0xaf6   :  { %6567 = vrot.lane.b32.xlu1 %v7627_v15, %s9212_s19  ;;  %s7851_s19 = sld [smem:[#allocation7 + $0x87]] }
 0xafc   :  { %s6199_s27 = scalar_lea.vmem %s9206_s4, %s7851_s19  ;;  %s9249_s19 = smov 104  }
 0xb04   :  { %6557 = vrot.lane.b32.xlu0 %v7627_v15, %s9218_s26  ;;  %s7775_s26 = sld [smem:[#allocation7 + $0x7]] }
 0xb09   :  { %6562 = vrot.lane.b32.xlu2 %v7627_v15, %s9216_s12  ;;  %s6171_s12 = scalar_lea.vmem %s9206_s4, %s6234_s13  ;;  %s6255_s13 = sld [smem:[#allocation7 + $0x80]] }
 0xb0a   :  { %s6183_s2 = scalar_lea.vmem %s9206_s4, %s7775_s26  ;;  %s6191_s26 = scalar_lea.vmem %s9206_s4, %s6264_s24 }
 0xb0b   :  { %s9247_s24 = smov 88  }
 0xb43   :  { %v1525_v63 = vpop.xlane.xlu1 %1524 }
 0xb44   :  { %6694 = vrcp.f32 %v1525_v63  ;;  %v1540_v8 = vand.u32 2147483648, %v1525_v63  ;;  %v1538_v11 = vand.u32 2147483647, %v1525_v63  ;;  %vm1534_vm4 = vweird.f32 %v1525_v63 }
 0xb46   :  { %v1528_v1 = vpop.xlane.xlu0 %1527  ;;  %v1541_v32 = vor.u32 1.1754944e-38, %v1540_v8  ;;  %vm1539_vm7 = vcmp.eq.f32.partialorder %v1538_v11, 8.507059e+37 }
 0xb47   :  { %6696 = vrcp.f32 %v1528_v1  ;;  %v1555_v15 = vand.u32 2147483648, %v1528_v1  ;;  %v1553_v28 = vand.u32 2147483647, %v1528_v1  ;;  %vm1549_vm8 = vweird.f32 %v1528_v1 }
 0xb49   :  { %v1556_v26 = vor.u32 1.1754944e-38, %v1555_v15  ;;  %vm1554_vm12 = vcmp.eq.f32.partialorder %v1553_v28, 8.507059e+37 }
 0xb4a   :  { %v6695_v58 = vpop.eup %6694 }
 0xb4b   :  { %v1530_v4 = vmul.f32 %v6695_v58, %v1525_v63  ;;  %vm1535_vm3 = vweird.f32 %v6695_v58 }
 0xb4c   :  { %vm1536_vm5 = vmor %vm1534_vm4, %vm1535_vm3 }
 0xb4d   :  { %v6697_v5 = vpop.eup %6696  ;;  %v1531_v6 = vsub.f32 1.0, %v1530_v4 }
 0xb4e   :  { %v1545_v9 = vmul.f32 %v6697_v5, %v1528_v1  ;;  %vm1550_vm6 = vweird.f32 %v6697_v5  ;;  %v1685_v19 = vpop.xlane.xlu2 %1684 }
 0xb4f   :  { %v1532_v3 = vmul.f32 %v6695_v58, %v1531_v6  ;;  %vm1551_vm9 = vmor %vm1549_vm8, %vm1550_vm6  ;;  %6698 = vrcp.f32 %v1685_v19  ;;  %v1700_v57 = vand.u32 2147483648, %v1685_v19  ;;  %vm1694_vm3 = vweird.f32 %v1685_v19 }
 0xb50   :  { %v1546_v12 = vsub.f32 1.0, %v1545_v9  ;;  %v1688_v16 = vpop.xlane.xlu1 %1687  ;;  %v1698_v0 = vand.u32 2147483647, %v1685_v19 }
 0xb51   :  { %v1533_v13 = vadd.f32 %v6695_v58, %v1532_v3  ;;  %6700 = vrcp.f32 %v1688_v16  ;;  %v1715_v37 = vand.u32 2147483648, %v1688_v16  ;;  %v1713_v63 = vand.u32 2147483647, %v1688_v16 }
 0xb52   :  { %v1547_v14 = vmul.f32 %v6697_v5, %v1546_v12  ;;  %v1701_v6 = vor.u32 1.1754944e-38, %v1700_v57 }
 0xb53   :  { %v1537_v44 = vsel %vm1536_vm5, %v6695_v58, %v1533_v13  ;;  %vm1709_vm5 = vweird.f32 %v1688_v16  ;;  %v1716_v11 = vor.u32 1.1754944e-38, %v1715_v37  ;;  %vm1714_vm8 = vcmp.eq.f32.partialorder %v1713_v63, 8.507059e+37 }
 0xb54   :  { %v1548_v24 = vadd.f32 %v6697_v5, %v1547_v14  ;;  %v1542_v22 = vsel %vm1539_vm7, %v1541_v32, %v1537_v44  ;;  %vm1699_vm7 = vcmp.eq.f32.partialorder %v1698_v0, 8.507059e+37 }
 0xb55   :  { %v1543_v20 = vmul.f32 %v7631_v17, %v1542_v22  ;;  %v6699_v34 = vpop.eup %6698 }
 0xb56   :  { %v1552_v21 = vsel %vm1551_vm9, %v6697_v5, %v1548_v24  ;;  %v1690_v17 = vmul.f32 %v6699_v34, %v1685_v19  ;;  %vm1695_vm14 = vweird.f32 %v6699_v34 }
 0xb57   :  { %6338 = vmatmul.msk.f32.vlgmr.msra.gmra.mxu1 %vm471_vm15, %v1543_v20  ;;  %v1557_v25 = vsel %vm1554_vm12, %v1556_v26, %v1552_v21  ;;  %v7673_v29 = vpop.xlane.xlu0 %1844  ;;  %v6701_v18 = vpop.eup %6700  ;;  %vm7697_vm4 = vmor %vm1694_vm3, %vm1695_vm14 }
 0xb58   :  { %v1558_v27 = vmul.f32 %v7635_v23, %v1557_v25  ;;  %6702 = vrcp.f32 %v7673_v29  ;;  %v1705_v35 = vmul.f32 %v6701_v18, %v1688_v16  ;;  %v1691_v36 = vsub.f32 1.0, %v1690_v17 }
 0xb59   :  { %v7675_v31 = vpop.xlane.xlu2 %1847  ;;  %vm1710_vm2 = vweird.f32 %v6701_v18  ;;  %vm1854_vm14 = vweird.f32 %v7673_v29  ;;  %v1860_v15 = vand.u32 2147483648, %v7673_v29  ;;  %v1858_v25 = vand.u32 2147483647, %v7673_v29 }
 0xb5a   :  { %6339 = vmatmul.msk.f32.vlgmr.msra.gmra.mxu2 %vm471_vm15, %v1558_v27  ;;  %6704 = vrcp.f32 %v7675_v31  ;;  %v1706_v46 = vsub.f32 1.0, %v1705_v35  ;;  %v1692_v2 = vmul.f32 %v6699_v34, %v1691_v36  ;;  %vm7703_vm6 = vmor %vm1709_vm5, %vm1710_vm2  ;;  %vm1869_vm3 = vweird.f32 %v7675_v31 }
 0xb5b   :  { %v1875_v20 = vand.u32 2147483648, %v7675_v31  ;;  %vm1859_vm5 = vcmp.eq.f32.partialorder %v1858_v25, 8.507059e+37 }
 0xb5c   :  { %v1707_v51 = vmul.f32 %v6701_v18, %v1706_v46  ;;  %v1693_v52 = vadd.f32 %v6699_v34, %v1692_v2 }
 0xb5e   :  { %v7679_v30 = vpop.eup %6702  ;;  %v1708_v43 = vadd.f32 %v6701_v18, %v1707_v51  ;;  %v1697_v1 = vsel %vm7697_vm4, %v6699_v34, %v1693_v52  ;;  %v1873_v34 = vand.u32 2147483647, %v7675_v31 }
 0xb5f   :  { %v1850_v47 = vmul.f32 %v7679_v30, %v7673_v29  ;;  %vm1855_vm9 = vweird.f32 %v7679_v30  ;;  %v1702_v12 = vsel %vm1699_vm7, %v1701_v6, %v1697_v1  ;;  %v6236_v6 = vld [vmem:[%s9206_s4 + $0x21] sm:$0x1] }
 0xb60   :  { %v7683_v23 = vpop.eup %6704  ;;  %v1712_v8 = vsel %vm7703_vm6, %v6701_v18, %v1708_v43  ;;  %vm7721_vm2 = vmor %vm1854_vm14, %vm1855_vm9  ;;  %v1703_v18 = vmul.f32 %v7639_v59, %v1702_v12  ;;  %vm1874_vm6 = vcmp.eq.f32.partialorder %v1873_v34, 8.507059e+37 }
 0xb61   :  { %v1865_v48 = vmul.f32 %v7683_v23, %v7675_v31  ;;  %v1851_v53 = vsub.f32 1.0, %v1850_v47  ;;  %vm1870_vm12 = vweird.f32 %v7683_v23  ;;  %v1717_v14 = vsel %vm1714_vm8, %v1716_v11, %v1712_v8  ;;  %v6238_v8 = vld [vmem:[%s6173_s23 + $0x10] sm:$0x1]  ;;  %s9250_s23 = smov 80  }
 0xb62   :  { %vm7730_vm4 = vmor %vm1869_vm3, %vm1870_vm12  ;;  %v1718_v17 = vmul.f32 %v7643_v40, %v1717_v14  ;;  %v1861_v40 = vor.u32 1.1754944e-38, %v1860_v15  ;;  %v6242_v14 = vld [vmem:[%s9206_s4 + $0x23] sm:$0x1]  ;;  %v6244_v15 = vld [vmem:[%s6177_s18 + $0x10] sm:$0x1]  ;;  %s6992_s18 = smov [#allocation9]  }
 0xb63   :  { %v7681_v49 = vpop.xlane.xlu0 %2004  ;;  %v1866_v54 = vsub.f32 1.0, %v1865_v48  ;;  %v1852_v4 = vmul.f32 %v7679_v30, %v1851_v53 }
 0xb64   :  { %v7685_v42 = vpop.xlane.xlu2 %2007  ;;  %6706 = vrcp.f32 %v7681_v49  ;;  %vm2014_vm9 = vweird.f32 %v7681_v49  ;;  %v2018_v53 = vand.u32 2147483647, %v7681_v49 }
 0xb65   :  { %6708 = vrcp.f32 %v7685_v42  ;;  %v1867_v5 = vmul.f32 %v7683_v23, %v1866_v54  ;;  %v1853_v13 = vadd.f32 %v7679_v30, %v1852_v4  ;;  %v2020_v54 = vand.u32 2147483648, %v7681_v49 }
 0xb66   :  { %v2035_v57 = vand.u32 2147483648, %v7685_v42  ;;  %vm2029_vm14 = vweird.f32 %v7685_v42  ;;  %v2033_v43 = vand.u32 2147483647, %v7685_v42  ;;  %vm2019_vm3 = vcmp.eq.f32.partialorder %v2018_v53, 8.507059e+37  ;;  %v6257_v53 = vld [vmem:[%s9206_s4 + $0x20] sm:$0x1] }
 0xb67   :  { %v1868_v32 = vadd.f32 %v7683_v23, %v1867_v5  ;;  %v1857_v35 = vsel %vm7721_vm2, %v7679_v30, %v1853_v13  ;;  %v1876_v30 = vor.u32 1.1754944e-38, %v1875_v20  ;;  %v199_v13 = vmul.f32 5.656854, %v6238_v8  ;;  %v6275_v8 = vld [vmem:[%s9206_s4 + $0x26] sm:$0x1] }
 0xb68   :  { %v6568_v21 = vpop.permute.xlu1 %6567  ;;  %v2036_v1 = vor.u32 1.1754944e-38, %v2035_v57  ;;  %v215_v20 = vmul.f32 5.656854, %v6244_v15 }
 0xb69   :  { %v1872_v29 = vsel %vm7730_vm4, %v7683_v23, %v1868_v32  ;;  %v6570_v47 = vunpack.i.h.bf16 %v6568_v21  ;;  %v6569_v59 = vunpack.i.l.bf16 %v6568_v21  ;;  %v1862_v23 = vsel %vm1859_vm5, %v1861_v40, %v1857_v35  ;;  %v6253_v35 = vld [vmem:[%s6183_s2 + $0x10] sm:$0x1] }
 0xb6a   :  { %v7693_v55 = vpop.eup %6706  ;;  %v1877_v48 = vsel %vm1874_vm6, %v1876_v30, %v1872_v29  ;;  %v1863_v0 = vmul.f32 %v7647_v45, %v1862_v23  ;;  %vm2034_vm4 = vcmp.eq.f32.partialorder %v2033_v43, 8.507059e+37  ;;  %v6254_v29 = vld [vmem:[%s9206_s4 + $0x27] sm:$0x1] }
 0xb6b   :  { %v7695_v33 = vpop.eup %6708  ;;  %v2010_v9 = vmul.f32 %v7693_v55, %v7681_v49  ;;  %vm2015_vm7 = vweird.f32 %v7693_v55  ;;  %v1878_v37 = vmul.f32 %v7651_v38, %v1877_v48  ;;  %v2021_v49 = vor.u32 1.1754944e-38, %v2020_v54  ;;  %v6260_v54 = vld [vmem:[%s9206_s4 + $0x21] sm:$0x1] }
 0xb6c   :  { %v2025_v3 = vmul.f32 %v7695_v33, %v7685_v42  ;;  %v6563_v24 = vpop.permute.xlu2 %6562  ;;  %vm2030_vm8 = vweird.f32 %v7695_v33  ;;  %vm2016_vm12 = vmor %vm2014_vm9, %vm2015_vm7 }
 0xb6d   :  { %v2011_v44 = vsub.f32 1.0, %v2010_v9  ;;  %v6565_v36 = vunpack.i.h.bf16 %v6563_v24  ;;  %v6564_v46 = vunpack.i.l.bf16 %v6563_v24  ;;  %vm2031_vm2 = vmor %vm2029_vm14, %vm2030_vm8  ;;  %v6239_v9 = vld [vmem:[%s9206_s4 + $0x22] sm:$0x1] }
 0xb6e   :  { %v2026_v28 = vsub.f32 1.0, %v2025_v3  ;;  %v6241_v3 = vld [vmem:[%s6175_s17 + $0x10] sm:$0x1]  ;;  %s6187_s17 = scalar_lea.vmem %s9206_s4, %s6258_s16  ;;  %s6193_s16 = scalar_lea.vmem %s9206_s4, %s7834_s15 }
 0xb6f   :  { %v2012_v2 = vmul.f32 %v7693_v55, %v2011_v44  ;;  %v207_v32 = vmul.f32 5.656854, %v6241_v3  ;;  %v6245_v44 = vld [vmem:[%s9206_s4 + $0x24] sm:$0x1]  ;;  %v6259_v30 = vld [vmem:[%s6187_s17 + $0x10] sm:$0x1] }
 0xb70   :  { %v2027_v31 = vmul.f32 %v7695_v33, %v2026_v28  ;;  %v6247_v28 = vld [vmem:[%s6179_s0 + $0x10] sm:$0x1]  ;;  %v217_v27 = vadd.f32 %v6245_v44, %v215_v20  ;;  %s6261_s0 = sld [smem:[#allocation7 + $0x82]]  ;;  %v255_v48 = vmul.f32 5.656854, %v6259_v30  ;;  %s9251_s15 = smov 112  }
 0xb71   :  { %v2013_v51 = vadd.f32 %v7693_v55, %v2012_v2  ;;  %v209_v19 = vadd.f32 %v6242_v14, %v207_v32  ;;  %v223_v21 = vmul.f32 5.656854, %v6247_v28  ;;  %v6277_v3 = vld [vmem:[%s6199_s27 + $0x10] sm:$0x1]  ;;  %s9254_s27 = smov 48  }
 0xb72   :  { %v2028_v52 = vadd.f32 %v7695_v33, %v2027_v31  ;;  %218 = vst.msk [vmem:[#allocation3 + $0x4] sm:$0x1] %vm65_vm0, %v217_v27  ;;  %v303_v32 = vmul.f32 5.656854, %v6277_v3  ;;  %v6317_v20 = vld [vmem:[%s9207_s5 + $0xd0] sm:$0xff] }
 0xb73   :  { %v2017_v62 = vsel %vm2016_vm12, %v7693_v55, %v2013_v51  ;;  %v6235_v55 = vld [vmem:[%s6171_s12 + $0x10] sm:$0x1]  ;;  %210 = vst.msk [vmem:[#allocation3 + $0x3] sm:$0x1] %vm65_vm0, %v209_v19  ;;  %s7838_s12 = sld [smem:[#allocation7 + $0x85]]  ;;  %v6318_v19 = vld [vmem:[%s9207_s5 + $0xd8] sm:$0xff] }
 0xb74   :  { %v2032_v63 = vsel %vm2031_vm2, %v7695_v33, %v2028_v52  ;;  %v2022_v58 = vsel %vm2019_vm3, %v2021_v49, %v2017_v62  ;;  %v191_v5 = vmul.f32 5.656854, %v6235_v55  ;;  %v6265_v62 = vld [vmem:[%s6191_s26 + $0x10] sm:$0x1]  ;;  %2140 = vmatpush.msrb.mxu0 %v6318_v19  ;;  %s6137_s26 = sshll.u32 %s6992_s18, 4  ;;  %s6138_s26 = int_to_ptr.vmem [resolvable:$true] %s6137_s26 }
 0xb75   :  { %v2037_v4 = vsel %vm2034_vm4, %v2036_v1, %v2032_v63  ;;  %v2023_v42 = vmul.f32 %v7655_v60, %v2022_v58  ;;  %v6232_v60 = vld [vmem:[%s6169_s20 + $0x10] sm:$0x1]  ;;  %s6181_s20 = scalar_lea.vmem %s9206_s4, %s7767_s28  ;;  %v271_v49 = vmul.f32 5.656854, %v6265_v62  ;;  %v6266_v1 = vld [vmem:[%s9206_s4 + $0x23] sm:$0x1] }
 0xb76   :  { %v6558_v22 = vpop.permute.xlu0 %6557  ;;  %v2038_v45 = vmul.f32 %v7657_v61, %v2037_v4  ;;  %v6233_v61 = vld [vmem:[%s9206_s4 + $0x20] sm:$0x1]  ;;  %v183_v33 = vmul.f32 5.656854, %v6232_v60  ;;  %v193_v12 = vadd.f32 %v6236_v6, %v191_v5  ;;  %s6189_s28 = scalar_lea.vmem %s9206_s4, %s6261_s0  ;;  %v6268_v58 = vld [vmem:[%s6193_s16 + $0x10] sm:$0x1]  ;;  %2141 = vmatpush.msrb.mxu0 %v6317_v20 }
 0xb77   :  { %v6560_v26 = vunpack.i.h.bf16 %v6558_v22  ;;  %v6559_v16 = vunpack.i.l.bf16 %v6558_v22  ;;  %v201_v22 = vadd.f32 %v6239_v9, %v199_v13  ;;  %v6262_v51 = vld [vmem:[%s6189_s28 + $0x10] sm:$0x1]  ;;  %v279_v4 = vmul.f32 5.656854, %v6268_v58  ;;  %v2389_v58 = vld [vmem:[%s9209_s7 + $0x18] sm:$0xff]  ;;  %s9252_s28 = smov 72  }
 0xb78   :  { %v185_v11 = vadd.f32 %v6233_v61, %v183_v33  ;;  %194 = vst.msk [vmem:[#allocation3 + $0x1] sm:$0x1] %vm65_vm0, %v193_v12  ;;  %v263_v57 = vmul.f32 5.656854, %v6262_v51  ;;  %v6272_v61 = vld [vmem:[%s9206_s4 + $0x25] sm:$0x1] }
 0xb79   :  { %1740 = vmatpush.msrb.mxu1 %v6559_v16  ;;  %1766 = vmatpush.msrb.mxu2 %v6560_v26  ;;  %v6248_v26 = vld [vmem:[%s9206_s4 + $0x25] sm:$0x1]  ;;  %v6250_v16 = vld [vmem:[%s6181_s20 + $0x10] sm:$0x1]  ;;  %202 = vst.msk [vmem:[#allocation3 + $0x2] sm:$0x1] %vm65_vm0, %v201_v22  ;;  %s6185_s20 = scalar_lea.vmem %s9206_s4, %s6255_s13  ;;  %s6195_s17 = scalar_lea.vmem %s9206_s4, %s7838_s12 }
 0xb7a   :  { %6344 = vmatmul.msk.f32.vlgmr.msrb.gmra.mxu1 %vm471_vm15, %v1703_v18  ;;  %6345 = vmatmul.msk.f32.vlgmr.msrb.gmra.mxu2 %vm471_vm15, %v1718_v17  ;;  %186 = vst.msk [vmem:[#allocation3] sm:$0x1] %vm65_vm0, %v185_v11  ;;  %v225_v34 = vadd.f32 %v6248_v26, %v223_v21  ;;  %v231_v18 = vmul.f32 5.656854, %v6250_v16  ;;  %v6251_v17 = vld [vmem:[%s9206_s4 + $0x26] sm:$0x1] }
 0xb7b   :  { %1900 = vmatpush.msra.mxu1 %v6564_v46  ;;  %1926 = vmatpush.msra.mxu2 %v6565_v36  ;;  %v239_v46 = vmul.f32 5.656854, %v6253_v35  ;;  %v6256_v40 = vld [vmem:[%s6185_s20 + $0x10] sm:$0x1]  ;;  %v6278_v11 = vld [vmem:[%s9206_s4 + $0x27] sm:$0x1] }
 0xb7c   :  { %v233_v36 = vadd.f32 %v6251_v17, %v231_v18  ;;  %226 = vst.msk [vmem:[#allocation3 + $0x5] sm:$0x1] %vm65_vm0, %v225_v34  ;;  %v247_v23 = vmul.f32 5.656854, %v6256_v40  ;;  %v6271_v60 = vld [vmem:[%s6195_s17 + $0x10] sm:$0x1]  ;;  %v305_v14 = vadd.f32 %v6278_v11, %v303_v32 }
 0xb7d   :  { %2060 = vmatpush.msrb.mxu1 %v6569_v59  ;;  %2086 = vmatpush.msrb.mxu2 %v6570_v47  ;;  %v241_v2 = vadd.f32 %v6254_v29, %v239_v46  ;;  %v287_v33 = vmul.f32 5.656854, %v6271_v60  ;;  %v6274_v5 = vld [vmem:[%s6197_s22 + $0x10] sm:$0x1]  ;;  %v6316_v21 = vld [vmem:[%s9207_s5 + $0xc8] sm:$0xff]  ;;  %v6315_v26 = vld [vmem:[%s9207_s5 + $0xc0] sm:$0xff] }
 0xb7e   :  { %234 = vst.msk [vmem:[#allocation3 + $0x6] sm:$0x1] %vm65_vm0, %v233_v36  ;;  %v249_v43 = vadd.f32 %v6257_v53, %v247_v23  ;;  %v295_v6 = vmul.f32 5.656854, %v6274_v5  ;;  %2142 = vmatpush.msrb.mxu0 %v6316_v21  ;;  %v7946_v53 = vld [vmem:[%s9208_s6 + $0x8] sm:$0xff]  ;;  %s9246_s20 = smov 96  }
 0xb7f   :  { %242 = vst.msk [vmem:[#allocation3 + $0x7] sm:$0x1] %vm65_vm0, %v241_v2  ;;  %v289_v9 = vadd.f32 %v6272_v61, %v287_v33  ;;  %s6139_s22 = sshll.u32 %s9211_s9, 4  ;;  %s6993_s12 = smov 128   ;;  %s6140_s22 = int_to_ptr.hbm [resolvable:$true] %s6139_s22 }
 0xb80   :  { %250 = vst.msk [vmem:[#allocation3 + $0x8] sm:$0x1] %vm65_vm0, %v249_v43  ;;  %v297_v13 = vadd.f32 %v6275_v8, %v295_v6  ;;  %2143 = vmatpush.msrb.mxu0 %v6315_v26 }
 0xb81   :  { %290 = vst.msk [vmem:[#allocation3 + $0xd] sm:$0x1] %vm65_vm0, %v289_v9 }
 0xb82   :  { %6350 = vmatmul.msk.f32.vlgmr.msra.gmra.mxu1 %vm471_vm15, %v1863_v0  ;;  %6351 = vmatmul.msk.f32.vlgmr.msra.gmra.mxu2 %vm471_vm15, %v1878_v37  ;;  %v257_v0 = vadd.f32 %v6260_v54, %v255_v48  ;;  %v6263_v37 = vld [vmem:[%s9206_s4 + $0x22] sm:$0x1]  ;;  %298 = vst.msk [vmem:[#allocation3 + $0xe] sm:$0x1] %vm65_vm0, %v297_v13  ;;  %v2121_v54 = vperm.slane %v7946_v53, 5 }
 0xb83   :  { %v265_v63 = vadd.f32 %v6263_v37, %v263_v57  ;;  %306 = vst.msk [vmem:[#allocation3 + $0xf] sm:$0x1] %vm65_vm0, %v305_v14  ;;  %2521 = vmatpush.msra.mxu2 %v2389_v58 }
 0xb84   :  { %258 = vst.msk [vmem:[#allocation3 + $0x9] sm:$0x1] %vm65_vm0, %v257_v0 }
 0xb85   :  { %266 = vst.msk [vmem:[#allocation3 + $0xa] sm:$0x1] %vm65_vm0, %v265_v63 }
 0xb86   :  { %v2384_v15 = vld [vmem:[#allocation3] sm:$0xff] }
 0xb87   :  { %v2420_v44 = vsel %vm348_vm1, %v2384_v15, 0.0 }
 0xb8a   :  { %6356 = vmatmul.msk.f32.vlgmr.msrb.gmra.mxu1 %vm471_vm15, %v2023_v42  ;;  %6357 = vmatmul.msk.f32.vlgmr.msrb.gmra.mxu2 %vm471_vm15, %v2038_v45  ;;  %v6269_v42 = vld [vmem:[%s9206_s4 + $0x24] sm:$0x1]  ;;  %v273_v45 = vadd.f32 %v6266_v1, %v271_v49  ;;  %s9248_s4 = smov 120  }
 0xb8b   :  { %v281_v55 = vadd.f32 %v6269_v42, %v279_v4  ;;  %v2387_v4 = vld [vmem:[%s9209_s7 + $0x8] sm:$0xff]  ;;  %v2386_v42 = vld [vmem:[%s9209_s7] sm:$0xff] }
 0xb8c   :  { %274 = vst.msk [vmem:[#allocation3 + $0xb] sm:$0x1] %vm65_vm0, %v273_v45 }
 0xb8d   :  { %282 = vst.msk [vmem:[#allocation3 + $0xc] sm:$0x1] %vm65_vm0, %v281_v55 }
 0xb94   :  { %v2385_v28 = vld [vmem:[#allocation3 + $0x8] sm:$0xff] }
 0xb95   :  { %v2423_v22 = vsel %vm348_vm1, %v2385_v28, 0.0 }
 0xbd4   :  { %v7777_v38 = vpop.f32.mrf.mxu1 }
 0xbdd   :  { %v7810_v24 = vpop.f32.mrf.mxu2 }
 0xbf7   :  { %v1742_v25 = vpop.f32.mrf.mxu1 }
 0xbf8   :  { %2093 = vrot.lane.b32.xlu0 %v1742_v25, %s6989_s29 }
 0xbfd   :  { %v1768_v31 = vpop.f32.mrf.mxu2 }
 0xbff   :  { %v1902_v47 = vpop.f32.mrf.mxu1 }
 0xc00   :  { %2095 = vrot.lane.b32.xlu0 %v1768_v31, %s6989_s29  ;;  %2101 = vrot.lane.b32.xlu1 %v1902_v47, %s6990_s21 }
 0xc05   :  { %v1928_v59 = vpop.f32.mrf.mxu2 }
 0xc07   :  { %v2062_v52 = vpop.f32.mrf.mxu1 }
 0xc08   :  { %2103 = vrot.lane.b32.xlu1 %v1928_v59, %s6990_s21  ;;  %2109 = vrot.lane.b32.xlu2 %v2062_v52, %s6991_s30 }
 0xc0d   :  { %v2088_v12 = vpop.f32.mrf.mxu2 }
 0xc10   :  { %2111 = vrot.lane.b32.xlu2 %v2088_v12, %s6991_s30 }
 0xc2a   :  { %2421 = vadd.xlane.f32.xlu0 %v2420_v44 }
 0xc32   :  { %2424 = vadd.xlane.f32.xlu1 %v2423_v22 }
 0xc62   :  { %v2110_v25 = vpop.permute.xlu2 %2109 }
 0xc6a   :  { %v2094_v16 = vpop.permute.xlu0 %2093  ;;  %v2112_v46 = vpop.permute.xlu2 %2111 }
 0xc6b   :  { %v2115_v27 = vsel %vm471_vm15, %v7777_v38, %v2094_v16 }
 0xc72   :  { %v2102_v34 = vpop.permute.xlu1 %2101  ;;  %v2096_v35 = vpop.permute.xlu0 %2095 }
 0xc73   :  { %v2117_v18 = vsel %vm1133_vm10, %v2115_v27, %v2102_v34  ;;  %v2116_v29 = vsel %vm471_vm15, %v7810_v24, %v2096_v35  ;;  %v2418_v34 = vld [vmem:[%s9210_s8] sm:$0xff] }
 0xc74   :  { %v2119_v17 = vsel %vm1136_vm11, %v2117_v18, %v2110_v25  ;;  %v2464_v35 = vperm.slane %v2418_v34, 0 }
 0xc75   :  { %6358 = vmatmul.msk.f32.vlgmr.msrb.gmra.mxu0 %vm348_vm1, %v2119_v17 }
 0xc7a   :  { %v2104_v36 = vpop.permute.xlu1 %2103 }
 0xc7b   :  { %v2118_v2 = vsel %vm1133_vm10, %v2116_v29, %v2104_v36 }
 0xc7c   :  { %v2120_v31 = vsel %vm1136_vm11, %v2118_v2, %v2112_v46 }
 0xc7d   :  { %6359 = vmatmul.msk.f32.gmra.mxu0 %vm348_vm1, %v2120_v31 }
 0xc9d   :  { %v2422_v38 = vpop.xlane.xlu0 %2421 }
 0xc9e   :  { %v2426_v47 = vmul.f32 %v2422_v38, %v7194_v10 }
 0xca0   :  { %v7932_v59 = vsub.f32 %v2384_v15, %v2426_v47 }
 0xca2   :  { %v2430_v40 = vmul.f32 %v7932_v59, %v7932_v59  ;;  %v2465_v38 = vmul.f32 %v2464_v35, %v7932_v59 }
 0xca4   :  { %v2432_v30 = vsel %vm348_vm1, %v2430_v40, 0.0 }
 0xca5   :  { %v2425_v23 = vpop.xlane.xlu1 %2424  ;;  %2433 = vadd.xlane.f32.xlu2 %v2432_v30  ;;  %v2499_v30 = vperm.slane %v2418_v34, 1 }
 0xca6   :  { %v2427_v24 = vmul.f32 %v2425_v23, %v7194_v10 }
 0xca8   :  { %v7938_v48 = vsub.f32 %v2385_v28, %v2427_v24 }
 0xcaa   :  { %v2431_v51 = vmul.f32 %v7938_v48, %v7938_v48 }
 0xcac   :  { %v2435_v52 = vsel %vm348_vm1, %v2431_v51, 0.0 }
 0xcad   :  { %2436 = vadd.xlane.f32.xlu0 %v2435_v52 }
 0xcf2   :  { %v2145_v57 = vpop.f32.mrf.mxu0 }
 0xcf3   :  { %v2146_v43 = vadd.f32 %v2145_v57, %v2121_v54 }
 0xcf5   :  { %v7950_v0 = vadd.f32 %v2146_v43, %v7517_v7  ;;  %v2388_v7 = vld [vmem:[%s9209_s7 + $0x10] sm:$0xff] }
 0xcf6   :  { %2522 = vmatpush.msra.mxu2 %v2388_v7 }
 0xcf7   :  { %v2153_v37 = vsel %vm348_vm1, %v7950_v0, 0.0 }
 0xcf8   :  { %2154 = vadd.xlane.f32.xlu1 %v2153_v37  ;;  %2523 = vmatpush.msra.mxu2 %v2387_v4 }
 0xcfa   :  { %v2148_v62 = vpop.f32.mrf.mxu0  ;;  %2524 = vmatpush.msra.mxu2 %v2386_v42 }
 0xcfb   :  { %v2149_v63 = vadd.f32 %v2148_v62, %v2121_v54 }
 0xcfd   :  { %v7955_v49 = vadd.f32 %v2149_v63, %v7522_v56  ;;  %v2466_v63 = vmul.f32 %v2464_v35, %v7938_v48 }
 0xcff   :  { %v2156_v1 = vsel %vm348_vm1, %v7955_v49, 0.0 }
 0xd00   :  { %2157 = vadd.xlane.f32.xlu2 %v2156_v1 }
 0xd18   :  { %v2434_v56 = vpop.xlane.xlu2 %2433 }
 0xd19   :  { %v2438_v45 = vmul.f32 0.032258064, %v2434_v56 }
 0xd1b   :  { %6710 = vrsqrt.f32 %v2438_v45  ;;  %vm2447_vm0 = vcmp.eq.f32.partialorder %v2438_v45, inf  ;;  %v2450_v32 = vand.u32 2147483648, %v2438_v45  ;;  %vm2449_vm5 = vcmp.eq.f32.partialorder %v2438_v45, 0.0 }
 0xd20   :  { %v2437_v60 = vpop.xlane.xlu0 %2436 }
 0xd21   :  { %v6711_v61 = vpop.eup %6710  ;;  %v2439_v55 = vmul.f32 0.032258064, %v2437_v60 }
 0xd22   :  { %v2441_v33 = vmul.f32 %v6711_v61, %v2438_v45 }
 0xd23   :  { %6712 = vrsqrt.f32 %v2439_v55  ;;  %vm2459_vm6 = vcmp.eq.f32.partialorder %v2439_v55, inf  ;;  %v2462_v20 = vand.u32 2147483648, %v2439_v55  ;;  %vm2461_vm7 = vcmp.eq.f32.partialorder %v2439_v55, 0.0 }
 0xd24   :  { %v2442_v5 = vmul.f32 %v6711_v61, %v2441_v33 }
 0xd26   :  { %v2443_v6 = vmul.f32 0.5, %v2442_v5 }
 0xd28   :  { %v2444_v8 = vsub.f32 1.5, %v2443_v6 }
 0xd29   :  { %v6713_v9 = vpop.eup %6712 }
 0xd2a   :  { %v2445_v3 = vmul.f32 %v6711_v61, %v2444_v8  ;;  %v2453_v11 = vmul.f32 %v6713_v9, %v2439_v55  ;;  %v2502_v8 = vperm.slane %v2418_v34, 6 }
 0xd2c   :  { %v2446_v12 = vmul.f32 %v2445_v3, %v2438_v45  ;;  %v2454_v13 = vmul.f32 %v6713_v9, %v2453_v11 }
 0xd2e   :  { %v2448_v14 = vsel %vm2447_vm0, %v2438_v45, %v2446_v12  ;;  %v2455_v15 = vmul.f32 0.5, %v2454_v13  ;;  %v6322_v13 = vld [vmem:[%s9207_s5 + $0xf8] sm:$0xff] }
 0xd2f   :  { %v2451_v44 = vsel %vm2449_vm5, %v2450_v32, %v2448_v14  ;;  %2254 = vmatpush.msra.mxu3 %v6322_v13  ;;  %v6321_v32 = vld [vmem:[%s9207_s5 + $0xf0] sm:$0xff]  ;;  %v6320_v14 = vld [vmem:[%s9207_s5 + $0xe8] sm:$0xff] }
 0xd30   :  { %v2467_v28 = vadd.f32 1e-06, %v2451_v44  ;;  %v2456_v22 = vsub.f32 1.5, %v2455_v15 }
 0xd31   :  { %2255 = vmatpush.msra.mxu3 %v6321_v32 }
 0xd32   :  { %6714 = vrcp.f32 %v2467_v28  ;;  %v2457_v19 = vmul.f32 %v6713_v9, %v2456_v22  ;;  %v2480_v29 = vand.u32 2147483648, %v2467_v28  ;;  %v2478_v46 = vand.u32 2147483647, %v2467_v28 }
 0xd33   :  { %vm2474_vm9 = vweird.f32 %v2467_v28  ;;  %2256 = vmatpush.msra.mxu3 %v6320_v14 }
 0xd34   :  { %v2458_v21 = vmul.f32 %v2457_v19, %v2439_v55  ;;  %v2481_v47 = vor.u32 1.1754944e-38, %v2480_v29  ;;  %vm2479_vm14 = vcmp.eq.f32.partialorder %v2478_v46, 8.507059e+37 }
 0xd36   :  { %v2460_v26 = vsel %vm2459_vm6, %v2439_v55, %v2458_v21 }
 0xd37   :  { %v2463_v16 = vsel %vm2461_vm7, %v2462_v20, %v2460_v26 }
 0xd38   :  { %v6715_v25 = vpop.eup %6714  ;;  %v2468_v27 = vadd.f32 1e-06, %v2463_v16 }
 0xd39   :  { %v2470_v18 = vmul.f32 %v6715_v25, %v2467_v28  ;;  %vm2475_vm8 = vweird.f32 %v6715_v25  ;;  %v6319_v28 = vld [vmem:[%s9207_s5 + $0xe0] sm:$0xff] }
 0xd3a   :  { %6716 = vrcp.f32 %v2468_v27  ;;  %vm2476_vm12 = vmor %vm2474_vm9, %vm2475_vm8  ;;  %v2495_v54 = vand.u32 2147483648, %v2468_v27  ;;  %v2493_v37 = vand.u32 2147483647, %v2468_v27  ;;  %vm2489_vm3 = vweird.f32 %v2468_v27  ;;  %2257 = vmatpush.msra.mxu3 %v6319_v28  ;;  %v6329_v28 = vld [vmem:[%s9207_s5 + $0x130] sm:$0xff] }
 0xd3b   :  { %v2471_v17 = vsub.f32 1.0, %v2470_v18 }
 0xd3c   :  { %v2496_v59 = vor.u32 1.1754944e-38, %v2495_v54  ;;  %vm2494_vm0 = vcmp.eq.f32.partialorder %v2493_v37, 8.507059e+37 }
 0xd3d   :  { %v2472_v36 = vmul.f32 %v6715_v25, %v2471_v17 }
 0xd3f   :  { %v2473_v2 = vadd.f32 %v6715_v25, %v2472_v36 }
 0xd40   :  { %v6717_v31 = vpop.eup %6716 }
 0xd41   :  { %v2477_v40 = vsel %vm2476_vm12, %v6715_v25, %v2473_v2  ;;  %v2485_v23 = vmul.f32 %v6717_v31, %v2468_v27  ;;  %vm2490_vm2 = vweird.f32 %v6717_v31 }
 0xd42   :  { %v2482_v24 = vsel %vm2479_vm14, %v2481_v47, %v2477_v40  ;;  %vm2491_vm4 = vmor %vm2489_vm3, %vm2490_vm2 }
 0xd43   :  { %v2483_v51 = vmul.f32 %v2482_v24, %v2465_v38  ;;  %v2486_v52 = vsub.f32 1.0, %v2485_v23 }
 0xd45   :  { %v2500_v57 = vadd.f32 %v2499_v30, %v2483_v51  ;;  %v2487_v43 = vmul.f32 %v6717_v31, %v2486_v52 }
 0xd47   :  { %6366 = vmatmul.msk.f32.vlgmr.msra.gmra.mxu2 %vm348_vm1, %v2500_v57  ;;  %v2488_v62 = vadd.f32 %v6717_v31, %v2487_v43  ;;  %v2197_v43 = vperm.slane %v7946_v53, 2 }
 0xd49   :  { %v2492_v1 = vsel %vm2491_vm4, %v6717_v31, %v2488_v62 }
 0xd4a   :  { %v2497_v58 = vsel %vm2494_vm0, %v2496_v59, %v2492_v1 }
 0xd4b   :  { %v2498_v7 = vmul.f32 %v2497_v58, %v2466_v63 }
 0xd4d   :  { %v2501_v4 = vadd.f32 %v2499_v30, %v2498_v7 }
 0xd4f   :  { %6367 = vmatmul.msk.f32.gmra.mxu2 %vm348_vm1, %v2501_v4 }
 0xd6b   :  { %v2155_v56 = vpop.xlane.xlu1 %2154 }
 0xd6c   :  { %v2159_v42 = vmul.f32 %v2155_v56, %v7194_v10  ;;  %v2232_v56 = vperm.slane %v7946_v53, 3 }
 0xd6e   :  { %v7980_v45 = vsub.f32 %v7950_v0, %v2159_v42 }
 0xd70   :  { %v2163_v60 = vmul.f32 %v7980_v45, %v7980_v45  ;;  %v2198_v58 = vmul.f32 %v2197_v43, %v7980_v45 }
 0xd72   :  { %v2165_v61 = vsel %vm348_vm1, %v2163_v60, 0.0 }
 0xd73   :  { %2166 = vadd.xlane.f32.xlu0 %v2165_v61  ;;  %v2158_v48 = vpop.xlane.xlu2 %2157 }
 0xd74   :  { %v2160_v55 = vmul.f32 %v2158_v48, %v7194_v10 }
 0xd76   :  { %v7987_v33 = vsub.f32 %v7955_v49, %v2160_v55 }
 0xd78   :  { %v2164_v5 = vmul.f32 %v7987_v33, %v7987_v33 }
 0xd7a   :  { %v2168_v6 = vsel %vm348_vm1, %v2164_v5, 0.0 }
 0xd7b   :  { %2169 = vadd.xlane.f32.xlu1 %v2168_v6 }
 0xdca   :  { %v2526_v9 = vpop.f32.mrf.mxu2 }
 0xdcb   :  { %v7992_v3 = vadd.f32 %v2526_v9, %v2502_v8 }
 0xdcd   :  { %2533 = vrot.lane.b32.xlu0 %v7992_v3, %s9246_s20  ;;  %2692 = vrot.lane.b32.xlu1 %v7992_v3, %s9247_s24 }
 0xdd2   :  { %v2529_v11 = vpop.f32.mrf.mxu2 }
 0xdd3   :  { %v7998_v12 = vadd.f32 %v2529_v11, %v2502_v8  ;;  %v2199_v11 = vmul.f32 %v2197_v43, %v7987_v33  ;;  %v6328_v33 = vld [vmem:[%s9207_s5 + $0x128] sm:$0xff] }
 0xdd5   :  { %2560 = vrot.lane.b32.xlu2 %v7998_v12, %s9246_s20  ;;  %2690 = vrot.lane.b32.xlu0 %v7992_v3, %s9248_s4 }
 0xdd6   :  { %3010 = vrot.lane.b32.xlu1 %v7992_v3, %s9249_s19 }
 0xddd   :  { %2852 = vrot.lane.b32.xlu2 %v7992_v3, %s9250_s23  ;;  %2850 = vrot.lane.b32.xlu0 %v7992_v3, %s9251_s15 }
 0xdde   :  { %2880 = vrot.lane.b32.xlu1 %v7998_v12, %s9250_s23 }
 0xde5   :  { %3012 = vrot.lane.b32.xlu2 %v7992_v3, %s9252_s28  ;;  %2720 = vrot.lane.b32.xlu0 %v7998_v12, %s9247_s24 }
 0xde6   :  { %3038 = vrot.lane.b32.xlu1 %v7998_v12, %s9249_s19  ;;  %v2167_v15 = vpop.xlane.xlu0 %2166 }
 0xde7   :  { %v2171_v44 = vmul.f32 0.032258064, %v2167_v15 }
 0xde9   :  { %6718 = vrsqrt.f32 %v2171_v44  ;;  %vm2180_vm5 = vcmp.eq.f32.partialorder %v2171_v44, inf  ;;  %v2183_v29 = vand.u32 2147483648, %v2171_v44  ;;  %vm2182_vm6 = vcmp.eq.f32.partialorder %v2171_v44, 0.0 }
 0xded   :  { %2718 = vrot.lane.b32.xlu2 %v7998_v12, %s9248_s4  ;;  %2878 = vrot.lane.b32.xlu0 %v7998_v12, %s9251_s15 }
 0xdee   :  { %v2170_v22 = vpop.xlane.xlu1 %2169 }
 0xdef   :  { %v6719_v19 = vpop.eup %6718  ;;  %v2172_v20 = vmul.f32 0.032258064, %v2170_v22  ;;  %v6327_v22 = vld [vmem:[%s9207_s5 + $0x120] sm:$0xff] }
 0xdf0   :  { %v2174_v21 = vmul.f32 %v6719_v19, %v2171_v44 }
 0xdf1   :  { %6720 = vrsqrt.f32 %v2172_v20  ;;  %vm2192_vm7 = vcmp.eq.f32.partialorder %v2172_v20, inf  ;;  %v2195_v30 = vand.u32 2147483648, %v2172_v20  ;;  %vm2194_vm8 = vcmp.eq.f32.partialorder %v2172_v20, 0.0 }
 0xdf2   :  { %v2175_v26 = vmul.f32 %v6719_v19, %v2174_v21  ;;  %v6325_v21 = vld [vmem:[%s9207_s5 + $0x110] sm:$0xff] }
 0xdf4   :  { %v2176_v16 = vmul.f32 0.5, %v2175_v26  ;;  %v6324_v26 = vld [vmem:[%s9207_s5 + $0x108] sm:$0xff] }
 0xdf5   :  { %3040 = vrot.lane.b32.xlu2 %v7998_v12, %s9252_s28 }
 0xdf6   :  { %v2177_v25 = vsub.f32 1.5, %v2176_v16  ;;  %v6323_v16 = vld [vmem:[%s9207_s5 + $0x100] sm:$0xff] }
 0xdf7   :  { %v6721_v27 = vpop.eup %6720 }
 0xdf8   :  { %v2178_v34 = vmul.f32 %v6719_v19, %v2177_v25  ;;  %v2186_v18 = vmul.f32 %v6721_v27, %v2172_v20 }
 0xdfa   :  { %v2179_v17 = vmul.f32 %v2178_v34, %v2171_v44  ;;  %v2187_v35 = vmul.f32 %v6721_v27, %v2186_v18 }
 0xdfc   :  { %v2181_v36 = vsel %vm2180_vm5, %v2171_v44, %v2179_v17  ;;  %v2188_v46 = vmul.f32 0.5, %v2187_v35  ;;  %v6330_v44 = vld [vmem:[%s9207_s5 + $0x138] sm:$0xff] }
 0xdfd   :  { %v2184_v2 = vsel %vm2182_vm6, %v2183_v29, %v2181_v36  ;;  %2282 = vmatpush.msra.mxu1 %v6330_v44 }
 0xdfe   :  { %v2200_v31 = vadd.f32 1e-06, %v2184_v2  ;;  %v2189_v38 = vsub.f32 1.5, %v2188_v46  ;;  %v2235_v46 = vperm.slane %v7946_v53, 6 }
 0xdff   :  { %2283 = vmatpush.msra.mxu1 %v6329_v28 }
 0xe00   :  { %6722 = vrcp.f32 %v2200_v31  ;;  %v2190_v47 = vmul.f32 %v6721_v27, %v2189_v38  ;;  %v2213_v37 = vand.u32 2147483648, %v2200_v31  ;;  %v2211_v59 = vand.u32 2147483647, %v2200_v31 }
 0xe01   :  { %vm2207_vm12 = vweird.f32 %v2200_v31  ;;  %2284 = vmatpush.msra.mxu1 %v6328_v33 }
 0xe02   :  { %v2191_v40 = vmul.f32 %v2190_v47, %v2172_v20  ;;  %v2214_v7 = vor.u32 1.1754944e-38, %v2213_v37  ;;  %vm2212_vm2 = vcmp.eq.f32.partialorder %v2211_v59, 8.507059e+37  ;;  %v320_v37 = vld [vmem:[%s9205_s3 + $0x8] sm:$0xff] }
 0xe03   :  { %2285 = vmatpush.msra.mxu1 %v6327_v22 }
 0xe04   :  { %v2193_v23 = vsel %vm2192_vm7, %v2172_v20, %v2191_v40  ;;  %v6326_v20 = vld [vmem:[%s9207_s5 + $0x118] sm:$0xff]  ;;  %vm322_vm7 = vcmp.ne.s32.totalorder %v320_v37, 0 }
 0xe05   :  { %v2196_v24 = vsel %vm2194_vm8, %v2195_v30, %v2193_v23  ;;  %2286 = vmatpush.msra.mxu1 %v6326_v20 }
 0xe06   :  { %v6723_v51 = vpop.eup %6722  ;;  %v2201_v52 = vadd.f32 1e-06, %v2196_v24 }
 0xe07   :  { %v2203_v54 = vmul.f32 %v6723_v51, %v2200_v31  ;;  %vm2208_vm9 = vweird.f32 %v6723_v51  ;;  %2287 = vmatpush.msra.mxu1 %v6325_v21 }
 0xe08   :  { %6724 = vrcp.f32 %v2201_v52  ;;  %vm2209_vm14 = vmor %vm2207_vm12, %vm2208_vm9  ;;  %v2228_v55 = vand.u32 2147483648, %v2201_v52  ;;  %v2226_v8 = vand.u32 2147483647, %v2201_v52  ;;  %vm2222_vm4 = vweird.f32 %v2201_v52 }
 0xe09   :  { %v2204_v57 = vsub.f32 1.0, %v2203_v54  ;;  %2288 = vmatpush.msra.mxu1 %v6324_v26 }
 0xe0a   :  { %v2229_v45 = vor.u32 1.1754944e-38, %v2228_v55  ;;  %vm2227_vm5 = vcmp.eq.f32.partialorder %v2226_v8, 8.507059e+37 }
 0xe0b   :  { %v2205_v62 = vmul.f32 %v6723_v51, %v2204_v57  ;;  %2289 = vmatpush.msra.mxu1 %v6323_v16 }
 0xe0d   :  { %v2206_v63 = vadd.f32 %v6723_v51, %v2205_v62 }
 0xe0e   :  { %v6725_v1 = vpop.eup %6724 }
 0xe0f   :  { %v2210_v4 = vsel %vm2209_vm14, %v6723_v51, %v2206_v63  ;;  %v2218_v42 = vmul.f32 %v6725_v1, %v2201_v52  ;;  %vm2223_vm3 = vweird.f32 %v6725_v1  ;;  %v319_v52 = vld [vmem:[%s9205_s3] sm:$0xff]  ;;  %s9253_s3 = smov 56  }
 0xe10   :  { %v2215_v60 = vsel %vm2212_vm2, %v2214_v7, %v2210_v4  ;;  %vm2224_vm0 = vmor %vm2222_vm4, %vm2223_vm3  ;;  %vm321_vm6 = vcmp.ne.s32.totalorder %v319_v52, 0  ;;  %v8099_v7 = vsel %vm322_vm7, 0.0, %v6984_v39 }
 0xe11   :  { %v2216_v61 = vmul.f32 %v2215_v60, %v2198_v58  ;;  %v2219_v48 = vsub.f32 1.0, %v2218_v42  ;;  %v8091_v43 = vsel %vm321_vm6, 0.0, %v6984_v39 }
 0xe13   :  { %v2233_v5 = vadd.f32 %v2232_v56, %v2216_v61  ;;  %v2220_v6 = vmul.f32 %v6725_v1, %v2219_v48 }
 0xe15   :  { %6360 = vmatmul.msk.f32.vlgmr.msra.gmra.mxu3 %vm348_vm1, %v2233_v5  ;;  %v2221_v9 = vadd.f32 %v6725_v1, %v2220_v6 }
 0xe17   :  { %v2225_v13 = vsel %vm2224_vm0, %v6725_v1, %v2221_v9 }
 0xe18   :  { %v2230_v32 = vsel %vm2227_vm5, %v2229_v45, %v2225_v13 }
 0xe19   :  { %v2231_v14 = vmul.f32 %v2230_v32, %v2199_v11 }
 0xe1b   :  { %v2234_v15 = vadd.f32 %v2232_v56, %v2231_v14 }
 0xe1d   :  { %6361 = vmatmul.msk.f32.gmra.mxu3 %vm348_vm1, %v2234_v15 }
 0xe2f   :  { %v2561_v19 = vpop.permute.xlu2 %2560 }
 0xe30   :  { %6370 = vmatpush.xpose.msk.msrb.mxu3 %vm471_vm15, %v2561_v19 }
 0xe33   :  { %6371 = vmatmul.msk.f32.vlgmr.msrb.gmra.mxu3 %vm471_vm15, %v7998_v12 }
 0xe37   :  { %v2853_v25 = vpop.permute.xlu2 %2852 }
 0xe3f   :  { %v2534_v27 = vpop.permute.xlu0 %2533  ;;  %v2693_v34 = vpop.permute.xlu1 %2692 }
 0xe40   :  { %6368 = vmatpush.xpose.msk.msra.mxu0 %vm471_vm15, %v2534_v27  ;;  %6374 = vmatpush.xpose.msk.msra.mxu3 %vm471_vm15, %v2693_v34  ;;  %v3013_v17 = vpop.permute.xlu2 %3012 }
 0xe43   :  { %6369 = vmatmul.msk.f32.vlgmr.msra.gmra.mxu0 %vm471_vm15, %v7992_v3 }
 0xe44   :  { %6380 = vmatpush.xpose.msk.msrb.mxu3 %vm471_vm15, %v2853_v25 }
 0xe47   :  { %v2691_v18 = vpop.permute.xlu0 %2690 }
 0xe48   :  { %6375 = vmatmul.msk.f32.vlgmr.msra.gmra.mxu3 %vm471_vm15, %v2691_v18  ;;  %v3011_v29 = vpop.permute.xlu1 %3010  ;;  %v2719_v23 = vpop.permute.xlu2 %2718 }
 0xe49   :  { %6386 = vmatpush.xpose.msk.msra.mxu3 %vm471_vm15, %v3013_v17 }
 0xe4f   :  { %v2851_v35 = vpop.permute.xlu0 %2850 }
 0xe50   :  { %6381 = vmatmul.msk.f32.vlgmr.msrb.gmra.mxu3 %vm471_vm15, %v2851_v35  ;;  %v2881_v47 = vpop.permute.xlu1 %2880  ;;  %v3041_v51 = vpop.permute.xlu2 %3040 }
 0xe57   :  { %v2721_v36 = vpop.permute.xlu0 %2720 }
 0xe58   :  { %6376 = vmatpush.xpose.msk.msrb.mxu1 %vm471_vm15, %v2721_v36  ;;  %6387 = vmatmul.msk.f32.vlgmr.msra.gmra.mxu3 %vm471_vm15, %v3011_v29  ;;  %v3039_v54 = vpop.permute.xlu1 %3038 }
 0xe5f   :  { %v2879_v53 = vpop.permute.xlu0 %2878 }
 0xe98   :  { %v2259_v2 = vpop.f32.mrf.mxu3 }
 0xe99   :  { %v2260_v31 = vadd.f32 %v2259_v2, %v2235_v46 }
 0xe9b   :  { %v2265_v38 = vmax.f32 %v2260_v31, 0.0 }
 0xe9d   :  { %6362 = vmatmul.msk.f32.vlgmr.msra.gmra.mxu1 %vm1286_vm13, %v2265_v38 }
 0xe9e   :  { %6382 = vmatpush.xpose.msk.msra.mxu1 %vm471_vm15, %v2881_v47 }
 0xea0   :  { %v2262_v40 = vpop.f32.mrf.mxu3 }
 0xea1   :  { %v2263_v30 = vadd.f32 %v2262_v40, %v2235_v46 }
 0xea3   :  { %v2266_v24 = vmax.f32 %v2263_v30, 0.0 }
 0xea5   :  { %6363 = vmatmul.msk.f32.gmra.mxu1 %vm1286_vm13, %v2266_v24 }
 0xead   :  { %6377 = vmatmul.msk.f32.vlgmr.msrb.gmra.mxu1 %vm471_vm15, %v2719_v23 }
 0xeae   :  { %6388 = vmatpush.xpose.msk.msrb.mxu1 %vm471_vm15, %v3041_v51 }
 0xeb5   :  { %6383 = vmatmul.msk.f32.vlgmr.msra.gmra.mxu1 %vm471_vm15, %v2879_v53 }
 0xeb6   :  { %v2583_v59 = vpop.f32.mrf.mxu3 }
 0xeb7   :  { %v2587_v1 = vmul.f32 0.35355338, %v2583_v59 }
 0xeb9   :  { %v2589_v4 = vadd.f32 %v2587_v1, %v8099_v7 }
 0xebb   :  { %v2593_v60 = vsel %vm471_vm15, %v2589_v4, -inf }
 0xebd   :  { %6389 = vmatmul.msk.f32.vlgmr.msrb.gmra.mxu1 %vm471_vm15, %v3039_v54 }
 0xec0   :  { %v2556_v57 = vpop.f32.mrf.mxu0 }
 0xec1   :  { %v2586_v62 = vmul.f32 0.35355338, %v2556_v57 }
 0xec3   :  { %v2588_v63 = vadd.f32 %v2586_v62, %v8091_v43 }
 0xec5   :  { %v2590_v58 = vsel %vm471_vm15, %v2588_v63, -inf }
 0xec6   :  { %2591 = vmax.xlane.f32.xlu0 %v2590_v58 }
 0xecb   :  { %v2715_v56 = vpop.f32.mrf.mxu3 }
 0xecc   :  { %v2746_v42 = vmul.f32 0.35355338, %v2715_v56 }
 0xece   :  { %2594 = vmax.xlane.f32.xlu0 %v2593_v60  ;;  %v2748_v61 = vadd.f32 %v2746_v42, %v8091_v43 }
 0xed0   :  { %v2750_v48 = vsel %vm471_vm15, %v2748_v61, -inf }
 0xed1   :  { %2751 = vmax.xlane.f32.xlu2 %v2750_v48 }
 0xed3   :  { %v2875_v55 = vpop.f32.mrf.mxu3 }
 0xed4   :  { %v2906_v5 = vmul.f32 0.35355338, %v2875_v55 }
 0xed6   :  { %v2908_v6 = vadd.f32 %v2906_v5, %v8091_v43 }
 0xed8   :  { %v2910_v8 = vsel %vm471_vm15, %v2908_v6, -inf }
 0xed9   :  { %2911 = vmax.xlane.f32.xlu1 %v2910_v8 }
 0xedb   :  { %v3035_v39 = vpop.f32.mrf.mxu3 }
 0xedc   :  { %v3066_v9 = vmul.f32 0.35355338, %v3035_v39 }
 0xede   :  { %v3068_v45 = vadd.f32 %v3066_v9, %v8091_v43 }
 0xee0   :  { %v3070_v11 = vsel %vm471_vm15, %v3068_v45, -inf }
 0xee1   :  { %3071 = vmax.xlane.f32.xlu2 %v3070_v11 }
 0xef9   :  { %2798 = vrot.lane.b32.xlu2 %v7992_v3, %s9253_s3 }
 0xf1a   :  { %v8111_v13 = vpop.f32.mrf.mxu1 }
 0xf22   :  { %v8113_v32 = vpop.f32.mrf.mxu1 }
 0xf2a   :  { %v2743_v33 = vpop.f32.mrf.mxu1 }
 0xf2b   :  { %v2747_v26 = vmul.f32 0.35355338, %v2743_v33 }
 0xf2d   :  { %v2749_v34 = vadd.f32 %v2747_v26, %v8099_v7 }
 0xf2f   :  { %v2753_v29 = vsel %vm471_vm15, %v2749_v34, -inf }
 0xf32   :  { %v2903_v17 = vpop.f32.mrf.mxu1 }
 0xf33   :  { %v2907_v46 = vmul.f32 0.35355338, %v2903_v17 }
 0xf35   :  { %v2909_v38 = vadd.f32 %v2907_v46, %v8099_v7 }
 0xf37   :  { %v2913_v30 = vsel %vm471_vm15, %v2909_v38, -inf }
 0xf39   :  { %v2592_v14 = vpop.xlane.xlu0 %2591 }
 0xf3a   :  { %v2596_v15 = vsub.f32 %v2588_v63, %v2592_v14  ;;  %v3063_v57 = vpop.f32.mrf.mxu1 }
 0xf3b   :  { %v3067_v37 = vmul.f32 0.35355338, %v3063_v57 }
 0xf3c   :  { %v2598_v44 = vmul.f32 1.442695, %v2596_v15 }
 0xf3d   :  { %v8146_v59 = vadd.f32 %v3067_v37, %v8099_v7 }
 0xf3e   :  { %6726 = vpow2.f32 %v2598_v44 }
 0xf3f   :  { %v3073_v63 = vsel %vm471_vm15, %v8146_v59, -inf }
 0xf41   :  { %v2595_v28 = vpop.xlane.xlu0 %2594 }
 0xf42   :  { %v2597_v22 = vsub.f32 %v2589_v4, %v2595_v28 }
 0xf44   :  { %v8115_v19 = vpop.eup %6726  ;;  %v2600_v20 = vmul.f32 1.442695, %v2597_v22  ;;  %v2752_v21 = vpop.xlane.xlu2 %2751 }
 0xf45   :  { %v2756_v16 = vsub.f32 %v2748_v61, %v2752_v21  ;;  %v2602_v25 = vsel %vm471_vm15, %v8115_v19, 0.0 }
 0xf46   :  { %6728 = vpow2.f32 %v2600_v20  ;;  %2603 = vadd.xlane.f32.xlu1 %v2602_v25 }
 0xf47   :  { %v2758_v27 = vmul.f32 1.442695, %v2756_v16 }
 0xf49   :  { %6730 = vpow2.f32 %v2758_v27 }
 0xf4c   :  { %v8120_v18 = vpop.eup %6728  ;;  %v2912_v51 = vpop.xlane.xlu1 %2911 }
 0xf4d   :  { %v2605_v35 = vsel %vm471_vm15, %v8120_v18, 0.0  ;;  %v2916_v53 = vsub.f32 %v2908_v6, %v2912_v51 }
 0xf4e   :  { %2606 = vadd.xlane.f32.xlu0 %v2605_v35  ;;  %2754 = vmax.xlane.f32.xlu1 %v2753_v29 }
 0xf4f   :  { %v8125_v36 = vpop.eup %6730  ;;  %v2918_v52 = vmul.f32 1.442695, %v2916_v53 }
 0xf50   :  { %v2762_v2 = vsel %vm471_vm15, %v8125_v36, 0.0 }
 0xf51   :  { %2763 = vadd.xlane.f32.xlu2 %v2762_v2 }
 0xf54   :  { %v3072_v31 = vpop.xlane.xlu2 %3071 }
 0xf55   :  { %v3076_v47 = vsub.f32 %v3068_v45, %v3072_v31 }
 0xf57   :  { %v3078_v40 = vmul.f32 1.442695, %v3076_v47 }
 0xf59   :  { %6732 = vpow2.f32 %v3078_v40  ;;  %2914 = vmax.xlane.f32.xlu2 %v2913_v30 }
 0xf5a   :  { %6734 = vpow2.f32 %v2918_v52 }
 0xf5f   :  { %v8131_v23 = vpop.eup %6732 }
 0xf60   :  { %v3082_v24 = vsel %vm471_vm15, %v8131_v23, 0.0  ;;  %v8141_v54 = vpop.eup %6734 }
 0xf61   :  { %3083 = vadd.xlane.f32.xlu2 %v3082_v24  ;;  %v2922_v62 = vsel %vm471_vm15, %v8141_v54, 0.0 }
 0xf62   :  { %2958 = vrot.lane.b32.xlu0 %v7992_v3, %s9254_s27 }
 0xf67   :  { %2638 = vrot.lane.b32.xlu1 %v7992_v3, %s9255_s25 }
 0xf79   :  { %3118 = vrot.lane.b32.xlu2 %v7992_v3, %s9256_s11  ;;  %v2799_v3 = vpop.permute.xlu2 %2798 }
 0xf8c   :  { %2923 = vadd.xlane.f32.xlu0 %v2922_v62 }
 0xf94   :  { %3074 = vmax.xlane.f32.xlu0 %v3073_v63 }
 0xfb9   :  { %v2604_v1 = vpop.xlane.xlu1 %2603 }
 0xfba   :  { %6736 = vrcp.f32 %v2604_v1  ;;  %v2619_v44 = vand.u32 2147483648, %v2604_v1  ;;  %vm2613_vm9 = vweird.f32 %v2604_v1  ;;  %v2617_v28 = vand.u32 2147483647, %v2604_v1 }
 0xfbc   :  { %v2620_v20 = vor.u32 1.1754944e-38, %v2619_v44  ;;  %vm2618_vm14 = vcmp.eq.f32.partialorder %v2617_v28, 8.507059e+37 }
 0xfc0   :  { %v6737_v58 = vpop.eup %6736 }
 0xfc1   :  { %v2755_v4 = vpop.xlane.xlu1 %2754  ;;  %v2609_v56 = vmul.f32 %v6737_v58, %v2604_v1  ;;  %vm2614_vm8 = vweird.f32 %v6737_v58  ;;  %v8154_v21 = vpop.xlane.xlu0 %2606 }
 0xfc2   :  { %v2757_v42 = vsub.f32 %v2749_v34, %v2755_v4  ;;  %vm2615_vm12 = vmor %vm2613_vm9, %vm2614_vm8 }
 0xfc3   :  { %v2610_v48 = vsub.f32 1.0, %v2609_v56 }
 0xfc4   :  { %v2764_v60 = vpop.xlane.xlu2 %2763  ;;  %v2760_v61 = vmul.f32 1.442695, %v2757_v42 }
 0xfc5   :  { %6738 = vrcp.f32 %v2764_v60  ;;  %v2611_v5 = vmul.f32 %v6737_v58, %v2610_v48  ;;  %v2779_v27 = vand.u32 2147483648, %v2764_v60  ;;  %vm2773_vm3 = vweird.f32 %v2764_v60 }
 0xfc6   :  { %6740 = vpow2.f32 %v2760_v61  ;;  %v2777_v17 = vand.u32 2147483647, %v2764_v60 }
 0xfc7   :  { %v2612_v11 = vadd.f32 %v6737_v58, %v2611_v5  ;;  %v2780_v31 = vor.u32 1.1754944e-38, %v2779_v27 }
 0xfc8   :  { %vm2778_vm0 = vcmp.eq.f32.partialorder %v2777_v17, 8.507059e+37 }
 0xfc9   :  { %v2616_v33 = vsel %vm2615_vm12, %v6737_v58, %v2612_v11 }
 0xfca   :  { %v2621_v26 = vsel %vm2618_vm14, %v2620_v20, %v2616_v33 }
 0xfcb   :  { %v6739_v55 = vpop.eup %6738  ;;  %v2622_v46 = vmul.f32 %v8115_v19, %v2621_v26  ;;  %v2634_v26 = vand.u32 2147483648, %v8154_v21 }
 0xfcc   :  { %v2769_v6 = vmul.f32 %v6739_v55, %v2764_v60  ;;  %v2915_v8 = vpop.xlane.xlu2 %2914  ;;  %v8150_v39 = vpop.eup %6740  ;;  %vm2774_vm2 = vweird.f32 %v6739_v55 }
 0xfcd   :  { %v2917_v9 = vsub.f32 %v2909_v38, %v2915_v8  ;;  %v2765_v45 = vsel %vm471_vm15, %v8150_v39, 0.0  ;;  %vm2775_vm4 = vmor %vm2773_vm3, %vm2774_vm2 }
 0xfce   :  { %v2770_v14 = vsub.f32 1.0, %v2769_v6  ;;  %2766 = vadd.xlane.f32.xlu0 %v2765_v45 }
 0xfcf   :  { %v2920_v15 = vmul.f32 1.442695, %v2917_v9 }
 0xfd0   :  { %v2771_v22 = vmul.f32 %v6739_v55, %v2770_v14 }
 0xfd1   :  { %6742 = vpow2.f32 %v2920_v15 }
 0xfd2   :  { %v2772_v25 = vadd.f32 %v6739_v55, %v2771_v22 }
 0xfd4   :  { %v3084_v35 = vpop.xlane.xlu2 %3083  ;;  %v2776_v2 = vsel %vm2775_vm4, %v6739_v55, %v2772_v25  ;;  %v2959_v38 = vpop.permute.xlu0 %2958  ;;  %vm2628_vm4 = vweird.f32 %v8154_v21 }
 0xfd5   :  { %v2781_v47 = vsel %vm2778_vm0, %v2780_v31, %v2776_v2  ;;  %6744 = vrcp.f32 %v3084_v35  ;;  %v3099_v61 = vand.u32 2147483648, %v3084_v35  ;;  %vm3093_vm12 = vweird.f32 %v3084_v35 }
 0xfd6   :  { %v2782_v40 = vmul.f32 %v8125_v36, %v2781_v47 }
 0xfd7   :  { %v8156_v16 = vpop.eup %6742  ;;  %v3100_v9 = vor.u32 1.1754944e-38, %v3099_v61 }
 0xfd8   :  { %v2925_v34 = vsel %vm471_vm15, %v8156_v16, 0.0 }
 0xfd9   :  { %v2639_v29 = vpop.permute.xlu1 %2638  ;;  %2926 = vadd.xlane.f32.xlu1 %v2925_v34 }
 0xfda   :  { %2659 = vmatpush.msrb.mxu2 %v2639_v29 }
 0xfdb   :  { %6372 = vmatmul.msk.f32.vlgmr.msrb.gmra.mxu2 %vm471_vm15, %v2622_v46  ;;  %v6745_v24 = vpop.eup %6744 }
 0xfdc   :  { %2819 = vmatpush.msra.mxu2 %v2799_v3  ;;  %v3119_v30 = vpop.permute.xlu2 %3118  ;;  %v3089_v36 = vmul.f32 %v6745_v24, %v3084_v35  ;;  %vm3094_vm8 = vweird.f32 %v6745_v24 }
 0xfdd   :  { %vm3095_vm14 = vmor %vm3093_vm12, %vm3094_vm8 }
 0xfde   :  { %2979 = vmatpush.msrb.mxu2 %v2959_v38  ;;  %v3090_v53 = vsub.f32 1.0, %v3089_v36 }
 0xfe0   :  { %v3091_v3 = vmul.f32 %v6745_v24, %v3090_v53 }
 0xfe2   :  { %2664 = vrot.lane.b32.xlu0 %v7998_v12, %s9255_s25  ;;  %v3092_v42 = vadd.f32 %v6745_v24, %v3091_v3 }
 0xfe3   :  { %6378 = vmatmul.msk.f32.vlgmr.msra.gmra.mxu2 %vm471_vm15, %v2782_v40 }
 0xfe4   :  { %3139 = vmatpush.msra.mxu2 %v3119_v30  ;;  %v3096_v6 = vsel %vm3095_vm14, %v6745_v24, %v3092_v42 }
 0xfea   :  { %2824 = vrot.lane.b32.xlu0 %v7998_v12, %s9253_s3 }
 0xff2   :  { %2984 = vrot.lane.b32.xlu0 %v7998_v12, %s9254_s27 }
 0xffa   :  { %3144 = vrot.lane.b32.xlu0 %v7998_v12, %s9256_s11 }
 0xfff   :  { %v2924_v19 = vpop.xlane.xlu0 %2923 }
0x1000   :  { %6746 = vrcp.f32 %v2924_v19  ;;  %v2939_v63 = vand.u32 2147483648, %v2924_v19  ;;  %v2937_v4 = vand.u32 2147483647, %v2924_v19  ;;  %vm2933_vm6 = vweird.f32 %v2924_v19 }
0x1002   :  { %v2940_v12 = vor.u32 1.1754944e-38, %v2939_v63  ;;  %vm2938_vm9 = vcmp.eq.f32.partialorder %v2937_v4, 8.507059e+37 }
0x1006   :  { %v6747_v51 = vpop.eup %6746 }
0x1007   :  { %v2929_v52 = vmul.f32 %v6747_v51, %v2924_v19  ;;  %v3075_v57 = vpop.xlane.xlu0 %3074  ;;  %vm2934_vm5 = vweird.f32 %v6747_v51 }
0x1008   :  { %v3077_v37 = vsub.f32 %v8146_v59, %v3075_v57  ;;  %vm2935_vm7 = vmor %vm2933_vm6, %vm2934_vm5  ;;  %v3097_v59 = vand.u32 2147483647, %v3084_v35  ;;  %v2635_v35 = vor.u32 1.1754944e-38, %v2634_v26 }
0x1009   :  { %v2930_v62 = vsub.f32 1.0, %v2929_v52 }
0x100a   :  { %v3080_v1 = vmul.f32 1.442695, %v3077_v37  ;;  %vm3098_vm2 = vcmp.eq.f32.partialorder %v3097_v59, 8.507059e+37 }
0x100b   :  { %v2931_v58 = vmul.f32 %v6747_v51, %v2930_v62  ;;  %v3101_v45 = vsel %vm3098_vm2, %v3100_v9, %v3096_v6 }
0x100c   :  { %6748 = vpow2.f32 %v3080_v1  ;;  %v3102_v11 = vmul.f32 %v8131_v23, %v3101_v45  ;;  %v2632_v23 = vand.u32 2147483647, %v8154_v21 }
0x100d   :  { %v2932_v56 = vadd.f32 %v6747_v51, %v2931_v58  ;;  %6750 = vrcp.f32 %v8154_v21 }
0x100e   :  { %vm2633_vm5 = vcmp.eq.f32.partialorder %v2632_v23, 8.507059e+37 }
0x100f   :  { %v2936_v60 = vsel %vm2935_vm7, %v6747_v51, %v2932_v56 }
0x1010   :  { %v2941_v48 = vsel %vm2938_vm9, %v2940_v12, %v2936_v60 }
0x1011   :  { %v2942_v55 = vmul.f32 %v8141_v54, %v2941_v48 }
0x1012   :  { %v8174_v5 = vpop.eup %6748 }
0x1013   :  { %6384 = vmatmul.msk.f32.vlgmr.msrb.gmra.mxu2 %vm471_vm15, %v2942_v55  ;;  %v3085_v8 = vsel %vm471_vm15, %v8174_v5, 0.0  ;;  %v6751_v54 = vpop.eup %6750 }
0x1014   :  { %3086 = vadd.xlane.f32.xlu2 %v3085_v8  ;;  %v2624_v14 = vmul.f32 %v6751_v54, %v8154_v21  ;;  %vm2629_vm3 = vweird.f32 %v6751_v54 }
0x1015   :  { %vm2630_vm0 = vmor %vm2628_vm4, %vm2629_vm3 }
0x1016   :  { %v2625_v44 = vsub.f32 1.0, %v2624_v14 }
0x1018   :  { %v2626_v28 = vmul.f32 %v6751_v54, %v2625_v44 }
0x101a   :  { %v2627_v20 = vadd.f32 %v6751_v54, %v2626_v28  ;;  %v2393_v28 = vld [vmem:[%s9209_s7 + $0x38] sm:$0xff] }
0x101b   :  { %6390 = vmatmul.msk.f32.vlgmr.msra.gmra.mxu2 %vm471_vm15, %v3102_v11  ;;  %3219 = vmatpush.msrb.mxu3 %v2393_v28 }
0x101c   :  { %v2631_v34 = vsel %vm2630_vm0, %v6751_v54, %v2627_v20  ;;  %v6912_v20 = vld [vmem:[%s9208_s6 + $0x8] sm:$0xff] }
0x101d   :  { %v2636_v29 = vsel %vm2633_vm5, %v2635_v35, %v2631_v34  ;;  %v2267_v26 = vperm.slane %v6912_v20, 7 }
0x101e   :  { %v2637_v30 = vmul.f32 %v8120_v18, %v2636_v29 }
0x101f   :  { %v2292_v34 = vadd.f32 %v8111_v13, %v2267_v26 }
0x1021   :  { %v2297_v35 = vadd.f32 %v2292_v34, %v7950_v0 }
0x1041   :  { %v2767_v15 = vpop.xlane.xlu0 %2766 }
0x1042   :  { %6752 = vrcp.f32 %v2767_v15  ;;  %v2794_v31 = vand.u32 2147483648, %v2767_v15  ;;  %vm2788_vm7 = vweird.f32 %v2767_v15  ;;  %v2792_v47 = vand.u32 2147483647, %v2767_v15 }
0x1044   :  { %v2795_v24 = vor.u32 1.1754944e-38, %v2794_v31  ;;  %vm2793_vm9 = vcmp.eq.f32.partialorder %v2792_v47, 8.507059e+37 }
0x1048   :  { %v6753_v33 = vpop.eup %6752 }
0x1049   :  { %v2784_v22 = vmul.f32 %v6753_v33, %v2767_v15  ;;  %vm2789_vm6 = vweird.f32 %v6753_v33 }
0x104a   :  { %vm2790_vm8 = vmor %vm2788_vm7, %vm2789_vm6 }
0x104b   :  { %v2785_v25 = vsub.f32 1.0, %v2784_v22  ;;  %v2390_v22 = vld [vmem:[%s9209_s7 + $0x20] sm:$0xff] }
0x104c   :  { %v2927_v27 = vpop.xlane.xlu1 %2926 }
0x104d   :  { %6754 = vrcp.f32 %v2927_v27  ;;  %v2786_v17 = vmul.f32 %v6753_v33, %v2785_v25  ;;  %v2954_v52 = vand.u32 2147483648, %v2927_v27  ;;  %vm2948_vm14 = vweird.f32 %v2927_v27 }
0x104e   :  { %v2952_v57 = vand.u32 2147483647, %v2927_v27  ;;  %v2295_v25 = vadd.f32 %v8113_v32, %v2267_v26 }
0x104f   :  { %v2787_v2 = vadd.f32 %v6753_v33, %v2786_v17  ;;  %v2955_v1 = vor.u32 1.1754944e-38, %v2954_v52 }
0x1050   :  { %vm2953_vm3 = vcmp.eq.f32.partialorder %v2952_v57, 8.507059e+37  ;;  %v6914_v57 = vld [vmem:[#allocation3] sm:$0xff] }
0x1051   :  { %v2791_v21 = vsel %vm2790_vm8, %v6753_v33, %v2787_v2  ;;  %v2391_v33 = vld [vmem:[%s9209_s7 + $0x28] sm:$0xff] }
0x1052   :  { %v2796_v51 = vsel %vm2793_vm9, %v2795_v24, %v2791_v21  ;;  %v8232_v21 = vld [vmem:[%s9210_s8] sm:$0xff] }
0x1053   :  { %v6755_v46 = vpop.eup %6754  ;;  %v2797_v62 = vmul.f32 %v8150_v39, %v2796_v51  ;;  %v3200_v24 = vperm.slane %v8232_v21, 7 }
0x1054   :  { %v2944_v38 = vmul.f32 %v6755_v46, %v2927_v27  ;;  %v2665_v40 = vpop.permute.xlu0 %2664  ;;  %vm2949_vm12 = vweird.f32 %v6755_v46  ;;  %v2298_v27 = vadd.f32 %v2295_v25, %v7955_v49 }
0x1055   :  { %2685 = vmatpush.msrb.mxu0 %v2665_v40  ;;  %vm2950_vm2 = vmor %vm2948_vm14, %vm2949_vm12 }
0x1056   :  { %v2945_v19 = vsub.f32 1.0, %v2944_v38  ;;  %6373 = vmatmul.msk.f32.vlgmr.msrb.gmra.mxu0 %vm471_vm15, %v2637_v30  ;;  %v2305_v23 = vsel %vm348_vm1, %v2298_v27, 0.0 }
0x1058   :  { %v2946_v36 = vmul.f32 %v6755_v46, %v2945_v19 }
0x105a   :  { %v2947_v53 = vadd.f32 %v6755_v46, %v2946_v36 }
0x105c   :  { %v2825_v37 = vpop.permute.xlu0 %2824  ;;  %v2951_v63 = vsel %vm2950_vm2, %v6755_v46, %v2947_v53  ;;  %v2302_v46 = vsel %vm348_vm1, %v2297_v35, 0.0 }
0x105d   :  { %2845 = vmatpush.msra.mxu0 %v2825_v37  ;;  %v2956_v3 = vsel %vm2953_vm3, %v2955_v1, %v2951_v63 }
0x105e   :  { %v2661_v18 = vpop.f32.mrf.mxu2  ;;  %6379 = vmatmul.msk.f32.vlgmr.msra.gmra.mxu0 %vm471_vm15, %v2797_v62  ;;  %v2957_v4 = vmul.f32 %v8156_v16, %v2956_v3 }
0x1064   :  { %v2985_v58 = vpop.permute.xlu0 %2984 }
0x1065   :  { %3005 = vmatpush.msrb.mxu0 %v2985_v58 }
0x1066   :  { %v2821_v56 = vpop.f32.mrf.mxu2  ;;  %6385 = vmatmul.msk.f32.vlgmr.msrb.gmra.mxu0 %vm471_vm15, %v2957_v4 }
0x1067   :  { %3172 = vrot.lane.b32.xlu1 %v2821_v56, %s6989_s29 }
0x106c   :  { %v3145_v12 = vpop.permute.xlu0 %3144 }
0x106d   :  { %3165 = vmatpush.msra.mxu0 %v3145_v12 }
0x1087   :  { %v3087_v39 = vpop.xlane.xlu2 %3086 }
0x1088   :  { %6756 = vrcp.f32 %v3087_v39  ;;  %v3114_v48 = vand.u32 2147483648, %v3087_v39  ;;  %v3112_v55 = vand.u32 2147483647, %v3087_v39  ;;  %vm3108_vm0 = vweird.f32 %v3087_v39 }
0x108a   :  { %v3115_v16 = vor.u32 1.1754944e-38, %v3114_v48  ;;  %vm3113_vm6 = vcmp.eq.f32.partialorder %v3112_v55, 8.507059e+37  ;;  %v6915_v48 = vld [vmem:[#allocation3 + $0x8] sm:$0xff] }
0x108b   :  { %v2401_v55 = vld [vmem:[%s9209_s7 + $0x78] sm:$0xff] }
0x108c   :  { %3363 = vmatpush.msrb.mxu2 %v2401_v55 }
0x108e   :  { %v6757_v42 = vpop.eup %6756 }
0x108f   :  { %v3104_v60 = vmul.f32 %v6757_v42, %v3087_v39  ;;  %vm3109_vm4 = vweird.f32 %v6757_v42 }
0x1090   :  { %vm3110_vm5 = vmor %vm3108_vm0, %vm3109_vm4 }
0x1091   :  { %v3105_v61 = vsub.f32 1.0, %v3104_v60 }
0x1093   :  { %v3106_v59 = vmul.f32 %v6757_v42, %v3105_v61 }
0x1095   :  { %v3107_v6 = vadd.f32 %v6757_v42, %v3106_v59 }
0x1096   :  { %v2981_v8 = vpop.f32.mrf.mxu2 }
0x1097   :  { %v3111_v9 = vsel %vm3110_vm5, %v6757_v42, %v3107_v6  ;;  %3180 = vrot.lane.b32.xlu0 %v2981_v8, %s6990_s21  ;;  %v2400_v6 = vld [vmem:[%s9209_s7 + $0x70] sm:$0xff] }
0x1098   :  { %v3116_v45 = vsel %vm3113_vm6, %v3115_v16, %v3111_v9  ;;  %v2399_v9 = vld [vmem:[%s9209_s7 + $0x68] sm:$0xff]  ;;  %3364 = vmatpush.msrb.mxu2 %v2400_v6 }
0x1099   :  { %v3117_v11 = vmul.f32 %v8174_v5, %v3116_v45  ;;  %v2392_v5 = vld [vmem:[%s9209_s7 + $0x30] sm:$0xff] }
0x109a   :  { %3220 = vmatpush.msrb.mxu3 %v2392_v5  ;;  %3365 = vmatpush.msrb.mxu2 %v2399_v9 }
0x109b   :  { %6391 = vmatmul.msk.f32.vlgmr.msra.gmra.mxu0 %vm471_vm15, %v3117_v11  ;;  %v2398_v11 = vld [vmem:[%s9209_s7 + $0x60] sm:$0xff] }
0x109c   :  { %3221 = vmatpush.msrb.mxu3 %v2391_v33  ;;  %3366 = vmatpush.msrb.mxu2 %v2398_v11 }
0x109e   :  { %v3141_v54 = vpop.f32.mrf.mxu2  ;;  %3222 = vmatpush.msrb.mxu3 %v2390_v22 }
0x109f   :  { %3188 = vrot.lane.b32.xlu0 %v3141_v54, %s6991_s30 }
0x10d3   :  { %v2687_v14 = vpop.f32.mrf.mxu0 }
0x10d9   :  { %v3173_v29 = vpop.permute.xlu1 %3172 }
0x10da   :  { %v3194_v2 = vsel %vm471_vm15, %v2661_v18, %v3173_v29 }
0x10db   :  { %v2847_v15 = vpop.f32.mrf.mxu0 }
0x10dc   :  { %3174 = vrot.lane.b32.xlu2 %v2847_v15, %s6989_s29 }
0x10e3   :  { %v3007_v44 = vpop.f32.mrf.mxu0 }
0x10e4   :  { %3182 = vrot.lane.b32.xlu0 %v3007_v44, %s6990_s21 }
0x1105   :  { %2306 = vadd.xlane.f32.xlu2 %v2305_v23 }
0x1109   :  { %v3181_v17 = vpop.permute.xlu0 %3180 }
0x110a   :  { %v3196_v31 = vsel %vm1133_vm10, %v3194_v2, %v3181_v17 }
0x110e   :  { %2303 = vadd.xlane.f32.xlu0 %v2302_v46 }
0x1111   :  { %v3189_v38 = vpop.permute.xlu0 %3188 }
0x1112   :  { %v3198_v32 = vsel %vm1136_vm11, %v3196_v31, %v3189_v38 }
0x1113   :  { %6392 = vmatmul.msk.f32.vlgmr.msrb.gmra.mxu3 %vm348_vm1, %v3198_v32 }
0x1118   :  { %v3167_v49 = vpop.f32.mrf.mxu0 }
0x1119   :  { %3190 = vrot.lane.b32.xlu1 %v3167_v49, %s6991_s30 }
0x1136   :  { %v3175_v13 = vpop.permute.xlu2 %3174 }
0x1137   :  { %v3195_v0 = vsel %vm471_vm15, %v2687_v14, %v3175_v13 }
0x1156   :  { %v3183_v47 = vpop.permute.xlu0 %3182 }
0x1157   :  { %v3197_v40 = vsel %vm1133_vm10, %v3195_v0, %v3183_v47 }
0x1178   :  { %v2307_v63 = vpop.xlane.xlu2 %2306 }
0x1179   :  { %v2309_v1 = vmul.f32 %v2307_v63, %v7194_v10 }
0x117b   :  { %v8245_v58 = vsub.f32 %v2298_v27, %v2309_v1 }
0x117d   :  { %v2313_v56 = vmul.f32 %v8245_v58, %v8245_v58 }
0x117f   :  { %v2317_v12 = vsel %vm348_vm1, %v2313_v56, 0.0 }
0x1181   :  { %v2304_v36 = vpop.xlane.xlu0 %2303 }
0x1182   :  { %v2308_v53 = vmul.f32 %v2304_v36, %v7194_v10 }
0x1184   :  { %v8238_v62 = vsub.f32 %v2297_v35, %v2308_v53 }
0x1186   :  { %v2312_v3 = vmul.f32 %v8238_v62, %v8238_v62 }
0x1188   :  { %v2314_v4 = vsel %vm348_vm1, %v2312_v3, 0.0 }
0x118b   :  { %v3191_v30 = vpop.permute.xlu1 %3190 }
0x118c   :  { %v3199_v19 = vsel %vm1136_vm11, %v3197_v40, %v3191_v30 }
0x118d   :  { %6393 = vmatmul.msk.f32.gmra.mxu3 %vm348_vm1, %v3199_v19 }
0x1196   :  { %v3224_v51 = vpop.f32.mrf.mxu3 }
0x1197   :  { %v3225_v52 = vadd.f32 %v3224_v51, %v3200_v24 }
0x1199   :  { %v8236_v37 = vadd.f32 %v6914_v57, %v3225_v52  ;;  %v6616_v52 = vld [vmem:[%s9208_s6 + $0x10] ss:$0 sm:$0xff] }
0x119a   :  { %v2347_v1 = vmul.f32 %v6616_v52, %v8238_v62 }
0x119b   :  { %v3232_v18 = vsel %vm348_vm1, %v8236_v37, 0.0 }
0x119c   :  { %3233 = vadd.xlane.f32.xlu1 %v3232_v18 }
0x11a4   :  { %2315 = vadd.xlane.f32.xlu1 %v2314_v4  ;;  %v6617_v4 = vld [vmem:[%s9208_s6 + $0x11] ss:$0 sm:$0xff] }
0x11ac   :  { %2318 = vadd.xlane.f32.xlu1 %v2317_v12 }
0x120f   :  { %v3234_v39 = vpop.xlane.xlu1 %3233 }
0x1210   :  { %v3227_v42 = vpop.f32.mrf.mxu3  ;;  %v3238_v60 = vmul.f32 %v3234_v39, %v7194_v10 }
0x1211   :  { %v3228_v61 = vadd.f32 %v3227_v42, %v3200_v24 }
0x1212   :  { %v8261_v16 = vsub.f32 %v8236_v37, %v3238_v60 }
0x1213   :  { %v8252_v59 = vadd.f32 %v6915_v48, %v3228_v61 }
0x1214   :  { %v3242_v14 = vmul.f32 %v8261_v16, %v8261_v16 }
0x1215   :  { %v3235_v8 = vsel %vm348_vm1, %v8252_v59, 0.0 }
0x1216   :  { %3236 = vadd.xlane.f32.xlu0 %v3235_v8  ;;  %v3244_v15 = vsel %vm348_vm1, %v3242_v14, 0.0  ;;  %v2348_v8 = vmul.f32 %v6616_v52, %v8245_v58  ;;  %v2396_v58 = vld [vmem:[%s9209_s7 + $0x50] sm:$0xff]  ;;  %v3311_v52 = vperm.slane %v8232_v21, 3 }
0x1217   :  { %v2316_v45 = vpop.xlane.xlu1 %2315 }
0x1218   :  { %v2320_v54 = vmul.f32 0.032258064, %v2316_v45 }
0x121a   :  { %6758 = vrsqrt.f32 %v2320_v54  ;;  %vm2329_vm7 = vcmp.eq.f32.partialorder %v2320_v54, inf  ;;  %v2332_v35 = vand.u32 2147483648, %v2320_v54  ;;  %vm2331_vm8 = vcmp.eq.f32.partialorder %v2320_v54, 0.0 }
0x121e   :  { %3245 = vadd.xlane.f32.xlu0 %v3244_v15 }
0x121f   :  { %v2319_v44 = vpop.xlane.xlu1 %2318 }
0x1220   :  { %v6759_v28 = vpop.eup %6758  ;;  %v2321_v5 = vmul.f32 0.032258064, %v2319_v44  ;;  %v2397_v44 = vld [vmem:[%s9209_s7 + $0x58] sm:$0xff] }
0x1221   :  { %v2323_v33 = vmul.f32 %v6759_v28, %v2320_v54  ;;  %3333 = vmatpush.msra.mxu1 %v2397_v44 }
0x1222   :  { %6760 = vrsqrt.f32 %v2321_v5  ;;  %vm2341_vm9 = vcmp.eq.f32.partialorder %v2321_v5, inf  ;;  %v2344_v13 = vand.u32 2147483648, %v2321_v5  ;;  %vm2343_vm12 = vcmp.eq.f32.partialorder %v2321_v5, 0.0 }
0x1223   :  { %v2324_v22 = vmul.f32 %v6759_v28, %v2323_v33  ;;  %3334 = vmatpush.msra.mxu1 %v2396_v58 }
0x1225   :  { %v2325_v20 = vmul.f32 0.5, %v2324_v22  ;;  %v2394_v22 = vld [vmem:[%s9209_s7 + $0x40] sm:$0xff] }
0x1227   :  { %v2326_v26 = vsub.f32 1.5, %v2325_v20 }
0x1228   :  { %v6761_v25 = vpop.eup %6760 }
0x1229   :  { %v2327_v27 = vmul.f32 %v6759_v28, %v2326_v26  ;;  %v2335_v23 = vmul.f32 %v6761_v25, %v2321_v5 }
0x122b   :  { %v2328_v34 = vmul.f32 %v2327_v27, %v2320_v54  ;;  %v2336_v17 = vmul.f32 %v6761_v25, %v2335_v23 }
0x122d   :  { %v2330_v29 = vsel %vm2329_vm7, %v2320_v54, %v2328_v34  ;;  %v2337_v46 = vmul.f32 0.5, %v2336_v17 }
0x122e   :  { %v2333_v2 = vsel %vm2331_vm8, %v2332_v35, %v2330_v29 }
0x122f   :  { %v2349_v31 = vadd.f32 1e-06, %v2333_v2  ;;  %v2338_v38 = vsub.f32 1.5, %v2337_v46 }
0x1231   :  { %6762 = vrcp.f32 %v2349_v31  ;;  %v2339_v32 = vmul.f32 %v6761_v25, %v2338_v38  ;;  %v2362_v36 = vand.u32 2147483648, %v2349_v31  ;;  %v2360_v53 = vand.u32 2147483647, %v2349_v31 }
0x1232   :  { %vm2356_vm2 = vweird.f32 %v2349_v31 }
0x1233   :  { %v2340_v49 = vmul.f32 %v2339_v32, %v2321_v5  ;;  %v2363_v63 = vor.u32 1.1754944e-38, %v2362_v36  ;;  %vm2361_vm4 = vcmp.eq.f32.partialorder %v2360_v53, 8.507059e+37 }
0x1235   :  { %v2342_v47 = vsel %vm2341_vm9, %v2321_v5, %v2340_v49  ;;  %v2395_v5 = vld [vmem:[%s9209_s7 + $0x48] sm:$0xff] }
0x1236   :  { %v2345_v0 = vsel %vm2343_vm12, %v2344_v13, %v2342_v47  ;;  %3335 = vmatpush.msra.mxu1 %v2395_v5 }
0x1237   :  { %v6763_v40 = vpop.eup %6762  ;;  %v2350_v30 = vadd.f32 1e-06, %v2345_v0 }
0x1238   :  { %v2352_v19 = vmul.f32 %v6763_v40, %v2349_v31  ;;  %vm2357_vm14 = vweird.f32 %v6763_v40  ;;  %3336 = vmatpush.msra.mxu1 %v2394_v22 }
0x1239   :  { %6764 = vrcp.f32 %v2350_v30  ;;  %vm2358_vm3 = vmor %vm2356_vm2, %vm2357_vm14  ;;  %v2377_v60 = vand.u32 2147483648, %v2350_v30  ;;  %v2375_v55 = vand.u32 2147483647, %v2350_v30  ;;  %vm2371_vm5 = vweird.f32 %v2350_v30 }
0x123a   :  { %v2353_v24 = vsub.f32 1.0, %v2352_v19 }
0x123b   :  { %v2378_v6 = vor.u32 1.1754944e-38, %v2377_v60  ;;  %vm2376_vm7 = vcmp.eq.f32.partialorder %v2375_v55, 8.507059e+37 }
0x123c   :  { %v2354_v51 = vmul.f32 %v6763_v40, %v2353_v24 }
0x123e   :  { %v2355_v57 = vadd.f32 %v6763_v40, %v2354_v51 }
0x123f   :  { %v6765_v18 = vpop.eup %6764 }
0x1240   :  { %v2359_v3 = vsel %vm2358_vm3, %v6763_v40, %v2355_v57  ;;  %v2367_v56 = vmul.f32 %v6765_v18, %v2350_v30  ;;  %vm2372_vm0 = vweird.f32 %v6765_v18  ;;  %v3276_v40 = vperm.slane %v8232_v21, 2 }
0x1241   :  { %v2364_v12 = vsel %vm2361_vm4, %v2363_v63, %v2359_v3  ;;  %vm2373_vm6 = vmor %vm2371_vm5, %vm2372_vm0 }
0x1242   :  { %v2365_v39 = vmul.f32 %v2364_v12, %v2347_v1  ;;  %v2368_v42 = vsub.f32 1.0, %v2367_v56  ;;  %v3277_v51 = vmul.f32 %v3276_v40, %v8261_v16  ;;  %v8316_v1 = vld [vmem:[%s9210_s8 + $0x8] sm:$0xff] }
0x1243   :  { %v3344_v3 = vperm.slane %v8316_v1, 1 }
0x1244   :  { %v8281_v61 = vadd.f32 %v6617_v4, %v2365_v39  ;;  %v2369_v48 = vmul.f32 %v6765_v18, %v2368_v42 }
0x1246   :  { %6396 = vmatmul.msk.f32.vlgmr.msrb.gmra.mxu2 %vm348_vm1, %v8281_v61  ;;  %v2370_v62 = vadd.f32 %v6765_v18, %v2369_v48 }
0x1248   :  { %v2374_v9 = vsel %vm2373_vm6, %v6765_v18, %v2370_v62 }
0x1249   :  { %v2379_v45 = vsel %vm2376_vm7, %v2378_v6, %v2374_v9 }
0x124a   :  { %v2380_v11 = vmul.f32 %v2379_v45, %v2348_v8 }
0x124c   :  { %v8286_v54 = vadd.f32 %v6617_v4, %v2380_v11 }
0x124e   :  { %6397 = vmatmul.msk.f32.gmra.mxu2 %vm348_vm1, %v8286_v54 }
0x1289   :  { %v3237_v14 = vpop.xlane.xlu0 %3236 }
0x128a   :  { %v3239_v15 = vmul.f32 %v3237_v14, %v7194_v10 }
0x128c   :  { %v8298_v28 = vsub.f32 %v8252_v59, %v3239_v15 }
0x128e   :  { %v3243_v33 = vmul.f32 %v8298_v28, %v8298_v28 }
0x1290   :  { %v3247_v20 = vsel %vm348_vm1, %v3243_v33, 0.0 }
0x1291   :  { %3248 = vadd.xlane.f32.xlu2 %v3247_v20  ;;  %v3246_v26 = vpop.xlane.xlu0 %3245 }
0x1292   :  { %v3250_v25 = vmul.f32 0.032258064, %v3246_v26 }
0x1294   :  { %6766 = vrsqrt.f32 %v3250_v25  ;;  %vm3259_vm8 = vcmp.eq.f32.partialorder %v3250_v25, inf  ;;  %v3262_v2 = vand.u32 2147483648, %v3250_v25  ;;  %vm3261_vm9 = vcmp.eq.f32.partialorder %v3250_v25, 0.0 }
0x129a   :  { %v6767_v27 = vpop.eup %6766 }
0x129b   :  { %v3253_v23 = vmul.f32 %v6767_v27, %v3250_v25 }
0x129d   :  { %v3254_v34 = vmul.f32 %v6767_v27, %v3253_v23 }
0x129f   :  { %v3255_v17 = vmul.f32 0.5, %v3254_v34 }
0x12a1   :  { %v3256_v35 = vsub.f32 1.5, %v3255_v17 }
0x12a3   :  { %v3257_v29 = vmul.f32 %v6767_v27, %v3256_v35  ;;  %v3314_v35 = vperm.slane %v8316_v1, 0 }
0x12a5   :  { %v3258_v46 = vmul.f32 %v3257_v29, %v3250_v25 }
0x12a7   :  { %v3260_v31 = vsel %vm3259_vm8, %v3250_v25, %v3258_v46  ;;  %v3278_v25 = vmul.f32 %v3276_v40, %v8298_v28 }
0x12a8   :  { %v3263_v38 = vsel %vm3261_vm9, %v3262_v2, %v3260_v31 }
0x12a9   :  { %v3279_v32 = vadd.f32 1e-06, %v3263_v38 }
0x12ab   :  { %6768 = vrcp.f32 %v3279_v32  ;;  %v3292_v0 = vand.u32 2147483648, %v3279_v32  ;;  %v3290_v19 = vand.u32 2147483647, %v3279_v32  ;;  %vm3286_vm14 = vweird.f32 %v3279_v32 }
0x12ad   :  { %v3293_v36 = vor.u32 1.1754944e-38, %v3292_v0  ;;  %vm3291_vm3 = vcmp.eq.f32.partialorder %v3290_v19, 8.507059e+37 }
0x12b1   :  { %v6769_v49 = vpop.eup %6768 }
0x12b2   :  { %v3282_v13 = vmul.f32 %v6769_v49, %v3279_v32  ;;  %vm3287_vm12 = vweird.f32 %v6769_v49 }
0x12b3   :  { %vm3288_vm2 = vmor %vm3286_vm14, %vm3287_vm12 }
0x12b4   :  { %v3283_v47 = vsub.f32 1.0, %v3282_v13 }
0x12b6   :  { %v3284_v30 = vmul.f32 %v6769_v49, %v3283_v47 }
0x12b8   :  { %v3285_v24 = vadd.f32 %v6769_v49, %v3284_v30 }
0x12ba   :  { %v3289_v53 = vsel %vm3288_vm2, %v6769_v49, %v3285_v24 }
0x12bb   :  { %v3294_v57 = vsel %vm3291_vm3, %v3293_v36, %v3289_v53 }
0x12bc   :  { %v3295_v18 = vmul.f32 %v3294_v57, %v3277_v51 }
0x12be   :  { %v3312_v63 = vadd.f32 %v3311_v52, %v3295_v18 }
0x12c0   :  { %6394 = vmatmul.msk.f32.vlgmr.msra.gmra.mxu1 %vm348_vm1, %v3312_v63 }
0x12c9   :  { %v3368_v4 = vpop.f32.mrf.mxu2 }
0x12ca   :  { %v8319_v56 = vadd.f32 %v3368_v4, %v3344_v3 }
0x12cc   :  { %6398 = vmatpush.xpose.msk.msrb.mxu0 %vm471_vm15, %v8319_v56  ;;  %3532 = vrot.lane.b32.xlu0 %v8319_v56, %s9248_s4 }
0x12cd   :  { %3692 = vrot.lane.b32.xlu2 %v8319_v56, %s9251_s15 }
0x12d1   :  { %v3371_v21 = vpop.f32.mrf.mxu2 }
0x12d2   :  { %v8327_v16 = vadd.f32 %v3371_v21, %v3344_v3 }
0x12d4   :  { %6400 = vmatpush.xpose.msk.msra.mxu0 %vm471_vm15, %v8327_v16  ;;  %v6571_v47 = vpack.i.bf16 %v8327_v16, %v8319_v56 }
0x1304   :  { %v3249_v12 = vpop.xlane.xlu2 %3248 }
0x1305   :  { %v3251_v39 = vmul.f32 0.032258064, %v3249_v12 }
0x1307   :  { %6770 = vrsqrt.f32 %v3251_v39  ;;  %vm3271_vm4 = vcmp.eq.f32.partialorder %v3251_v39, inf  ;;  %v3274_v9 = vand.u32 2147483648, %v3251_v39  ;;  %vm3273_vm0 = vcmp.eq.f32.partialorder %v3251_v39, 0.0 }
0x130d   :  { %v6771_v42 = vpop.eup %6770 }
0x130e   :  { %v3265_v60 = vmul.f32 %v6771_v42, %v3251_v39 }
0x1310   :  { %v3266_v48 = vmul.f32 %v6771_v42, %v3265_v60 }
0x1312   :  { %v3267_v55 = vmul.f32 0.5, %v3266_v48 }
0x1314   :  { %v3268_v62 = vsub.f32 1.5, %v3267_v55 }
0x1316   :  { %v3269_v6 = vmul.f32 %v6771_v42, %v3268_v62 }
0x1318   :  { %v3270_v8 = vmul.f32 %v3269_v6, %v3251_v39 }
0x131a   :  { %v3272_v45 = vsel %vm3271_vm4, %v3251_v39, %v3270_v8 }
0x131b   :  { %v3275_v11 = vsel %vm3273_vm0, %v3274_v9, %v3272_v45 }
0x131c   :  { %v3280_v14 = vadd.f32 1e-06, %v3275_v11 }
0x131e   :  { %6772 = vrcp.f32 %v3280_v14  ;;  %v3307_v5 = vand.u32 2147483648, %v3280_v14  ;;  %v3305_v22 = vand.u32 2147483647, %v3280_v14  ;;  %vm3301_vm6 = vweird.f32 %v3280_v14 }
0x1320   :  { %v3308_v26 = vor.u32 1.1754944e-38, %v3307_v5  ;;  %vm3306_vm8 = vcmp.eq.f32.partialorder %v3305_v22, 8.507059e+37 }
0x1324   :  { %v6773_v15 = vpop.eup %6772 }
0x1325   :  { %v3297_v44 = vmul.f32 %v6773_v15, %v3280_v14  ;;  %vm3302_vm5 = vweird.f32 %v6773_v15 }
0x1326   :  { %vm3303_vm7 = vmor %vm3301_vm6, %vm3302_vm5 }
0x1327   :  { %v3298_v58 = vsub.f32 1.0, %v3297_v44  ;;  %v3693_v31 = vpop.permute.xlu2 %3692 }
0x1329   :  { %v3299_v33 = vmul.f32 %v6773_v15, %v3298_v58 }
0x132b   :  { %v3300_v20 = vadd.f32 %v6773_v15, %v3299_v33 }
0x132d   :  { %v3304_v27 = vsel %vm3303_vm7, %v6773_v15, %v3300_v20 }
0x132e   :  { %v3309_v23 = vsel %vm3306_vm8, %v3308_v26, %v3304_v27 }
0x132f   :  { %v3310_v34 = vmul.f32 %v3309_v23, %v3278_v25 }
0x1331   :  { %v3313_v17 = vadd.f32 %v3311_v52, %v3310_v34 }
0x1333   :  { %6395 = vmatmul.msk.f32.gmra.mxu1 %vm348_vm1, %v3313_v17 }
0x133d   :  { %v3338_v29 = vpop.f32.mrf.mxu1 }
0x133e   :  { %v3339_v46 = vadd.f32 %v3338_v29, %v3314_v35  ;;  %v3533_v2 = vpop.permute.xlu0 %3532 }
0x133f   :  { %6404 = vmatpush.xpose.msk.msra.mxu2 %vm471_vm15, %v3533_v2 }
0x1340   :  { %3850 = vrot.lane.b32.xlu2 %v3339_v46, %s9249_s19  ;;  %3690 = vrot.lane.b32.xlu0 %v3339_v46, %s9251_s15 }
0x1341   :  { %6399 = vmatmul.msk.f32.vlgmr.msrb.gmra.mxu0 %vm471_vm15, %v3339_v46  ;;  %3530 = vrot.lane.b32.xlu1 %v3339_v46, %s9248_s4 }
0x1343   :  { %6410 = vmatpush.xpose.msk.msrb.mxu2 %vm471_vm15, %v3693_v31 }
0x1348   :  { %3720 = vrot.lane.b32.xlu2 %v8327_v16, %s9251_s15  ;;  %3560 = vrot.lane.b32.xlu0 %v8327_v16, %s9248_s4 }
0x1349   :  { %3852 = vrot.lane.b32.xlu1 %v8319_v56, %s9249_s19 }
0x139a   :  { %v3851_v32 = vpop.permute.xlu2 %3850 }
0x13a2   :  { %v3721_v30 = vpop.permute.xlu2 %3720 }
0x13b0   :  { %v3341_v28 = vpop.f32.mrf.mxu1 }
0x13b1   :  { %v3342_v38 = vadd.f32 %v3341_v28, %v3314_v35 }
0x13b2   :  { %v3691_v49 = vpop.permute.xlu0 %3690 }
0x13b3   :  { %v3531_v13 = vpop.permute.xlu1 %3530  ;;  %3878 = vrot.lane.b32.xlu2 %v3342_v38, %s9249_s19  ;;  %3718 = vrot.lane.b32.xlu0 %v3342_v38, %s9251_s15 }
0x13b4   :  { %6405 = vmatmul.msk.f32.vlgmr.msra.gmra.mxu2 %vm471_vm15, %v3531_v13  ;;  %3558 = vrot.lane.b32.xlu1 %v3342_v38, %s9248_s4 }
0x13b5   :  { %6401 = vmatmul.msk.f32.vlgmr.msra.gmra.mxu0 %vm471_vm15, %v3342_v38 }
0x13ba   :  { %v3561_v0 = vpop.permute.xlu0 %3560 }
0x13bb   :  { %v3853_v40 = vpop.permute.xlu1 %3852  ;;  %6406 = vmatpush.xpose.msk.msrb.mxu0 %vm471_vm15, %v3561_v0  ;;  %6572 = vrot.lane.b32.xlu0 %v6571_v47, %s9246_s20 }
0x13bc   :  { %3880 = vrot.lane.b32.xlu1 %v8327_v16, %s9249_s19  ;;  %6411 = vmatmul.msk.f32.vlgmr.msrb.gmra.mxu2 %vm471_vm15, %v3691_v49 }
0x13bd   :  { %6416 = vmatpush.xpose.msk.msra.mxu2 %vm471_vm15, %v3853_v40 }
0x13be   :  { %v3397_v19 = vpop.f32.mrf.mxu0 }
0x13bf   :  { %6412 = vmatpush.xpose.msk.msra.mxu0 %vm471_vm15, %v3721_v30  ;;  %v3426_v24 = vmul.f32 0.35355338, %v3397_v19 }
0x13c1   :  { %v3428_v36 = vadd.f32 %v3426_v24, %v7283_v41 }
0x13c3   :  { %v3430_v51 = vsel %vm471_vm15, %v3428_v36, -inf }
0x13c4   :  { %6417 = vmatmul.msk.f32.vlgmr.msra.gmra.mxu2 %vm471_vm15, %v3851_v32 }
0x13e5   :  { %3431 = vmax.xlane.f32.xlu0 %v3430_v51 }
0x140d   :  { %v3879_v39 = vpop.permute.xlu2 %3878 }
0x1425   :  { %v3719_v53 = vpop.permute.xlu0 %3718 }
0x1426   :  { %v3559_v52 = vpop.permute.xlu1 %3558 }
0x1427   :  { %6407 = vmatmul.msk.f32.vlgmr.msrb.gmra.mxu0 %vm471_vm15, %v3559_v52 }
0x142d   :  { %v6573_v57 = vpop.permute.xlu0 %6572 }
0x142e   :  { %v6575_v18 = vunpack.i.h.bf16 %v6573_v57  ;;  %v6574_v63 = vunpack.i.l.bf16 %v6573_v57  ;;  %v3881_v3 = vpop.permute.xlu1 %3880 }
0x142f   :  { %6413 = vmatmul.msk.f32.vlgmr.msra.gmra.mxu0 %vm471_vm15, %v3719_v53 }
0x1430   :  { %6418 = vmatpush.xpose.msk.msrb.mxu0 %vm471_vm15, %v3881_v3  ;;  %3499 = vmatpush.msra.mxu3 %v6574_v63 }
0x1431   :  { %3525 = vmatpush.msrb.mxu1 %v6575_v18 }
0x1432   :  { %v3423_v4 = vpop.f32.mrf.mxu0 }
0x1433   :  { %v3427_v21 = vmul.f32 0.35355338, %v3423_v4 }
0x1435   :  { %v3429_v12 = vadd.f32 %v3427_v21, %v7291_v50 }
0x1437   :  { %v3555_v42 = vpop.f32.mrf.mxu2  ;;  %v3433_v60 = vsel %vm471_vm15, %v3429_v12, -inf  ;;  %6419 = vmatmul.msk.f32.vlgmr.msrb.gmra.mxu0 %vm471_vm15, %v3879_v39 }
0x1438   :  { %v3586_v48 = vmul.f32 0.35355338, %v3555_v42  ;;  %3434 = vmax.xlane.f32.xlu2 %v3433_v60 }
0x143a   :  { %v8370_v55 = vadd.f32 %v3586_v48, %v7283_v41 }
0x143c   :  { %v3590_v62 = vsel %vm471_vm15, %v8370_v55, -inf }
0x143d   :  { %3591 = vmax.xlane.f32.xlu1 %v3590_v62 }
0x143f   :  { %v3715_v6 = vpop.f32.mrf.mxu2 }
0x1440   :  { %v3746_v8 = vmul.f32 0.35355338, %v3715_v6 }
0x1442   :  { %v3748_v9 = vadd.f32 %v3746_v8, %v7283_v41 }
0x1444   :  { %v3750_v45 = vsel %vm471_vm15, %v3748_v9, -inf }
0x1445   :  { %3751 = vmax.xlane.f32.xlu0 %v3750_v45 }
0x1447   :  { %v3875_v44 = vpop.f32.mrf.mxu2 }
0x1448   :  { %v3906_v5 = vmul.f32 0.35355338, %v3875_v44 }
0x144a   :  { %v3908_v22 = vadd.f32 %v3906_v5, %v7283_v41 }
0x144c   :  { %v3910_v20 = vsel %vm471_vm15, %v3908_v22, -inf }
0x1458   :  { %v3432_v11 = vpop.xlane.xlu0 %3431 }
0x1459   :  { %v3436_v14 = vsub.f32 %v3428_v36, %v3432_v11 }
0x145b   :  { %v3438_v15 = vmul.f32 1.442695, %v3436_v14 }
0x145d   :  { %6774 = vpow2.f32 %v3438_v15 }
0x1463   :  { %v6775_v58 = vpop.eup %6774 }
0x1464   :  { %v3442_v33 = vsel %vm471_vm15, %v6775_v58, 0.0 }
0x1465   :  { %3443 = vadd.xlane.f32.xlu2 %v3442_v33 }
0x146d   :  { %3911 = vmax.xlane.f32.xlu2 %v3910_v20 }
0x14a4   :  { %v3583_v26 = vpop.f32.mrf.mxu0 }
0x14a5   :  { %v3587_v25 = vmul.f32 0.35355338, %v3583_v26 }
0x14a7   :  { %v8380_v27 = vadd.f32 %v3587_v25, %v7291_v50 }
0x14a9   :  { %v3593_v23 = vsel %vm471_vm15, %v8380_v27, -inf }
0x14aa   :  { %3594 = vmax.xlane.f32.xlu1 %v3593_v23 }
0x14ab   :  { %v3435_v34 = vpop.xlane.xlu2 %3434 }
0x14ac   :  { %v3437_v17 = vsub.f32 %v3429_v12, %v3435_v34  ;;  %v3743_v35 = vpop.f32.mrf.mxu0 }
0x14ad   :  { %v3747_v29 = vmul.f32 0.35355338, %v3743_v35 }
0x14ae   :  { %v3440_v46 = vmul.f32 1.442695, %v3437_v17 }
0x14af   :  { %v3749_v2 = vadd.f32 %v3747_v29, %v7291_v50 }
0x14b0   :  { %6776 = vpow2.f32 %v3440_v46  ;;  %v3592_v63 = vpop.xlane.xlu1 %3591 }
0x14b1   :  { %v3753_v31 = vsel %vm471_vm15, %v3749_v2, -inf  ;;  %v3596_v39 = vsub.f32 %v8370_v55, %v3592_v63 }
0x14b2   :  { %3754 = vmax.xlane.f32.xlu0 %v3753_v31 }
0x14b3   :  { %v3598_v6 = vmul.f32 1.442695, %v3596_v39 }
0x14b4   :  { %v3903_v28 = vpop.f32.mrf.mxu0 }
0x14b5   :  { %v3907_v32 = vmul.f32 0.35355338, %v3903_v28 }
0x14b6   :  { %v8386_v38 = vpop.eup %6776 }
0x14b7   :  { %v3445_v49 = vsel %vm471_vm15, %v8386_v38, 0.0  ;;  %v8391_v0 = vadd.f32 %v3907_v32, %v7291_v50 }
0x14b8   :  { %3446 = vadd.xlane.f32.xlu1 %v3445_v49  ;;  %v3752_v13 = vpop.xlane.xlu0 %3751 }
0x14b9   :  { %v3756_v47 = vsub.f32 %v3748_v9, %v3752_v13  ;;  %v3913_v30 = vsel %vm471_vm15, %v8391_v0, -inf }
0x14bb   :  { %v3758_v40 = vmul.f32 1.442695, %v3756_v47 }
0x14bd   :  { %6778 = vpow2.f32 %v3758_v40 }
0x14c0   :  { %3914 = vmax.xlane.f32.xlu1 %v3913_v30 }
0x14c3   :  { %v8395_v19 = vpop.eup %6778 }
0x14c4   :  { %v3762_v24 = vsel %vm471_vm15, %v8395_v19, 0.0 }
0x14c5   :  { %3763 = vadd.xlane.f32.xlu2 %v3762_v24 }
0x14c6   :  { %3798 = vrot.lane.b32.xlu0 %v8319_v56, %s9250_s23 }
0x14ce   :  { %3664 = vrot.lane.b32.xlu0 %v8327_v16, %s9247_s24 }
0x14d8   :  { %v3444_v36 = vpop.xlane.xlu2 %3443 }
0x14d9   :  { %3638 = vrot.lane.b32.xlu1 %v8319_v56, %s9247_s24  ;;  %6780 = vrcp.f32 %v3444_v36  ;;  %v3459_v3 = vand.u32 2147483648, %v3444_v36  ;;  %v3457_v12 = vand.u32 2147483647, %v3444_v36  ;;  %vm3453_vm12 = vweird.f32 %v3444_v36 }
0x14db   :  { %v3460_v60 = vor.u32 1.1754944e-38, %v3459_v3  ;;  %vm3458_vm2 = vcmp.eq.f32.partialorder %v3457_v12, 8.507059e+37 }
0x14df   :  { %v6781_v51 = vpop.eup %6780 }
0x14e0   :  { %v3449_v53 = vmul.f32 %v6781_v51, %v3444_v36  ;;  %v3912_v52 = vpop.xlane.xlu2 %3911  ;;  %vm3454_vm9 = vweird.f32 %v6781_v51 }
0x14e1   :  { %v3916_v57 = vsub.f32 %v3908_v22, %v3912_v52  ;;  %vm3455_vm14 = vmor %vm3453_vm12, %vm3454_vm9 }
0x14e2   :  { %v3450_v18 = vsub.f32 1.0, %v3449_v53 }
0x14e3   :  { %v3918_v4 = vmul.f32 1.442695, %v3916_v57 }
0x14e4   :  { %v3451_v21 = vmul.f32 %v6781_v51, %v3450_v18 }
0x14e5   :  { %6782 = vpow2.f32 %v3918_v4 }
0x14e6   :  { %v3452_v42 = vadd.f32 %v6781_v51, %v3451_v21  ;;  %6784 = vpow2.f32 %v3598_v6 }
0x14e8   :  { %v3456_v48 = vsel %vm3455_vm14, %v6781_v51, %v3452_v42 }
0x14e9   :  { %v3461_v62 = vsel %vm3458_vm2, %v3460_v60, %v3456_v48 }
0x14ea   :  { %v3462_v8 = vmul.f32 %v6775_v58, %v3461_v62 }
0x14eb   :  { %v8406_v9 = vpop.eup %6782 }
0x14ec   :  { %6402 = vmatmul.msk.f32.vlgmr.msra.gmra.mxu3 %vm471_vm15, %v3462_v8  ;;  %v3922_v45 = vsel %vm471_vm15, %v8406_v9, 0.0  ;;  %v8411_v11 = vpop.eup %6784 }
0x14ed   :  { %3923 = vadd.xlane.f32.xlu2 %v3922_v45  ;;  %v3602_v55 = vsel %vm471_vm15, %v8411_v11, 0.0 }
0x14f8   :  { %3603 = vadd.xlane.f32.xlu0 %v3602_v55 }
0x150c   :  { %3824 = vrot.lane.b32.xlu0 %v8327_v16, %s9250_s23 }
0x151d   :  { %v3595_v14 = vpop.xlane.xlu1 %3594 }
0x151e   :  { %v3597_v15 = vsub.f32 %v8380_v27, %v3595_v14 }
0x1520   :  { %v3600_v44 = vmul.f32 1.442695, %v3597_v15 }
0x1522   :  { %6786 = vpow2.f32 %v3600_v44 }
0x1525   :  { %v3755_v58 = vpop.xlane.xlu0 %3754 }
0x1526   :  { %v3757_v5 = vsub.f32 %v3749_v2, %v3755_v58 }
0x1528   :  { %v8418_v33 = vpop.eup %6786  ;;  %v3760_v22 = vmul.f32 1.442695, %v3757_v5 }
0x1529   :  { %v3605_v20 = vsel %vm471_vm15, %v8418_v33, 0.0 }
0x152a   :  { %6788 = vpow2.f32 %v3760_v22  ;;  %3606 = vadd.xlane.f32.xlu1 %v3605_v20 }
0x152b   :  { %v3447_v26 = vpop.xlane.xlu1 %3446 }
0x152c   :  { %6790 = vrcp.f32 %v3447_v26  ;;  %v3474_v46 = vand.u32 2147483648, %v3447_v26  ;;  %v3472_v28 = vand.u32 2147483647, %v3447_v26  ;;  %vm3468_vm4 = vweird.f32 %v3447_v26 }
0x152e   :  { %v3475_v13 = vor.u32 1.1754944e-38, %v3474_v46  ;;  %vm3473_vm5 = vcmp.eq.f32.partialorder %v3472_v28, 8.507059e+37 }
0x1530   :  { %v8422_v25 = vpop.eup %6788 }
0x1531   :  { %v3765_v23 = vsel %vm471_vm15, %v8422_v25, 0.0 }
0x1532   :  { %v6791_v27 = vpop.eup %6790  ;;  %3766 = vadd.xlane.f32.xlu2 %v3765_v23 }
0x1533   :  { %v3464_v34 = vmul.f32 %v6791_v27, %v3447_v26  ;;  %v3915_v17 = vpop.xlane.xlu1 %3914  ;;  %vm3469_vm3 = vweird.f32 %v6791_v27 }
0x1534   :  { %v3917_v35 = vsub.f32 %v8391_v0, %v3915_v17  ;;  %vm3470_vm0 = vmor %vm3468_vm4, %vm3469_vm3 }
0x1535   :  { %v3465_v29 = vsub.f32 1.0, %v3464_v34 }
0x1536   :  { %v3920_v2 = vmul.f32 1.442695, %v3917_v35 }
0x1537   :  { %v3466_v31 = vmul.f32 %v6791_v27, %v3465_v29 }
0x1538   :  { %6792 = vpow2.f32 %v3920_v2  ;;  %v3799_v32 = vpop.permute.xlu0 %3798 }
0x1539   :  { %v3467_v49 = vadd.f32 %v6791_v27, %v3466_v31 }
0x153b   :  { %v3471_v47 = vsel %vm3470_vm0, %v6791_v27, %v3467_v49 }
0x153c   :  { %v3476_v40 = vsel %vm3473_vm5, %v3475_v13, %v3471_v47 }
0x153d   :  { %v3477_v30 = vmul.f32 %v8386_v38, %v3476_v40  ;;  %v3764_v38 = vpop.xlane.xlu2 %3763 }
0x153e   :  { %v8428_v24 = vpop.eup %6792  ;;  %6794 = vrcp.f32 %v3764_v38  ;;  %v3779_v62 = vand.u32 2147483648, %v3764_v38  ;;  %vm3773_vm14 = vweird.f32 %v3764_v38  ;;  %v3777_v8 = vand.u32 2147483647, %v3764_v38 }
0x153f   :  { %6403 = vmatmul.msk.f32.vlgmr.msrb.gmra.mxu1 %vm471_vm15, %v3477_v30  ;;  %v3925_v0 = vsel %vm471_vm15, %v8428_v24, 0.0 }
0x1540   :  { %3926 = vadd.xlane.f32.xlu2 %v3925_v0  ;;  %v3665_v36 = vpop.permute.xlu0 %3664  ;;  %v3780_v15 = vor.u32 1.1754944e-38, %v3779_v62  ;;  %vm3778_vm3 = vcmp.eq.f32.partialorder %v3777_v8, 8.507059e+37 }
0x1541   :  { %3685 = vmatpush.msra.mxu1 %v3665_v36 }
0x1543   :  { %3984 = vrot.lane.b32.xlu1 %v8327_v16, %s9252_s28 }
0x1544   :  { %v6795_v52 = vpop.eup %6794 }
0x1545   :  { %v3769_v57 = vmul.f32 %v6795_v52, %v3764_v38  ;;  %vm3774_vm9 = vweird.f32 %v6795_v52 }
0x1546   :  { %vm3775_vm2 = vmor %vm3773_vm14, %vm3774_vm9 }
0x1547   :  { %v3770_v63 = vsub.f32 1.0, %v3769_v57 }
0x1549   :  { %v3771_v12 = vmul.f32 %v6795_v52, %v3770_v63 }
0x154b   :  { %v3639_v51 = vpop.permute.xlu1 %3638 }
0x154c   :  { %3659 = vmatpush.msrb.mxu3 %v3639_v51 }
0x154e   :  { %3819 = vmatpush.msra.mxu3 %v3799_v32 }
0x1558   :  { %3958 = vrot.lane.b32.xlu2 %v8319_v56, %s9252_s28  ;;  %v3772_v56 = vadd.f32 %v6795_v52, %v3771_v12 }
0x155a   :  { %v3776_v14 = vsel %vm3775_vm2, %v6795_v52, %v3772_v56 }
0x155b   :  { %v3781_v44 = vsel %vm3778_vm3, %v3780_v15, %v3776_v14 }
0x155c   :  { %v3782_v58 = vmul.f32 %v8395_v19, %v3781_v44 }
0x1560   :  { %v3924_v5 = vpop.xlane.xlu2 %3923 }
0x1561   :  { %vm3933_vm9 = vweird.f32 %v3924_v5  ;;  %v3939_v38 = vand.u32 2147483648, %v3924_v5  ;;  %v3937_v52 = vand.u32 2147483647, %v3924_v5 }
0x156b   :  { %v3604_v53 = vpop.xlane.xlu0 %3603 }
0x156c   :  { %6796 = vrcp.f32 %v3604_v53  ;;  %v3619_v21 = vand.u32 2147483648, %v3604_v53  ;;  %v3617_v16 = vand.u32 2147483647, %v3604_v53  ;;  %vm3613_vm7 = vweird.f32 %v3604_v53 }
0x156d   :  { %6798 = vrcp.f32 %v3924_v5 }
0x156e   :  { %v3620_v60 = vor.u32 1.1754944e-38, %v3619_v21  ;;  %vm3618_vm12 = vcmp.eq.f32.partialorder %v3617_v16, 8.507059e+37  ;;  %v3940_v21 = vor.u32 1.1754944e-38, %v3939_v38 }
0x1572   :  { %v6797_v18 = vpop.eup %6796 }
0x1573   :  { %v3609_v3 = vmul.f32 %v6797_v18, %v3604_v53  ;;  %vm3614_vm6 = vweird.f32 %v6797_v18  ;;  %v6799_v20 = vpop.eup %6798 }
0x1574   :  { %vm3615_vm8 = vmor %vm3613_vm7, %vm3614_vm6  ;;  %vm3934_vm7 = vweird.f32 %v6799_v20 }
0x1575   :  { %v3610_v4 = vsub.f32 1.0, %v3609_v3 }
0x1577   :  { %v3611_v39 = vmul.f32 %v6797_v18, %v3610_v4 }
0x1579   :  { %v3612_v42 = vadd.f32 %v6797_v18, %v3611_v39 }
0x157b   :  { %v3616_v48 = vsel %vm3615_vm8, %v6797_v18, %v3612_v42 }
0x157c   :  { %v3621_v6 = vsel %vm3618_vm12, %v3620_v60, %v3616_v48  ;;  %vm8443_vm12 = vmor %vm3933_vm9, %vm3934_vm7 }
0x157d   :  { %v3622_v45 = vmul.f32 %v8411_v11, %v3621_v6  ;;  %v3929_v11 = vmul.f32 %v6799_v20, %v3924_v5 }
0x157e   :  { %v3825_v55 = vpop.permute.xlu0 %3824 }
0x157f   :  { %6408 = vmatmul.msk.f32.vlgmr.msrb.gmra.mxu3 %vm471_vm15, %v3622_v45  ;;  %3845 = vmatpush.msrb.mxu1 %v3825_v55  ;;  %v3930_v35 = vsub.f32 1.0, %v3929_v11 }
0x1581   :  { %v3931_v28 = vmul.f32 %v6799_v20, %v3930_v35 }
0x1583   :  { %v3932_v0 = vadd.f32 %v6799_v20, %v3931_v28 }
0x1585   :  { %v3936_v63 = vsel %vm8443_vm12, %v6799_v20, %v3932_v0 }
0x1587   :  { %6414 = vmatmul.msk.f32.vlgmr.msra.gmra.mxu3 %vm471_vm15, %v3782_v58 }
0x159d   :  { %v3607_v22 = vpop.xlane.xlu1 %3606 }
0x159e   :  { %6800 = vrcp.f32 %v3607_v22  ;;  %v3634_v17 = vand.u32 2147483648, %v3607_v22  ;;  %v3632_v46 = vand.u32 2147483647, %v3607_v22  ;;  %vm3628_vm0 = vweird.f32 %v3607_v22 }
0x15a0   :  { %v3635_v31 = vor.u32 1.1754944e-38, %v3634_v17  ;;  %vm3633_vm6 = vcmp.eq.f32.partialorder %v3632_v46, 8.507059e+37  ;;  %v2402_v17 = vld [vmem:[%s9209_s7 + $0x80] sm:$0xff] }
0x15a4   :  { %v6801_v26 = vpop.eup %6800 }
0x15a5   :  { %v3624_v23 = vmul.f32 %v6801_v26, %v3607_v22  ;;  %v3767_v27 = vpop.xlane.xlu2 %3766  ;;  %vm3629_vm4 = vweird.f32 %v6801_v26 }
0x15a6   :  { %6802 = vrcp.f32 %v3767_v27  ;;  %vm3630_vm5 = vmor %vm3628_vm0, %vm3629_vm4  ;;  %v3794_v30 = vand.u32 2147483648, %v3767_v27  ;;  %v3792_v51 = vand.u32 2147483647, %v3767_v27  ;;  %vm3788_vm14 = vweird.f32 %v3767_v27 }
0x15a7   :  { %v3625_v34 = vsub.f32 1.0, %v3624_v23  ;;  %vm3938_vm4 = vcmp.eq.f32.partialorder %v3937_v52, 8.507059e+37  ;;  %v2405_v23 = vld [vmem:[%s9209_s7 + $0x98] sm:$0xff] }
0x15a8   :  { %vm3793_vm3 = vcmp.eq.f32.partialorder %v3792_v51, 8.507059e+37  ;;  %v3941_v16 = vsel %vm3938_vm4, %v3940_v21, %v3936_v63  ;;  %4059 = vmatpush.msrb.mxu2 %v2405_v23 }
0x15a9   :  { %v3626_v29 = vmul.f32 %v6801_v26, %v3625_v34  ;;  %v3942_v48 = vmul.f32 %v8406_v9, %v3941_v16  ;;  %v3501_v9 = vpop.f32.mrf.mxu3  ;;  %v2403_v34 = vld [vmem:[%s9209_s7 + $0x88] sm:$0xff] }
0x15ab   :  { %v3627_v2 = vadd.f32 %v6801_v26, %v3626_v29 }
0x15ac   :  { %v6803_v19 = vpop.eup %6802 }
0x15ad   :  { %v3631_v32 = vsel %vm3630_vm5, %v6801_v26, %v3627_v2  ;;  %v3784_v49 = vmul.f32 %v6803_v19, %v3767_v27  ;;  %vm3789_vm8 = vweird.f32 %v6803_v19  ;;  %v2404_v27 = vld [vmem:[%s9209_s7 + $0x90] sm:$0xff] }
0x15ae   :  { %v3636_v13 = vsel %vm3633_vm6, %v3635_v31, %v3631_v32  ;;  %vm3790_vm2 = vmor %vm3788_vm14, %vm3789_vm8  ;;  %4060 = vmatpush.msrb.mxu2 %v2404_v27  ;;  %v2417_v27 = vld [vmem:[%s9209_s7 + $0xf8] sm:$0xff] }
0x15af   :  { %v3785_v47 = vsub.f32 1.0, %v3784_v49  ;;  %v3637_v40 = vmul.f32 %v8418_v33, %v3636_v13  ;;  %v3795_v33 = vor.u32 1.1754944e-38, %v3794_v30  ;;  %v4040_v30 = vperm.slane %v8316_v1, 2 }
0x15b0   :  { %4061 = vmatpush.msrb.mxu2 %v2403_v34  ;;  %v2416_v34 = vld [vmem:[%s9209_s7 + $0xf0] sm:$0xff] }
0x15b1   :  { %v3786_v36 = vmul.f32 %v6803_v19, %v3785_v47  ;;  %6409 = vmatmul.msk.f32.vlgmr.msra.gmra.mxu1 %vm471_vm15, %v3637_v40 }
0x15b2   :  { %4062 = vmatpush.msrb.mxu2 %v2402_v17 }
0x15b3   :  { %v3787_v57 = vadd.f32 %v6803_v19, %v3786_v36  ;;  %v3927_v18 = vpop.xlane.xlu2 %3926 }
0x15b4   :  { %6804 = vrcp.f32 %v3927_v18  ;;  %v3954_v6 = vand.u32 2147483648, %v3927_v18  ;;  %v3952_v45 = vand.u32 2147483647, %v3927_v18  ;;  %vm3948_vm5 = vweird.f32 %v3927_v18 }
0x15b5   :  { %v3791_v3 = vsel %vm3790_vm2, %v6803_v19, %v3787_v57  ;;  %v3985_v4 = vpop.permute.xlu1 %3984 }
0x15b6   :  { %v3796_v12 = vsel %vm3793_vm3, %v3795_v33, %v3791_v3  ;;  %4005 = vmatpush.msra.mxu1 %v3985_v4  ;;  %vm3953_vm7 = vcmp.eq.f32.partialorder %v3952_v45, 8.507059e+37 }
0x15b7   :  { %v3797_v39 = vmul.f32 %v8422_v25, %v3796_v12  ;;  %v3955_v25 = vor.u32 1.1754944e-38, %v3954_v6 }
0x15b9   :  { %6415 = vmatmul.msk.f32.vlgmr.msrb.gmra.mxu1 %vm471_vm15, %v3797_v39 }
0x15ba   :  { %v6805_v42 = vpop.eup %6804 }
0x15bb   :  { %v3944_v60 = vmul.f32 %v6805_v42, %v3927_v18  ;;  %v3959_v56 = vpop.permute.xlu2 %3958  ;;  %vm3949_vm0 = vweird.f32 %v6805_v42 }
0x15bc   :  { %3979 = vmatpush.msrb.mxu3 %v3959_v56  ;;  %vm3950_vm6 = vmor %vm3948_vm5, %vm3949_vm0  ;;  %v3527_v22 = vpop.f32.mrf.mxu1  ;;  %v2407_v56 = vld [vmem:[%s9209_s7 + $0xa8] sm:$0xff] }
0x15bd   :  { %v3945_v62 = vsub.f32 1.0, %v3944_v60  ;;  %6420 = vmatmul.msk.f32.vlgmr.msrb.gmra.mxu3 %vm471_vm15, %v3942_v48  ;;  %v2408_v60 = vld [vmem:[%s9209_s7 + $0xb0] sm:$0xff] }
0x15be   :  { %4201 = vmatpush.msra.mxu3 %v2417_v27 }
0x15bf   :  { %v3946_v8 = vmul.f32 %v6805_v42, %v3945_v62  ;;  %v2406_v62 = vld [vmem:[%s9209_s7 + $0xa0] sm:$0xff] }
0x15c0   :  { %4202 = vmatpush.msra.mxu3 %v2416_v34 }
0x15c1   :  { %v3947_v55 = vadd.f32 %v6805_v42, %v3946_v8 }
0x15c3   :  { %v3951_v14 = vsel %vm3950_vm6, %v6805_v42, %v3947_v55  ;;  %v2409_v42 = vld [vmem:[%s9209_s7 + $0xb8] sm:$0xff] }
0x15c4   :  { %v3956_v15 = vsel %vm3953_vm7, %v3955_v25, %v3951_v14  ;;  %4173 = vmatpush.msra.mxu0 %v2409_v42 }
0x15c5   :  { %v3957_v44 = vmul.f32 %v8428_v24, %v3956_v15 }
0x15c6   :  { %4174 = vmatpush.msra.mxu0 %v2408_v60 }
0x15c7   :  { %6421 = vmatmul.msk.f32.vlgmr.msra.gmra.mxu1 %vm471_vm15, %v3957_v44 }
0x15c8   :  { %4175 = vmatpush.msra.mxu0 %v2407_v56 }
0x15ca   :  { %4176 = vmatpush.msra.mxu0 %v2406_v62 }
0x1602   :  { %v3661_v58 = vpop.f32.mrf.mxu3 }
0x1603   :  { %4012 = vrot.lane.b32.xlu0 %v3661_v58, %s6989_s29 }
0x160a   :  { %v3821_v5 = vpop.f32.mrf.mxu3 }
0x160b   :  { %4020 = vrot.lane.b32.xlu1 %v3821_v5, %s6990_s21 }
0x162e   :  { %v3687_v20 = vpop.f32.mrf.mxu1 }
0x162f   :  { %4014 = vrot.lane.b32.xlu2 %v3687_v20, %s6989_s29 }
0x1636   :  { %v3847_v26 = vpop.f32.mrf.mxu1 }
0x1637   :  { %4022 = vrot.lane.b32.xlu1 %v3847_v26, %s6990_s21 }
0x1640   :  { %v3981_v11 = vpop.f32.mrf.mxu3 }
0x1641   :  { %4028 = vrot.lane.b32.xlu0 %v3981_v11, %s6991_s30 }
0x1644   :  { %v4007_v24 = vpop.f32.mrf.mxu1 }
0x1649   :  { %4030 = vrot.lane.b32.xlu0 %v4007_v24, %s6991_s30 }
0x1675   :  { %v4013_v35 = vpop.permute.xlu0 %4012 }
0x1676   :  { %v4034_v46 = vsel %vm471_vm15, %v3501_v9, %v4013_v35 }
0x167d   :  { %v4021_v29 = vpop.permute.xlu1 %4020 }
0x167e   :  { %v4036_v2 = vsel %vm1133_vm10, %v4034_v46, %v4021_v29  ;;  %v2415_v29 = vld [vmem:[%s9209_s7 + $0xe8] sm:$0xff] }
0x167f   :  { %4203 = vmatpush.msra.mxu3 %v2415_v29 }
0x1689   :  { %v4015_v28 = vpop.permute.xlu2 %4014 }
0x168a   :  { %v4035_v49 = vsel %vm471_vm15, %v3527_v22, %v4015_v28  ;;  %v2413_v28 = vld [vmem:[%s9209_s7 + $0xd8] sm:$0xff] }
0x16a9   :  { %v4023_v32 = vpop.permute.xlu1 %4022 }
0x16aa   :  { %v4037_v13 = vsel %vm1133_vm10, %v4035_v49, %v4023_v32 }
0x16b3   :  { %v4029_v19 = vpop.permute.xlu0 %4028 }
0x16b4   :  { %v4038_v31 = vsel %vm1136_vm11, %v4036_v2, %v4029_v19  ;;  %v2414_v2 = vld [vmem:[%s9209_s7 + $0xe0] sm:$0xff] }
0x16b5   :  { %6422 = vmatmul.msk.f32.vlgmr.msrb.gmra.mxu2 %vm348_vm1, %v4038_v31  ;;  %4204 = vmatpush.msra.mxu3 %v2414_v2 }
0x16b7   :  { %4205 = vmatpush.msra.mxu3 %v2413_v28 }
0x16bb   :  { %v4031_v47 = vpop.permute.xlu0 %4030 }
0x16bc   :  { %v4039_v40 = vsel %vm1136_vm11, %v4037_v13, %v4031_v47 }
0x16bd   :  { %6423 = vmatmul.msk.f32.gmra.mxu2 %vm348_vm1, %v4039_v40 }
0x1738   :  { %v4064_v0 = vpop.f32.mrf.mxu2 }
0x1739   :  { %v4065_v36 = vadd.f32 %v4064_v0, %v4040_v30  ;;  %v6916_v0 = vld [vmem:[%s9210_s8] sm:$0xff] }
0x173b   :  { %v8483_v51 = vadd.f32 %v4065_v36, %v8236_v37  ;;  %v4116_v36 = vperm.slane %v6916_v0, 4 }
0x173d   :  { %v4072_v38 = vsel %vm348_vm1, %v8483_v51, 0.0 }
0x173e   :  { %4073 = vadd.xlane.f32.xlu2 %v4072_v38 }
0x1740   :  { %v4067_v53 = vpop.f32.mrf.mxu2 }
0x1741   :  { %v4068_v52 = vadd.f32 %v4067_v53, %v4040_v30 }
0x1743   :  { %v8488_v57 = vadd.f32 %v4068_v52, %v8252_v59 }
0x1745   :  { %v4075_v18 = vsel %vm348_vm1, %v8488_v57, 0.0 }
0x1746   :  { %4076 = vadd.xlane.f32.xlu1 %v4075_v18 }
0x17b1   :  { %v4074_v33 = vpop.xlane.xlu2 %4073 }
0x17b2   :  { %v4078_v63 = vmul.f32 %v4074_v33, %v7194_v10 }
0x17b4   :  { %v8494_v3 = vsub.f32 %v8483_v51, %v4078_v63 }
0x17b6   :  { %v4082_v37 = vmul.f32 %v8494_v3, %v8494_v3  ;;  %v4117_v63 = vmul.f32 %v4116_v36, %v8494_v3 }
0x17b8   :  { %v4084_v4 = vsel %vm348_vm1, %v4082_v37, 0.0 }
0x17b9   :  { %v4077_v21 = vpop.xlane.xlu1 %4076  ;;  %4085 = vadd.xlane.f32.xlu0 %v4084_v4 }
0x17ba   :  { %v4079_v59 = vmul.f32 %v4077_v21, %v7194_v10  ;;  %v4151_v21 = vperm.slane %v6916_v0, 5  ;;  %v6430_v0 = vld [vmem:[%s9209_s7 + $0x110] sm:$0xff] }
0x17bc   :  { %v8501_v12 = vsub.f32 %v8488_v57, %v4079_v59 }
0x17be   :  { %v4083_v39 = vmul.f32 %v8501_v12, %v8501_v12 }
0x17c0   :  { %v4087_v16 = vsel %vm348_vm1, %v4083_v39, 0.0 }
0x17c1   :  { %4088 = vadd.xlane.f32.xlu2 %v4087_v16 }
0x182c   :  { %v4086_v48 = vpop.xlane.xlu0 %4085 }
0x182d   :  { %v4090_v6 = vmul.f32 0.032258064, %v4086_v48 }
0x182f   :  { %6806 = vrsqrt.f32 %v4090_v6  ;;  %vm4099_vm8 = vcmp.eq.f32.partialorder %v4090_v6, inf  ;;  %v4102_v26 = vand.u32 2147483648, %v4090_v6  ;;  %vm4101_vm9 = vcmp.eq.f32.partialorder %v4090_v6, 0.0 }
0x1834   :  { %v4089_v8 = vpop.xlane.xlu2 %4088 }
0x1835   :  { %v6807_v45 = vpop.eup %6806  ;;  %v4091_v55 = vmul.f32 0.032258064, %v4089_v8  ;;  %v4118_v8 = vmul.f32 %v4116_v36, %v8501_v12  ;;  %v2410_v12 = vld [vmem:[%s9209_s7 + $0xc0] sm:$0xff]  ;;  %v6429_v36 = vld [vmem:[%s9209_s7 + $0x108] sm:$0xff] }
0x1836   :  { %v4093_v25 = vmul.f32 %v6807_v45, %v4090_v6 }
0x1837   :  { %6808 = vrsqrt.f32 %v4091_v55  ;;  %vm4111_vm12 = vcmp.eq.f32.partialorder %v4091_v55, inf  ;;  %v4114_v31 = vand.u32 2147483648, %v4091_v55  ;;  %vm4113_vm14 = vcmp.eq.f32.partialorder %v4091_v55, 0.0 }
0x1838   :  { %v4094_v14 = vmul.f32 %v6807_v45, %v4093_v25 }
0x183a   :  { %v4095_v15 = vmul.f32 0.5, %v4094_v14 }
0x183c   :  { %v4096_v44 = vsub.f32 1.5, %v4095_v15  ;;  %v2412_v15 = vld [vmem:[%s9209_s7 + $0xd0] sm:$0xff] }
0x183d   :  { %v6809_v9 = vpop.eup %6808  ;;  %4206 = vmatpush.msra.mxu3 %v2412_v15 }
0x183e   :  { %v4097_v58 = vmul.f32 %v6807_v45, %v4096_v44  ;;  %v4105_v5 = vmul.f32 %v6809_v9, %v4091_v55  ;;  %v2411_v44 = vld [vmem:[%s9209_s7 + $0xc8] sm:$0xff] }
0x183f   :  { %4207 = vmatpush.msra.mxu3 %v2411_v44 }
0x1840   :  { %v4098_v22 = vmul.f32 %v4097_v58, %v4090_v6  ;;  %v4106_v20 = vmul.f32 %v6809_v9, %v4105_v5 }
0x1841   :  { %4208 = vmatpush.msra.mxu3 %v2410_v12 }
0x1842   :  { %v4100_v11 = vsel %vm4099_vm8, %v4090_v6, %v4098_v22  ;;  %v4107_v24 = vmul.f32 0.5, %v4106_v20 }
0x1843   :  { %v4103_v23 = vsel %vm4101_vm9, %v4102_v26, %v4100_v11 }
0x1844   :  { %v4119_v17 = vadd.f32 1e-06, %v4103_v23  ;;  %v4108_v35 = vsub.f32 1.5, %v4107_v24  ;;  %v6917_v24 = vld [vmem:[%s9210_s8 + $0x8] sm:$0xff] }
0x1845   :  { %v4186_v23 = vperm.slane %v6917_v24, 4 }
0x1846   :  { %6810 = vrcp.f32 %v4119_v17  ;;  %v4109_v46 = vmul.f32 %v6809_v9, %v4108_v35  ;;  %v4132_v38 = vand.u32 2147483648, %v4119_v17  ;;  %v4130_v52 = vand.u32 2147483647, %v4119_v17 }
0x1847   :  { %vm4126_vm3 = vweird.f32 %v4119_v17  ;;  %v4154_v9 = vperm.slane %v8316_v1, 3 }
0x1848   :  { %v4110_v19 = vmul.f32 %v4109_v46, %v4091_v55  ;;  %v4133_v37 = vor.u32 1.1754944e-38, %v4132_v38  ;;  %vm4131_vm0 = vcmp.eq.f32.partialorder %v4130_v52, 8.507059e+37 }
0x184a   :  { %v4112_v32 = vsel %vm4111_vm12, %v4091_v55, %v4110_v19 }
0x184b   :  { %v4115_v49 = vsel %vm4113_vm14, %v4114_v31, %v4112_v32 }
0x184c   :  { %v6811_v13 = vpop.eup %6810  ;;  %v4120_v47 = vadd.f32 1e-06, %v4115_v49 }
0x184d   :  { %v4122_v40 = vmul.f32 %v6811_v13, %v4119_v17  ;;  %vm4127_vm2 = vweird.f32 %v6811_v13 }
0x184e   :  { %6812 = vrcp.f32 %v4120_v47  ;;  %vm4128_vm4 = vmor %vm4126_vm3, %vm4127_vm2  ;;  %v4147_v60 = vand.u32 2147483648, %v4120_v47  ;;  %v4145_v62 = vand.u32 2147483647, %v4120_v47  ;;  %vm4141_vm6 = vweird.f32 %v4120_v47 }
0x184f   :  { %v4123_v30 = vsub.f32 1.0, %v4122_v40 }
0x1850   :  { %v4148_v3 = vor.u32 1.1754944e-38, %v4147_v60  ;;  %vm4146_vm8 = vcmp.eq.f32.partialorder %v4145_v62, 8.507059e+37 }
0x1851   :  { %v4124_v53 = vmul.f32 %v6811_v13, %v4123_v30  ;;  %v6431_v30 = vld [vmem:[%s9209_s7 + $0x118] sm:$0xff] }
0x1852   :  { %4355 = vmatpush.msrb.mxu1 %v6431_v30 }
0x1853   :  { %v4125_v18 = vadd.f32 %v6811_v13, %v4124_v53  ;;  %v6428_v53 = vld [vmem:[%s9209_s7 + $0x100] sm:$0xff] }
0x1854   :  { %v6813_v33 = vpop.eup %6812  ;;  %4356 = vmatpush.msrb.mxu1 %v6430_v0 }
0x1855   :  { %v4129_v4 = vsel %vm4128_vm4, %v6811_v13, %v4125_v18  ;;  %v4137_v59 = vmul.f32 %v6813_v33, %v4120_v47  ;;  %vm4142_vm5 = vweird.f32 %v6813_v33 }
0x1856   :  { %v4134_v39 = vsel %vm4131_vm0, %v4133_v37, %v4129_v4  ;;  %vm4143_vm7 = vmor %vm4141_vm6, %vm4142_vm5  ;;  %4357 = vmatpush.msrb.mxu1 %v6429_v36 }
0x1857   :  { %v4135_v16 = vmul.f32 %v4134_v39, %v4117_v63  ;;  %v4138_v42 = vsub.f32 1.0, %v4137_v59 }
0x1858   :  { %4358 = vmatpush.msrb.mxu1 %v6428_v53 }
0x1859   :  { %v4152_v56 = vadd.f32 %v4151_v21, %v4135_v16  ;;  %v4139_v48 = vmul.f32 %v6813_v33, %v4138_v42 }
0x185b   :  { %6424 = vmatmul.msk.f32.vlgmr.msra.gmra.mxu0 %vm348_vm1, %v4152_v56  ;;  %v4140_v6 = vadd.f32 %v6813_v33, %v4139_v48 }
0x185d   :  { %v4144_v45 = vsel %vm4143_vm7, %v6813_v33, %v4140_v6 }
0x185e   :  { %v4149_v55 = vsel %vm4146_vm8, %v4148_v3, %v4144_v45 }
0x185f   :  { %v4150_v25 = vmul.f32 %v4149_v55, %v4118_v8 }
0x1861   :  { %v4153_v14 = vadd.f32 %v4151_v21, %v4150_v25 }
0x1863   :  { %6425 = vmatmul.msk.f32.gmra.mxu0 %vm348_vm1, %v4153_v14 }
0x18d8   :  { %v4178_v58 = vpop.f32.mrf.mxu0 }
0x18d9   :  { %v4179_v5 = vadd.f32 %v4178_v58, %v4154_v9  ;;  %v8594_v58 = vld [vmem:[%s9210_s8 + $0x10] sm:$0xff] }
0x18db   :  { %v4184_v22 = vmax.f32 %v4179_v5, 0.0 }
0x18dd   :  { %6426 = vmatmul.msk.f32.vlgmr.msra.gmra.mxu3 %vm1286_vm13, %v4184_v22 }
0x18e0   :  { %v4181_v20 = vpop.f32.mrf.mxu0 }
0x18e1   :  { %v4182_v26 = vadd.f32 %v4181_v20, %v4154_v9  ;;  %v4298_v20 = vperm.slane %v8594_v58, 0 }
0x18e3   :  { %v4185_v11 = vmax.f32 %v4182_v26, 0.0 }
0x18e5   :  { %6427 = vmatmul.msk.f32.gmra.mxu3 %vm1286_vm13, %v4185_v11 }
0x1960   :  { %v4210_v27 = vpop.f32.mrf.mxu3 }
0x1961   :  { %v4211_v34 = vadd.f32 %v4210_v27, %v4186_v23 }
0x1963   :  { %v8556_v17 = vadd.f32 %v4211_v34, %v8483_v51 }
0x1965   :  { %v4254_v1 = vsel %vm348_vm1, %v8556_v17, 0.0 }
0x1966   :  { %4255 = vadd.xlane.f32.xlu1 %v4254_v1 }
0x1968   :  { %v4213_v35 = vpop.f32.mrf.mxu3 }
0x1969   :  { %v4214_v29 = vadd.f32 %v4213_v35, %v4186_v23 }
0x196b   :  { %v8561_v46 = vadd.f32 %v4214_v29, %v8488_v57  ;;  %v4333_v29 = vperm.slane %v8594_v58, 1 }
0x196d   :  { %v4257_v2 = vsel %vm348_vm1, %v8561_v46, 0.0 }
0x196e   :  { %4258 = vadd.xlane.f32.xlu0 %v4257_v2 }
0x19d9   :  { %v4256_v19 = vpop.xlane.xlu1 %4255 }
0x19da   :  { %v4260_v31 = vmul.f32 %v4256_v19, %v7194_v10 }
0x19dc   :  { %v8567_v28 = vsub.f32 %v8556_v17, %v4260_v31 }
0x19de   :  { %v4264_v51 = vmul.f32 %v8567_v28, %v8567_v28  ;;  %v4299_v34 = vmul.f32 %v4298_v20, %v8567_v28 }
0x19e0   :  { %v4266_v32 = vsel %vm348_vm1, %v4264_v51, 0.0 }
0x19e1   :  { %4267 = vadd.xlane.f32.xlu2 %v4266_v32  ;;  %v4259_v49 = vpop.xlane.xlu0 %4258 }
0x19e2   :  { %v4261_v57 = vmul.f32 %v4259_v49, %v7194_v10 }
0x19e4   :  { %v8574_v13 = vsub.f32 %v8561_v46, %v4261_v57 }
0x19e6   :  { %v4265_v47 = vmul.f32 %v8574_v13, %v8574_v13  ;;  %v4300_v30 = vmul.f32 %v4298_v20, %v8574_v13 }
0x19e8   :  { %v4269_v40 = vsel %vm348_vm1, %v4265_v47, 0.0 }
0x19e9   :  { %4270 = vadd.xlane.f32.xlu1 %v4269_v40 }
0x1a54   :  { %v4268_v38 = vpop.xlane.xlu2 %4267 }
0x1a55   :  { %v4272_v52 = vmul.f32 0.032258064, %v4268_v38 }
0x1a57   :  { %6814 = vrsqrt.f32 %v4272_v52  ;;  %vm4281_vm9 = vcmp.eq.f32.partialorder %v4272_v52, inf  ;;  %v4284_v48 = vand.u32 2147483648, %v4272_v52  ;;  %vm4283_vm12 = vcmp.eq.f32.partialorder %v4272_v52, 0.0 }
0x1a5c   :  { %v4271_v18 = vpop.xlane.xlu1 %4270 }
0x1a5d   :  { %v6815_v33 = vpop.eup %6814  ;;  %v4273_v63 = vmul.f32 0.032258064, %v4271_v18 }
0x1a5e   :  { %v4275_v37 = vmul.f32 %v6815_v33, %v4272_v52 }
0x1a5f   :  { %6816 = vrsqrt.f32 %v4273_v63  ;;  %vm4293_vm14 = vcmp.eq.f32.partialorder %v4273_v63, inf  ;;  %v4296_v14 = vand.u32 2147483648, %v4273_v63  ;;  %vm4295_vm2 = vcmp.eq.f32.partialorder %v4273_v63, 0.0 }
0x1a60   :  { %v4276_v4 = vmul.f32 %v6815_v33, %v4275_v37 }
0x1a62   :  { %v4277_v21 = vmul.f32 0.5, %v4276_v4 }
0x1a64   :  { %v4278_v59 = vsub.f32 1.5, %v4277_v21 }
0x1a65   :  { %v6817_v39 = vpop.eup %6816 }
0x1a66   :  { %v4279_v16 = vmul.f32 %v6815_v33, %v4278_v59  ;;  %v4287_v42 = vmul.f32 %v6817_v39, %v4273_v63 }
0x1a68   :  { %v4280_v60 = vmul.f32 %v4279_v16, %v4272_v52  ;;  %v4288_v56 = vmul.f32 %v6817_v39, %v4287_v42 }
0x1a6a   :  { %v4282_v62 = vsel %vm4281_vm9, %v4272_v52, %v4280_v60  ;;  %v4289_v6 = vmul.f32 0.5, %v4288_v56  ;;  %v4336_v52 = vperm.slane %v8594_v58, 6 }
0x1a6b   :  { %v4285_v3 = vsel %vm4283_vm12, %v4284_v48, %v4282_v62 }
0x1a6c   :  { %v4301_v8 = vadd.f32 1e-06, %v4285_v3  ;;  %v4290_v45 = vsub.f32 1.5, %v4289_v6 }
0x1a6e   :  { %6818 = vrcp.f32 %v4301_v8  ;;  %v4291_v55 = vmul.f32 %v6817_v39, %v4290_v45  ;;  %v4314_v26 = vand.u32 2147483648, %v4301_v8  ;;  %v4312_v24 = vand.u32 2147483647, %v4301_v8 }
0x1a6f   :  { %vm4308_vm4 = vweird.f32 %v4301_v8 }
0x1a70   :  { %v4292_v25 = vmul.f32 %v4291_v55, %v4273_v63  ;;  %v4315_v1 = vor.u32 1.1754944e-38, %v4314_v26  ;;  %vm4313_vm5 = vcmp.eq.f32.partialorder %v4312_v24, 8.507059e+37 }
0x1a72   :  { %v4294_v15 = vsel %vm4293_vm14, %v4273_v63, %v4292_v25 }
0x1a73   :  { %v4297_v44 = vsel %vm4295_vm2, %v4296_v14, %v4294_v15 }
0x1a74   :  { %v6819_v12 = vpop.eup %6818  ;;  %v4302_v9 = vadd.f32 1e-06, %v4297_v44 }
0x1a75   :  { %v4304_v5 = vmul.f32 %v6819_v12, %v4301_v8  ;;  %vm4309_vm3 = vweird.f32 %v6819_v12 }
0x1a76   :  { %6820 = vrcp.f32 %v4302_v9  ;;  %vm4310_vm0 = vmor %vm4308_vm4, %vm4309_vm3  ;;  %v4329_v32 = vand.u32 2147483648, %v4302_v9  ;;  %v4327_v47 = vand.u32 2147483647, %v4302_v9  ;;  %vm4323_vm7 = vweird.f32 %v4302_v9 }
0x1a77   :  { %v4305_v22 = vsub.f32 1.0, %v4304_v5 }
0x1a78   :  { %v4330_v28 = vor.u32 1.1754944e-38, %v4329_v32  ;;  %vm4328_vm9 = vcmp.eq.f32.partialorder %v4327_v47, 8.507059e+37 }
0x1a79   :  { %v4306_v11 = vmul.f32 %v6819_v12, %v4305_v22 }
0x1a7b   :  { %v4307_v23 = vadd.f32 %v6819_v12, %v4306_v11 }
0x1a7c   :  { %v6821_v27 = vpop.eup %6820 }
0x1a7d   :  { %v4311_v35 = vsel %vm4310_vm0, %v6819_v12, %v4307_v23  ;;  %v4319_v2 = vmul.f32 %v6821_v27, %v4302_v9  ;;  %vm4324_vm6 = vweird.f32 %v6821_v27 }
0x1a7e   :  { %v4316_v19 = vsel %vm4313_vm5, %v4315_v1, %v4311_v35  ;;  %vm4325_vm8 = vmor %vm4323_vm7, %vm4324_vm6 }
0x1a7f   :  { %v4317_v31 = vmul.f32 %v4316_v19, %v4299_v34  ;;  %v4320_v51 = vsub.f32 1.0, %v4319_v2 }
0x1a81   :  { %v4334_v49 = vadd.f32 %v4333_v29, %v4317_v31  ;;  %v4321_v57 = vmul.f32 %v6821_v27, %v4320_v51 }
0x1a83   :  { %6462 = vmatmul.msk.f32.vlgmr.msrb.gmra.mxu1 %vm348_vm1, %v4334_v49  ;;  %v4322_v40 = vadd.f32 %v6821_v27, %v4321_v57 }
0x1a85   :  { %v4326_v0 = vsel %vm4325_vm8, %v6821_v27, %v4322_v40 }
0x1a86   :  { %v4331_v36 = vsel %vm4328_vm9, %v4330_v28, %v4326_v0 }
0x1a87   :  { %v4332_v38 = vmul.f32 %v4331_v36, %v4300_v30 }
0x1a89   :  { %v4335_v53 = vadd.f32 %v4333_v29, %v4332_v38 }
0x1a8b   :  { %6463 = vmatmul.msk.f32.gmra.mxu1 %vm348_vm1, %v4335_v53 }
0x1b00   :  { %v4360_v18 = vpop.f32.mrf.mxu1 }
0x1b01   :  { %v8603_v33 = vadd.f32 %v4360_v18, %v4336_v52 }
0x1b03   :  { %4367 = vrot.lane.b32.xlu0 %v8603_v33, %s9246_s20 }
0x1b08   :  { %v4363_v63 = vpop.f32.mrf.mxu1 }
0x1b09   :  { %v8607_v37 = vadd.f32 %v4363_v63, %v4336_v52 }
0x1b0b   :  { %4554 = vrot.lane.b32.xlu1 %v8607_v37, %s9247_s24  ;;  %4394 = vrot.lane.b32.xlu2 %v8607_v37, %s9246_s20  ;;  %v8671_v36 = vpack.i.bf16 %v8607_v37, %v8603_v33 }
0x1b0c   :  { %4524 = vrot.lane.b32.xlu0 %v8603_v33, %s9248_s4 }
0x1b13   :  { %4714 = vrot.lane.b32.xlu1 %v8607_v37, %s9250_s23  ;;  %4526 = vrot.lane.b32.xlu2 %v8603_v33, %s9247_s24 }
0x1b14   :  { %4552 = vrot.lane.b32.xlu0 %v8607_v37, %s9248_s4 }
0x1b1b   :  { %4684 = vrot.lane.b32.xlu1 %v8603_v33, %s9251_s15  ;;  %4712 = vrot.lane.b32.xlu2 %v8607_v37, %s9251_s15 }
0x1b1c   :  { %4686 = vrot.lane.b32.xlu0 %v8603_v33, %s9250_s23 }
0x1b23   :  { %4846 = vrot.lane.b32.xlu1 %v8603_v33, %s9252_s28  ;;  %4874 = vrot.lane.b32.xlu2 %v8607_v37, %s9252_s28 }
0x1b24   :  { %4872 = vrot.lane.b32.xlu0 %v8607_v37, %s9249_s19 }
0x1b2b   :  { %4844 = vrot.lane.b32.xlu2 %v8603_v33, %s9249_s19 }
0x1b65   :  { %v4395_v13 = vpop.permute.xlu2 %4394 }
0x1b66   :  { %6466 = vmatpush.xpose.msk.msrb.mxu0 %vm471_vm15, %v4395_v13 }
0x1b69   :  { %6467 = vmatmul.msk.f32.vlgmr.msrb.gmra.mxu0 %vm471_vm15, %v8607_v37 }
0x1b6d   :  { %v4527_v4 = vpop.permute.xlu2 %4526 }
0x1b6e   :  { %6470 = vmatpush.xpose.msk.msra.mxu0 %vm471_vm15, %v4527_v4 }
0x1b75   :  { %v4368_v21 = vpop.permute.xlu0 %4367  ;;  %v4713_v59 = vpop.permute.xlu2 %4712 }
0x1b76   :  { %6464 = vmatpush.xpose.msk.msra.mxu2 %vm471_vm15, %v4368_v21 }
0x1b79   :  { %6465 = vmatmul.msk.f32.vlgmr.msra.gmra.mxu2 %vm471_vm15, %v8603_v33 }
0x1b7d   :  { %v4555_v39 = vpop.permute.xlu1 %4554  ;;  %v4875_v56 = vpop.permute.xlu2 %4874 }
0x1b7e   :  { %v4525_v16 = vpop.permute.xlu0 %4524  ;;  %6472 = vmatpush.xpose.msk.msrb.mxu3 %vm471_vm15, %v4555_v39 }
0x1b7f   :  { %6471 = vmatmul.msk.f32.vlgmr.msra.gmra.mxu0 %vm471_vm15, %v4525_v16 }
0x1b85   :  { %v4715_v42 = vpop.permute.xlu1 %4714  ;;  %v4845_v8 = vpop.permute.xlu2 %4844 }
0x1b86   :  { %v4553_v60 = vpop.permute.xlu0 %4552  ;;  %6478 = vmatpush.xpose.msk.msra.mxu3 %vm471_vm15, %v4715_v42 }
0x1b87   :  { %6473 = vmatmul.msk.f32.vlgmr.msrb.gmra.mxu3 %vm471_vm15, %v4553_v60 }
0x1b8a   :  { %6484 = vmatpush.xpose.msk.msrb.mxu3 %vm471_vm15, %v4875_v56 }
0x1b8d   :  { %v4685_v48 = vpop.permute.xlu1 %4684 }
0x1b8e   :  { %v4687_v62 = vpop.permute.xlu0 %4686 }
0x1b8f   :  { %6476 = vmatpush.xpose.msk.msrb.mxu0 %vm471_vm15, %v4687_v62  ;;  %6479 = vmatmul.msk.f32.vlgmr.msra.gmra.mxu3 %vm471_vm15, %v4713_v59 }
0x1b92   :  { %6477 = vmatmul.msk.f32.vlgmr.msrb.gmra.mxu0 %vm471_vm15, %v4685_v48 }
0x1b95   :  { %v4847_v6 = vpop.permute.xlu1 %4846 }
0x1b96   :  { %v4873_v3 = vpop.permute.xlu0 %4872  ;;  %6482 = vmatpush.xpose.msk.msra.mxu0 %vm471_vm15, %v4847_v6 }
0x1b97   :  { %6485 = vmatmul.msk.f32.vlgmr.msrb.gmra.mxu3 %vm471_vm15, %v4873_v3 }
0x1b9a   :  { %6483 = vmatmul.msk.f32.vlgmr.msra.gmra.mxu0 %vm471_vm15, %v4845_v8 }
0x1be6   :  { %v4417_v45 = vpop.f32.mrf.mxu0 }
0x1be7   :  { %v4421_v55 = vmul.f32 0.35355338, %v4417_v45 }
0x1be9   :  { %v4423_v25 = vadd.f32 %v4421_v55, %v8099_v7 }
0x1beb   :  { %v4427_v14 = vsel %vm471_vm15, %v4423_v25, -inf }
0x1bec   :  { %4428 = vmax.xlane.f32.xlu1 %v4427_v14 }
0x1bfc   :  { %v4549_v15 = vpop.f32.mrf.mxu0  ;;  %v4390_v44 = vpop.f32.mrf.mxu2 }
0x1bfd   :  { %v4580_v12 = vmul.f32 0.35355338, %v4549_v15  ;;  %v4420_v9 = vmul.f32 0.35355338, %v4390_v44 }
0x1bff   :  { %v4582_v5 = vadd.f32 %v4580_v12, %v8091_v43  ;;  %v4422_v22 = vadd.f32 %v4420_v9, %v8091_v43 }
0x1c01   :  { %v4584_v20 = vsel %vm471_vm15, %v4582_v5, -inf  ;;  %v4424_v26 = vsel %vm471_vm15, %v4422_v22, -inf }
0x1c02   :  { %4585 = vmax.xlane.f32.xlu2 %v4584_v20  ;;  %4425 = vmax.xlane.f32.xlu0 %v4424_v26 }
0x1c0a   :  { %v4577_v11 = vpop.f32.mrf.mxu3 }
0x1c0b   :  { %v4581_v24 = vmul.f32 0.35355338, %v4577_v11 }
0x1c0d   :  { %v4583_v23 = vadd.f32 %v4581_v24, %v8099_v7 }
0x1c0f   :  { %v4709_v27 = vpop.f32.mrf.mxu0  ;;  %v4587_v34 = vsel %vm471_vm15, %v4583_v23, -inf }
0x1c10   :  { %v4740_v1 = vmul.f32 0.35355338, %v4709_v27  ;;  %4588 = vmax.xlane.f32.xlu0 %v4587_v34 }
0x1c12   :  { %v4742_v35 = vadd.f32 %v4740_v1, %v8091_v43  ;;  %v4737_v29 = vpop.f32.mrf.mxu3 }
0x1c13   :  { %v4741_v2 = vmul.f32 0.35355338, %v4737_v29 }
0x1c14   :  { %v4744_v19 = vsel %vm471_vm15, %v4742_v35, -inf }
0x1c15   :  { %v4743_v31 = vadd.f32 %v4741_v2, %v8099_v7  ;;  %4745 = vmax.xlane.f32.xlu1 %v4744_v19 }
0x1c17   :  { %v4869_v51 = vpop.f32.mrf.mxu0  ;;  %v4747_v32 = vsel %vm471_vm15, %v4743_v31, -inf }
0x1c18   :  { %v4900_v49 = vmul.f32 0.35355338, %v4869_v51  ;;  %4748 = vmax.xlane.f32.xlu2 %v4747_v32 }
0x1c1a   :  { %v4902_v57 = vadd.f32 %v4900_v49, %v8091_v43  ;;  %v4897_v47 = vpop.f32.mrf.mxu3 }
0x1c1b   :  { %v4901_v40 = vmul.f32 0.35355338, %v4897_v47 }
0x1c1c   :  { %v4904_v28 = vsel %vm471_vm15, %v4902_v57, -inf }
0x1c1d   :  { %v4903_v30 = vadd.f32 %v4901_v40, %v8099_v7  ;;  %4905 = vmax.xlane.f32.xlu0 %v4904_v28 }
0x1c1f   :  { %v4907_v0 = vsel %vm471_vm15, %v4903_v30, -inf }
0x1c20   :  { %4908 = vmax.xlane.f32.xlu1 %v4907_v0 }
0x1c30   :  { %6577 = vrot.lane.b32.xlu2 %v8671_v36, %s9255_s25 }
0x1c5f   :  { %v4429_v38 = vpop.xlane.xlu1 %4428 }
0x1c60   :  { %v4431_v53 = vsub.f32 %v4423_v25, %v4429_v38 }
0x1c62   :  { %v4434_v43 = vmul.f32 1.442695, %v4431_v53 }
0x1c64   :  { %6822 = vpow2.f32 %v4434_v43 }
0x1c6a   :  { %v8675_v52 = vpop.eup %6822 }
0x1c6b   :  { %v4439_v7 = vsel %vm471_vm15, %v8675_v52, 0.0 }
0x1c6c   :  { %4440 = vadd.xlane.f32.xlu0 %v4439_v7 }
0x1c75   :  { %v4586_v18 = vpop.xlane.xlu2 %4585  ;;  %v4426_v63 = vpop.xlane.xlu0 %4425 }
0x1c76   :  { %v4590_v13 = vsub.f32 %v4582_v5, %v4586_v18  ;;  %v4430_v4 = vsub.f32 %v4422_v22, %v4426_v63 }
0x1c78   :  { %v4592_v21 = vmul.f32 1.442695, %v4590_v13  ;;  %v4432_v33 = vmul.f32 1.442695, %v4430_v4 }
0x1c7a   :  { %6824 = vpow2.f32 %v4592_v21 }
0x1c7b   :  { %6826 = vpow2.f32 %v4432_v33 }
0x1c80   :  { %v8679_v37 = vpop.eup %6824 }
0x1c81   :  { %v8681_v59 = vpop.eup %6826  ;;  %v4596_v39 = vsel %vm471_vm15, %v8679_v37, 0.0 }
0x1c82   :  { %4597 = vadd.xlane.f32.xlu1 %v4596_v39  ;;  %v4436_v16 = vsel %vm471_vm15, %v8681_v59, 0.0 }
0x1c83   :  { %4437 = vadd.xlane.f32.xlu2 %v4436_v16  ;;  %v4589_v42 = vpop.xlane.xlu0 %4588 }
0x1c84   :  { %v4591_v60 = vsub.f32 %v4583_v23, %v4589_v42 }
0x1c86   :  { %v4594_v56 = vmul.f32 1.442695, %v4591_v60 }
0x1c88   :  { %6828 = vpow2.f32 %v4594_v56  ;;  %v4746_v48 = vpop.xlane.xlu1 %4745 }
0x1c89   :  { %v4750_v62 = vsub.f32 %v4742_v35, %v4746_v48 }
0x1c8b   :  { %v4752_v6 = vmul.f32 1.442695, %v4750_v62  ;;  %v4749_v3 = vpop.xlane.xlu2 %4748 }
0x1c8c   :  { %v4751_v8 = vsub.f32 %v4743_v31, %v4749_v3 }
0x1c8d   :  { %6830 = vpow2.f32 %v4752_v6 }
0x1c8e   :  { %v8687_v45 = vpop.eup %6828  ;;  %v4754_v55 = vmul.f32 1.442695, %v4751_v8 }
0x1c8f   :  { %v4599_v25 = vsel %vm471_vm15, %v8687_v45, 0.0 }
0x1c90   :  { %6832 = vpow2.f32 %v4754_v55  ;;  %4600 = vadd.xlane.f32.xlu2 %v4599_v25  ;;  %v4906_v14 = vpop.xlane.xlu0 %4905 }
0x1c91   :  { %v4910_v15 = vsub.f32 %v4902_v57, %v4906_v14 }
0x1c93   :  { %v8691_v44 = vpop.eup %6830  ;;  %v4912_v12 = vmul.f32 1.442695, %v4910_v15  ;;  %v6578_v9 = vpop.permute.xlu2 %6577 }
0x1c94   :  { %v4909_v5 = vpop.xlane.xlu1 %4908  ;;  %v6580_v22 = vunpack.i.h.bf16 %v6578_v9  ;;  %v6579_v20 = vunpack.i.l.bf16 %v6578_v9  ;;  %v4756_v11 = vsel %vm471_vm15, %v8691_v44, 0.0 }
0x1c95   :  { %v4911_v26 = vsub.f32 %v4903_v30, %v4909_v5  ;;  %6834 = vpow2.f32 %v4912_v12  ;;  %4757 = vadd.xlane.f32.xlu0 %v4756_v11 }
0x1c96   :  { %v8695_v24 = vpop.eup %6832  ;;  %4493 = vmatpush.msra.mxu1 %v6579_v20  ;;  %4519 = vmatpush.msrb.mxu2 %v6580_v22 }
0x1c97   :  { %v4914_v23 = vmul.f32 1.442695, %v4911_v26  ;;  %v4759_v27 = vsel %vm471_vm15, %v8695_v24, 0.0 }
0x1c98   :  { %4760 = vadd.xlane.f32.xlu1 %v4759_v27 }
0x1c99   :  { %6836 = vpow2.f32 %v4914_v23 }
0x1c9b   :  { %v8699_v34 = vpop.eup %6834 }
0x1c9c   :  { %v4916_v1 = vsel %vm471_vm15, %v8699_v34, 0.0 }
0x1c9d   :  { %4917 = vadd.xlane.f32.xlu0 %v4916_v1 }
0x1c9f   :  { %v8703_v35 = vpop.eup %6836 }
0x1ca0   :  { %v4919_v29 = vsel %vm471_vm15, %v8703_v35, 0.0 }
0x1ca1   :  { %4920 = vadd.xlane.f32.xlu1 %v4919_v29 }
0x1ca8   :  { %6592 = vrot.lane.b32.xlu2 %v8671_v36, %s9256_s11 }
0x1cb1   :  { %6582 = vrot.lane.b32.xlu0 %v8671_v36, %s9253_s3 }
0x1cba   :  { %6587 = vrot.lane.b32.xlu1 %v8671_v36, %s9254_s27 }
0x1cdf   :  { %v4441_v2 = vpop.xlane.xlu0 %4440 }
0x1ce0   :  { %6838 = vrcp.f32 %v4441_v2  ;;  %v4468_v32 = vand.u32 2147483648, %v4441_v2  ;;  %v4466_v57 = vand.u32 2147483647, %v4441_v2  ;;  %vm4462_vm14 = vweird.f32 %v4441_v2 }
0x1ce2   :  { %v4469_v40 = vor.u32 1.1754944e-38, %v4468_v32  ;;  %vm4467_vm3 = vcmp.eq.f32.partialorder %v4466_v57, 8.507059e+37 }
0x1ce6   :  { %v6839_v19 = vpop.eup %6838 }
0x1ce7   :  { %v4458_v31 = vmul.f32 %v6839_v19, %v4441_v2  ;;  %vm4463_vm12 = vweird.f32 %v6839_v19 }
0x1ce8   :  { %vm4464_vm2 = vmor %vm4462_vm14, %vm4463_vm12 }
0x1ce9   :  { %v4459_v51 = vsub.f32 1.0, %v4458_v31 }
0x1ceb   :  { %v4460_v49 = vmul.f32 %v6839_v19, %v4459_v51 }
0x1ced   :  { %v4461_v47 = vadd.f32 %v6839_v19, %v4460_v49 }
0x1cef   :  { %v4465_v28 = vsel %vm4464_vm2, %v6839_v19, %v4461_v47 }
0x1cf0   :  { %v4470_v30 = vsel %vm4467_vm3, %v4469_v40, %v4465_v28 }
0x1cf1   :  { %v4471_v0 = vmul.f32 %v8675_v52, %v4470_v30 }
0x1cf3   :  { %6469 = vmatmul.msk.f32.vlgmr.msrb.gmra.mxu2 %vm471_vm15, %v4471_v0 }
0x1cf5   :  { %v4598_v43 = vpop.xlane.xlu1 %4597 }
0x1cf6   :  { %v4438_v36 = vpop.xlane.xlu2 %4437  ;;  %v4613_v20 = vand.u32 2147483648, %v4598_v43  ;;  %vm4607_vm8 = vweird.f32 %v4598_v43  ;;  %v4611_v26 = vand.u32 2147483647, %v4598_v43 }
0x1cf7   :  { %6840 = vrcp.f32 %v4438_v36  ;;  %v4453_v18 = vand.u32 2147483648, %v4438_v36  ;;  %v4451_v13 = vand.u32 2147483647, %v4438_v36  ;;  %vm4447_vm0 = vweird.f32 %v4438_v36 }
0x1cf8   :  { %6842 = vrcp.f32 %v4598_v43  ;;  %v4614_v19 = vor.u32 1.1754944e-38, %v4613_v20  ;;  %vm4612_vm14 = vcmp.eq.f32.partialorder %v4611_v26, 8.507059e+37 }
0x1cf9   :  { %v4454_v33 = vor.u32 1.1754944e-38, %v4453_v18  ;;  %vm4452_vm6 = vcmp.eq.f32.partialorder %v4451_v13, 8.507059e+37 }
0x1cfd   :  { %v6841_v38 = vpop.eup %6840 }
0x1cfe   :  { %v4443_v53 = vmul.f32 %v6841_v38, %v4438_v36  ;;  %vm4448_vm4 = vweird.f32 %v6841_v38  ;;  %v6843_v16 = vpop.eup %6842 }
0x1cff   :  { %vm4449_vm5 = vmor %vm4447_vm0, %vm4448_vm4  ;;  %v4603_v56 = vmul.f32 %v6843_v16, %v4598_v43  ;;  %vm4608_vm7 = vweird.f32 %v6843_v16 }
0x1d00   :  { %v4444_v7 = vsub.f32 1.0, %v4443_v53  ;;  %vm4609_vm9 = vmor %vm4607_vm8, %vm4608_vm7 }
0x1d01   :  { %v4604_v6 = vsub.f32 1.0, %v4603_v56 }
0x1d02   :  { %v4445_v63 = vmul.f32 %v6841_v38, %v4444_v7 }
0x1d03   :  { %v4601_v4 = vpop.xlane.xlu2 %4600  ;;  %v4605_v25 = vmul.f32 %v6843_v16, %v4604_v6 }
0x1d04   :  { %v4446_v21 = vadd.f32 %v6841_v38, %v4445_v63  ;;  %6844 = vrcp.f32 %v4601_v4  ;;  %v4628_v31 = vand.u32 2147483648, %v4601_v4  ;;  %vm4622_vm2 = vweird.f32 %v4601_v4 }
0x1d05   :  { %v4606_v9 = vadd.f32 %v6843_v16, %v4605_v25  ;;  %v4626_v51 = vand.u32 2147483647, %v4601_v4 }
0x1d06   :  { %v4450_v39 = vsel %vm4449_vm5, %v6841_v38, %v4446_v21  ;;  %v4629_v30 = vor.u32 1.1754944e-38, %v4628_v31 }
0x1d07   :  { %v4455_v52 = vsel %vm4452_vm6, %v4454_v33, %v4450_v39  ;;  %v4610_v27 = vsel %vm4609_vm9, %v6843_v16, %v4606_v9  ;;  %vm4627_vm4 = vcmp.eq.f32.partialorder %v4626_v51, 8.507059e+37  ;;  %v6442_v51 = vld [vmem:[%s9209_s7 + $0x170] sm:$0xff] }
0x1d08   :  { %v4456_v42 = vmul.f32 %v8681_v59, %v4455_v52  ;;  %v8716_v60 = vpop.xlane.xlu0 %4757  ;;  %v4615_v32 = vsel %vm4612_vm14, %v4614_v19, %v4610_v27 }
0x1d09   :  { %6846 = vrcp.f32 %v8716_v60  ;;  %v4616_v0 = vmul.f32 %v8679_v37, %v4615_v32  ;;  %vm4767_vm0 = vweird.f32 %v8716_v60  ;;  %v4773_v63 = vand.u32 2147483648, %v8716_v60 }
0x1d0a   :  { %6468 = vmatmul.msk.f32.vlgmr.msra.gmra.mxu1 %vm471_vm15, %v4456_v42  ;;  %v6845_v62 = vpop.eup %6844  ;;  %v4771_v39 = vand.u32 2147483647, %v8716_v60 }
0x1d0b   :  { %v8719_v48 = vpop.xlane.xlu1 %4760  ;;  %v4618_v3 = vmul.f32 %v6845_v62, %v4601_v4  ;;  %vm4623_vm12 = vweird.f32 %v6845_v62 }
0x1d0c   :  { %6848 = vrcp.f32 %v8719_v48  ;;  %vm4624_vm3 = vmor %vm4622_vm2, %vm4623_vm12  ;;  %v4788_v13 = vand.u32 2147483648, %v8719_v48  ;;  %vm4782_vm8 = vweird.f32 %v8719_v48  ;;  %v4786_v52 = vand.u32 2147483647, %v8719_v48 }
0x1d0d   :  { %v4619_v59 = vsub.f32 1.0, %v4618_v3  ;;  %vm4772_vm12 = vcmp.eq.f32.partialorder %v4771_v39, 8.507059e+37  ;;  %v6593_v3 = vpop.permute.xlu2 %6592 }
0x1d0e   :  { %vm4787_vm14 = vcmp.eq.f32.partialorder %v4786_v52, 8.507059e+37 }
0x1d0f   :  { %v8725_v55 = vpop.eup %6846  ;;  %v4620_v5 = vmul.f32 %v6845_v62, %v4619_v59 }
0x1d10   :  { %v8723_v8 = vpop.xlane.xlu0 %4917  ;;  %v4763_v12 = vmul.f32 %v8725_v55, %v8716_v60  ;;  %vm4768_vm5 = vweird.f32 %v8725_v55  ;;  %v4774_v60 = vor.u32 1.1754944e-38, %v4773_v63  ;;  %v6435_v63 = vld [vmem:[%s9209_s7 + $0x138] sm:$0xff] }
0x1d11   :  { %6850 = vrcp.f32 %v8723_v8  ;;  %v4621_v1 = vadd.f32 %v6845_v62, %v4620_v5  ;;  %vm8756_vm7 = vmor %vm4767_vm0, %vm4768_vm5  ;;  %vm4927_vm2 = vweird.f32 %v8723_v8  ;;  %v4931_v25 = vand.u32 2147483647, %v8723_v8  ;;  %5053 = vmatpush.msrb.mxu0 %v6435_v63 }
0x1d12   :  { %v8729_v15 = vpop.eup %6848  ;;  %v4764_v11 = vsub.f32 1.0, %v4763_v12  ;;  %v4933_v12 = vand.u32 2147483648, %v8723_v8 }
0x1d13   :  { %v4778_v22 = vmul.f32 %v8729_v15, %v8719_v48  ;;  %v4625_v57 = vsel %vm4624_vm3, %v6845_v62, %v4621_v1  ;;  %vm4783_vm6 = vweird.f32 %v8729_v15  ;;  %v4789_v62 = vor.u32 1.1754944e-38, %v4788_v13  ;;  %v6434_v13 = vld [vmem:[%s9209_s7 + $0x130] sm:$0xff] }
0x1d14   :  { %v8727_v14 = vpop.xlane.xlu1 %4920  ;;  %v4765_v49 = vmul.f32 %v8725_v55, %v4764_v11  ;;  %v4630_v36 = vsel %vm4627_vm4, %v4629_v30, %v4625_v57  ;;  %vm4784_vm9 = vmor %vm4782_vm8, %vm4783_vm6  ;;  %v6595_v1 = vunpack.i.h.bf16 %v6593_v3  ;;  %v4934_v19 = vor.u32 1.1754944e-38, %v4933_v12  ;;  %5054 = vmatpush.msrb.mxu0 %v6434_v13 }
0x1d15   :  { %6852 = vrcp.f32 %v8727_v14  ;;  %v4779_v29 = vsub.f32 1.0, %v4778_v22  ;;  %v4631_v21 = vmul.f32 %v8687_v45, %v4630_v36  ;;  %v4948_v9 = vand.u32 2147483648, %v8727_v14 }
0x1d16   :  { %v4766_v38 = vadd.f32 %v8725_v55, %v4765_v49  ;;  %vm4942_vm5 = vweird.f32 %v8727_v14  ;;  %v4946_v27 = vand.u32 2147483647, %v8727_v14 }
0x1d17   :  { %v8737_v23 = vpop.eup %6850  ;;  %v4780_v47 = vmul.f32 %v8729_v15, %v4779_v29  ;;  %v6594_v29 = vunpack.i.l.bf16 %v6593_v3  ;;  %v4949_v31 = vor.u32 1.1754944e-38, %v4948_v9  ;;  %v5034_v3 = vperm.slane %v8594_v58, 7 }
0x1d18   :  { %v4923_v40 = vmul.f32 %v8737_v23, %v8723_v8  ;;  %v4770_v16 = vsel %vm8756_vm7, %v8725_v55, %v4766_v38  ;;  %vm4928_vm3 = vweird.f32 %v8737_v23  ;;  %vm4932_vm7 = vcmp.eq.f32.partialorder %v4931_v25, 8.507059e+37 }
0x1d19   :  { %v4781_v53 = vadd.f32 %v8729_v15, %v4780_v47  ;;  %v4775_v48 = vsel %vm4772_vm12, %v4774_v60, %v4770_v16  ;;  %vm8781_vm0 = vmor %vm4927_vm2, %vm4928_vm3  ;;  %vm4947_vm8 = vcmp.eq.f32.partialorder %v4946_v27, 8.507059e+37  ;;  %v6440_v47 = vld [vmem:[%s9209_s7 + $0x160] sm:$0xff] }
0x1d1a   :  { %v4924_v43 = vsub.f32 1.0, %v4923_v40  ;;  %v4776_v20 = vmul.f32 %v8691_v44, %v4775_v48  ;;  %v6443_v44 = vld [vmem:[%s9209_s7 + $0x178] sm:$0xff] }
0x1d1b   :  { %v8739_v2 = vpop.eup %6852  ;;  %v4785_v42 = vsel %vm4784_vm9, %v8729_v15, %v4781_v53 }
0x1d1c   :  { %v4938_v28 = vmul.f32 %v8739_v2, %v8727_v14  ;;  %v4925_v45 = vmul.f32 %v8737_v23, %v4924_v43  ;;  %v4790_v6 = vsel %vm4787_vm14, %v4789_v62, %v4785_v42  ;;  %vm4943_vm4 = vweird.f32 %v8739_v2 }
0x1d1d   :  { %v4791_v26 = vmul.f32 %v8695_v24, %v4790_v6  ;;  %vm8787_vm6 = vmor %vm4942_vm5, %vm4943_vm4 }
0x1d1e   :  { %v4939_v7 = vsub.f32 1.0, %v4938_v28  ;;  %v4926_v55 = vadd.f32 %v8737_v23, %v4925_v45 }
0x1d20   :  { %v4940_v56 = vmul.f32 %v8739_v2, %v4939_v7  ;;  %v4930_v24 = vsel %vm8781_vm0, %v8737_v23, %v4926_v55 }
0x1d21   :  { %v4935_v23 = vsel %vm4932_vm7, %v4934_v19, %v4930_v24  ;;  %v6439_v24 = vld [vmem:[%s9209_s7 + $0x158] sm:$0xff] }
0x1d22   :  { %v4941_v59 = vadd.f32 %v8739_v2, %v4940_v56  ;;  %v4936_v49 = vmul.f32 %v8699_v34, %v4935_v23  ;;  %5167 = vmatpush.msra.mxu3 %v6439_v24  ;;  %v6436_v23 = vld [vmem:[%s9209_s7 + $0x140] sm:$0xff] }
0x1d23   :  { %v6583_v18 = vpop.permute.xlu0 %6582 }
0x1d24   :  { %v6585_v37 = vunpack.i.h.bf16 %v6583_v18  ;;  %v6584_v4 = vunpack.i.l.bf16 %v6583_v18  ;;  %v4945_v14 = vsel %vm8787_vm6, %v8739_v2, %v4941_v59  ;;  %v6441_v2 = vld [vmem:[%s9209_s7 + $0x168] sm:$0xff] }
0x1d25   :  { %v4950_v32 = vsel %vm4947_vm8, %v4949_v31, %v4945_v14  ;;  %v6438_v14 = vld [vmem:[%s9209_s7 + $0x150] sm:$0xff]  ;;  %v6437_v31 = vld [vmem:[%s9209_s7 + $0x148] sm:$0xff] }
0x1d26   :  { %4653 = vmatpush.msrb.mxu1 %v6584_v4  ;;  %4679 = vmatpush.msra.mxu2 %v6585_v37  ;;  %v4951_v57 = vmul.f32 %v8703_v35, %v4950_v32  ;;  %v6433_v37 = vld [vmem:[%s9209_s7 + $0x128] sm:$0xff]  ;;  %v6432_v4 = vld [vmem:[%s9209_s7 + $0x120] sm:$0xff] }
0x1d27   :  { %6474 = vmatmul.msk.f32.vlgmr.msrb.gmra.mxu1 %vm471_vm15, %v4616_v0  ;;  %6475 = vmatmul.msk.f32.vlgmr.msra.gmra.mxu2 %vm471_vm15, %v4631_v21 }
0x1d28   :  { %5055 = vmatpush.msrb.mxu0 %v6433_v37  ;;  %5168 = vmatpush.msra.mxu3 %v6438_v14 }
0x1d2a   :  { %5056 = vmatpush.msrb.mxu0 %v6432_v4  ;;  %5169 = vmatpush.msra.mxu3 %v6437_v31 }
0x1d2c   :  { %v6588_v15 = vpop.permute.xlu1 %6587  ;;  %5170 = vmatpush.msra.mxu3 %v6436_v23 }
0x1d2d   :  { %v6590_v5 = vunpack.i.h.bf16 %v6588_v15  ;;  %v6589_v22 = vunpack.i.l.bf16 %v6588_v15 }
0x1d2f   :  { %4813 = vmatpush.msra.mxu1 %v6589_v22  ;;  %4839 = vmatpush.msrb.mxu2 %v6590_v5 }
0x1d30   :  { %6480 = vmatmul.msk.f32.vlgmr.msra.gmra.mxu1 %vm471_vm15, %v4776_v20  ;;  %6481 = vmatmul.msk.f32.vlgmr.msrb.gmra.mxu2 %vm471_vm15, %v4791_v26 }
0x1d31   :  { %4973 = vmatpush.msrb.mxu1 %v6594_v29  ;;  %4999 = vmatpush.msra.mxu2 %v6595_v1 }
0x1d33   :  { %5191 = vmatpush.msra.mxu1 %v6443_v44 }
0x1d35   :  { %5192 = vmatpush.msra.mxu1 %v6442_v51 }
0x1d37   :  { %5193 = vmatpush.msra.mxu1 %v6441_v2 }
0x1d38   :  { %6486 = vmatmul.msk.f32.vlgmr.msrb.gmra.mxu1 %vm471_vm15, %v4936_v49  ;;  %6487 = vmatmul.msk.f32.vlgmr.msra.gmra.mxu2 %vm471_vm15, %v4951_v57 }
0x1d39   :  { %5194 = vmatpush.msra.mxu1 %v6440_v47 }
0x1d40   :  { %6492 = vmatmul.msk.f32.vlgmr.msra.gmra.mxu1 %vm348_vm1, %v8281_v61  ;;  %v8827_v61 = vld [vmem:[%s9210_s8 + $0x18] sm:$0xff] }
0x1d41   :  { %v5148_v23 = vperm.slane %v8827_v61, 0 }
0x1d48   :  { %6493 = vmatmul.msk.f32.gmra.mxu1 %vm348_vm1, %v8286_v54  ;;  %v5178_v54 = vperm.slane %v8827_v61, 1 }
0x1d76   :  { %v4521_v34 = vpop.f32.mrf.mxu2 }
0x1d87   :  { %v4495_v40 = vpop.f32.mrf.mxu1 }
0x1da4   :  { %v4655_v28 = vpop.f32.mrf.mxu1 }
0x1da5   :  { %5006 = vrot.lane.b32.xlu0 %v4655_v28, %s6989_s29 }
0x1daa   :  { %v4681_v35 = vpop.f32.mrf.mxu2 }
0x1dad   :  { %v4815_v30 = vpop.f32.mrf.mxu1  ;;  %5008 = vrot.lane.b32.xlu0 %v4681_v35, %s6989_s29 }
0x1dae   :  { %5014 = vrot.lane.b32.xlu2 %v4815_v30, %s6990_s21 }
0x1db3   :  { %v4841_v0 = vpop.f32.mrf.mxu2 }
0x1db5   :  { %v4975_v36 = vpop.f32.mrf.mxu1 }
0x1db6   :  { %5016 = vrot.lane.b32.xlu2 %v4841_v0, %s6990_s21  ;;  %5022 = vrot.lane.b32.xlu1 %v4975_v36, %s6991_s30 }
0x1dbb   :  { %v5001_v38 = vpop.f32.mrf.mxu2 }
0x1dbd   :  { %v5196_v53 = vpop.f32.mrf.mxu1 }
0x1dbe   :  { %v8830_v43 = vadd.f32 %v5196_v53, %v5178_v54  ;;  %5024 = vrot.lane.b32.xlu1 %v5001_v38, %s6991_s30 }
0x1dc0   :  { %6494 = vmatpush.xpose.msk.msrb.mxu2 %vm471_vm15, %v8830_v43 }
0x1dc5   :  { %v5199_v7 = vpop.f32.mrf.mxu1 }
0x1dc6   :  { %v8835_v18 = vadd.f32 %v5199_v7, %v5178_v54 }
0x1dc8   :  { %6496 = vmatpush.xpose.msk.msra.mxu2 %vm471_vm15, %v8835_v18 }
0x1e08   :  { %v5015_v33 = vpop.permute.xlu2 %5014 }
0x1e10   :  { %v5017_v60 = vpop.permute.xlu2 %5016 }
0x1e17   :  { %v5007_v21 = vpop.permute.xlu0 %5006 }
0x1e18   :  { %v5028_v39 = vsel %vm471_vm15, %v4495_v40, %v5007_v21 }
0x1e19   :  { %v5030_v52 = vsel %vm1133_vm10, %v5028_v39, %v5015_v33 }
0x1e1f   :  { %v5009_v45 = vpop.permute.xlu0 %5008 }
0x1e20   :  { %v5029_v56 = vsel %vm471_vm15, %v4521_v34, %v5009_v45 }
0x1e21   :  { %v5031_v62 = vsel %vm1133_vm10, %v5029_v56, %v5017_v60 }
0x1e28   :  { %v5023_v16 = vpop.permute.xlu1 %5022 }
0x1e29   :  { %v5032_v42 = vsel %vm1136_vm11, %v5030_v52, %v5023_v16 }
0x1e2a   :  { %6488 = vmatmul.msk.f32.vlgmr.msrb.gmra.mxu0 %vm348_vm1, %v5032_v42 }
0x1e30   :  { %v5025_v48 = vpop.permute.xlu1 %5024 }
0x1e31   :  { %v5033_v6 = vsel %vm1136_vm11, %v5031_v62, %v5025_v48  ;;  %v5110_v62 = vperm.slane %v8594_v58, 2 }
0x1e32   :  { %6489 = vmatmul.msk.f32.gmra.mxu0 %vm348_vm1, %v5033_v6 }
0x1ea7   :  { %v5058_v55 = vpop.f32.mrf.mxu0 }
0x1ea8   :  { %v5059_v25 = vadd.f32 %v5058_v55, %v5034_v3 }
0x1eaa   :  { %v8861_v59 = vadd.f32 %v5059_v25, %v8556_v17 }
0x1eac   :  { %v5066_v15 = vsel %vm348_vm1, %v8861_v59, 0.0 }
0x1ead   :  { %5067 = vadd.xlane.f32.xlu0 %v5066_v15 }
0x1eaf   :  { %v5061_v12 = vpop.f32.mrf.mxu0 }
0x1eb0   :  { %v5062_v9 = vadd.f32 %v5061_v12, %v5034_v3 }
0x1eb2   :  { %v8866_v5 = vadd.f32 %v5062_v9, %v8561_v46 }
0x1eb4   :  { %v5069_v22 = vsel %vm348_vm1, %v8866_v5, 0.0 }
0x1eb5   :  { %5070 = vadd.xlane.f32.xlu2 %v5069_v22  ;;  %v5145_v22 = vperm.slane %v8594_v58, 3 }
0x1ec1   :  { %5388 = vrot.lane.b32.xlu0 %v8835_v18, %s9248_s4 }
0x1ec9   :  { %5548 = vrot.lane.b32.xlu0 %v8835_v18, %s9251_s15 }
0x1f20   :  { %v5068_v17 = vpop.xlane.xlu0 %5067 }
0x1f21   :  { %v5072_v20 = vmul.f32 %v5068_v17, %v7194_v10 }
0x1f23   :  { %v8876_v26 = vsub.f32 %v8861_v59, %v5072_v20 }
0x1f25   :  { %v5076_v46 = vmul.f32 %v8876_v26, %v8876_v26  ;;  %v5111_v15 = vmul.f32 %v5110_v62, %v8876_v26 }
0x1f27   :  { %v5078_v11 = vsel %vm348_vm1, %v5076_v46, 0.0 }
0x1f28   :  { %5079 = vadd.xlane.f32.xlu1 %v5078_v11  ;;  %v5071_v27 = vpop.xlane.xlu2 %5070 }
0x1f29   :  { %v5073_v1 = vmul.f32 %v5071_v27, %v7194_v10 }
0x1f2b   :  { %v8883_v29 = vsub.f32 %v8866_v5, %v5073_v1 }
0x1f2d   :  { %v5077_v8 = vmul.f32 %v8883_v29, %v8883_v29  ;;  %v5112_v14 = vmul.f32 %v5110_v62, %v8883_v29 }
0x1f2f   :  { %v5081_v44 = vsel %vm348_vm1, %v5077_v8, 0.0 }
0x1f30   :  { %5082 = vadd.xlane.f32.xlu2 %v5081_v44 }
0x1f48   :  { %5360 = vrot.lane.b32.xlu2 %v8830_v43, %s9248_s4 }
0x1f50   :  { %5520 = vrot.lane.b32.xlu2 %v8830_v43, %s9251_s15 }
0x1f9b   :  { %v5080_v19 = vpop.xlane.xlu1 %5079 }
0x1f9c   :  { %v5084_v51 = vmul.f32 0.032258064, %v5080_v19 }
0x1f9e   :  { %6854 = vrsqrt.f32 %v5084_v51  ;;  %vm5093_vm9 = vcmp.eq.f32.partialorder %v5084_v51, inf  ;;  %v5096_v38 = vand.u32 2147483648, %v5084_v51  ;;  %vm5095_vm12 = vcmp.eq.f32.partialorder %v5084_v51, 0.0 }
0x1fa3   :  { %v5083_v32 = vpop.xlane.xlu2 %5082 }
0x1fa4   :  { %v6855_v2 = vpop.eup %6854  ;;  %v5085_v49 = vmul.f32 0.032258064, %v5083_v32 }
0x1fa5   :  { %v5087_v57 = vmul.f32 %v6855_v2, %v5084_v51 }
0x1fa6   :  { %6856 = vrsqrt.f32 %v5085_v49  ;;  %vm5105_vm14 = vcmp.eq.f32.partialorder %v5085_v49, inf  ;;  %v5108_v39 = vand.u32 2147483648, %v5085_v49  ;;  %vm5107_vm2 = vcmp.eq.f32.partialorder %v5085_v49, 0.0 }
0x1fa7   :  { %v5088_v47 = vmul.f32 %v6855_v2, %v5087_v57 }
0x1fa9   :  { %v5089_v40 = vmul.f32 0.5, %v5088_v47 }
0x1fab   :  { %v5090_v34 = vsub.f32 1.5, %v5089_v40  ;;  %v5361_v28 = vpop.permute.xlu2 %5360 }
0x1fac   :  { %v6857_v35 = vpop.eup %6856  ;;  %6500 = vmatpush.xpose.msk.msrb.mxu1 %vm471_vm15, %v5361_v28 }
0x1fad   :  { %v5091_v30 = vmul.f32 %v6855_v2, %v5090_v34  ;;  %v5099_v0 = vmul.f32 %v6857_v35, %v5085_v49 }
0x1faf   :  { %v5092_v36 = vmul.f32 %v5091_v30, %v5084_v51  ;;  %v5100_v54 = vmul.f32 %v6857_v35, %v5099_v0 }
0x1fb1   :  { %v5094_v53 = vsel %vm5093_vm9, %v5084_v51, %v5092_v36  ;;  %v5101_v7 = vmul.f32 0.5, %v5100_v54 }
0x1fb2   :  { %v5097_v63 = vsel %vm5095_vm12, %v5096_v38, %v5094_v53 }
0x1fb3   :  { %v5113_v13 = vadd.f32 1e-06, %v5097_v63  ;;  %v5102_v37 = vsub.f32 1.5, %v5101_v7  ;;  %v5521_v4 = vpop.permute.xlu2 %5520 }
0x1fb4   :  { %6506 = vmatpush.xpose.msk.msra.mxu1 %vm471_vm15, %v5521_v4 }
0x1fb5   :  { %6858 = vrcp.f32 %v5113_v13  ;;  %v5103_v21 = vmul.f32 %v6857_v35, %v5102_v37  ;;  %v5126_v48 = vand.u32 2147483648, %v5113_v13  ;;  %v5124_v3 = vand.u32 2147483647, %v5113_v13 }
0x1fb6   :  { %vm5120_vm4 = vweird.f32 %v5113_v13 }
0x1fb7   :  { %v5104_v33 = vmul.f32 %v5103_v21, %v5085_v49  ;;  %v5127_v12 = vor.u32 1.1754944e-38, %v5126_v48  ;;  %vm5125_vm5 = vcmp.eq.f32.partialorder %v5124_v3, 8.507059e+37 }
0x1fb9   :  { %v5106_v52 = vsel %vm5105_vm14, %v5085_v49, %v5104_v33  ;;  %v5389_v49 = vpop.permute.xlu0 %5388 }
0x1fba   :  { %v5109_v16 = vsel %vm5107_vm2, %v5108_v39, %v5106_v52 }
0x1fbb   :  { %v6859_v42 = vpop.eup %6858  ;;  %v5114_v45 = vadd.f32 1e-06, %v5109_v16 }
0x1fbc   :  { %v5116_v56 = vmul.f32 %v6859_v42, %v5113_v13  ;;  %vm5121_vm3 = vweird.f32 %v6859_v42 }
0x1fbd   :  { %6860 = vrcp.f32 %v5114_v45  ;;  %vm5122_vm0 = vmor %vm5120_vm4, %vm5121_vm3  ;;  %v5141_v27 = vand.u32 2147483648, %v5114_v45  ;;  %v5139_v44 = vand.u32 2147483647, %v5114_v45  ;;  %vm5135_vm7 = vweird.f32 %v5114_v45 }
0x1fbe   :  { %v5117_v60 = vsub.f32 1.0, %v5116_v56 }
0x1fbf   :  { %v5142_v26 = vor.u32 1.1754944e-38, %v5141_v27  ;;  %vm5140_vm9 = vcmp.eq.f32.partialorder %v5139_v44, 8.507059e+37 }
0x1fc0   :  { %v5118_v6 = vmul.f32 %v6859_v42, %v5117_v60 }
0x1fc1   :  { %v5549_v47 = vpop.permute.xlu0 %5548 }
0x1fc2   :  { %v5119_v55 = vadd.f32 %v6859_v42, %v5118_v6 }
0x1fc3   :  { %v6861_v25 = vpop.eup %6860 }
0x1fc4   :  { %v5123_v9 = vsel %vm5122_vm0, %v6859_v42, %v5119_v55  ;;  %v5131_v17 = vmul.f32 %v6861_v25, %v5114_v45  ;;  %vm5136_vm6 = vweird.f32 %v6861_v25 }
0x1fc5   :  { %v5128_v20 = vsel %vm5125_vm5, %v5127_v12, %v5123_v9  ;;  %vm5137_vm8 = vmor %vm5135_vm7, %vm5136_vm6 }
0x1fc6   :  { %v5129_v46 = vmul.f32 %v5128_v20, %v5111_v15  ;;  %v5132_v11 = vsub.f32 1.0, %v5131_v17 }
0x1fc8   :  { %v5146_v1 = vadd.f32 %v5145_v22, %v5129_v46  ;;  %v5133_v8 = vmul.f32 %v6861_v25, %v5132_v11 }
0x1fca   :  { %6490 = vmatmul.msk.f32.vlgmr.msra.gmra.mxu3 %vm348_vm1, %v5146_v1  ;;  %v5134_v24 = vadd.f32 %v6861_v25, %v5133_v8 }
0x1fcc   :  { %v5138_v19 = vsel %vm5137_vm8, %v6861_v25, %v5134_v24 }
0x1fcd   :  { %v5143_v58 = vsel %vm5140_vm9, %v5142_v26, %v5138_v19 }
0x1fce   :  { %v5144_v31 = vmul.f32 %v5143_v58, %v5112_v14 }
0x1fd0   :  { %v5147_v51 = vadd.f32 %v5145_v22, %v5144_v31 }
0x1fd2   :  { %6491 = vmatmul.msk.f32.gmra.mxu3 %vm348_vm1, %v5147_v51 }
0x204d   :  { %v5172_v32 = vpop.f32.mrf.mxu3 }
0x204e   :  { %v5173_v2 = vadd.f32 %v5172_v32, %v5148_v23  ;;  %v8961_v32 = vpack.i.bf16 %v8835_v18, %v8830_v43 }
0x2050   :  { %5358 = vrot.lane.b32.xlu0 %v5173_v2, %s9248_s4  ;;  %6495 = vmatmul.msk.f32.vlgmr.msrb.gmra.mxu2 %vm471_vm15, %v5173_v2 }
0x2051   :  { %6502 = vmatpush.xpose.msk.msrb.mxu2 %vm471_vm15, %v5389_v49 }
0x2055   :  { %v5175_v57 = vpop.f32.mrf.mxu3 }
0x2056   :  { %v5176_v29 = vadd.f32 %v5175_v57, %v5148_v23 }
0x2058   :  { %5386 = vrot.lane.b32.xlu1 %v5176_v29, %s9248_s4  ;;  %5518 = vrot.lane.b32.xlu0 %v5173_v2, %s9251_s15 }
0x2059   :  { %5706 = vrot.lane.b32.xlu2 %v5176_v29, %s9249_s19  ;;  %6497 = vmatmul.msk.f32.vlgmr.msra.gmra.mxu2 %vm471_vm15, %v5176_v29 }
0x205a   :  { %6508 = vmatpush.xpose.msk.msra.mxu2 %vm471_vm15, %v5549_v47 }
0x2060   :  { %5546 = vrot.lane.b32.xlu1 %v5176_v29, %s9251_s15  ;;  %5680 = vrot.lane.b32.xlu0 %v8830_v43, %s9249_s19 }
0x2068   :  { %5708 = vrot.lane.b32.xlu1 %v8835_v18, %s9249_s19 }
0x2070   :  { %5678 = vrot.lane.b32.xlu1 %v5173_v2, %s9249_s19 }
0x20b3   :  { %v5707_v63 = vpop.permute.xlu2 %5706 }
0x20c2   :  { %v5359_v40 = vpop.permute.xlu0 %5358 }
0x20c3   :  { %6501 = vmatmul.msk.f32.vlgmr.msrb.gmra.mxu1 %vm471_vm15, %v5359_v40 }
0x20ca   :  { %v5387_v34 = vpop.permute.xlu1 %5386  ;;  %v5519_v28 = vpop.permute.xlu0 %5518 }
0x20cb   :  { %6503 = vmatmul.msk.f32.vlgmr.msrb.gmra.mxu2 %vm471_vm15, %v5387_v34  ;;  %6507 = vmatmul.msk.f32.vlgmr.msra.gmra.mxu1 %vm471_vm15, %v5519_v28 }
0x20d2   :  { %v5547_v35 = vpop.permute.xlu1 %5546  ;;  %v5681_v30 = vpop.permute.xlu0 %5680 }
0x20d3   :  { %v5225_v0 = vpop.f32.mrf.mxu2  ;;  %6509 = vmatmul.msk.f32.vlgmr.msra.gmra.mxu2 %vm471_vm15, %v5547_v35  ;;  %6512 = vmatpush.xpose.msk.msrb.mxu1 %vm471_vm15, %v5681_v30 }
0x20d4   :  { %v5254_v36 = vmul.f32 0.35355338, %v5225_v0 }
0x20d6   :  { %v5256_v54 = vadd.f32 %v5254_v36, %v7283_v41 }
0x20d8   :  { %v5258_v38 = vsel %vm471_vm15, %v5256_v54, -inf }
0x20d9   :  { %5259 = vmax.xlane.f32.xlu2 %v5258_v38 }
0x20da   :  { %v5709_v53 = vpop.permute.xlu1 %5708 }
0x20db   :  { %6514 = vmatpush.xpose.msk.msrb.mxu2 %vm471_vm15, %v5709_v53 }
0x20dc   :  { %v5251_v7 = vpop.f32.mrf.mxu2 }
0x20dd   :  { %v5255_v13 = vmul.f32 0.35355338, %v5251_v7 }
0x20de   :  { %6515 = vmatmul.msk.f32.vlgmr.msrb.gmra.mxu2 %vm471_vm15, %v5707_v63 }
0x20df   :  { %v5257_v37 = vadd.f32 %v5255_v13, %v7291_v50 }
0x20e1   :  { %v5261_v4 = vsel %vm471_vm15, %v5257_v37, -inf }
0x20e2   :  { %5262 = vmax.xlane.f32.xlu0 %v5261_v4  ;;  %v5679_v21 = vpop.permute.xlu1 %5678 }
0x20e3   :  { %6513 = vmatmul.msk.f32.vlgmr.msrb.gmra.mxu1 %vm471_vm15, %v5679_v21 }
0x2140   :  { %v5383_v33 = vpop.f32.mrf.mxu1 }
0x2141   :  { %v5414_v39 = vmul.f32 0.35355338, %v5383_v33 }
0x2143   :  { %v5416_v52 = vadd.f32 %v5414_v39, %v7283_v41 }
0x2145   :  { %v5418_v16 = vsel %vm471_vm15, %v5416_v52, -inf }
0x2146   :  { %5419 = vmax.xlane.f32.xlu1 %v5418_v16 }
0x2148   :  { %v5543_v42 = vpop.f32.mrf.mxu1 }
0x2149   :  { %v5574_v45 = vmul.f32 0.35355338, %v5543_v42 }
0x214b   :  { %v5576_v56 = vadd.f32 %v5574_v45, %v7283_v41 }
0x214c   :  { %v5260_v60 = vpop.xlane.xlu2 %5259 }
0x214d   :  { %v5264_v62 = vsub.f32 %v5256_v54, %v5260_v60  ;;  %v5578_v48 = vsel %vm471_vm15, %v5576_v56, -inf }
0x214e   :  { %v5411_v6 = vpop.f32.mrf.mxu2  ;;  %5579 = vmax.xlane.f32.xlu0 %v5578_v48 }
0x214f   :  { %v5266_v3 = vmul.f32 1.442695, %v5264_v62  ;;  %v5415_v55 = vmul.f32 0.35355338, %v5411_v6 }
0x2151   :  { %6862 = vpow2.f32 %v5266_v3  ;;  %v5417_v25 = vadd.f32 %v5415_v55, %v7291_v50 }
0x2153   :  { %v5421_v15 = vsel %vm471_vm15, %v5417_v25, -inf }
0x2154   :  { %5422 = vmax.xlane.f32.xlu2 %v5421_v15 }
0x2155   :  { %v5263_v20 = vpop.xlane.xlu0 %5262 }
0x2156   :  { %v5571_v12 = vpop.f32.mrf.mxu2  ;;  %v5265_v46 = vsub.f32 %v5257_v37, %v5263_v20 }
0x2157   :  { %v8945_v9 = vpop.eup %6862  ;;  %v5575_v22 = vmul.f32 0.35355338, %v5571_v12 }
0x2158   :  { %v5270_v17 = vsel %vm471_vm15, %v8945_v9, 0.0  ;;  %v5268_v27 = vmul.f32 1.442695, %v5265_v46 }
0x2159   :  { %5271 = vadd.xlane.f32.xlu1 %v5270_v17  ;;  %v5577_v11 = vadd.f32 %v5575_v22, %v7291_v50 }
0x215a   :  { %6864 = vpow2.f32 %v5268_v27 }
0x215b   :  { %v5581_v8 = vsel %vm471_vm15, %v5577_v11, -inf }
0x2160   :  { %v5703_v1 = vpop.f32.mrf.mxu1  ;;  %v8955_v51 = vpop.eup %6864 }
0x2161   :  { %v5734_v44 = vmul.f32 0.35355338, %v5703_v1  ;;  %v5731_v24 = vpop.f32.mrf.mxu2  ;;  %5582 = vmax.xlane.f32.xlu1 %v5581_v8  ;;  %v5273_v23 = vsel %vm471_vm15, %v8955_v51, 0.0 }
0x2162   :  { %v5735_v26 = vmul.f32 0.35355338, %v5731_v24 }
0x2163   :  { %v5736_v14 = vadd.f32 %v5734_v44, %v7283_v41 }
0x2164   :  { %v5737_v19 = vadd.f32 %v5735_v26, %v7291_v50 }
0x2165   :  { %v5738_v58 = vsel %vm471_vm15, %v5736_v14, -inf }
0x2166   :  { %5739 = vmax.xlane.f32.xlu2 %v5738_v58  ;;  %v5741_v31 = vsel %vm471_vm15, %v5737_v19, -inf }
0x2167   :  { %5742 = vmax.xlane.f32.xlu0 %v5741_v31 }
0x216e   :  { %5274 = vadd.xlane.f32.xlu2 %v5273_v23 }
0x217a   :  { %6597 = vrot.lane.b32.xlu1 %v8961_v32, %s9246_s20 }
0x21b9   :  { %v5420_v41 = vpop.xlane.xlu1 %5419 }
0x21ba   :  { %v5424_v50 = vsub.f32 %v5416_v52, %v5420_v41 }
0x21bc   :  { %v5426_v2 = vmul.f32 1.442695, %v5424_v50 }
0x21be   :  { %6866 = vpow2.f32 %v5426_v2 }
0x21c1   :  { %v5580_v49 = vpop.xlane.xlu0 %5579 }
0x21c2   :  { %v5584_v57 = vsub.f32 %v5576_v56, %v5580_v49 }
0x21c4   :  { %v8965_v29 = vpop.eup %6866  ;;  %v5586_v47 = vmul.f32 1.442695, %v5584_v57 }
0x21c5   :  { %v5430_v40 = vsel %vm471_vm15, %v8965_v29, 0.0 }
0x21c6   :  { %6868 = vpow2.f32 %v5586_v47  ;;  %5431 = vadd.xlane.f32.xlu0 %v5430_v40 }
0x21c7   :  { %v5423_v34 = vpop.xlane.xlu2 %5422 }
0x21c8   :  { %v5425_v43 = vsub.f32 %v5417_v25, %v5423_v34 }
0x21ca   :  { %v5428_v18 = vmul.f32 1.442695, %v5425_v43 }
0x21cc   :  { %v8969_v28 = vpop.eup %6868  ;;  %6870 = vpow2.f32 %v5428_v18  ;;  %v5272_v35 = vpop.xlane.xlu1 %5271 }
0x21cd   :  { %v5590_v30 = vsel %vm471_vm15, %v8969_v28, 0.0  ;;  %6872 = vrcp.f32 %v5272_v35  ;;  %v5287_v6 = vand.u32 2147483648, %v5272_v35  ;;  %vm5281_vm14 = vweird.f32 %v5272_v35 }
0x21ce   :  { %5591 = vadd.xlane.f32.xlu2 %v5590_v30  ;;  %v5285_v55 = vand.u32 2147483647, %v5272_v35 }
0x21cf   :  { %v5288_v22 = vor.u32 1.1754944e-38, %v5287_v6 }
0x21d0   :  { %vm5286_vm3 = vcmp.eq.f32.partialorder %v5285_v55, 8.507059e+37 }
0x21d2   :  { %v8973_v0 = vpop.eup %6870 }
0x21d3   :  { %v5433_v36 = vsel %vm471_vm15, %v8973_v0, 0.0  ;;  %v6873_v38 = vpop.eup %6872 }
0x21d4   :  { %v5583_v54 = vpop.xlane.xlu1 %5582  ;;  %5434 = vadd.xlane.f32.xlu1 %v5433_v36  ;;  %v5277_v63 = vmul.f32 %v6873_v38, %v5272_v35  ;;  %vm5282_vm12 = vweird.f32 %v6873_v38 }
0x21d5   :  { %v5585_v53 = vsub.f32 %v5577_v11, %v5583_v54  ;;  %vm5283_vm2 = vmor %vm5281_vm14, %vm5282_vm12 }
0x21d6   :  { %v5278_v33 = vsub.f32 1.0, %v5277_v63 }
0x21d7   :  { %v5588_v7 = vmul.f32 1.442695, %v5585_v53 }
0x21d8   :  { %v5279_v42 = vmul.f32 %v6873_v38, %v5278_v33 }
0x21d9   :  { %6874 = vpow2.f32 %v5588_v7  ;;  %v5740_v13 = vpop.xlane.xlu2 %5739 }
0x21da   :  { %v5744_v37 = vsub.f32 %v5736_v14, %v5740_v13  ;;  %v5743_v4 = vpop.xlane.xlu0 %5742  ;;  %v5280_v62 = vadd.f32 %v6873_v38, %v5279_v42 }
0x21db   :  { %v5745_v21 = vsub.f32 %v5737_v19, %v5743_v4 }
0x21dc   :  { %v5746_v39 = vmul.f32 1.442695, %v5744_v37  ;;  %v5284_v15 = vsel %vm5283_vm2, %v6873_v38, %v5280_v62 }
0x21dd   :  { %v5748_v52 = vmul.f32 1.442695, %v5745_v21  ;;  %v5289_v20 = vsel %vm5286_vm3, %v5288_v22, %v5284_v15 }
0x21de   :  { %6876 = vpow2.f32 %v5746_v39  ;;  %v5290_v26 = vmul.f32 %v8945_v9, %v5289_v20 }
0x21df   :  { %v8977_v16 = vpop.eup %6874  ;;  %6878 = vpow2.f32 %v5748_v52 }
0x21e0   :  { %v5593_v45 = vsel %vm471_vm15, %v8977_v16, 0.0 }
0x21e1   :  { %5594 = vadd.xlane.f32.xlu0 %v5593_v45  ;;  %v5275_v56 = vpop.xlane.xlu2 %5274 }
0x21e2   :  { %6880 = vrcp.f32 %v5275_v56  ;;  %v5300_v11 = vand.u32 2147483647, %v5275_v56  ;;  %v5302_v27 = vand.u32 2147483648, %v5275_v56  ;;  %vm5296_vm0 = vweird.f32 %v5275_v56 }
0x21e4   :  { %v8981_v60 = vpop.eup %6876  ;;  %v5303_v19 = vor.u32 1.1754944e-38, %v5302_v27  ;;  %vm5301_vm6 = vcmp.eq.f32.partialorder %v5300_v11, 8.507059e+37 }
0x21e5   :  { %v8983_v48 = vpop.eup %6878  ;;  %v5750_v3 = vsel %vm471_vm15, %v8981_v60, 0.0 }
0x21e6   :  { %5751 = vadd.xlane.f32.xlu2 %v5750_v3  ;;  %v5753_v12 = vsel %vm471_vm15, %v8983_v48, 0.0 }
0x21e8   :  { %v6881_v25 = vpop.eup %6880 }
0x21e9   :  { %v5292_v17 = vmul.f32 %v6881_v25, %v5275_v56  ;;  %5754 = vadd.xlane.f32.xlu0 %v5753_v12  ;;  %vm5297_vm4 = vweird.f32 %v6881_v25 }
0x21ea   :  { %vm5298_vm5 = vmor %vm5296_vm0, %vm5297_vm4 }
0x21eb   :  { %v5293_v46 = vsub.f32 1.0, %v5292_v17 }
0x21ec   :  { %v6598_v1 = vpop.permute.xlu1 %6597 }
0x21ed   :  { %v5294_v8 = vmul.f32 %v6881_v25, %v5293_v46  ;;  %v6600_v44 = vunpack.i.h.bf16 %v6598_v1  ;;  %v6599_v24 = vunpack.i.l.bf16 %v6598_v1  ;;  %6612 = vrot.lane.b32.xlu1 %v8961_v32, %s9252_s28 }
0x21ef   :  { %v5295_v14 = vadd.f32 %v6881_v25, %v5294_v8  ;;  %5327 = vmatpush.msra.mxu0 %v6599_v24  ;;  %5353 = vmatpush.msrb.mxu3 %v6600_v44 }
0x21f0   :  { %6498 = vmatmul.msk.f32.vlgmr.msra.gmra.mxu0 %vm471_vm15, %v5290_v26 }
0x21f1   :  { %v5299_v58 = vsel %vm5298_vm5, %v6881_v25, %v5295_v14 }
0x21f2   :  { %v5304_v31 = vsel %vm5301_vm6, %v5303_v19, %v5299_v58 }
0x21f3   :  { %v5305_v23 = vmul.f32 %v8955_v51, %v5304_v31 }
0x21f5   :  { %6499 = vmatmul.msk.f32.vlgmr.msrb.gmra.mxu3 %vm471_vm15, %v5305_v23 }
0x21fd   :  { %6607 = vrot.lane.b32.xlu0 %v8961_v32, %s9250_s23 }
0x21fe   :  { %6602 = vrot.lane.b32.xlu2 %v8961_v32, %s9247_s24 }
0x2239   :  { %v5432_v9 = vpop.xlane.xlu0 %5431 }
0x223a   :  { %6882 = vrcp.f32 %v5432_v9  ;;  %vm5441_vm9 = vweird.f32 %v5432_v9  ;;  %v5447_v38 = vand.u32 2147483648, %v5432_v9  ;;  %v5445_v13 = vand.u32 2147483647, %v5432_v9 }
0x223c   :  { %v5448_v42 = vor.u32 1.1754944e-38, %v5447_v38  ;;  %vm5446_vm3 = vcmp.eq.f32.partialorder %v5445_v13, 8.507059e+37 }
0x2240   :  { %v6883_v50 = vpop.eup %6882 }
0x2241   :  { %v8999_v2 = vpop.xlane.xlu2 %5591  ;;  %v5437_v49 = vmul.f32 %v6883_v50, %v5432_v9  ;;  %vm5442_vm7 = vweird.f32 %v6883_v50 }
0x2242   :  { %vm9012_vm12 = vmor %vm5441_vm9, %vm5442_vm7  ;;  %v5607_v8 = vand.u32 2147483648, %v8999_v2  ;;  %vm5601_vm5 = vweird.f32 %v8999_v2 }
0x2243   :  { %v5438_v47 = vsub.f32 1.0, %v5437_v49 }
0x2244   :  { %v5608_v19 = vor.u32 1.1754944e-38, %v5607_v8 }
0x2245   :  { %v5439_v18 = vmul.f32 %v6883_v50, %v5438_v47 }
0x2247   :  { %v5435_v41 = vpop.xlane.xlu1 %5434  ;;  %v5440_v30 = vadd.f32 %v6883_v50, %v5439_v18 }
0x2248   :  { %6884 = vrcp.f32 %v5435_v41  ;;  %v5462_v53 = vand.u32 2147483648, %v5435_v41  ;;  %vm5456_vm14 = vweird.f32 %v5435_v41  ;;  %v5460_v37 = vand.u32 2147483647, %v5435_v41 }
0x2249   :  { %6886 = vrcp.f32 %v8999_v2  ;;  %v5444_v39 = vsel %vm9012_vm12, %v6883_v50, %v5440_v30 }
0x224a   :  { %v5463_v45 = vor.u32 1.1754944e-38, %v5462_v53  ;;  %vm5461_vm4 = vcmp.eq.f32.partialorder %v5460_v37, 8.507059e+37  ;;  %v5449_v6 = vsel %vm5446_vm3, %v5448_v42, %v5444_v39 }
0x224b   :  { %v5450_v17 = vmul.f32 %v8965_v29, %v5449_v6  ;;  %v5605_v29 = vand.u32 2147483647, %v8999_v2 }
0x224d   :  { %vm5606_vm9 = vcmp.eq.f32.partialorder %v5605_v29, 8.507059e+37 }
0x224e   :  { %v6885_v57 = vpop.eup %6884 }
0x224f   :  { %v5452_v51 = vmul.f32 %v6885_v57, %v5435_v41  ;;  %v9004_v43 = vpop.eup %6886  ;;  %vm5457_vm8 = vweird.f32 %v6885_v57 }
0x2250   :  { %v5597_v35 = vmul.f32 %v9004_v43, %v8999_v2  ;;  %vm5458_vm2 = vmor %vm5456_vm14, %vm5457_vm8  ;;  %vm5602_vm0 = vweird.f32 %v9004_v43 }
0x2251   :  { %v5453_v40 = vsub.f32 1.0, %v5452_v51  ;;  %vm5603_vm6 = vmor %vm5601_vm5, %vm5602_vm0 }
0x2252   :  { %v5598_v4 = vsub.f32 1.0, %v5597_v35 }
0x2253   :  { %v5454_v32 = vmul.f32 %v6885_v57, %v5453_v40 }
0x2254   :  { %v9002_v34 = vpop.xlane.xlu0 %5594  ;;  %v5599_v3 = vmul.f32 %v9004_v43, %v5598_v4 }
0x2255   :  { %6888 = vrcp.f32 %v9002_v34  ;;  %v5455_v36 = vadd.f32 %v6885_v57, %v5454_v32  ;;  %v5622_v14 = vand.u32 2147483648, %v9002_v34  ;;  %vm5616_vm8 = vweird.f32 %v9002_v34 }
0x2256   :  { %v5600_v27 = vadd.f32 %v9004_v43, %v5599_v3  ;;  %v5620_v58 = vand.u32 2147483647, %v9002_v34  ;;  %v6446_v3 = vld [vmem:[%s9209_s7 + $0x190] sm:$0xff] }
0x2257   :  { %v5459_v52 = vsel %vm5458_vm2, %v6885_v57, %v5455_v36  ;;  %v5623_v50 = vor.u32 1.1754944e-38, %v5622_v14 }
0x2258   :  { %v5464_v55 = vsel %vm5461_vm4, %v5463_v45, %v5459_v52  ;;  %v5604_v26 = vsel %vm5603_vm6, %v9004_v43, %v5600_v27  ;;  %vm5621_vm14 = vcmp.eq.f32.partialorder %v5620_v58, 8.507059e+37 }
0x2259   :  { %v9009_v54 = vpop.xlane.xlu2 %5751  ;;  %v5465_v20 = vmul.f32 %v8973_v0, %v5464_v55  ;;  %v5609_v31 = vsel %vm5606_vm9, %v5608_v19, %v5604_v26  ;;  %v6445_v55 = vld [vmem:[%s9209_s7 + $0x188] sm:$0xff] }
0x225a   :  { %6890 = vrcp.f32 %v9009_v54  ;;  %v5610_v2 = vmul.f32 %v8969_v28, %v5609_v31  ;;  %vm5761_vm3 = vweird.f32 %v9009_v54  ;;  %v5765_v30 = vand.u32 2147483647, %v9009_v54 }
0x225b   :  { %v6889_v7 = vpop.eup %6888 }
0x225c   :  { %v5612_v21 = vmul.f32 %v6889_v7, %v9002_v34  ;;  %v9017_v33 = vpop.xlane.xlu0 %5754  ;;  %vm5617_vm7 = vweird.f32 %v6889_v7  ;;  %v5767_v34 = vand.u32 2147483648, %v9009_v54 }
0x225d   :  { %6892 = vrcp.f32 %v9017_v33  ;;  %vm5618_vm12 = vmor %vm5616_vm8, %vm5617_vm7  ;;  %v5782_v43 = vand.u32 2147483648, %v9017_v33  ;;  %vm5776_vm5 = vweird.f32 %v9017_v33  ;;  %v5780_v36 = vand.u32 2147483647, %v9017_v33 }
0x225e   :  { %v5613_v56 = vsub.f32 1.0, %v5612_v21  ;;  %v5768_v63 = vor.u32 1.1754944e-38, %v5767_v34  ;;  %vm5766_vm7 = vcmp.eq.f32.partialorder %v5765_v30, 8.507059e+37  ;;  %v6450_v34 = vld [vmem:[%s9209_s7 + $0x1b0] sm:$0xff] }
0x225f   :  { %v6613_v47 = vpop.permute.xlu1 %6612  ;;  %v5783_v13 = vor.u32 1.1754944e-38, %v5782_v43  ;;  %vm5781_vm8 = vcmp.eq.f32.partialorder %v5780_v36, 8.507059e+37 }
0x2260   :  { %v9022_v62 = vpop.eup %6890  ;;  %v5614_v46 = vmul.f32 %v6889_v7, %v5613_v56  ;;  %v6615_v53 = vunpack.i.h.bf16 %v6613_v47 }
0x2261   :  { %v6603_v25 = vpop.permute.xlu2 %6602  ;;  %v5757_v11 = vmul.f32 %v9022_v62, %v9009_v54  ;;  %vm5762_vm2 = vweird.f32 %v9022_v62 }
0x2262   :  { %v6605_v15 = vunpack.i.h.bf16 %v6603_v25  ;;  %v6604_v12 = vunpack.i.l.bf16 %v6603_v25  ;;  %v5615_v0 = vadd.f32 %v6889_v7, %v5614_v46  ;;  %vm9055_vm0 = vmor %vm5761_vm3, %vm5762_vm2  ;;  %v6444_v25 = vld [vmem:[%s9209_s7 + $0x180] sm:$0xff] }
0x2263   :  { %v9025_v22 = vpop.eup %6892  ;;  %v5758_v44 = vsub.f32 1.0, %v5757_v11 }
0x2264   :  { %v5772_v1 = vmul.f32 %v9025_v22, %v9017_v33  ;;  %5487 = vmatpush.msrb.mxu0 %v6604_v12  ;;  %5513 = vmatpush.msra.mxu3 %v6605_v15  ;;  %v5619_v23 = vsel %vm5618_vm12, %v6889_v7, %v5615_v0  ;;  %vm5777_vm4 = vweird.f32 %v9025_v22  ;;  %v6614_v7 = vunpack.i.l.bf16 %v6613_v47 }
0x2265   :  { %6504 = vmatmul.msk.f32.vlgmr.msrb.gmra.mxu0 %vm471_vm15, %v5450_v17  ;;  %6505 = vmatmul.msk.f32.vlgmr.msra.gmra.mxu3 %vm471_vm15, %v5465_v20  ;;  %v5759_v9 = vmul.f32 %v9022_v62, %v5758_v44  ;;  %v5624_v49 = vsel %vm5621_vm14, %v5623_v50, %v5619_v23  ;;  %vm9062_vm6 = vmor %vm5776_vm5, %vm5777_vm4  ;;  %v5868_v44 = vperm.slane %v8827_v61, 2 }
0x2266   :  { %v5773_v24 = vsub.f32 1.0, %v5772_v1  ;;  %v5625_v28 = vmul.f32 %v8977_v16, %v5624_v49 }
0x2267   :  { %v5760_v57 = vadd.f32 %v9022_v62, %v5759_v9 }
0x2268   :  { %v5774_v41 = vmul.f32 %v9025_v22, %v5773_v24 }
0x2269   :  { %v5764_v16 = vsel %vm9055_vm0, %v9022_v62, %v5760_v57 }
0x226a   :  { %v5775_v51 = vadd.f32 %v9025_v22, %v5774_v41  ;;  %v5769_v37 = vsel %vm5766_vm7, %v5768_v63, %v5764_v16 }
0x226b   :  { %v5770_v21 = vmul.f32 %v8981_v60, %v5769_v37 }
0x226c   :  { %v5779_v54 = vsel %vm9062_vm6, %v9025_v22, %v5775_v51 }
0x226d   :  { %v5784_v4 = vsel %vm5781_vm8, %v5783_v13, %v5779_v54  ;;  %v5329_v39 = vpop.f32.mrf.mxu0 }
0x226e   :  { %v5785_v33 = vmul.f32 %v8983_v48, %v5784_v4  ;;  %v6447_v48 = vld [vmem:[%s9209_s7 + $0x198] sm:$0xff] }
0x226f   :  { %v6608_v40 = vpop.permute.xlu0 %6607  ;;  %5887 = vmatpush.msra.mxu1 %v6447_v48  ;;  %v6456_v48 = vld [vmem:[%s9209_s7 + $0x1e0] sm:$0xff] }
0x2270   :  { %v6610_v18 = vunpack.i.h.bf16 %v6608_v40  ;;  %v6609_v32 = vunpack.i.l.bf16 %v6608_v40  ;;  %v6451_v40 = vld [vmem:[%s9209_s7 + $0x1b8] sm:$0xff] }
0x2271   :  { %5888 = vmatpush.msra.mxu1 %v6446_v3  ;;  %6001 = vmatpush.msra.mxu2 %v6451_v40 }
0x2272   :  { %5647 = vmatpush.msra.mxu0 %v6609_v32  ;;  %5673 = vmatpush.msrb.mxu3 %v6610_v18  ;;  %v6449_v18 = vld [vmem:[%s9209_s7 + $0x1a8] sm:$0xff] }
0x2273   :  { %6510 = vmatmul.msk.f32.vlgmr.msra.gmra.mxu0 %vm471_vm15, %v5610_v2  ;;  %6511 = vmatmul.msk.f32.vlgmr.msrb.gmra.mxu3 %vm471_vm15, %v5625_v28  ;;  %v6448_v28 = vld [vmem:[%s9209_s7 + $0x1a0] sm:$0xff] }
0x2274   :  { %5807 = vmatpush.msrb.mxu0 %v6614_v7  ;;  %5833 = vmatpush.msra.mxu3 %v6615_v53 }
0x2275   :  { %5889 = vmatpush.msra.mxu1 %v6445_v55  ;;  %6002 = vmatpush.msra.mxu2 %v6450_v34 }
0x2277   :  { %5890 = vmatpush.msra.mxu1 %v6444_v25  ;;  %6003 = vmatpush.msra.mxu2 %v6449_v18  ;;  %v6455_v25 = vld [vmem:[%s9209_s7 + $0x1d8] sm:$0xff] }
0x2278   :  { %v5355_v52 = vpop.f32.mrf.mxu3 }
0x2279   :  { %6004 = vmatpush.msra.mxu2 %v6448_v28  ;;  %v6453_v28 = vld [vmem:[%s9209_s7 + $0x1c8] sm:$0xff] }
0x227b   :  { %6516 = vmatmul.msk.f32.vlgmr.msrb.gmra.mxu0 %vm471_vm15, %v5770_v21  ;;  %6517 = vmatmul.msk.f32.vlgmr.msra.gmra.mxu3 %vm471_vm15, %v5785_v33 }
0x22e2   :  { %v5489_v42 = vpop.f32.mrf.mxu0 }
0x22e3   :  { %5840 = vrot.lane.b32.xlu2 %v5489_v42, %s6989_s29  ;;  %v6459_v42 = vld [vmem:[%s9209_s7 + $0x1f8] sm:$0xff] }
0x22e4   :  { %6029 = vmatpush.msra.mxu0 %v6459_v42 }
0x22e8   :  { %v5515_v45 = vpop.f32.mrf.mxu3 }
0x22eb   :  { %5842 = vrot.lane.b32.xlu2 %v5515_v45, %s6989_s29  ;;  %v6458_v45 = vld [vmem:[%s9209_s7 + $0x1f0] sm:$0xff] }
0x22ec   :  { %6030 = vmatpush.msra.mxu0 %v6458_v45 }
0x22f0   :  { %v5649_v56 = vpop.f32.mrf.mxu0 }
0x22f1   :  { %5848 = vrot.lane.b32.xlu1 %v5649_v56, %s6990_s21 }
0x22f6   :  { %v5675_v62 = vpop.f32.mrf.mxu3 }
0x22f8   :  { %v5809_v6 = vpop.f32.mrf.mxu0 }
0x22f9   :  { %5850 = vrot.lane.b32.xlu1 %v5675_v62, %s6990_s21  ;;  %5856 = vrot.lane.b32.xlu0 %v5809_v6, %s6991_s30  ;;  %v6457_v6 = vld [vmem:[%s9209_s7 + $0x1e8] sm:$0xff] }
0x22fa   :  { %6031 = vmatpush.msra.mxu0 %v6457_v6 }
0x22fc   :  { %6032 = vmatpush.msra.mxu0 %v6456_v48 }
0x22fe   :  { %v5835_v60 = vpop.f32.mrf.mxu3  ;;  %6033 = vmatpush.msra.mxu0 %v6455_v25 }
0x2301   :  { %5858 = vrot.lane.b32.xlu0 %v5835_v60, %s6991_s30 }
0x233d   :  { %v5841_v15 = vpop.permute.xlu2 %5840 }
0x233e   :  { %v5862_v22 = vsel %vm471_vm15, %v5329_v39, %v5841_v15 }
0x2345   :  { %v5843_v11 = vpop.permute.xlu2 %5842 }
0x2346   :  { %v5863_v1 = vsel %vm471_vm15, %v5355_v52, %v5843_v11  ;;  %v6918_v11 = vld [vmem:[%s9210_s8 + $0x10] sm:$0xff] }
0x2363   :  { %v5849_v12 = vpop.permute.xlu1 %5848 }
0x2364   :  { %v5864_v17 = vsel %vm1133_vm10, %v5862_v22, %v5849_v12 }
0x236b   :  { %v5857_v20 = vpop.permute.xlu0 %5856  ;;  %v5851_v27 = vpop.permute.xlu1 %5850 }
0x236c   :  { %v5866_v46 = vsel %vm1136_vm11, %v5864_v17, %v5857_v20  ;;  %v5865_v8 = vsel %vm1133_vm10, %v5863_v1, %v5851_v27  ;;  %v5944_v27 = vperm.slane %v6918_v11, 4 }
0x236d   :  { %6518 = vmatmul.msk.f32.vlgmr.msra.gmra.mxu1 %vm348_vm1, %v5866_v46 }
0x2373   :  { %v5859_v29 = vpop.permute.xlu0 %5858 }
0x2374   :  { %v5867_v0 = vsel %vm1136_vm11, %v5865_v8, %v5859_v29 }
0x2375   :  { %6519 = vmatmul.msk.f32.gmra.mxu1 %vm348_vm1, %v5867_v0 }
0x23ea   :  { %v5892_v24 = vpop.f32.mrf.mxu1 }
0x23eb   :  { %v5893_v26 = vadd.f32 %v5892_v24, %v5868_v44 }
0x23ed   :  { %v9106_v14 = vadd.f32 %v5893_v26, %v8861_v59 }
0x23ef   :  { %v5900_v19 = vsel %vm348_vm1, %v9106_v14, 0.0 }
0x23f0   :  { %5901 = vadd.xlane.f32.xlu2 %v5900_v19 }
0x23f2   :  { %v5895_v58 = vpop.f32.mrf.mxu1 }
0x23f3   :  { %v5896_v31 = vadd.f32 %v5895_v58, %v5868_v44  ;;  %v5979_v58 = vperm.slane %v6918_v11, 5 }
0x23f5   :  { %v9111_v23 = vadd.f32 %v5896_v31, %v8866_v5 }
0x23f7   :  { %v5903_v9 = vsel %vm348_vm1, %v9111_v23, 0.0 }
0x23f8   :  { %5904 = vadd.xlane.f32.xlu1 %v5903_v9 }
0x2463   :  { %v5902_v41 = vpop.xlane.xlu2 %5901 }
0x2464   :  { %v5906_v61 = vmul.f32 %v5902_v41, %v7194_v10 }
0x2466   :  { %v9117_v50 = vsub.f32 %v9106_v14, %v5906_v61 }
0x2468   :  { %v5910_v59 = vmul.f32 %v9117_v50, %v9117_v50  ;;  %v5945_v24 = vmul.f32 %v5944_v27, %v9117_v50 }
0x246a   :  { %v5912_v2 = vsel %vm348_vm1, %v5910_v59, 0.0 }
0x246b   :  { %5913 = vadd.xlane.f32.xlu0 %v5912_v2  ;;  %v5905_v49 = vpop.xlane.xlu1 %5904 }
0x246c   :  { %v5907_v5 = vmul.f32 %v5905_v49, %v7194_v10 }
0x246e   :  { %v9124_v57 = vsub.f32 %v9111_v23, %v5907_v5 }
0x2470   :  { %v5911_v51 = vmul.f32 %v9124_v57, %v9124_v57 }
0x2472   :  { %v5915_v47 = vsel %vm348_vm1, %v5911_v51, 0.0 }
0x2473   :  { %5916 = vadd.xlane.f32.xlu2 %v5915_v47  ;;  %v5946_v47 = vmul.f32 %v5944_v27, %v9124_v57  ;;  %v6452_v57 = vld [vmem:[%s9209_s7 + $0x1c0] sm:$0xff] }
0x24de   :  { %v5914_v43 = vpop.xlane.xlu0 %5913 }
0x24df   :  { %v5918_v32 = vmul.f32 0.032258064, %v5914_v43 }
0x24e1   :  { %6894 = vrsqrt.f32 %v5918_v32  ;;  %vm5927_vm15 = vcmp.eq.f32.partialorder %v5918_v32, inf  ;;  %v5930_v21 = vand.u32 2147483648, %v5918_v32  ;;  %vm5929_vm10 = vcmp.eq.f32.partialorder %v5918_v32, 0.0 }
0x24e6   :  { %v5917_v35 = vpop.xlane.xlu2 %5916 }
0x24e7   :  { %v6895_v30 = vpop.eup %6894  ;;  %v5919_v36 = vmul.f32 0.032258064, %v5917_v35  ;;  %v6919_v35 = vld [vmem:[%s9210_s8 + $0x18] sm:$0xff] }
0x24e8   :  { %v5921_v38 = vmul.f32 %v6895_v30, %v5918_v32 }
0x24e9   :  { %6896 = vrsqrt.f32 %v5919_v36  ;;  %vm5939_vm11 = vcmp.eq.f32.partialorder %v5919_v36, inf  ;;  %v5942_v55 = vand.u32 2147483648, %v5919_v36  ;;  %vm5941_vm9 = vcmp.eq.f32.partialorder %v5919_v36, 0.0 }
0x24ea   :  { %v5922_v53 = vmul.f32 %v6895_v30, %v5921_v38 }
0x24ec   :  { %v5923_v7 = vmul.f32 0.5, %v5922_v53 }
0x24ee   :  { %v5924_v16 = vsub.f32 1.5, %v5923_v7 }
0x24ef   :  { %v6897_v54 = vpop.eup %6896 }
0x24f0   :  { %v5925_v63 = vmul.f32 %v6895_v30, %v5924_v16  ;;  %v5933_v13 = vmul.f32 %v6897_v54, %v5919_v36  ;;  %v5982_v30 = vperm.slane %v6919_v35, 3 }
0x24f2   :  { %v5926_v37 = vmul.f32 %v5925_v63, %v5918_v32  ;;  %v5934_v4 = vmul.f32 %v6897_v54, %v5933_v13  ;;  %v6014_v63 = vperm.slane %v6919_v35, 4 }
0x24f4   :  { %v5928_v33 = vsel %vm5927_vm15, %v5918_v32, %v5926_v37  ;;  %v5935_v39 = vmul.f32 0.5, %v5934_v4  ;;  %v6454_v32 = vld [vmem:[%s9209_s7 + $0x1d0] sm:$0xff] }
0x24f5   :  { %v5931_v52 = vsel %vm5929_vm10, %v5930_v21, %v5928_v33  ;;  %6034 = vmatpush.msra.mxu0 %v6454_v32 }
0x24f6   :  { %v5947_v56 = vadd.f32 1e-06, %v5931_v52  ;;  %v5936_v62 = vsub.f32 1.5, %v5935_v39 }
0x24f7   :  { %6035 = vmatpush.msra.mxu0 %v6453_v28 }
0x24f8   :  { %6898 = vrcp.f32 %v5947_v56  ;;  %v5937_v60 = vmul.f32 %v6897_v54, %v5936_v62  ;;  %v5960_v1 = vand.u32 2147483648, %v5947_v56  ;;  %v5958_v29 = vand.u32 2147483647, %v5947_v56 }
0x24f9   :  { %vm5954_vm14 = vweird.f32 %v5947_v56  ;;  %6036 = vmatpush.msra.mxu0 %v6452_v57 }
0x24fa   :  { %v5938_v3 = vmul.f32 %v5937_v60, %v5919_v36  ;;  %v5961_v26 = vor.u32 1.1754944e-38, %v5960_v1  ;;  %vm5959_vm3 = vcmp.eq.f32.partialorder %v5958_v29, 8.507059e+37 }
0x24fc   :  { %v5940_v15 = vsel %vm5939_vm11, %v5919_v36, %v5938_v3 }
0x24fd   :  { %v5943_v12 = vsel %vm5941_vm9, %v5942_v55, %v5940_v15 }
0x24fe   :  { %v6899_v22 = vpop.eup %6898  ;;  %v5948_v17 = vadd.f32 1e-06, %v5943_v12 }
0x24ff   :  { %v5950_v20 = vmul.f32 %v6899_v22, %v5947_v56  ;;  %vm5955_vm12 = vweird.f32 %v6899_v22 }
0x2500   :  { %6900 = vrcp.f32 %v5948_v17  ;;  %vm5956_vm2 = vmor %vm5954_vm14, %vm5955_vm12  ;;  %v5975_v59 = vand.u32 2147483648, %v5948_v17  ;;  %v5973_v5 = vand.u32 2147483647, %v5948_v17  ;;  %vm5969_vm0 = vweird.f32 %v5948_v17 }
0x2501   :  { %v5951_v46 = vsub.f32 1.0, %v5950_v20 }
0x2502   :  { %v5976_v50 = vor.u32 1.1754944e-38, %v5975_v59  ;;  %vm5974_vm6 = vcmp.eq.f32.partialorder %v5973_v5, 8.507059e+37 }
0x2503   :  { %v5952_v8 = vmul.f32 %v6899_v22, %v5951_v46 }
0x2505   :  { %v5953_v0 = vadd.f32 %v6899_v22, %v5952_v8 }
0x2506   :  { %v6901_v44 = vpop.eup %6900 }
0x2507   :  { %v5957_v19 = vsel %vm5956_vm2, %v6899_v22, %v5953_v0  ;;  %v5965_v31 = vmul.f32 %v6901_v44, %v5948_v17  ;;  %vm5970_vm4 = vweird.f32 %v6901_v44 }
0x2508   :  { %v5962_v9 = vsel %vm5959_vm3, %v5961_v26, %v5957_v19  ;;  %vm5971_vm5 = vmor %vm5969_vm0, %vm5970_vm4 }
0x2509   :  { %v5963_v41 = vmul.f32 %v5962_v9, %v5945_v24  ;;  %v5966_v61 = vsub.f32 1.0, %v5965_v31 }
0x250b   :  { %v5980_v2 = vadd.f32 %v5979_v58, %v5963_v41  ;;  %v5967_v49 = vmul.f32 %v6901_v44, %v5966_v61 }
0x250d   :  { %6520 = vmatmul.msk.f32.vlgmr.msra.gmra.mxu2 %vm348_vm1, %v5980_v2  ;;  %v5968_v51 = vadd.f32 %v6901_v44, %v5967_v49 }
0x250f   :  { %v5972_v40 = vsel %vm5971_vm5, %v6901_v44, %v5968_v51 }
0x2510   :  { %v5977_v34 = vsel %vm5974_vm6, %v5976_v50, %v5972_v40  ;;  %v6618_v40 = vld [vmem:[%s9210_s8 + $0x20] ss:$0 sm:$0xff] }
0x2511   :  { %v5978_v43 = vmul.f32 %v5977_v34, %v5946_v47 }
0x2513   :  { %v5981_v18 = vadd.f32 %v5979_v58, %v5978_v43 }
0x2515   :  { %6521 = vmatmul.msk.f32.gmra.mxu2 %vm348_vm1, %v5981_v18 }
0x2590   :  { %v6006_v36 = vpop.f32.mrf.mxu2 }
0x2591   :  { %v6007_v38 = vadd.f32 %v6006_v36, %v5982_v30  ;;  %v6619_v36 = vld [vmem:[%s9210_s8 + $0x21] ss:$0 sm:$0xff] }
0x2593   :  { %v6012_v53 = vmax.f32 %v6007_v38, 0.0 }
0x2595   :  { %6522 = vmatmul.msk.f32.vlgmr.msra.gmra.mxu0 %vm1286_vm13, %v6012_v53 }
0x2598   :  { %v6009_v7 = vpop.f32.mrf.mxu2 }
0x2599   :  { %v6010_v16 = vadd.f32 %v6009_v7, %v5982_v30 }
0x259b   :  { %v6013_v54 = vmax.f32 %v6010_v16, 0.0 }
0x259d   :  { %6523 = vmatmul.msk.f32.gmra.mxu0 %vm1286_vm13, %v6013_v54 }
0x2612   :  { %v6038_v13 = vpop.f32.mrf.mxu0 }
0x2613   :  { %v6039_v37 = vadd.f32 %v6038_v13, %v6014_v63 }
0x2615   :  { %v6044_v4 = vadd.f32 %v6039_v37, %v9106_v14 }
0x2617   :  { %v6049_v21 = vsel %vm348_vm1, %v6044_v4, 0.0 }
0x2618   :  { %6050 = vadd.xlane.f32.xlu1 %v6049_v21 }
0x261a   :  { %v6041_v33 = vpop.f32.mrf.mxu0 }
0x261b   :  { %v6042_v39 = vadd.f32 %v6041_v33, %v6014_v63 }
0x261d   :  { %v6045_v52 = vadd.f32 %v6042_v39, %v9111_v23 }
0x261f   :  { %v6052_v42 = vsel %vm348_vm1, %v6045_v52, 0.0 }
0x2620   :  { %6053 = vadd.xlane.f32.xlu0 %v6052_v42 }
0x268b   :  { %v6051_v45 = vpop.xlane.xlu1 %6050 }
0x268c   :  { %v6055_v56 = vmul.f32 %v6051_v45, %v7194_v10 }
0x268e   :  { %v6057_v62 = vsub.f32 %v6044_v4, %v6055_v56 }
0x2690   :  { %v6059_v6 = vmul.f32 %v6057_v62, %v6057_v62  ;;  %v6094_v57 = vmul.f32 %v6618_v40, %v6057_v62 }
0x2692   :  { %v6061_v60 = vsel %vm348_vm1, %v6059_v6, 0.0 }
0x2693   :  { %v6054_v48 = vpop.xlane.xlu0 %6053  ;;  %6062 = vadd.xlane.f32.xlu2 %v6061_v60 }
0x2694   :  { %v6056_v14 = vmul.f32 %v6054_v48, %v7194_v10 }
0x2696   :  { %v9184_v3 = vsub.f32 %v6045_v52, %v6056_v14 }
0x2698   :  { %v6060_v55 = vmul.f32 %v9184_v3, %v9184_v3  ;;  %v6095_v21 = vmul.f32 %v6618_v40, %v9184_v3 }
0x269a   :  { %v6064_v23 = vsel %vm348_vm1, %v6060_v55, 0.0 }
0x269b   :  { %6065 = vadd.xlane.f32.xlu1 %v6064_v23 }
0x2706   :  { %v6063_v25 = vpop.xlane.xlu2 %6062 }
0x2707   :  { %v6067_v15 = vmul.f32 0.032258064, %v6063_v25 }
0x2709   :  { %6902 = vrsqrt.f32 %v6067_v15  ;;  %vm6076_vm13 = vcmp.eq.f32.partialorder %v6067_v15, inf  ;;  %v6079_v44 = vand.u32 2147483648, %v6067_v15  ;;  %vm6078_vm7 = vcmp.eq.f32.partialorder %v6067_v15, 0.0 }
0x270e   :  { %v6066_v12 = vpop.xlane.xlu1 %6065 }
0x270f   :  { %v6903_v22 = vpop.eup %6902  ;;  %v6068_v17 = vmul.f32 0.032258064, %v6066_v12 }
0x2710   :  { %v6070_v20 = vmul.f32 %v6903_v22, %v6067_v15 }
0x2711   :  { %6904 = vrsqrt.f32 %v6068_v17  ;;  %vm6088_vm8 = vcmp.eq.f32.partialorder %v6068_v17, inf  ;;  %v6091_v61 = vand.u32 2147483648, %v6068_v17  ;;  %vm6090_vm15 = vcmp.eq.f32.partialorder %v6068_v17, 0.0 }
0x2712   :  { %v6071_v46 = vmul.f32 %v6903_v22, %v6070_v20 }
0x2714   :  { %v6072_v11 = vmul.f32 0.5, %v6071_v46 }
0x2716   :  { %v6073_v27 = vsub.f32 1.5, %v6072_v11 }
0x2717   :  { %v6905_v10 = vpop.eup %6904 }
0x2718   :  { %v6074_v1 = vmul.f32 %v6903_v22, %v6073_v27  ;;  %v6082_v8 = vmul.f32 %v6905_v10, %v6068_v17 }
0x271a   :  { %v6075_v29 = vmul.f32 %v6074_v1, %v6067_v15  ;;  %v6083_v0 = vmul.f32 %v6905_v10, %v6082_v8 }
0x271c   :  { %v6077_v24 = vsel %vm6076_vm13, %v6067_v15, %v6075_v29  ;;  %v6084_v26 = vmul.f32 0.5, %v6083_v0 }
0x271d   :  { %v6080_v19 = vsel %vm6078_vm7, %v6079_v44, %v6077_v24 }
0x271e   :  { %v6096_v58 = vadd.f32 1e-06, %v6080_v19  ;;  %v6085_v31 = vsub.f32 1.5, %v6084_v26 }
0x2720   :  { %6906 = vrcp.f32 %v6096_v58  ;;  %v6086_v9 = vmul.f32 %v6905_v10, %v6085_v31  ;;  %v6109_v47 = vand.u32 2147483648, %v6096_v58  ;;  %v6107_v43 = vand.u32 2147483647, %v6096_v58 }
0x2721   :  { %vm6103_vm11 = vweird.f32 %v6096_v58 }
0x2722   :  { %v6087_v41 = vmul.f32 %v6086_v9, %v6068_v17  ;;  %v6110_v28 = vor.u32 1.1754944e-38, %v6109_v47  ;;  %vm6108_vm12 = vcmp.eq.f32.partialorder %v6107_v43, 8.507059e+37 }
0x2724   :  { %v6089_v59 = vsel %vm6088_vm8, %v6068_v17, %v6087_v41 }
0x2725   :  { %v6092_v2 = vsel %vm6090_vm15, %v6091_v61, %v6089_v59 }
0x2726   :  { %v6907_v49 = vpop.eup %6906  ;;  %v6097_v5 = vadd.f32 1e-06, %v6092_v2 }
0x2727   :  { %v6099_v51 = vmul.f32 %v6907_v49, %v6096_v58  ;;  %vm6104_vm10 = vweird.f32 %v6907_v49 }
0x2728   :  { %6908 = vrcp.f32 %v6097_v5  ;;  %vm6105_vm9 = vmor %vm6103_vm11, %vm6104_vm10  ;;  %v6124_v16 = vand.u32 2147483648, %v6097_v5  ;;  %v6122_v63 = vand.u32 2147483647, %v6097_v5  ;;  %vm6118_vm2 = vweird.f32 %v6097_v5 }
0x2729   :  { %v6100_v50 = vsub.f32 1.0, %v6099_v51 }
0x272a   :  { %v6125_v4 = vor.u32 1.1754944e-38, %v6124_v16  ;;  %vm6123_vm4 = vcmp.eq.f32.partialorder %v6122_v63, 8.507059e+37 }
0x272b   :  { %v6101_v34 = vmul.f32 %v6907_v49, %v6100_v50 }
0x272d   :  { %v6102_v18 = vadd.f32 %v6907_v49, %v6101_v34 }
0x272e   :  { %v6909_v32 = vpop.eup %6908 }
0x272f   :  { %v6106_v35 = vsel %vm6105_vm9, %v6907_v49, %v6102_v18  ;;  %v6114_v30 = vmul.f32 %v6909_v32, %v6097_v5  ;;  %vm6119_vm14 = vweird.f32 %v6909_v32 }
0x2730   :  { %v6111_v38 = vsel %vm6108_vm12, %v6110_v28, %v6106_v35  ;;  %vm6120_vm3 = vmor %vm6118_vm2, %vm6119_vm14 }
0x2731   :  { %v6112_v53 = vmul.f32 %v6111_v38, %v6094_v57  ;;  %v6115_v7 = vsub.f32 1.0, %v6114_v30 }
0x2733   :  { %v6116_v54 = vmul.f32 %v6909_v32, %v6115_v7  ;;  %v6129_v13 = vadd.f32 %v6619_v36, %v6112_v53 }
0x2735   :  { %v6117_v37 = vadd.f32 %v6909_v32, %v6116_v54  ;;  %6131 = vst.msk [vmem:[#allocation9] sm:$0xff] %vm348_vm1, %v6129_v13 }
0x2737   :  { %v6121_v33 = vsel %vm6120_vm3, %v6909_v32, %v6117_v37 }
0x2738   :  { %v6126_v39 = vsel %vm6123_vm4, %v6125_v4, %v6121_v33 }
0x2739   :  { %v6127_v52 = vmul.f32 %v6126_v39, %v6095_v21 }
0x273b   :  { %v6130_v42 = vadd.f32 %v6619_v36, %v6127_v52 }
0x273d   :  { %6132 = vst.msk [vmem:[#allocation9 + $0x8] sm:$0xff] %vm348_vm1, %v6130_v42 }
0x273e   :  { %6145 = dma.vmem_to_hbm [thread:$0]  %s6138_s26, 256, %s6140_s22, [#allocation5], %s6993_s12, %s6993_s12, %s6989_s29  }
0x273f   :  { %6972 = dma.done.wait [#allocation5], 256  }
0x2740   :  { %6973 = vsyncadd [#allocation5], 4294967040 }
0x2741   :  { %6150 = vsyncpa [#allocation5], 1 }
0x2742   :  { %6151 = vsyncpa [#allocation6], 1 }
0x2743   :  { %6152 = vsyncpa [#allocation8], 1 }

</bundles_post_ra>
